<compile_context>
chip_gen: v7x
topology: tpu7x:2x2x1
jax: 0.10.0
libtpu: 0.0.40
codegen_flags: <defaults>
</compile_context>

<pallas_src>
import functools

import jax
import jax.numpy as jnp
from jax.experimental import pallas as pl
from jax.experimental.pallas import tpu as pltpu

KH = KW = 4
LEAKY_SLOPE = 0.2
BN_EPS = 1e-5
VMEM_LIMIT_BYTES = 32 * 1024 * 1024  # >= v5e's 16 MiB default, <= v7x physical 64 MiB


# --------------------------------------------------------------------------------------
# Small helpers
# --------------------------------------------------------------------------------------
def _round_up(x, m):
    return (x + m - 1) // m * m


def _choose_tm(m):
    # 256-row tiles when there is plenty of work; otherwise split into (at least) two
    # 16-aligned tiles so v7x's two TensorCores both get a block on the parallel grid.
    if m >= 512:
        return 256
    return max(16, _round_up((m + 1) // 2, 16))


# --------------------------------------------------------------------------------------
# Pallas kernels
# --------------------------------------------------------------------------------------
def _conv_matmul_kernel(a_ref, w_ref, b_ref, o_ref, *, negative_slope):
    # a_ref: (TM, K) bf16, w_ref: (K, TN) bf16, b_ref: (1, TN) f32, o_ref: (TM, TN).
    # Single full-K MXU pass with f32 accumulation; bias + optional LeakyReLU fused.
    acc = jnp.dot(a_ref[...], w_ref[...], preferred_element_type=jnp.float32)
    out = acc + b_ref[...]
    if negative_slope is not None:
        out = jnp.where(out >= 0, out, negative_slope * out)
    o_ref[...] = out.astype(o_ref.dtype)


def _conv_matmul_stats_kernel(a_ref, w_ref, b_ref, o_ref, sum_ref, sq_ref):
    # Conv matmul (bias is zero, no activation for BN layers) that also emits the
    # per-tile BatchNorm partials (sum, sum of squares) from the f32 accumulator.
    # Zero-padded A rows produce exactly-zero output rows, so they do not perturb stats.
    acc = jnp.dot(a_ref[...], w_ref[...], preferred_element_type=jnp.float32)
    out = acc + b_ref[...]
    o_ref[...] = out.astype(o_ref.dtype)
    sum_ref[...] = jnp.sum(out, axis=0, keepdims=True)[None]          # (1, 1, TN)
    sq_ref[...] = jnp.sum(out * out, axis=0, keepdims=True)[None]     # (1, 1, TN)


def _bn_apply_kernel(y_ref, scale_ref, shift_ref, o_ref, *, slope):
    # y_ref: (TM, C) bf16; scale/shift: (1, C) f32 (precomputed from batch statistics).
    y = y_ref[...].astype(jnp.float32)
    out = y * scale_ref[...] + shift_ref[...]
    o_ref[...] = jnp.where(out >= 0, out, slope * out).astype(o_ref.dtype)


# --------------------------------------------------------------------------------------
# Pallas wrappers
# --------------------------------------------------------------------------------------
def conv_matmul(a, w2d, bias2d, negative_slope, out_dtype, tm, tn, with_stats):
    m_p, k = a.shape
    _, cout_p = w2d.shape
    n_m = m_p // tm
    n_n = cout_p // tn
    grid = (n_n, n_m)  # m innermost -> weight / bias tiles stay resident across m steps

    in_specs = [
        pl.BlockSpec((tm, k), lambda j, i: (i, 0)),
        pl.BlockSpec((k, tn), lambda j, i: (0, j)),
        pl.BlockSpec((1, tn), lambda j, i: (0, j)),
    ]
    cparams = pltpu.CompilerParams(
        dimension_semantics=("parallel", "parallel"),
        vmem_limit_bytes=VMEM_LIMIT_BYTES)

    if with_stats:
        return pl.pallas_call(
            _conv_matmul_stats_kernel,
            out_shape=(jax.ShapeDtypeStruct((m_p, cout_p), out_dtype),
                       jax.ShapeDtypeStruct((n_m, 1, cout_p), jnp.float32),
                       jax.ShapeDtypeStruct((n_m, 1, cout_p), jnp.float32)),
            grid=grid,
            in_specs=in_specs,
            out_specs=(pl.BlockSpec((tm, tn), lambda j, i: (i, j)),
                       pl.BlockSpec((1, 1, tn), lambda j, i: (i, 0, j)),
                       pl.BlockSpec((1, 1, tn), lambda j, i: (i, 0, j))),
            compiler_params=cparams,
        )(a, w2d, bias2d)

    kernel = functools.partial(_conv_matmul_kernel, negative_slope=negative_slope)
    return pl.pallas_call(
        kernel,
        out_shape=jax.ShapeDtypeStruct((m_p, cout_p), out_dtype),
        grid=grid,
        in_specs=in_specs,
        out_specs=pl.BlockSpec((tm, tn), lambda j, i: (i, j)),
        compiler_params=cparams,
    )(a, w2d, bias2d)


def bn_apply(y, scale, shift, tm):
    """Tiled normalize (precomputed per-channel scale/shift) + LeakyReLU(0.2)."""
    m_p, c = y.shape
    return pl.pallas_call(
        functools.partial(_bn_apply_kernel, slope=LEAKY_SLOPE),
        out_shape=jax.ShapeDtypeStruct((m_p, c), jnp.bfloat16),
        grid=(m_p // tm,),
        in_specs=[pl.BlockSpec((tm, c), lambda i: (i, 0)),
                  pl.BlockSpec((1, c), lambda i: (0, 0)),
                  pl.BlockSpec((1, c), lambda i: (0, 0))],
        out_specs=pl.BlockSpec((tm, c), lambda i: (i, 0)),
        compiler_params=pltpu.CompilerParams(
            dimension_semantics=("parallel",),
            vmem_limit_bytes=VMEM_LIMIT_BYTES),
    )(y, scale.reshape(1, c), shift.reshape(1, c))


# --------------------------------------------------------------------------------------
# Plain-JAX glue: reflect pad + im2col (data movement only; all FLOPs are in Pallas)
# --------------------------------------------------------------------------------------
def _im2col(xp, stride):
    # xp: (N, Hp, Wp, C) reflect-padded NHWC (bf16)
    n, hp, wp, c = xp.shape
    oh = (hp - KH) // stride + 1
    ow = (wp - KW) // stride + 1
    cols = []
    for i in range(KH):
        for j in range(KW):
            cols.append(xp[:, i:i + (oh - 1) * stride + 1:stride,
                           j:j + (ow - 1) * stride + 1:stride, :])
    patches = jnp.stack(cols, axis=3)                    # (N, OH, OW, KH*KW, C)
    return patches.reshape(n * oh * ow, KH * KW * c), oh, ow


def conv_layer(x_nhwc, w, bias, stride, negative_slope, out_dtype, with_stats=False):
    """Reflect-pad + im2col + tiled full-K Pallas matmul (bias / LeakyReLU / stats fused)."""
    n = x_nhwc.shape[0]
    cin, cout = w.shape[2], w.shape[3]

    xp = jnp.pad(x_nhwc.astype(jnp.bfloat16), ((0, 0), (1, 1), (1, 1), (0, 0)),
                 mode="reflect")

    # Pad input channels so K = KH*KW*cin is a multiple of 128 (lane-dense A tiles).
    cin_p = _round_up(cin, 8)
    if cin_p != cin:
        xp = jnp.pad(xp, ((0, 0), (0, 0), (0, 0), (0, cin_p - cin)))
        w = jnp.pad(w, ((0, 0), (0, 0), (0, cin_p - cin), (0, 0)))

    a, oh, ow = _im2col(xp, stride)
    m = a.shape[0]

    # Pad output channels to a multiple of 128 (lane-dense output tiles).
    cout_p = _round_up(cout, 128)
    w2d = w.reshape(-1, cout).astype(jnp.bfloat16)       # (KH*KW*cin_p, Cout)
    b = bias.astype(jnp.float32)
    if cout_p != cout:
        w2d = jnp.pad(w2d, ((0, 0), (0, cout_p - cout)))
        b = jnp.pad(b, (0, cout_p - cout))

    tm = _choose_tm(m)
    m_p = _round_up(m, tm)
    if m_p != m:
        a = jnp.pad(a, ((0, m_p - m), (0, 0)))

    tn = 256 if cout_p % 256 == 0 else 128
    result = conv_matmul(a, w2d, b.reshape(1, cout_p), negative_slope, out_dtype,
                         tm, tn, with_stats)
    return result, (n, m, oh, ow, cout, tm)


def cnn_block(x_nhwc, w, gamma, beta, stride):
    cout = w.shape[-1]
    zero_bias = jnp.zeros((cout,), jnp.float32)          # Conv2d(..., bias=False)
    (conv_out, sum_p, sq_p), (n, m, oh, ow, _, tm) = conv_layer(
        x_nhwc, w, zero_bias, stride, None, jnp.bfloat16, with_stats=True)

    # Tiny final reduce of per-m-tile partials; train-mode (biased) batch statistics.
    sums = jnp.sum(sum_p[:, 0, :cout], axis=0)
    sqs = jnp.sum(sq_p[:, 0, :cout], axis=0)
    inv_n = 1.0 / m                                      # m = true (un-padded) row count
    mean = sums * inv_n
    var = sqs * inv_n - mean * mean
    scale = gamma * jax.lax.rsqrt(var + BN_EPS)
    shift = beta - mean * scale

    cout_p = conv_out.shape[1]
    if cout_p != cout:                                   # (never hit: BN couts are 128-mult)
        scale = jnp.pad(scale, (0, cout_p - cout))
        shift = jnp.pad(shift, (0, cout_p - cout))

    y = bn_apply(conv_out, scale.astype(jnp.float32), shift.astype(jnp.float32), tm)
    return y[:m, :cout].reshape(n, oh, ow, cout)


# --------------------------------------------------------------------------------------
# Discriminator: in_channels=3, features=[64, 128, 256, 512]
# --------------------------------------------------------------------------------------
def init_params(key, in_channels=3, features=(64, 128, 256, 512)):
    params = {}

    def conv_w(k, cin, cout):
        return jax.random.normal(k, (KH, KW, cin, cout), jnp.float32) * 0.05

    # initial: Conv2d(2*in_channels, f0, 4, 2, pad=1, reflect, bias=True) + LeakyReLU
    params["w0"] = conv_w(jax.random.fold_in(key, 0), 2 * in_channels, features[0])
    params["b0"] = jax.random.normal(
        jax.random.fold_in(key, 100), (features[0],), jnp.float32) * 0.05

    cin = features[0]
    for idx, f in enumerate(features[1:], start=1):
        params[f"w{idx}"] = conv_w(jax.random.fold_in(key, idx), cin, f)  # bias=False
        params[f"g{idx}"] = jnp.ones((f,), jnp.float32)      # BN gamma
        params[f"be{idx}"] = jnp.zeros((f,), jnp.float32)    # BN beta
        cin = f

    # final: Conv2d(features[-1], 1, 4, 1, pad=1, reflect, bias=True)
    params["w4"] = conv_w(jax.random.fold_in(key, 4), cin, 1)
    params["b4"] = jax.random.normal(
        jax.random.fold_in(key, 104), (1,), jnp.float32) * 0.05
    return params


def discriminator_forward(x, y, params):
    # x, y: NCHW (PyTorch convention).  bf16 NHWC internally end-to-end.
    h = jnp.concatenate([x, y], axis=1).astype(jnp.bfloat16)  # (N, 2*Cin, H, W)
    h = jnp.transpose(h, (0, 2, 3, 1))                        # -> NHWC

    # initial: conv stride 2 (bias) + LeakyReLU(0.2) fused in the matmul epilogue
    out_p, (n, m, oh, ow, cout, _) = conv_layer(
        h, params["w0"], params["b0"], 2, LEAKY_SLOPE, jnp.bfloat16)
    h = out_p[:m, :cout].reshape(n, oh, ow, cout)

    # CNNBlocks: 64->128 (s2), 128->256 (s2), 256->512 (s1)
    h = cnn_block(h, params["w1"], params["g1"], params["be1"], stride=2)
    h = cnn_block(h, params["w2"], params["g2"], params["be2"], stride=2)
    h = cnn_block(h, params["w3"], params["g3"], params["be3"], stride=1)

    # final conv: stride 1, bias, no activation (cout=1 zero-padded to 128 lanes)
    out_p, (n, m, oh, ow, cout, _) = conv_layer(
        h, params["w4"], params["b4"], 1, None, jnp.float32)
    h = out_p[:m, :cout].reshape(n, oh, ow, cout)

    return jnp.transpose(h, (0, 3, 1, 2))                     # NCHW: (N, 1, OH, OW)


if __name__ == "__main__":
    key = jax.random.PRNGKey(0)
    kx, ky, kp = jax.random.split(key, 3)

    N, C, S = 2, 3, 32
    x = jax.random.normal(kx, (N, C, S, S), jnp.float32)
    y = jax.random.normal(ky, (N, C, S, S), jnp.float32)

    params = init_params(kp, in_channels=C)

    fwd = jax.jit(discriminator_forward)
    out = jax.block_until_ready(fwd(x, y, params))

    # 32 -> 16 -> 8 -> 4 -> 3 -> 2  => patch map (N, 1, 2, 2)
    assert out.shape == (N, 1, 2, 2), out.shape
    assert jnp.all(jnp.isfinite(out))
    print("KERNEL_OK")
</pallas_src>

<mosaic_0001>
module attributes {stable_mosaic.version = 11 : i64} {
  func.func @_conv_matmul_kernel(%arg0: i32, %arg1: i32, %arg2: memref<256x128xbf16, #tpu.memory_space<vmem>>, %arg3: memref<128x128xbf16, #tpu.memory_space<vmem>>, %arg4: memref<1x128xf32, #tpu.memory_space<vmem>>, %arg5: memref<256x128xbf16, #tpu.memory_space<vmem>>) attributes {dimension_semantics = [#tpu.dimension_semantics<parallel>, #tpu.dimension_semantics<parallel>], iteration_bounds = array<i64: 1, 2>, scalar_prefetch = 0 : i64, scratch_operands = 0 : i64, tpu.core_type = #tpu.core_type<tc>, window_params = [{transform_indices = @transform_0, window_bounds = array<i64: 256, 128>}, {transform_indices = @transform_1, window_bounds = array<i64: 128, 128>}, {transform_indices = @transform_2, window_bounds = array<i64: 1, 128>}, {transform_indices = @transform_3, window_bounds = array<i64: 256, 128>}]} {
    %c0 = arith.constant 0 : index
    %c0_0 = arith.constant 0 : index
    %0 = vector.load %arg2[%c0, %c0_0] : memref<256x128xbf16, #tpu.memory_space<vmem>>, vector<256x128xbf16>
    %c0_1 = arith.constant 0 : index
    %c0_2 = arith.constant 0 : index
    %1 = vector.load %arg3[%c0_1, %c0_2] : memref<128x128xbf16, #tpu.memory_space<vmem>>, vector<128x128xbf16>
    %cst = arith.constant dense<0.000000e+00> : vector<256x128xf32>
    %2 = tpu.matmul %0, %1, %cst {dimension_numbers = #tpu.dot_dimension_numbers<[1], [0], [0], [1], [0, 0, 1, 1], [], []>} : vector<256x128xbf16>, vector<128x128xbf16>, vector<256x128xf32> -> vector<256x128xf32>
    %c0_3 = arith.constant 0 : index
    %c0_4 = arith.constant 0 : index
    %3 = vector.load %arg4[%c0_3, %c0_4] : memref<1x128xf32, #tpu.memory_space<vmem>>, vector<1x128xf32>
    %4 = vector.broadcast %3 : vector<1x128xf32> to vector<256x128xf32>
    %5 = arith.addf %2, %4 : vector<256x128xf32>
    %cst_5 = arith.constant 0.000000e+00 : f32
    %6 = vector.broadcast %cst_5 : f32 to vector<256x128xf32>
    %7 = arith.cmpf oge, %5, %6 : vector<256x128xf32>
    %cst_6 = arith.constant 2.000000e-01 : f32
    %8 = vector.broadcast %cst_6 : f32 to vector<256x128xf32>
    %9 = arith.mulf %8, %5 : vector<256x128xf32>
    %10 = arith.select %7, %5, %9 : vector<256x128xi1>, vector<256x128xf32>
    %11 = arith.truncf %10 : vector<256x128xf32> to vector<256x128xbf16>
    %c0_7 = arith.constant 0 : index
    %c0_8 = arith.constant 0 : index
    %12 = vector.load %arg5[%c0_7, %c0_8] : memref<256x128xbf16, #tpu.memory_space<vmem>>, vector<256x128xbf16>
    tpu.vector_store %arg5[%c0_7, %c0_8], %11 {strides = array<i32>} : memref<256x128xbf16, #tpu.memory_space<vmem>>, vector<256x128xbf16>,
    return
  }
  func.func @transform_0(%arg0: i32, %arg1: i32) -> (i32, i32) {
    %c0_i32 = arith.constant 0 : i32
    %c0_i32_0 = arith.constant 0 : i32
    return %arg1, %c0_i32 : i32, i32
  }
  func.func @transform_1(%arg0: i32, %arg1: i32) -> (i32, i32) {
    %c0_i32 = arith.constant 0 : i32
    %c0_i32_0 = arith.constant 0 : i32
    return %c0_i32, %arg0 : i32, i32
  }
  func.func @transform_2(%arg0: i32, %arg1: i32) -> (i32, i32) {
    %c0_i32 = arith.constant 0 : i32
    %c0_i32_0 = arith.constant 0 : i32
    return %c0_i32, %arg0 : i32, i32
  }
  func.func @transform_3(%arg0: i32, %arg1: i32) -> (i32, i32) {
    %c0_i32 = arith.constant 0 : i32
    return %arg1, %arg0 : i32, i32
  }
}

module attributes {stable_mosaic.version = 11 : i64} {
  func.func @_conv_matmul_stats_kernel(%arg0: i32, %arg1: i32, %arg2: memref<64x1024xbf16, #tpu.memory_space<vmem>>, %arg3: memref<1024x128xbf16, #tpu.memory_space<vmem>>, %arg4: memref<1x128xf32, #tpu.memory_space<vmem>>, %arg5: memref<64x128xbf16, #tpu.memory_space<vmem>>, %arg6: memref<1x1x128xf32, #tpu.memory_space<vmem>>, %arg7: memref<1x1x128xf32, #tpu.memory_space<vmem>>) attributes {dimension_semantics = [#tpu.dimension_semantics<parallel>, #tpu.dimension_semantics<parallel>], iteration_bounds = array<i64: 1, 2>, scalar_prefetch = 0 : i64, scratch_operands = 0 : i64, tpu.core_type = #tpu.core_type<tc>, window_params = [{transform_indices = @transform_0, window_bounds = array<i64: 64, 1024>}, {transform_indices = @transform_1, window_bounds = array<i64: 1024, 128>}, {transform_indices = @transform_2, window_bounds = array<i64: 1, 128>}, {transform_indices = @transform_3, window_bounds = array<i64: 64, 128>}, {transform_indices = @transform_4, window_bounds = array<i64: 1, 1, 128>}, {transform_indices = @transform_5, window_bounds = array<i64: 1, 1, 128>}]} {
    %c0 = arith.constant 0 : index
    %c0_0 = arith.constant 0 : index
    %0 = vector.load %arg2[%c0, %c0_0] : memref<64x1024xbf16, #tpu.memory_space<vmem>>, vector<64x1024xbf16>
    %c0_1 = arith.constant 0 : index
    %c0_2 = arith.constant 0 : index
    %1 = vector.load %arg3[%c0_1, %c0_2] : memref<1024x128xbf16, #tpu.memory_space<vmem>>, vector<1024x128xbf16>
    %cst = arith.constant dense<0.000000e+00> : vector<64x128xf32>
    %2 = tpu.matmul %0, %1, %cst {dimension_numbers = #tpu.dot_dimension_numbers<[1], [0], [0], [1], [0, 0, 1, 1], [], []>} : vector<64x1024xbf16>, vector<1024x128xbf16>, vector<64x128xf32> -> vector<64x128xf32>
    %c0_3 = arith.constant 0 : index
    %c0_4 = arith.constant 0 : index
    %3 = vector.load %arg4[%c0_3, %c0_4] : memref<1x128xf32, #tpu.memory_space<vmem>>, vector<1x128xf32>
    %4 = vector.broadcast %3 : vector<1x128xf32> to vector<64x128xf32>
    %5 = arith.addf %2, %4 : vector<64x128xf32>
    %6 = arith.truncf %5 : vector<64x128xf32> to vector<64x128xbf16>
    %c0_5 = arith.constant 0 : index
    %c0_6 = arith.constant 0 : index
    %7 = vector.load %arg5[%c0_5, %c0_6] : memref<64x128xbf16, #tpu.memory_space<vmem>>, vector<64x128xbf16>
    tpu.vector_store %arg5[%c0_5, %c0_6], %6 {strides = array<i32>} : memref<64x128xbf16, #tpu.memory_space<vmem>>, vector<64x128xbf16>,
    %cst_7 = arith.constant dense<0.000000e+00> : vector<128xf32>
    %8 = vector.multi_reduction <add>, %5, %cst_7 [0] : vector<64x128xf32> to vector<128xf32>
    %9 = vector.shape_cast %8 : vector<128xf32> to vector<1x128xf32>
    %10 = vector.shape_cast %9 : vector<1x128xf32> to vector<1x1x128xf32>
    %c0_8 = arith.constant 0 : index
    %c0_9 = arith.constant 0 : index
    %c0_10 = arith.constant 0 : index
    %11 = vector.load %arg6[%c0_8, %c0_9, %c0_10] : memref<1x1x128xf32, #tpu.memory_space<vmem>>, vector<1x1x128xf32>
    tpu.vector_store %arg6[%c0_8, %c0_9, %c0_10], %10 {strides = array<i32>} : memref<1x1x128xf32, #tpu.memory_space<vmem>>, vector<1x1x128xf32>,
    %12 = arith.mulf %5, %5 : vector<64x128xf32>
    %cst_11 = arith.constant dense<0.000000e+00> : vector<128xf32>
    %13 = vector.multi_reduction <add>, %12, %cst_11 [0] : vector<64x128xf32> to vector<128xf32>
    %14 = vector.shape_cast %13 : vector<128xf32> to vector<1x128xf32>
    %15 = vector.shape_cast %14 : vector<1x128xf32> to vector<1x1x128xf32>
    %c0_12 = arith.constant 0 : index
    %c0_13 = arith.constant 0 : index
    %c0_14 = arith.constant 0 : index
    %16 = vector.load %arg7[%c0_12, %c0_13, %c0_14] : memref<1x1x128xf32, #tpu.memory_space<vmem>>, vector<1x1x128xf32>
    tpu.vector_store %arg7[%c0_12, %c0_13, %c0_14], %15 {strides = array<i32>} : memref<1x1x128xf32, #tpu.memory_space<vmem>>, vector<1x1x128xf32>,
    return
  }
  func.func @transform_0(%arg0: i32, %arg1: i32) -> (i32, i32) {
    %c0_i32 = arith.constant 0 : i32
    %c0_i32_0 = arith.constant 0 : i32
    return %arg1, %c0_i32 : i32, i32
  }
  func.func @transform_1(%arg0: i32, %arg1: i32) -> (i32, i32) {
    %c0_i32 = arith.constant 0 : i32
    %c0_i32_0 = arith.constant 0 : i32
    return %c0_i32, %arg0 : i32, i32
  }
  func.func @transform_2(%arg0: i32, %arg1: i32) -> (i32, i32) {
    %c0_i32 = arith.constant 0 : i32
    %c0_i32_0 = arith.constant 0 : i32
    return %c0_i32, %arg0 : i32, i32
  }
  func.func @transform_3(%arg0: i32, %arg1: i32) -> (i32, i32) {
    %c0_i32 = arith.constant 0 : i32
    return %arg1, %arg0 : i32, i32
  }
  func.func @transform_4(%arg0: i32, %arg1: i32) -> (i32, i32, i32) {
    %c0_i32 = arith.constant 0 : i32
    %c0_i32_0 = arith.constant 0 : i32
    return %arg1, %c0_i32, %arg0 : i32, i32, i32
  }
  func.func @transform_5(%arg0: i32, %arg1: i32) -> (i32, i32, i32) {
    %c0_i32 = arith.constant 0 : i32
    %c0_i32_0 = arith.constant 0 : i32
    return %arg1, %c0_i32, %arg0 : i32, i32, i32
  }
}

module attributes {stable_mosaic.version = 11 : i64} {
  func.func @_bn_apply_kernel(%arg0: i32, %arg1: memref<64x128xbf16, #tpu.memory_space<vmem>>, %arg2: memref<1x128xf32, #tpu.memory_space<vmem>>, %arg3: memref<1x128xf32, #tpu.memory_space<vmem>>, %arg4: memref<64x128xbf16, #tpu.memory_space<vmem>>) attributes {dimension_semantics = [#tpu.dimension_semantics<parallel>], iteration_bounds = array<i64: 2>, scalar_prefetch = 0 : i64, scratch_operands = 0 : i64, tpu.core_type = #tpu.core_type<tc>, window_params = [{transform_indices = @transform_0, window_bounds = array<i64: 64, 128>}, {pipeline_mode = #tpu.pipeline_mode<synchronous>, transform_indices = @transform_1, window_bounds = array<i64: 1, 128>}, {pipeline_mode = #tpu.pipeline_mode<synchronous>, transform_indices = @transform_2, window_bounds = array<i64: 1, 128>}, {transform_indices = @transform_3, window_bounds = array<i64: 64, 128>}]} {
    %c0 = arith.constant 0 : index
    %c0_0 = arith.constant 0 : index
    %0 = vector.load %arg1[%c0, %c0_0] : memref<64x128xbf16, #tpu.memory_space<vmem>>, vector<64x128xbf16>
    %1 = arith.extf %0 : vector<64x128xbf16> to vector<64x128xf32>
    %c0_1 = arith.constant 0 : index
    %c0_2 = arith.constant 0 : index
    %2 = vector.load %arg2[%c0_1, %c0_2] : memref<1x128xf32, #tpu.memory_space<vmem>>, vector<1x128xf32>
    %3 = vector.broadcast %2 : vector<1x128xf32> to vector<64x128xf32>
    %4 = arith.mulf %1, %3 : vector<64x128xf32>
    %c0_3 = arith.constant 0 : index
    %c0_4 = arith.constant 0 : index
    %5 = vector.load %arg3[%c0_3, %c0_4] : memref<1x128xf32, #tpu.memory_space<vmem>>, vector<1x128xf32>
    %6 = vector.broadcast %5 : vector<1x128xf32> to vector<64x128xf32>
    %7 = arith.addf %4, %6 : vector<64x128xf32>
    %cst = arith.constant 0.000000e+00 : f32
    %8 = vector.broadcast %cst : f32 to vector<64x128xf32>
    %9 = arith.cmpf oge, %7, %8 : vector<64x128xf32>
    %cst_5 = arith.constant 2.000000e-01 : f32
    %10 = vector.broadcast %cst_5 : f32 to vector<64x128xf32>
    %11 = arith.mulf %10, %7 : vector<64x128xf32>
    %12 = arith.select %9, %7, %11 : vector<64x128xi1>, vector<64x128xf32>
    %13 = arith.truncf %12 : vector<64x128xf32> to vector<64x128xbf16>
    %c0_6 = arith.constant 0 : index
    %c0_7 = arith.constant 0 : index
    %14 = vector.load %arg4[%c0_6, %c0_7] : memref<64x128xbf16, #tpu.memory_space<vmem>>, vector<64x128xbf16>
    tpu.vector_store %arg4[%c0_6, %c0_7], %13 {strides = array<i32>} : memref<64x128xbf16, #tpu.memory_space<vmem>>, vector<64x128xbf16>,
    return
  }
  func.func @transform_0(%arg0: i32) -> (i32, i32) {
    %c0_i32 = arith.constant 0 : i32
    %c0_i32_0 = arith.constant 0 : i32
    return %arg0, %c0_i32 : i32, i32
  }
  func.func @transform_1(%arg0: i32) -> (i32, i32) {
    %c0_i32 = arith.constant 0 : i32
    %c0_i32_0 = arith.constant 0 : i32
    %c0_i32_1 = arith.constant 0 : i32
    return %c0_i32, %c0_i32_0 : i32, i32
  }
  func.func @transform_2(%arg0: i32) -> (i32, i32) {
    %c0_i32 = arith.constant 0 : i32
    %c0_i32_0 = arith.constant 0 : i32
    %c0_i32_1 = arith.constant 0 : i32
    return %c0_i32, %c0_i32_0 : i32, i32
  }
  func.func @transform_3(%arg0: i32) -> (i32, i32) {
    %c0_i32 = arith.constant 0 : i32
    %c0_i32_0 = arith.constant 0 : i32
    return %arg0, %c0_i32 : i32, i32
  }
}

module attributes {stable_mosaic.version = 11 : i64} {
  func.func @_conv_matmul_stats_kernel(%arg0: i32, %arg1: i32, %arg2: memref<16x2048xbf16, #tpu.memory_space<vmem>>, %arg3: memref<2048x256xbf16, #tpu.memory_space<vmem>>, %arg4: memref<1x256xf32, #tpu.memory_space<vmem>>, %arg5: memref<16x256xbf16, #tpu.memory_space<vmem>>, %arg6: memref<1x1x256xf32, #tpu.memory_space<vmem>>, %arg7: memref<1x1x256xf32, #tpu.memory_space<vmem>>) attributes {dimension_semantics = [#tpu.dimension_semantics<parallel>, #tpu.dimension_semantics<parallel>], iteration_bounds = array<i64: 1, 2>, scalar_prefetch = 0 : i64, scratch_operands = 0 : i64, tpu.core_type = #tpu.core_type<tc>, window_params = [{transform_indices = @transform_0, window_bounds = array<i64: 16, 2048>}, {transform_indices = @transform_1, window_bounds = array<i64: 2048, 256>}, {transform_indices = @transform_2, window_bounds = array<i64: 1, 256>}, {transform_indices = @transform_3, window_bounds = array<i64: 16, 256>}, {transform_indices = @transform_4, window_bounds = array<i64: 1, 1, 256>}, {transform_indices = @transform_5, window_bounds = array<i64: 1, 1, 256>}]} {
    %c0 = arith.constant 0 : index
    %c0_0 = arith.constant 0 : index
    %0 = vector.load %arg2[%c0, %c0_0] : memref<16x2048xbf16, #tpu.memory_space<vmem>>, vector<16x2048xbf16>
    %c0_1 = arith.constant 0 : index
    %c0_2 = arith.constant 0 : index
    %1 = vector.load %arg3[%c0_1, %c0_2] : memref<2048x256xbf16, #tpu.memory_space<vmem>>, vector<2048x256xbf16>
    %cst = arith.constant dense<0.000000e+00> : vector<16x256xf32>
    %2 = tpu.matmul %0, %1, %cst {dimension_numbers = #tpu.dot_dimension_numbers<[1], [0], [0], [1], [0, 0, 1, 1], [], []>} : vector<16x2048xbf16>, vector<2048x256xbf16>, vector<16x256xf32> -> vector<16x256xf32>
    %c0_3 = arith.constant 0 : index
    %c0_4 = arith.constant 0 : index
    %3 = vector.load %arg4[%c0_3, %c0_4] : memref<1x256xf32, #tpu.memory_space<vmem>>, vector<1x256xf32>
    %4 = vector.broadcast %3 : vector<1x256xf32> to vector<16x256xf32>
    %5 = arith.addf %2, %4 : vector<16x256xf32>
    %6 = arith.truncf %5 : vector<16x256xf32> to vector<16x256xbf16>
    %c0_5 = arith.constant 0 : index
    %c0_6 = arith.constant 0 : index
    %7 = vector.load %arg5[%c0_5, %c0_6] : memref<16x256xbf16, #tpu.memory_space<vmem>>, vector<16x256xbf16>
    tpu.vector_store %arg5[%c0_5, %c0_6], %6 {strides = array<i32>} : memref<16x256xbf16, #tpu.memory_space<vmem>>, vector<16x256xbf16>,
    %cst_7 = arith.constant dense<0.000000e+00> : vector<256xf32>
    %8 = vector.multi_reduction <add>, %5, %cst_7 [0] : vector<16x256xf32> to vector<256xf32>
    %9 = vector.shape_cast %8 : vector<256xf32> to vector<1x256xf32>
    %10 = vector.shape_cast %9 : vector<1x256xf32> to vector<1x1x256xf32>
    %c0_8 = arith.constant 0 : index
    %c0_9 = arith.constant 0 : index
    %c0_10 = arith.constant 0 : index
    %11 = vector.load %arg6[%c0_8, %c0_9, %c0_10] : memref<1x1x256xf32, #tpu.memory_space<vmem>>, vector<1x1x256xf32>
    tpu.vector_store %arg6[%c0_8, %c0_9, %c0_10], %10 {strides = array<i32>} : memref<1x1x256xf32, #tpu.memory_space<vmem>>, vector<1x1x256xf32>,
    %12 = arith.mulf %5, %5 : vector<16x256xf32>
    %cst_11 = arith.constant dense<0.000000e+00> : vector<256xf32>
    %13 = vector.multi_reduction <add>, %12, %cst_11 [0] : vector<16x256xf32> to vector<256xf32>
    %14 = vector.shape_cast %13 : vector<256xf32> to vector<1x256xf32>
    %15 = vector.shape_cast %14 : vector<1x256xf32> to vector<1x1x256xf32>
    %c0_12 = arith.constant 0 : index
    %c0_13 = arith.constant 0 : index
    %c0_14 = arith.constant 0 : index
    %16 = vector.load %arg7[%c0_12, %c0_13, %c0_14] : memref<1x1x256xf32, #tpu.memory_space<vmem>>, vector<1x1x256xf32>
    tpu.vector_store %arg7[%c0_12, %c0_13, %c0_14], %15 {strides = array<i32>} : memref<1x1x256xf32, #tpu.memory_space<vmem>>, vector<1x1x256xf32>,
    return
  }
  func.func @transform_0(%arg0: i32, %arg1: i32) -> (i32, i32) {
    %c0_i32 = arith.constant 0 : i32
    %c0_i32_0 = arith.constant 0 : i32
    return %arg1, %c0_i32 : i32, i32
  }
  func.func @transform_1(%arg0: i32, %arg1: i32) -> (i32, i32) {
    %c0_i32 = arith.constant 0 : i32
    %c0_i32_0 = arith.constant 0 : i32
    return %c0_i32, %arg0 : i32, i32
  }
  func.func @transform_2(%arg0: i32, %arg1: i32) -> (i32, i32) {
    %c0_i32 = arith.constant 0 : i32
    %c0_i32_0 = arith.constant 0 : i32
    return %c0_i32, %arg0 : i32, i32
  }
  func.func @transform_3(%arg0: i32, %arg1: i32) -> (i32, i32) {
    %c0_i32 = arith.constant 0 : i32
    return %arg1, %arg0 : i32, i32
  }
  func.func @transform_4(%arg0: i32, %arg1: i32) -> (i32, i32, i32) {
    %c0_i32 = arith.constant 0 : i32
    %c0_i32_0 = arith.constant 0 : i32
    return %arg1, %c0_i32, %arg0 : i32, i32, i32
  }
  func.func @transform_5(%arg0: i32, %arg1: i32) -> (i32, i32, i32) {
    %c0_i32 = arith.constant 0 : i32
    %c0_i32_0 = arith.constant 0 : i32
    return %arg1, %c0_i32, %arg0 : i32, i32, i32
  }
}

module attributes {stable_mosaic.version = 11 : i64} {
  func.func @_bn_apply_kernel(%arg0: i32, %arg1: memref<16x256xbf16, #tpu.memory_space<vmem>>, %arg2: memref<1x256xf32, #tpu.memory_space<vmem>>, %arg3: memref<1x256xf32, #tpu.memory_space<vmem>>, %arg4: memref<16x256xbf16, #tpu.memory_space<vmem>>) attributes {dimension_semantics = [#tpu.dimension_semantics<parallel>], iteration_bounds = array<i64: 2>, scalar_prefetch = 0 : i64, scratch_operands = 0 : i64, tpu.core_type = #tpu.core_type<tc>, window_params = [{transform_indices = @transform_0, window_bounds = array<i64: 16, 256>}, {pipeline_mode = #tpu.pipeline_mode<synchronous>, transform_indices = @transform_1, window_bounds = array<i64: 1, 256>}, {pipeline_mode = #tpu.pipeline_mode<synchronous>, transform_indices = @transform_2, window_bounds = array<i64: 1, 256>}, {transform_indices = @transform_3, window_bounds = array<i64: 16, 256>}]} {
    %c0 = arith.constant 0 : index
    %c0_0 = arith.constant 0 : index
    %0 = vector.load %arg1[%c0, %c0_0] : memref<16x256xbf16, #tpu.memory_space<vmem>>, vector<16x256xbf16>
    %1 = arith.extf %0 : vector<16x256xbf16> to vector<16x256xf32>
    %c0_1 = arith.constant 0 : index
    %c0_2 = arith.constant 0 : index
    %2 = vector.load %arg2[%c0_1, %c0_2] : memref<1x256xf32, #tpu.memory_space<vmem>>, vector<1x256xf32>
    %3 = vector.broadcast %2 : vector<1x256xf32> to vector<16x256xf32>
    %4 = arith.mulf %1, %3 : vector<16x256xf32>
    %c0_3 = arith.constant 0 : index
    %c0_4 = arith.constant 0 : index
    %5 = vector.load %arg3[%c0_3, %c0_4] : memref<1x256xf32, #tpu.memory_space<vmem>>, vector<1x256xf32>
    %6 = vector.broadcast %5 : vector<1x256xf32> to vector<16x256xf32>
    %7 = arith.addf %4, %6 : vector<16x256xf32>
    %cst = arith.constant 0.000000e+00 : f32
    %8 = vector.broadcast %cst : f32 to vector<16x256xf32>
    %9 = arith.cmpf oge, %7, %8 : vector<16x256xf32>
    %cst_5 = arith.constant 2.000000e-01 : f32
    %10 = vector.broadcast %cst_5 : f32 to vector<16x256xf32>
    %11 = arith.mulf %10, %7 : vector<16x256xf32>
    %12 = arith.select %9, %7, %11 : vector<16x256xi1>, vector<16x256xf32>
    %13 = arith.truncf %12 : vector<16x256xf32> to vector<16x256xbf16>
    %c0_6 = arith.constant 0 : index
    %c0_7 = arith.constant 0 : index
    %14 = vector.load %arg4[%c0_6, %c0_7] : memref<16x256xbf16, #tpu.memory_space<vmem>>, vector<16x256xbf16>
    tpu.vector_store %arg4[%c0_6, %c0_7], %13 {strides = array<i32>} : memref<16x256xbf16, #tpu.memory_space<vmem>>, vector<16x256xbf16>,
    return
  }
  func.func @transform_0(%arg0: i32) -> (i32, i32) {
    %c0_i32 = arith.constant 0 : i32
    %c0_i32_0 = arith.constant 0 : i32
    return %arg0, %c0_i32 : i32, i32
  }
  func.func @transform_1(%arg0: i32) -> (i32, i32) {
    %c0_i32 = arith.constant 0 : i32
    %c0_i32_0 = arith.constant 0 : i32
    %c0_i32_1 = arith.constant 0 : i32
    return %c0_i32, %c0_i32_0 : i32, i32
  }
  func.func @transform_2(%arg0: i32) -> (i32, i32) {
    %c0_i32 = arith.constant 0 : i32
    %c0_i32_0 = arith.constant 0 : i32
    %c0_i32_1 = arith.constant 0 : i32
    return %c0_i32, %c0_i32_0 : i32, i32
  }
  func.func @transform_3(%arg0: i32) -> (i32, i32) {
    %c0_i32 = arith.constant 0 : i32
    %c0_i32_0 = arith.constant 0 : i32
    return %arg0, %c0_i32 : i32, i32
  }
}

module attributes {stable_mosaic.version = 11 : i64} {
  func.func @_bn_apply_kernel(%arg0: i32, %arg1: memref<16x512xbf16, #tpu.memory_space<vmem>>, %arg2: memref<1x512xf32, #tpu.memory_space<vmem>>, %arg3: memref<1x512xf32, #tpu.memory_space<vmem>>, %arg4: memref<16x512xbf16, #tpu.memory_space<vmem>>) attributes {dimension_semantics = [#tpu.dimension_semantics<parallel>], iteration_bounds = array<i64: 2>, scalar_prefetch = 0 : i64, scratch_operands = 0 : i64, tpu.core_type = #tpu.core_type<tc>, window_params = [{transform_indices = @transform_0, window_bounds = array<i64: 16, 512>}, {pipeline_mode = #tpu.pipeline_mode<synchronous>, transform_indices = @transform_1, window_bounds = array<i64: 1, 512>}, {pipeline_mode = #tpu.pipeline_mode<synchronous>, transform_indices = @transform_2, window_bounds = array<i64: 1, 512>}, {transform_indices = @transform_3, window_bounds = array<i64: 16, 512>}]} {
    %c0 = arith.constant 0 : index
    %c0_0 = arith.constant 0 : index
    %0 = vector.load %arg1[%c0, %c0_0] : memref<16x512xbf16, #tpu.memory_space<vmem>>, vector<16x512xbf16>
    %1 = arith.extf %0 : vector<16x512xbf16> to vector<16x512xf32>
    %c0_1 = arith.constant 0 : index
    %c0_2 = arith.constant 0 : index
    %2 = vector.load %arg2[%c0_1, %c0_2] : memref<1x512xf32, #tpu.memory_space<vmem>>, vector<1x512xf32>
    %3 = vector.broadcast %2 : vector<1x512xf32> to vector<16x512xf32>
    %4 = arith.mulf %1, %3 : vector<16x512xf32>
    %c0_3 = arith.constant 0 : index
    %c0_4 = arith.constant 0 : index
    %5 = vector.load %arg3[%c0_3, %c0_4] : memref<1x512xf32, #tpu.memory_space<vmem>>, vector<1x512xf32>
    %6 = vector.broadcast %5 : vector<1x512xf32> to vector<16x512xf32>
    %7 = arith.addf %4, %6 : vector<16x512xf32>
    %cst = arith.constant 0.000000e+00 : f32
    %8 = vector.broadcast %cst : f32 to vector<16x512xf32>
    %9 = arith.cmpf oge, %7, %8 : vector<16x512xf32>
    %cst_5 = arith.constant 2.000000e-01 : f32
    %10 = vector.broadcast %cst_5 : f32 to vector<16x512xf32>
    %11 = arith.mulf %10, %7 : vector<16x512xf32>
    %12 = arith.select %9, %7, %11 : vector<16x512xi1>, vector<16x512xf32>
    %13 = arith.truncf %12 : vector<16x512xf32> to vector<16x512xbf16>
    %c0_6 = arith.constant 0 : index
    %c0_7 = arith.constant 0 : index
    %14 = vector.load %arg4[%c0_6, %c0_7] : memref<16x512xbf16, #tpu.memory_space<vmem>>, vector<16x512xbf16>
    tpu.vector_store %arg4[%c0_6, %c0_7], %13 {strides = array<i32>} : memref<16x512xbf16, #tpu.memory_space<vmem>>, vector<16x512xbf16>,
    return
  }
  func.func @transform_0(%arg0: i32) -> (i32, i32) {
    %c0_i32 = arith.constant 0 : i32
    %c0_i32_0 = arith.constant 0 : i32
    return %arg0, %c0_i32 : i32, i32
  }
  func.func @transform_1(%arg0: i32) -> (i32, i32) {
    %c0_i32 = arith.constant 0 : i32
    %c0_i32_0 = arith.constant 0 : i32
    %c0_i32_1 = arith.constant 0 : i32
    return %c0_i32, %c0_i32_0 : i32, i32
  }
  func.func @transform_2(%arg0: i32) -> (i32, i32) {
    %c0_i32 = arith.constant 0 : i32
    %c0_i32_0 = arith.constant 0 : i32
    %c0_i32_1 = arith.constant 0 : i32
    return %c0_i32, %c0_i32_0 : i32, i32
  }
  func.func @transform_3(%arg0: i32) -> (i32, i32) {
    %c0_i32 = arith.constant 0 : i32
    %c0_i32_0 = arith.constant 0 : i32
    return %arg0, %c0_i32 : i32, i32
  }
}

module attributes {stable_mosaic.version = 11 : i64} {
  func.func @_conv_matmul_stats_kernel(%arg0: i32, %arg1: i32, %arg2: memref<16x4096xbf16, #tpu.memory_space<vmem>>, %arg3: memref<4096x256xbf16, #tpu.memory_space<vmem>>, %arg4: memref<1x256xf32, #tpu.memory_space<vmem>>, %arg5: memref<16x256xbf16, #tpu.memory_space<vmem>>, %arg6: memref<1x1x256xf32, #tpu.memory_space<vmem>>, %arg7: memref<1x1x256xf32, #tpu.memory_space<vmem>>) attributes {dimension_semantics = [#tpu.dimension_semantics<parallel>, #tpu.dimension_semantics<parallel>], iteration_bounds = array<i64: 2, 2>, scalar_prefetch = 0 : i64, scratch_operands = 0 : i64, tpu.core_type = #tpu.core_type<tc>, window_params = [{transform_indices = @transform_0, window_bounds = array<i64: 16, 4096>}, {transform_indices = @transform_1, window_bounds = array<i64: 4096, 256>}, {transform_indices = @transform_2, window_bounds = array<i64: 1, 256>}, {transform_indices = @transform_3, window_bounds = array<i64: 16, 256>}, {transform_indices = @transform_4, window_bounds = array<i64: 1, 1, 256>}, {transform_indices = @transform_5, window_bounds = array<i64: 1, 1, 256>}]} {
    %c0 = arith.constant 0 : index
    %c0_0 = arith.constant 0 : index
    %0 = vector.load %arg2[%c0, %c0_0] : memref<16x4096xbf16, #tpu.memory_space<vmem>>, vector<16x4096xbf16>
    %c0_1 = arith.constant 0 : index
    %c0_2 = arith.constant 0 : index
    %1 = vector.load %arg3[%c0_1, %c0_2] : memref<4096x256xbf16, #tpu.memory_space<vmem>>, vector<4096x256xbf16>
    %cst = arith.constant dense<0.000000e+00> : vector<16x256xf32>
    %2 = tpu.matmul %0, %1, %cst {dimension_numbers = #tpu.dot_dimension_numbers<[1], [0], [0], [1], [0, 0, 1, 1], [], []>} : vector<16x4096xbf16>, vector<4096x256xbf16>, vector<16x256xf32> -> vector<16x256xf32>
    %c0_3 = arith.constant 0 : index
    %c0_4 = arith.constant 0 : index
    %3 = vector.load %arg4[%c0_3, %c0_4] : memref<1x256xf32, #tpu.memory_space<vmem>>, vector<1x256xf32>
    %4 = vector.broadcast %3 : vector<1x256xf32> to vector<16x256xf32>
    %5 = arith.addf %2, %4 : vector<16x256xf32>
    %6 = arith.truncf %5 : vector<16x256xf32> to vector<16x256xbf16>
    %c0_5 = arith.constant 0 : index
    %c0_6 = arith.constant 0 : index
    %7 = vector.load %arg5[%c0_5, %c0_6] : memref<16x256xbf16, #tpu.memory_space<vmem>>, vector<16x256xbf16>
    tpu.vector_store %arg5[%c0_5, %c0_6], %6 {strides = array<i32>} : memref<16x256xbf16, #tpu.memory_space<vmem>>, vector<16x256xbf16>,
    %cst_7 = arith.constant dense<0.000000e+00> : vector<256xf32>
    %8 = vector.multi_reduction <add>, %5, %cst_7 [0] : vector<16x256xf32> to vector<256xf32>
    %9 = vector.shape_cast %8 : vector<256xf32> to vector<1x256xf32>
    %10 = vector.shape_cast %9 : vector<1x256xf32> to vector<1x1x256xf32>
    %c0_8 = arith.constant 0 : index
    %c0_9 = arith.constant 0 : index
    %c0_10 = arith.constant 0 : index
    %11 = vector.load %arg6[%c0_8, %c0_9, %c0_10] : memref<1x1x256xf32, #tpu.memory_space<vmem>>, vector<1x1x256xf32>
    tpu.vector_store %arg6[%c0_8, %c0_9, %c0_10], %10 {strides = array<i32>} : memref<1x1x256xf32, #tpu.memory_space<vmem>>, vector<1x1x256xf32>,
    %12 = arith.mulf %5, %5 : vector<16x256xf32>
    %cst_11 = arith.constant dense<0.000000e+00> : vector<256xf32>
    %13 = vector.multi_reduction <add>, %12, %cst_11 [0] : vector<16x256xf32> to vector<256xf32>
    %14 = vector.shape_cast %13 : vector<256xf32> to vector<1x256xf32>
    %15 = vector.shape_cast %14 : vector<1x256xf32> to vector<1x1x256xf32>
    %c0_12 = arith.constant 0 : index
    %c0_13 = arith.constant 0 : index
    %c0_14 = arith.constant 0 : index
    %16 = vector.load %arg7[%c0_12, %c0_13, %c0_14] : memref<1x1x256xf32, #tpu.memory_space<vmem>>, vector<1x1x256xf32>
    tpu.vector_store %arg7[%c0_12, %c0_13, %c0_14], %15 {strides = array<i32>} : memref<1x1x256xf32, #tpu.memory_space<vmem>>, vector<1x1x256xf32>,
    return
  }
  func.func @transform_0(%arg0: i32, %arg1: i32) -> (i32, i32) {
    %c0_i32 = arith.constant 0 : i32
    %c0_i32_0 = arith.constant 0 : i32
    return %arg1, %c0_i32 : i32, i32
  }
  func.func @transform_1(%arg0: i32, %arg1: i32) -> (i32, i32) {
    %c0_i32 = arith.constant 0 : i32
    %c0_i32_0 = arith.constant 0 : i32
    return %c0_i32, %arg0 : i32, i32
  }
  func.func @transform_2(%arg0: i32, %arg1: i32) -> (i32, i32) {
    %c0_i32 = arith.constant 0 : i32
    %c0_i32_0 = arith.constant 0 : i32
    return %c0_i32, %arg0 : i32, i32
  }
  func.func @transform_3(%arg0: i32, %arg1: i32) -> (i32, i32) {
    %c0_i32 = arith.constant 0 : i32
    return %arg1, %arg0 : i32, i32
  }
  func.func @transform_4(%arg0: i32, %arg1: i32) -> (i32, i32, i32) {
    %c0_i32 = arith.constant 0 : i32
    %c0_i32_0 = arith.constant 0 : i32
    return %arg1, %c0_i32, %arg0 : i32, i32, i32
  }
  func.func @transform_5(%arg0: i32, %arg1: i32) -> (i32, i32, i32) {
    %c0_i32 = arith.constant 0 : i32
    %c0_i32_0 = arith.constant 0 : i32
    return %arg1, %c0_i32, %arg0 : i32, i32, i32
  }
}

module attributes {stable_mosaic.version = 11 : i64} {
  func.func @_conv_matmul_kernel(%arg0: i32, %arg1: i32, %arg2: memref<16x8192xbf16, #tpu.memory_space<vmem>>, %arg3: memref<8192x128xbf16, #tpu.memory_space<vmem>>, %arg4: memref<1x128xf32, #tpu.memory_space<vmem>>, %arg5: memref<16x128xf32, #tpu.memory_space<vmem>>) attributes {dimension_semantics = [#tpu.dimension_semantics<parallel>, #tpu.dimension_semantics<parallel>], iteration_bounds = array<i64: 1, 1>, scalar_prefetch = 0 : i64, scratch_operands = 0 : i64, tpu.core_type = #tpu.core_type<tc>, window_params = [{transform_indices = @transform_0, window_bounds = array<i64: 16, 8192>}, {transform_indices = @transform_1, window_bounds = array<i64: 8192, 128>}, {transform_indices = @transform_2, window_bounds = array<i64: 1, 128>}, {transform_indices = @transform_3, window_bounds = array<i64: 16, 128>}]} {
    %c0 = arith.constant 0 : index
    %c0_0 = arith.constant 0 : index
    %0 = vector.load %arg2[%c0, %c0_0] : memref<16x8192xbf16, #tpu.memory_space<vmem>>, vector<16x8192xbf16>
    %c0_1 = arith.constant 0 : index
    %c0_2 = arith.constant 0 : index
    %1 = vector.load %arg3[%c0_1, %c0_2] : memref<8192x128xbf16, #tpu.memory_space<vmem>>, vector<8192x128xbf16>
    %cst = arith.constant dense<0.000000e+00> : vector<16x128xf32>
    %2 = tpu.matmul %0, %1, %cst {dimension_numbers = #tpu.dot_dimension_numbers<[1], [0], [0], [1], [0, 0, 1, 1], [], []>} : vector<16x8192xbf16>, vector<8192x128xbf16>, vector<16x128xf32> -> vector<16x128xf32>
    %c0_3 = arith.constant 0 : index
    %c0_4 = arith.constant 0 : index
    %3 = vector.load %arg4[%c0_3, %c0_4] : memref<1x128xf32, #tpu.memory_space<vmem>>, vector<1x128xf32>
    %4 = vector.broadcast %3 : vector<1x128xf32> to vector<16x128xf32>
    %5 = arith.addf %2, %4 : vector<16x128xf32>
    %c0_5 = arith.constant 0 : index
    %c0_6 = arith.constant 0 : index
    %6 = vector.load %arg5[%c0_5, %c0_6] : memref<16x128xf32, #tpu.memory_space<vmem>>, vector<16x128xf32>
    tpu.vector_store %arg5[%c0_5, %c0_6], %5 {strides = array<i32>} : memref<16x128xf32, #tpu.memory_space<vmem>>, vector<16x128xf32>,
    return
  }
  func.func @transform_0(%arg0: i32, %arg1: i32) -> (i32, i32) {
    %c0_i32 = arith.constant 0 : i32
    %c0_i32_0 = arith.constant 0 : i32
    return %arg1, %c0_i32 : i32, i32
  }
  func.func @transform_1(%arg0: i32, %arg1: i32) -> (i32, i32) {
    %c0_i32 = arith.constant 0 : i32
    %c0_i32_0 = arith.constant 0 : i32
    return %c0_i32, %arg0 : i32, i32
  }
  func.func @transform_2(%arg0: i32, %arg1: i32) -> (i32, i32) {
    %c0_i32 = arith.constant 0 : i32
    %c0_i32_0 = arith.constant 0 : i32
    return %c0_i32, %arg0 : i32, i32
  }
  func.func @transform_3(%arg0: i32, %arg1: i32) -> (i32, i32) {
    %c0_i32 = arith.constant 0 : i32
    return %arg1, %arg0 : i32, i32
  }
}

</mosaic_0001>

<bundles_post_ra>
// kernel: discriminator_forward.8
= control target key start
LH: loop header
LB: loop body
LE: loop exit
PB: predicated region body
PF: predicated region fallthrough
CT: control target
= control target key end

     0   :  { %s1321_s12 = smov 0   ;;  %s1323_s13 = smov 0   ;;  %s1464_s0 = inlined_call_operand.vmem [shape: bf16[512,128], index: 0, kind: input, shape index: {}]   ;;  %s1465_s1 = inlined_call_operand.vmem [shape: bf16[128,128], index: 1, kind: input, shape index: {}]   ;;  %s1466_s2 = inlined_call_operand.vmem [shape: f32[1,128], index: 2, kind: input, shape index: {}]   ;;  %s1467_s3 = inlined_call_operand.vmem [shape: bf16[512,128], index: 3, kind: output, shape index: {}]  }
   0x1   :  { %s1325_s14 = smov 0  }
   0x2 LB: > { %s22_s15 = sadd.s32 1, %s1295_s13  ;;  %p950_p0 = scmp.ge.s32.totalorder %s1299_s14, 1  ;;  %s1299_s14 = sphi %s1325_s14, %s13_s14   ;;  %s1295_s13 = sphi %s1323_s13, %s1469_s13   ;;  %s1291_s12 = sphi %s1321_s12, %s1468_s12  }
   0x3   : > { %p23_p1 = scmp.ge.s32.totalorder %s22_s15, 2  ;;  %p169_p2 = scmp.lt.s32.totalorder %s1299_s14, 3 }
   0x5   : > { %s1471_s15 = smov (%p23_p1, %s22_s15), 0  ;;  %p170_p3 = pnand %p950_p0, %p169_p2 }
   0x6   : > { %v1253_v0 = vld [vmem:[%s1465_s1] sm:$0xff] (!%p170_p3)   ;;  %s951_s18 = sshll.u32 (!%p170_p3), %s1291_s12, 5  ;;  %v1254_v1 = vld [vmem:[%s1465_s1 + $0x8] sm:$0xff] (!%p170_p3)   ;;  %v1255_v2 = vld [vmem:[%s1465_s1 + $0x10] sm:$0xff] (!%p170_p3)  }
   0x7   : > { %173 = sbr.rel (%p170_p3) target bundleno = 294 (0x126), region = 32  ;;  %p204_p4 = scmp.lt.s32.totalorder (!%p170_p3), %s951_s18, 63  ;;  %1165 = vmatprep.subr.bf16.mxu0 (!%p170_p3), %v1253_v0  ;;  %1213 = vmatprep.subr.bf16.mxu1 (!%p170_p3), %v1253_v0  ;;  %v1256_v3 = vld [vmem:[%s1465_s1 + $0x18] sm:$0xff] (!%p170_p3)   ;;  %v1257_v6 = vld [vmem:[%s1465_s1 + $0x20] sm:$0xff] (!%p170_p3)   ;;  %v1258_v7 = vld [vmem:[%s1465_s1 + $0x28] sm:$0xff] (!%p170_p3)  }
   0x8   : > { %1166 = vmatpush3.bf16.msra.mxu0 (!%p170_p3), %v1253_v0  ;;  %1221 = vmatpush3.bf16.msra.mxu1 (!%p170_p3), %v1253_v0  ;;  %v1259_v8 = vld [vmem:[%s1465_s1 + $0x30] sm:$0xff] (!%p170_p3)   ;;  %v1260_v9 = vld [vmem:[%s1465_s1 + $0x38] sm:$0xff] (!%p170_p3)   ;;  %v1392_v24 = vld [vmem:[%s1466_s2] ss:$0 sm:$0xff] (!%p170_p3) }
   0x9   : > { %1167 = vmatprep.subr.bf16.mxu0 (!%p170_p3), %v1254_v1  ;;  %1214 = vmatprep.subr.bf16.mxu1 (!%p170_p3), %v1254_v1 }
   0xc   : > { %1168 = vmatpush3.bf16.msra.mxu0 (!%p170_p3), %v1254_v1  ;;  %1222 = vmatpush3.bf16.msra.mxu1 (!%p170_p3), %v1254_v1 }
   0xd   : > { %1169 = vmatprep.subr.bf16.mxu0 (!%p170_p3), %v1255_v2  ;;  %1215 = vmatprep.subr.bf16.mxu1 (!%p170_p3), %v1255_v2 }
   0xe   : > { %s1473_s18 = smov (!%p204_p4, %s951_s18), 63 }
   0xf   : > { %s952_s23 = sshll.u32 %s1473_s18, 2 }
  0x10   : > { %s1356_s26 = scalar_lea.vmem %s1464_s0, %s952_s23  ;;  %1170 = vmatpush3.bf16.msra.mxu0 %v1255_v2  ;;  %1223 = vmatpush3.bf16.msra.mxu1 %v1255_v2  ;;  %s1409_s17 = scalar_lea.vmem %s1467_s3, %s952_s23 }
  0x11   : > { %v1261_v4 = vld [vmem:[%s1356_s26] sm:$0xff]   ;;  %1171 = vmatprep.subr.bf16.mxu0 %v1256_v3  ;;  %1216 = vmatprep.subr.bf16.mxu1 %v1256_v3  ;;  %v1263_v10 = vld [vmem:[%s1356_s26 + $0x8] sm:$0xff]   ;;  %v1265_v12 = vld [vmem:[%s1356_s26 + $0x10] sm:$0xff]  }
  0x12   : > { %v1262_v5 = vld [vmem:[%s1356_s26 + $0x40] sm:$0xff]   ;;  %1181 = vmatprep.mubr.bf16.mxu0 %v1261_v4  ;;  %v1264_v11 = vld [vmem:[%s1356_s26 + $0x48] sm:$0xff]   ;;  %v1266_v13 = vld [vmem:[%s1356_s26 + $0x50] sm:$0xff]  }
  0x13   : > { %1197 = vmatprep.mubr.bf16.mxu1 %v1262_v5  ;;  %v1267_v14 = vld [vmem:[%s1356_s26 + $0x18] sm:$0xff]   ;;  %v1269_v16 = vld [vmem:[%s1356_s26 + $0x20] sm:$0xff]   ;;  %v1271_v18 = vld [vmem:[%s1356_s26 + $0x28] sm:$0xff]  }
  0x14   : > { %1172 = vmatpush3.bf16.msra.mxu0 %v1256_v3  ;;  %1224 = vmatpush3.bf16.msra.mxu1 %v1256_v3  ;;  %v1268_v15 = vld [vmem:[%s1356_s26 + $0x58] sm:$0xff]   ;;  %v1270_v17 = vld [vmem:[%s1356_s26 + $0x60] sm:$0xff]   ;;  %v1272_v19 = vld [vmem:[%s1356_s26 + $0x68] sm:$0xff]  }
  0x15   : > { %1173 = vmatprep.subr.bf16.mxu0 %v1257_v6  ;;  %1217 = vmatprep.subr.bf16.mxu1 %v1257_v6  ;;  %v1273_v20 = vld [vmem:[%s1356_s26 + $0x30] sm:$0xff]   ;;  %v1275_v22 = vld [vmem:[%s1356_s26 + $0x38] sm:$0xff]  }
  0x16   : > { %v1274_v21 = vld [vmem:[%s1356_s26 + $0x70] sm:$0xff]   ;;  %v1276_v23 = vld [vmem:[%s1356_s26 + $0x78] sm:$0xff]  }
  0x18   : > { %1174 = vmatpush3.bf16.msra.mxu0 %v1257_v6  ;;  %1225 = vmatpush3.bf16.msra.mxu1 %v1257_v6 }
  0x19   : > { %1175 = vmatprep.subr.bf16.mxu0 %v1258_v7  ;;  %1218 = vmatprep.subr.bf16.mxu1 %v1258_v7 }
  0x1c   : > { %1176 = vmatpush3.bf16.msra.mxu0 %v1258_v7  ;;  %1226 = vmatpush3.bf16.msra.mxu1 %v1258_v7 }
  0x1d   : > { %1177 = vmatprep.subr.bf16.mxu0 %v1259_v8  ;;  %1219 = vmatprep.subr.bf16.mxu1 %v1259_v8 }
  0x20   : > { %1178 = vmatpush3.bf16.msra.mxu0 %v1259_v8  ;;  %1227 = vmatpush3.bf16.msra.mxu1 %v1259_v8 }
  0x21   : > { %1179 = vmatprep.subr.bf16.mxu0 %v1260_v9  ;;  %1220 = vmatprep.subr.bf16.mxu1 %v1260_v9 }
  0x24   : > { %1180 = vmatpush3.bf16.msra.mxu0 %v1260_v9  ;;  %1228 = vmatpush3.bf16.msra.mxu1 %v1260_v9 }
  0x27   : > { %1182 = vmatmul.mubr.bf16.vlgmr.msra.gmra.mrb[0].mxu0 %v1263_v10  ;;  %1198 = vmatmul.mubr.bf16.vlgmr.msra.gmra.mrb[0].mxu1 %v1264_v11 }
  0x28   : > { %1185 = vmatprep.mubr.bf16.mxu0 %v1265_v12  ;;  %1201 = vmatprep.mubr.bf16.mxu1 %v1266_v13 }
  0x2f   : > { %1186 = vmatmul.mubr.bf16.gmra.mrb[4].mxu0 %v1267_v14  ;;  %1202 = vmatmul.mubr.bf16.gmra.mrb[4].mxu1 %v1268_v15 }
  0x30   : > { %1189 = vmatprep.mubr.bf16.mxu0 %v1269_v16  ;;  %1205 = vmatprep.mubr.bf16.mxu1 %v1270_v17 }
  0x37   : > { %1190 = vmatmul.mubr.bf16.gmra.mrb[8].mxu0 %v1271_v18  ;;  %1206 = vmatmul.mubr.bf16.gmra.mrb[8].mxu1 %v1272_v19 }
  0x38   : > { %1193 = vmatprep.mubr.bf16.mxu0 %v1273_v20  ;;  %1209 = vmatprep.mubr.bf16.mxu1 %v1274_v21 }
  0x3f   : > { %1194 = vmatmul.mubr.bf16.gmra.mrb[12].mxu0 %v1275_v22  ;;  %1210 = vmatmul.mubr.bf16.gmra.mrb[12].mxu1 %v1276_v23 }
  0xfa   : > { %v1183_v25 = vpop.f32.mrb[0].mxu0  ;;  %v1199_v26 = vpop.f32.mrb[0].mxu1 }
  0xfb   : > { %v468_v27 = vadd.f32 %v1183_v25, %v1392_v24  ;;  %v532_v28 = vadd.f32 %v1199_v26, %v1392_v24  ;;  %v459_v29 = vpop.f32.mrb[1].mxu0  ;;  %v523_v30 = vpop.f32.mrb[1].mxu1 }
  0xfc   : > { %v460_v31 = vadd.f32 %v1392_v24, %v459_v29  ;;  %v524_v32 = vadd.f32 %v1392_v24, %v523_v30  ;;  %v1184_v33 = vpop.f32.mrb[2].mxu0  ;;  %v1200_v34 = vpop.f32.mrb[2].mxu1 }
  0xfd   : > { %vm588_vm0 = vcmp.ge.f32.partialorder %v468_v27, 0.0  ;;  %v620_v35 = vmul.f32 0.2, %v468_v27  ;;  %vm604_vm1 = vcmp.ge.f32.partialorder %v532_v28, 0.0  ;;  %v636_v36 = vmul.f32 0.2, %v532_v28 }
  0xfe   : > { %vm586_vm2 = vcmp.ge.f32.partialorder %v460_v31, 0.0  ;;  %v618_v37 = vmul.f32 0.2, %v460_v31  ;;  %vm602_vm3 = vcmp.ge.f32.partialorder %v524_v32, 0.0  ;;  %v634_v38 = vmul.f32 0.2, %v524_v32 }
  0xff   : > { %v471_v39 = vadd.f32 %v1184_v33, %v1392_v24  ;;  %v535_v40 = vadd.f32 %v1200_v34, %v1392_v24  ;;  %v462_v41 = vpop.f32.mrb[3].mxu0  ;;  %v526_v42 = vpop.f32.mrb[3].mxu1  ;;  %v652_v43 = vsel %vm588_vm0, %v468_v27, %v620_v35  ;;  %v668_v44 = vsel %vm604_vm1, %v532_v28, %v636_v36 }
 0x100   : > { %v463_v45 = vadd.f32 %v1392_v24, %v462_v41  ;;  %v527_v46 = vadd.f32 %v1392_v24, %v526_v42  ;;  %v650_v51 = vsel %vm586_vm2, %v460_v31, %v618_v37  ;;  %v666_v52 = vsel %vm602_vm3, %v524_v32, %v634_v38 }
 0x101   : > { %vm589_vm4 = vcmp.ge.f32.partialorder %v471_v39, 0.0  ;;  %v621_v47 = vmul.f32 0.2, %v471_v39  ;;  %vm605_vm5 = vcmp.ge.f32.partialorder %v535_v40, 0.0  ;;  %v637_v48 = vmul.f32 0.2, %v535_v40 }
 0x102   : > { %vm587_vm6 = vcmp.ge.f32.partialorder %v463_v45, 0.0  ;;  %v619_v49 = vmul.f32 0.2, %v463_v45  ;;  %vm603_vm7 = vcmp.ge.f32.partialorder %v527_v46, 0.0  ;;  %v635_v50 = vmul.f32 0.2, %v527_v46 }
 0x103   : > { %v653_v53 = vsel %vm589_vm4, %v471_v39, %v621_v47  ;;  %v669_v54 = vsel %vm605_vm5, %v535_v40, %v637_v48  ;;  %v1187_v55 = vpop.f32.mrb[4].mxu0  ;;  %v1203_v56 = vpop.f32.mrb[4].mxu1 }
 0x104   : > { %v1054_v57 = vpack.c.bf16 %v653_v53, %v652_v43  ;;  %v1094_v58 = vpack.c.bf16 %v669_v54, %v668_v44  ;;  %v651_v59 = vsel %vm587_vm6, %v463_v45, %v619_v49  ;;  %v667_v60 = vsel %vm603_vm7, %v527_v46, %v635_v50  ;;  %v475_v61 = vpop.f32.mrb[5].mxu0  ;;  %v539_v62 = vpop.f32.mrb[5].mxu1 }
 0x105   : > { %v1049_v63 = vpack.c.bf16 %v651_v59, %v650_v51  ;;  %v1089_v0 = vpack.c.bf16 %v667_v60, %v666_v52  ;;  %v484_v1 = vadd.f32 %v1187_v55, %v1392_v24  ;;  %v548_v2 = vadd.f32 %v1203_v56, %v1392_v24  ;;  %v1188_v3 = vpop.f32.mrb[6].mxu0  ;;  %v1204_v4 = vpop.f32.mrb[6].mxu1 }
 0x106   : > { %1126 = vst [vmem:[%s1409_s17 + $0x8] sm:$0xff] %v1054_v57   ;;  %1134 = vst [vmem:[%s1409_s17 + $0x48] sm:$0xff] %v1094_v58   ;;  %v476_v5 = vadd.f32 %v1392_v24, %v475_v61  ;;  %v540_v6 = vadd.f32 %v1392_v24, %v539_v62  ;;  %v487_v7 = vadd.f32 %v1188_v3, %v1392_v24  ;;  %v478_v9 = vpop.f32.mrb[7].mxu0  ;;  %v542_v10 = vpop.f32.mrb[7].mxu1 }
 0x107   : > { %v551_v8 = vadd.f32 %v1204_v4, %v1392_v24  ;;  %1050 = vst [vmem:[%s1409_s17] sm:$0xff] %v1049_v63   ;;  %1133 = vst [vmem:[%s1409_s17 + $0x40] sm:$0xff] %v1089_v0   ;;  %vm592_vm8 = vcmp.ge.f32.partialorder %v484_v1, 0.0  ;;  %v624_v11 = vmul.f32 0.2, %v484_v1  ;;  %vm608_vm9 = vcmp.ge.f32.partialorder %v548_v2, 0.0 }
 0x108   : > { %v640_v12 = vmul.f32 0.2, %v548_v2  ;;  %vm590_vm10 = vcmp.ge.f32.partialorder %v476_v5, 0.0  ;;  %v622_v13 = vmul.f32 0.2, %v476_v5  ;;  %vm606_vm11 = vcmp.ge.f32.partialorder %v540_v6, 0.0 }
 0x109   : > { %v656_v14 = vsel %vm592_vm8, %v484_v1, %v624_v11  ;;  %v638_v15 = vmul.f32 0.2, %v540_v6  ;;  %vm593_vm12 = vcmp.ge.f32.partialorder %v487_v7, 0.0  ;;  %v625_v16 = vmul.f32 0.2, %v487_v7 }
 0x10a   : > { %v672_v17 = vsel %vm608_vm9, %v548_v2, %v640_v12  ;;  %v654_v18 = vsel %vm590_vm10, %v476_v5, %v622_v13  ;;  %vm609_vm13 = vcmp.ge.f32.partialorder %v551_v8, 0.0  ;;  %v641_v19 = vmul.f32 0.2, %v551_v8  ;;  %v1191_v20 = vpop.f32.mrb[8].mxu0  ;;  %v1207_v21 = vpop.f32.mrb[8].mxu1 }
 0x10b   : > { %v657_v22 = vsel %vm593_vm12, %v487_v7, %v625_v16  ;;  %v479_v23 = vadd.f32 %v1392_v24, %v478_v9  ;;  %v543_v25 = vadd.f32 %v1392_v24, %v542_v10  ;;  %v500_v26 = vadd.f32 %v1191_v20, %v1392_v24  ;;  %v491_v27 = vpop.f32.mrb[9].mxu0  ;;  %v555_v28 = vpop.f32.mrb[9].mxu1 }
 0x10c   : > { %v1064_v29 = vpack.c.bf16 %v657_v22, %v656_v14  ;;  %v673_v30 = vsel %vm609_vm13, %v551_v8, %v641_v19  ;;  %v564_v31 = vadd.f32 %v1207_v21, %v1392_v24  ;;  %v492_v32 = vadd.f32 %v1392_v24, %v491_v27  ;;  %v1192_v33 = vpop.f32.mrb[10].mxu0  ;;  %v1208_v34 = vpop.f32.mrb[10].mxu1 }
 0x10d   : > { %v1104_v35 = vpack.c.bf16 %v673_v30, %v672_v17  ;;  %vm591_vm14 = vcmp.ge.f32.partialorder %v479_v23, 0.0  ;;  %v623_v36 = vmul.f32 0.2, %v479_v23  ;;  %vm607_vm15 = vcmp.ge.f32.partialorder %v543_v25, 0.0  ;;  %v494_v37 = vpop.f32.mrb[11].mxu0  ;;  %v558_v38 = vpop.f32.mrb[11].mxu1 }
 0x10e   : > { %1128 = vst [vmem:[%s1409_s17 + $0x18] sm:$0xff] %v1064_v29   ;;  %v639_v39 = vmul.f32 0.2, %v543_v25  ;;  %vm596_vm0 = vcmp.ge.f32.partialorder %v500_v26, 0.0  ;;  %v628_v40 = vmul.f32 0.2, %v500_v26  ;;  %v670_v41 = vsel %vm606_vm11, %v540_v6, %v638_v15 }
 0x10f   : > { %vm612_vm1 = vcmp.ge.f32.partialorder %v564_v31, 0.0  ;;  %1136 = vst [vmem:[%s1409_s17 + $0x58] sm:$0xff] %v1104_v35   ;;  %v655_v42 = vsel %vm591_vm14, %v479_v23, %v623_v36  ;;  %v644_v43 = vmul.f32 0.2, %v564_v31  ;;  %vm594_vm2 = vcmp.ge.f32.partialorder %v492_v32, 0.0 }
 0x110   : > { %v1059_v44 = vpack.c.bf16 %v655_v42, %v654_v18  ;;  %v671_v45 = vsel %vm607_vm15, %v543_v25, %v639_v39  ;;  %v626_v46 = vmul.f32 0.2, %v492_v32  ;;  %v556_v47 = vadd.f32 %v1392_v24, %v555_v28 }
 0x111   : > { %v1099_v48 = vpack.c.bf16 %v671_v45, %v670_v41  ;;  %v660_v49 = vsel %vm596_vm0, %v500_v26, %v628_v40  ;;  %v676_v50 = vsel %vm612_vm1, %v564_v31, %v644_v43  ;;  %v503_v51 = vadd.f32 %v1192_v33, %v1392_v24 }
 0x112   : > { %1127 = vst [vmem:[%s1409_s17 + $0x10] sm:$0xff] %v1059_v44   ;;  %vm610_vm3 = vcmp.ge.f32.partialorder %v556_v47, 0.0  ;;  %v642_v52 = vmul.f32 0.2, %v556_v47  ;;  %v567_v53 = vadd.f32 %v1208_v34, %v1392_v24  ;;  %v495_v54 = vadd.f32 %v1392_v24, %v494_v37  ;;  %v1195_v55 = vpop.f32.mrb[12].mxu0  ;;  %v1211_v56 = vpop.f32.mrb[12].mxu1 }
 0x113   : > { %1135 = vst [vmem:[%s1409_s17 + $0x50] sm:$0xff] %v1099_v48   ;;  %vm597_vm4 = vcmp.ge.f32.partialorder %v503_v51, 0.0  ;;  %v629_v57 = vmul.f32 0.2, %v503_v51  ;;  %v559_v58 = vadd.f32 %v1392_v24, %v558_v38  ;;  %v516_v59 = vadd.f32 %v1195_v55, %v1392_v24  ;;  %v507_v60 = vpop.f32.mrb[13].mxu0  ;;  %v571_v61 = vpop.f32.mrb[13].mxu1 }
 0x114   : > { %v658_v62 = vsel %vm594_vm2, %v492_v32, %v626_v46  ;;  %vm613_vm5 = vcmp.ge.f32.partialorder %v567_v53, 0.0  ;;  %v645_v63 = vmul.f32 0.2, %v567_v53  ;;  %vm595_vm6 = vcmp.ge.f32.partialorder %v495_v54, 0.0  ;;  %v1196_v0 = vpop.f32.mrb[14].mxu0  ;;  %v1212_v1 = vpop.f32.mrb[14].mxu1 }
 0x115   : > { %v661_v2 = vsel %vm597_vm4, %v503_v51, %v629_v57  ;;  %v627_v3 = vmul.f32 0.2, %v495_v54  ;;  %vm611_vm7 = vcmp.ge.f32.partialorder %v559_v58, 0.0  ;;  %v643_v4 = vmul.f32 0.2, %v559_v58  ;;  %v510_v5 = vpop.f32.mrb[15].mxu0 }
 0x116   : > { %v674_v6 = vsel %vm610_vm3, %v556_v47, %v642_v52  ;;  %v1074_v7 = vpack.c.bf16 %v661_v2, %v660_v49  ;;  %v677_v8 = vsel %vm613_vm5, %v567_v53, %v645_v63  ;;  %v632_v9 = vmul.f32 0.2, %v516_v59  ;;  %v574_v10 = vpop.f32.mrb[15].mxu1 }
 0x117   : > { %v1114_v11 = vpack.c.bf16 %v677_v8, %v676_v50  ;;  %v659_v12 = vsel %vm595_vm6, %v495_v54, %v627_v3  ;;  %v675_v13 = vsel %vm611_vm7, %v559_v58, %v643_v4  ;;  %v580_v14 = vadd.f32 %v1211_v56, %v1392_v24 }
 0x118   : > { %1130 = vst [vmem:[%s1409_s17 + $0x28] sm:$0xff] %v1074_v7   ;;  %v1069_v15 = vpack.c.bf16 %v659_v12, %v658_v62  ;;  %v1109_v16 = vpack.c.bf16 %v675_v13, %v674_v6  ;;  %vm600_vm8 = vcmp.ge.f32.partialorder %v516_v59, 0.0  ;;  %v508_v17 = vadd.f32 %v1392_v24, %v507_v60 }
 0x119   : > { %1138 = vst [vmem:[%s1409_s17 + $0x68] sm:$0xff] %v1114_v11   ;;  %vm616_vm9 = vcmp.ge.f32.partialorder %v580_v14, 0.0  ;;  %v648_v18 = vmul.f32 0.2, %v580_v14  ;;  %v572_v19 = vadd.f32 %v1392_v24, %v571_v61  ;;  %v519_v20 = vadd.f32 %v1196_v0, %v1392_v24 }
 0x11a   : > { %1129 = vst [vmem:[%s1409_s17 + $0x20] sm:$0xff] %v1069_v15   ;;  %1137 = vst [vmem:[%s1409_s17 + $0x60] sm:$0xff] %v1109_v16   ;;  %v630_v21 = vmul.f32 0.2, %v508_v17  ;;  %v583_v22 = vadd.f32 %v1212_v1, %v1392_v24  ;;  %v511_v23 = vadd.f32 %v1392_v24, %v510_v5  ;;  %v664_v25 = vsel %vm600_vm8, %v516_v59, %v632_v9 }
 0x11b   : > { %vm598_vm10 = vcmp.ge.f32.partialorder %v508_v17, 0.0  ;;  %vm601_vm11 = vcmp.ge.f32.partialorder %v519_v20, 0.0  ;;  %v680_v26 = vsel %vm616_vm9, %v580_v14, %v648_v18  ;;  %v633_v27 = vmul.f32 0.2, %v519_v20 }
 0x11c   : > { %vm617_vm12 = vcmp.ge.f32.partialorder %v583_v22, 0.0  ;;  %v649_v28 = vmul.f32 0.2, %v583_v22  ;;  %vm614_vm13 = vcmp.ge.f32.partialorder %v572_v19, 0.0  ;;  %vm599_vm14 = vcmp.ge.f32.partialorder %v511_v23, 0.0 }
 0x11d   : > { %v631_v29 = vmul.f32 0.2, %v511_v23  ;;  %v575_v30 = vadd.f32 %v1392_v24, %v574_v10  ;;  %v662_v31 = vsel %vm598_vm10, %v508_v17, %v630_v21  ;;  %v646_v32 = vmul.f32 0.2, %v572_v19 }
 0x11e   : > { %v665_v33 = vsel %vm601_vm11, %v519_v20, %v633_v27  ;;  %v681_v34 = vsel %vm617_vm12, %v583_v22, %v649_v28 }
 0x11f   : > { %v1084_v35 = vpack.c.bf16 %v665_v33, %v664_v25  ;;  %v1124_v36 = vpack.c.bf16 %v681_v34, %v680_v26  ;;  %v663_v37 = vsel %vm599_vm14, %v511_v23, %v631_v29  ;;  %vm615_vm15 = vcmp.ge.f32.partialorder %v575_v30, 0.0 }
 0x120   : > { %v1079_v38 = vpack.c.bf16 %v663_v37, %v662_v31  ;;  %v647_v39 = vmul.f32 0.2, %v575_v30  ;;  %v678_v40 = vsel %vm614_vm13, %v572_v19, %v646_v32 }
 0x121   : > { %1132 = vst [vmem:[%s1409_s17 + $0x38] sm:$0xff] %v1084_v35   ;;  %1140 = vst [vmem:[%s1409_s17 + $0x78] sm:$0xff] %v1124_v36  }
 0x122   : > { %1131 = vst [vmem:[%s1409_s17 + $0x30] sm:$0xff] %v1079_v38   ;;  %v679_v41 = vsel %vm615_vm15, %v575_v30, %v647_v39 }
 0x123   : > { %v1119_v42 = vpack.c.bf16 %v679_v41, %v678_v40 }
 0x125   : > { %1139 = vst [vmem:[%s1409_s17 + $0x70] sm:$0xff] %v1119_v42  }
 0x126 PF: > { %s13_s14 = sadd.s32 1, %s1299_s14   ;;  %s1468_s12 = smov %s1295_s13 }
 0x127   : > { %p10_p5 = scmp.ge.s32.totalorder %s13_s14, 4   ;;  %s1469_s13 = smov %s1471_s15 }
 0x129   :  { %12 = sbr.rel (!%p10_p5) target bundleno = 2 (0x2), region = 68 }

// kernel: discriminator_forward.9
= control target key start
LH: loop header
LB: loop body
LE: loop exit
PB: predicated region body
PF: predicated region fallthrough
CT: control target
= control target key end

     0   :  { %s1988_s18 = smov 0   ;;  %s1990_s19 = smov 0   ;;  %s2292_s0 = inlined_call_operand.vmem [shape: bf16[128,1024], index: 0, kind: input, shape index: {}]   ;;  %s2293_s1 = inlined_call_operand.vmem [shape: bf16[1024,128], index: 1, kind: input, shape index: {}]   ;;  %s2294_s2 = inlined_call_operand.vmem [shape: f32[1,128], index: 2, kind: input, shape index: {}]   ;;  %s2295_s3 = inlined_call_operand.vmem [shape: bf16[128,128], index: 3, kind: output, shape index: {0}]   ;;  %s2296_s4 = inlined_call_operand.vmem [shape: f32[2,1,128], index: 4, kind: output, shape index: {1}]   ;;  %s2297_s5 = inlined_call_operand.vmem [shape: f32[2,1,128], index: 5, kind: output, shape index: {2}]  }
   0x1   :  { %s1992_s20 = smov 0  }
   0x2 LB: > { %s25_s21 = sadd.s32 1, %s1952_s19  ;;  %p1541_p0 = scmp.ge.s32.totalorder %s1956_s20, 1  ;;  %s1956_s20 = sphi %s1992_s20, %s16_s20   ;;  %s1952_s19 = sphi %s1990_s19, %s2299_s19   ;;  %s1948_s18 = sphi %s1988_s18, %s2298_s18  }
   0x3   : > { %p26_p1 = scmp.ge.s32.totalorder %s25_s21, 2  ;;  %p229_p2 = scmp.lt.s32.totalorder %s1956_s20, 3 }
   0x5   : > { %s2301_s21 = smov (%p26_p1, %s25_s21), 0  ;;  %p230_p3 = pnand %p1541_p0, %p229_p2 }
   0x6   : > { %v1870_v0 = vld [vmem:[%s2293_s1 + $0x40] sm:$0xff] (!%p230_p3)   ;;  %v1874_v4 = vld [vmem:[%s2293_s1 + $0x48] sm:$0xff] (!%p230_p3)   ;;  %v1878_v8 = vld [vmem:[%s2293_s1 + $0x50] sm:$0xff] (!%p230_p3)   ;;  %s1542_s8 = sshll.u32 (!%p230_p3), %s1948_s18, 3  ;;  %p303_p5 = scmp.lt.s32.totalorder (!%p230_p3), %s1948_s18, 1 }
   0x7   : > { %233 = sbr.rel (%p230_p3) target bundleno = 334 (0x14e), region = 32  ;;  %v1871_v1 = vld [vmem:[%s2293_s1 + $0xc0] sm:$0xff] (!%p230_p3)   ;;  %1686 = vmatprep.subr.bf16.mxu0 (!%p230_p3), %v1870_v0  ;;  %v1875_v5 = vld [vmem:[%s2293_s1 + $0xc8] sm:$0xff] (!%p230_p3)   ;;  %v1879_v9 = vld [vmem:[%s2293_s1 + $0xd0] sm:$0xff] (!%p230_p3)   ;;  %p281_p4 = scmp.lt.s32.totalorder (!%p230_p3), %s1542_s8, 15 }
   0x8   : > { %v1872_v2 = vld [vmem:[%s2293_s1] sm:$0xff] (!%p230_p3)   ;;  %1726 = vmatprep.subr.bf16.mxu1 (!%p230_p3), %v1871_v1  ;;  %v1876_v6 = vld [vmem:[%s2293_s1 + $0x8] sm:$0xff] (!%p230_p3)   ;;  %v1880_v10 = vld [vmem:[%s2293_s1 + $0x10] sm:$0xff] (!%p230_p3)  }
   0x9   : > { %v1873_v3 = vld [vmem:[%s2293_s1 + $0x80] sm:$0xff] (!%p230_p3)   ;;  %1687 = vmatpush3.bf16.msra.mxu0 (!%p230_p3), %v1872_v2  ;;  %v1877_v7 = vld [vmem:[%s2293_s1 + $0x88] sm:$0xff] (!%p230_p3)   ;;  %v1881_v11 = vld [vmem:[%s2293_s1 + $0x90] sm:$0xff] (!%p230_p3)  }
   0xa   : > { %1727 = vmatpush3.bf16.msra.mxu1 (!%p230_p3), %v1873_v3  ;;  %1688 = vmatprep.subr.bf16.mxu0 (!%p230_p3), %v1874_v4  ;;  %v1882_v12 = vld [vmem:[%s2293_s1 + $0x58] sm:$0xff] (!%p230_p3)   ;;  %v1886_v16 = vld [vmem:[%s2293_s1 + $0x60] sm:$0xff] (!%p230_p3)   ;;  %v1890_v20 = vld [vmem:[%s2293_s1 + $0x68] sm:$0xff] (!%p230_p3)  }
   0xb   : > { %1728 = vmatprep.subr.bf16.mxu1 (!%p230_p3), %v1875_v5  ;;  %v1883_v13 = vld [vmem:[%s2293_s1 + $0xd8] sm:$0xff] (!%p230_p3)   ;;  %v1887_v17 = vld [vmem:[%s2293_s1 + $0xe0] sm:$0xff] (!%p230_p3)   ;;  %v1891_v21 = vld [vmem:[%s2293_s1 + $0xe8] sm:$0xff] (!%p230_p3)  }
   0xc   : > { %v1884_v14 = vld [vmem:[%s2293_s1 + $0x18] sm:$0xff] (!%p230_p3)   ;;  %v1888_v18 = vld [vmem:[%s2293_s1 + $0x20] sm:$0xff] (!%p230_p3)   ;;  %v1892_v22 = vld [vmem:[%s2293_s1 + $0x28] sm:$0xff] (!%p230_p3)  }
   0xd   : > { %1689 = vmatpush3.bf16.msra.mxu0 (!%p230_p3), %v1876_v6  ;;  %v1885_v15 = vld [vmem:[%s2293_s1 + $0x98] sm:$0xff] (!%p230_p3)   ;;  %v1889_v19 = vld [vmem:[%s2293_s1 + $0xa0] sm:$0xff] (!%p230_p3)   ;;  %v1893_v23 = vld [vmem:[%s2293_s1 + $0xa8] sm:$0xff] (!%p230_p3)  }
   0xe   : > { %1729 = vmatpush3.bf16.msra.mxu1 %v1877_v7  ;;  %1690 = vmatprep.subr.bf16.mxu0 %v1878_v8  ;;  %s2303_s8 = smov (!%p281_p4, %s1542_s8), 15  ;;  %v1894_v24 = vld [vmem:[%s2293_s1 + $0x70] sm:$0xff]   ;;  %v1898_v28 = vld [vmem:[%s2293_s1 + $0x78] sm:$0xff]   ;;  %v1902_v40 = vld [vmem:[%s2293_s1 + $0x140] sm:$0xff]   ;;  %s2305_s18 = smov (!%p303_p5, %s1948_s18), 1 }
   0xf   : > { %1730 = vmatprep.subr.bf16.mxu1 %v1879_v9  ;;  %v1895_v25 = vld [vmem:[%s2293_s1 + $0xf0] sm:$0xff]   ;;  %s1654_s11 = sshll.u32 %s2303_s8, 5  ;;  %v1899_v29 = vld [vmem:[%s2293_s1 + $0xf8] sm:$0xff]   ;;  %v1903_v41 = vld [vmem:[%s2293_s1 + $0x1c0] sm:$0xff]   ;;  %s308_s22 = scalar_lea.vmem %s2296_s4, %s2305_s18 }
  0x10   : > { %v1896_v26 = vld [vmem:[%s2293_s1 + $0x30] sm:$0xff]   ;;  %s2105_s24 = scalar_lea.vmem %s2292_s0, %s1654_s11  ;;  %v1900_v30 = vld [vmem:[%s2293_s1 + $0x38] sm:$0xff]   ;;  %v1904_v42 = vld [vmem:[%s2293_s1 + $0x100] sm:$0xff]   ;;  %s314_s26 = scalar_lea.vmem %s2297_s5, %s2305_s18 }
  0x11   : > { %1691 = vmatpush3.bf16.msra.mxu0 %v1880_v10  ;;  %v1897_v27 = vld [vmem:[%s2293_s1 + $0xb0] sm:$0xff]   ;;  %v1901_v31 = vld [vmem:[%s2293_s1 + $0xb8] sm:$0xff]   ;;  %v316_v32 = vld [vmem:[%s2105_s24] sm:$0xff] }
  0x12   : > { %1731 = vmatpush3.bf16.msra.mxu1 %v1881_v11  ;;  %1692 = vmatprep.subr.bf16.mxu0 %v1882_v12  ;;  %v320_v33 = vld [vmem:[%s2105_s24 + $0x20] sm:$0xff]  ;;  %v317_v34 = vld [vmem:[%s2105_s24 + $0x8] sm:$0xff]  ;;  %v1910_v56 = vld [vmem:[%s2293_s1 + $0x150] sm:$0xff]  }
  0x13   : > { %1732 = vmatprep.subr.bf16.mxu1 %v1883_v13  ;;  %v1548_v35 = vcombine.low %v316_v32, %v320_v33  ;;  %v1549_v36 = vcombine.high %v316_v32, %v320_v33  ;;  %v321_v37 = vld [vmem:[%s2105_s24 + $0x28] sm:$0xff]  ;;  %v1905_v43 = vld [vmem:[%s2293_s1 + $0x180] sm:$0xff]   ;;  %v1911_v57 = vld [vmem:[%s2293_s1 + $0x1d0] sm:$0xff]  }
  0x14   : > { %v1550_v38 = vcombine.low %v317_v34, %v321_v37  ;;  %v1551_v39 = vcombine.high %v317_v34, %v321_v37  ;;  %v1906_v44 = vld [vmem:[%s2293_s1 + $0x148] sm:$0xff]   ;;  %v324_v48 = vld [vmem:[%s2105_s24 + $0x40] sm:$0xff]  ;;  %v1912_v58 = vld [vmem:[%s2293_s1 + $0x110] sm:$0xff]  }
  0x15   : > { %1693 = vmatpush3.bf16.msra.mxu0 %v1884_v14  ;;  %1059 = vmatprep.mubr.bf16.mxu0 %v1549_v36  ;;  %v1907_v45 = vld [vmem:[%s2293_s1 + $0x1c8] sm:$0xff]   ;;  %v328_v49 = vld [vmem:[%s2105_s24 + $0x60] sm:$0xff]  ;;  %v1913_v59 = vld [vmem:[%s2293_s1 + $0x190] sm:$0xff]  }
  0x16   : > { %1733 = vmatpush3.bf16.msra.mxu1 %v1885_v15  ;;  %1694 = vmatprep.subr.bf16.mxu0 %v1886_v16  ;;  %v1908_v46 = vld [vmem:[%s2293_s1 + $0x108] sm:$0xff]   ;;  %v1557_v50 = vcombine.high %v324_v48, %v328_v49  ;;  %v1556_v53 = vcombine.low %v324_v48, %v328_v49  ;;  %v1914_v60 = vld [vmem:[%s2293_s1 + $0x158] sm:$0xff]   ;;  %v332_v0 = vld [vmem:[%s2105_s24 + $0x80] sm:$0xff] }
  0x17   : > { %1734 = vmatprep.subr.bf16.mxu1 %v1887_v17  ;;  %1124 = vmatprep.mubr.bf16.mxu1 %v1551_v39  ;;  %v1909_v47 = vld [vmem:[%s2293_s1 + $0x188] sm:$0xff]   ;;  %v1915_v61 = vld [vmem:[%s2293_s1 + $0x1d8] sm:$0xff]   ;;  %v336_v1 = vld [vmem:[%s2105_s24 + $0xa0] sm:$0xff] }
  0x18   : > { %v325_v51 = vld [vmem:[%s2105_s24 + $0x48] sm:$0xff]  ;;  %v1916_v62 = vld [vmem:[%s2293_s1 + $0x118] sm:$0xff]   ;;  %v1565_v4 = vcombine.high %v332_v0, %v336_v1  ;;  %v1564_v6 = vcombine.low %v332_v0, %v336_v1  ;;  %v1918_v8 = vld [vmem:[%s2293_s1 + $0x160] sm:$0xff]  }
  0x19   : > { %1695 = vmatpush3.bf16.msra.mxu0 %v1888_v18  ;;  %v329_v52 = vld [vmem:[%s2105_s24 + $0x68] sm:$0xff]  ;;  %v1917_v63 = vld [vmem:[%s2293_s1 + $0x198] sm:$0xff]   ;;  %v1919_v9 = vld [vmem:[%s2293_s1 + $0x1e0] sm:$0xff]  }
  0x1a   : > { %1735 = vmatpush3.bf16.msra.mxu1 %v1889_v19  ;;  %1696 = vmatprep.subr.bf16.mxu0 %v1890_v20  ;;  %v1559_v54 = vcombine.high %v325_v51, %v329_v52  ;;  %v1558_v55 = vcombine.low %v325_v51, %v329_v52  ;;  %v333_v2 = vld [vmem:[%s2105_s24 + $0x88] sm:$0xff]  ;;  %v1920_v10 = vld [vmem:[%s2293_s1 + $0x120] sm:$0xff]   ;;  %v318_v32 = vld [vmem:[%s2105_s24 + $0x10] sm:$0xff] }
  0x1b   : > { %1736 = vmatprep.subr.bf16.mxu1 %v1891_v21  ;;  %v337_v3 = vld [vmem:[%s2105_s24 + $0xa8] sm:$0xff]  ;;  %v1921_v11 = vld [vmem:[%s2293_s1 + $0x1a0] sm:$0xff]   ;;  %v322_v33 = vld [vmem:[%s2105_s24 + $0x30] sm:$0xff] }
  0x1c   : > { %v1567_v5 = vcombine.high %v333_v2, %v337_v3  ;;  %v1566_v7 = vcombine.low %v333_v2, %v337_v3  ;;  %v1922_v12 = vld [vmem:[%s2293_s1 + $0x168] sm:$0xff]   ;;  %v340_v16 = vld [vmem:[%s2105_s24 + $0xc0] sm:$0xff]  ;;  %v1552_v34 = vcombine.low %v318_v32, %v322_v33  ;;  %v319_v36 = vld [vmem:[%s2105_s24 + $0x18] sm:$0xff] }
  0x1d   : > { %1697 = vmatpush3.bf16.msra.mxu0 %v1892_v22  ;;  %v1923_v13 = vld [vmem:[%s2293_s1 + $0x1e8] sm:$0xff]   ;;  %v344_v17 = vld [vmem:[%s2105_s24 + $0xe0] sm:$0xff]  ;;  %v323_v37 = vld [vmem:[%s2105_s24 + $0x38] sm:$0xff] }
  0x1e   : > { %1737 = vmatpush3.bf16.msra.mxu1 %v1893_v23  ;;  %1698 = vmatprep.subr.bf16.mxu0 %v1894_v24  ;;  %v1924_v14 = vld [vmem:[%s2293_s1 + $0x128] sm:$0xff]   ;;  %v1573_v19 = vcombine.high %v340_v16, %v344_v17  ;;  %v1572_v21 = vcombine.low %v340_v16, %v344_v17  ;;  %v1926_v24 = vld [vmem:[%s2293_s1 + $0x170] sm:$0xff]   ;;  %v1554_v39 = vcombine.low %v319_v36, %v323_v37  ;;  %v335_v48 = vld [vmem:[%s2105_s24 + $0x98] sm:$0xff] }
  0x1f   : > { %1738 = vmatprep.subr.bf16.mxu1 %v1895_v25  ;;  %v1925_v15 = vld [vmem:[%s2293_s1 + $0x1a8] sm:$0xff]   ;;  %v1927_v25 = vld [vmem:[%s2293_s1 + $0x1f0] sm:$0xff]   ;;  %v339_v49 = vld [vmem:[%s2105_s24 + $0xb8] sm:$0xff] }
  0x20   : > { %v341_v18 = vld [vmem:[%s2105_s24 + $0xc8] sm:$0xff]  ;;  %v1547_v2 = vld [vmem:[%s2294_s2] ss:$0 sm:$0xff] }
  0x21   : > { %1699 = vmatpush3.bf16.msra.mxu0 %v1896_v26  ;;  %v345_v20 = vld [vmem:[%s2105_s24 + $0xe8] sm:$0xff]  ;;  %v1928_v26 = vld [vmem:[%s2293_s1 + $0x130] sm:$0xff]  }
  0x22   : > { %1739 = vmatpush3.bf16.msra.mxu1 %v1897_v27  ;;  %1700 = vmatprep.subr.bf16.mxu0 %v1898_v28  ;;  %v1575_v22 = vcombine.high %v341_v18, %v345_v20  ;;  %v1574_v23 = vcombine.low %v341_v18, %v345_v20  ;;  %v1929_v27 = vld [vmem:[%s2293_s1 + $0x1b0] sm:$0xff]   ;;  %v1930_v28 = vld [vmem:[%s2293_s1 + $0x178] sm:$0xff]  }
  0x23   : > { %1740 = vmatprep.subr.bf16.mxu1 %v1899_v29  ;;  %v1931_v29 = vld [vmem:[%s2293_s1 + $0x1f8] sm:$0xff]  }
  0x25   : > { %1701 = vmatpush3.bf16.msra.mxu0 %v1900_v30  ;;  %v1932_v30 = vld [vmem:[%s2293_s1 + $0x138] sm:$0xff]  }
  0x26   : > { %1741 = vmatpush3.bf16.msra.mxu1 %v1901_v31  ;;  %1766 = vmatprep.subr.bf16.mxu0 %v1902_v40  ;;  %v1933_v31 = vld [vmem:[%s2293_s1 + $0x1b8] sm:$0xff]   ;;  %v1555_v40 = vcombine.high %v319_v36, %v323_v37 }
  0x27   : > { %1806 = vmatprep.subr.bf16.mxu1 %v1903_v41  ;;  %v330_v41 = vld [vmem:[%s2105_s24 + $0x70] sm:$0xff] }
  0x28   : > { %1060 = vmatmul.mubr.bf16.vlgmr.msra.gmra.mrb[0].mxu0 %v1548_v35  ;;  %v1553_v35 = vcombine.high %v318_v32, %v322_v33 }
  0x29   : > { %1125 = vmatmul.mubr.bf16.vlgmr.msra.gmra.mrb[0].mxu1 %v1550_v38  ;;  %1767 = vmatpush3.bf16.msra.mxu0 %v1904_v42  ;;  %v326_v38 = vld [vmem:[%s2105_s24 + $0x50] sm:$0xff]  ;;  %v327_v42 = vld [vmem:[%s2105_s24 + $0x58] sm:$0xff] }
  0x2a   : > { %1807 = vmatpush3.bf16.msra.mxu1 %v1905_v43  ;;  %1768 = vmatprep.subr.bf16.mxu0 %v1906_v44  ;;  %v331_v43 = vld [vmem:[%s2105_s24 + $0x78] sm:$0xff]  ;;  %v1561_v44 = vcombine.high %v326_v38, %v330_v41 }
  0x2b   : > { %1808 = vmatprep.subr.bf16.mxu1 %v1907_v45  ;;  %1067 = vmatprep.mubr.bf16.mxu0 %v1557_v50  ;;  %v1563_v45 = vcombine.high %v327_v42, %v331_v43  ;;  %v1560_v50 = vcombine.low %v326_v38, %v330_v41  ;;  %v1562_v51 = vcombine.low %v327_v42, %v331_v43 }
  0x2c   : > { %1132 = vmatprep.mubr.bf16.mxu1 %v1559_v54  ;;  %v342_v54 = vld [vmem:[%s2105_s24 + $0xd0] sm:$0xff] }
  0x2d   : > { %1769 = vmatpush3.bf16.msra.mxu0 %v1908_v46  ;;  %v334_v46 = vld [vmem:[%s2105_s24 + $0x90] sm:$0xff] }
  0x2e   : > { %1809 = vmatpush3.bf16.msra.mxu1 %v1909_v47  ;;  %1770 = vmatprep.subr.bf16.mxu0 %v1910_v56  ;;  %v338_v47 = vld [vmem:[%s2105_s24 + $0xb0] sm:$0xff]  ;;  %v343_v56 = vld [vmem:[%s2105_s24 + $0xd8] sm:$0xff] }
  0x2f   : > { %1810 = vmatprep.subr.bf16.mxu1 %v1911_v57  ;;  %v1569_v52 = vcombine.high %v334_v46, %v338_v47  ;;  %v347_v57 = vld [vmem:[%s2105_s24 + $0xf8] sm:$0xff] }
  0x30   : > { %1068 = vmatmul.mubr.bf16.gmra.mrb[4].mxu0 %v1556_v53  ;;  %v1571_v53 = vcombine.high %v335_v48, %v339_v49 }
  0x31   : > { %1133 = vmatmul.mubr.bf16.gmra.mrb[4].mxu1 %v1558_v55  ;;  %1771 = vmatpush3.bf16.msra.mxu0 %v1912_v58  ;;  %v346_v55 = vld [vmem:[%s2105_s24 + $0xf0] sm:$0xff]  ;;  %v1568_v58 = vcombine.low %v334_v46, %v338_v47  ;;  %s1546_s24 = sshll.u32 %s2303_s8, 2 }
  0x32   : > { %1811 = vmatpush3.bf16.msra.mxu1 %v1913_v59  ;;  %1772 = vmatprep.subr.bf16.mxu0 %v1914_v60  ;;  %v1570_v59 = vcombine.low %v335_v48, %v339_v49  ;;  %v1577_v60 = vcombine.high %v342_v54, %v346_v55  ;;  %s2263_s16 = scalar_lea.vmem %s2295_s3, %s1546_s24 }
  0x33   : > { %1812 = vmatprep.subr.bf16.mxu1 %v1915_v61  ;;  %1075 = vmatprep.mubr.bf16.mxu0 %v1565_v4  ;;  %v1579_v61 = vcombine.high %v343_v56, %v347_v57 }
  0x34   : > { %1140 = vmatprep.mubr.bf16.mxu1 %v1567_v5 }
  0x35   : > { %1773 = vmatpush3.bf16.msra.mxu0 %v1916_v62  ;;  %v1576_v62 = vcombine.low %v342_v54, %v346_v55 }
  0x36   : > { %1813 = vmatpush3.bf16.msra.mxu1 %v1917_v63  ;;  %1774 = vmatprep.subr.bf16.mxu0 %v1918_v8  ;;  %v1578_v63 = vcombine.low %v343_v56, %v347_v57 }
  0x37   : > { %1814 = vmatprep.subr.bf16.mxu1 %v1919_v9 }
  0x38   : > { %1076 = vmatmul.mubr.bf16.gmra.mrb[8].mxu0 %v1564_v6 }
  0x39   : > { %1141 = vmatmul.mubr.bf16.gmra.mrb[8].mxu1 %v1566_v7  ;;  %1775 = vmatpush3.bf16.msra.mxu0 %v1920_v10 }
  0x3a   : > { %1815 = vmatpush3.bf16.msra.mxu1 %v1921_v11  ;;  %1776 = vmatprep.subr.bf16.mxu0 %v1922_v12 }
  0x3b   : > { %1816 = vmatprep.subr.bf16.mxu1 %v1923_v13  ;;  %1083 = vmatprep.mubr.bf16.mxu0 %v1573_v19 }
  0x3c   : > { %1148 = vmatprep.mubr.bf16.mxu1 %v1575_v22 }
  0x3d   : > { %1777 = vmatpush3.bf16.msra.mxu0 %v1924_v14 }
  0x3e   : > { %1817 = vmatpush3.bf16.msra.mxu1 %v1925_v15  ;;  %1778 = vmatprep.subr.bf16.mxu0 %v1926_v24 }
  0x3f   : > { %1818 = vmatprep.subr.bf16.mxu1 %v1927_v25 }
  0x40   : > { %1084 = vmatmul.mubr.bf16.gmra.mrb[12].mxu0 %v1572_v21 }
  0x41   : > { %1149 = vmatmul.mubr.bf16.gmra.mrb[12].mxu1 %v1574_v23  ;;  %1779 = vmatpush3.bf16.msra.mxu0 %v1928_v26 }
  0x42   : > { %1819 = vmatpush3.bf16.msra.mxu1 %v1929_v27  ;;  %1780 = vmatprep.subr.bf16.mxu0 %v1930_v28 }
  0x43   : > { %1820 = vmatprep.subr.bf16.mxu1 %v1931_v29  ;;  %1189 = vmatprep.mubr.bf16.mxu0 %v1553_v35 }
  0x44   : > { %1254 = vmatprep.mubr.bf16.mxu1 %v1555_v40 }
  0x45   : > { %1781 = vmatpush3.bf16.msra.mxu0 %v1932_v30 }
  0x46   : > { %1821 = vmatpush3.bf16.msra.mxu1 %v1933_v31 }
  0x48   : > { %1190 = vmatmul.mubr.bf16.vlgmr.msra.gmra.mrb[16].mxu0 %v1552_v34 }
  0x49   : > { %1255 = vmatmul.mubr.bf16.vlgmr.msra.gmra.mrb[16].mxu1 %v1554_v39  ;;  %1197 = vmatprep.mubr.bf16.mxu0 %v1561_v44 }
  0x4a   : > { %1262 = vmatprep.mubr.bf16.mxu1 %v1563_v45 }
  0x50   : > { %1198 = vmatmul.mubr.bf16.gmra.mrb[20].mxu0 %v1560_v50 }
  0x51   : > { %1263 = vmatmul.mubr.bf16.gmra.mrb[20].mxu1 %v1562_v51  ;;  %1205 = vmatprep.mubr.bf16.mxu0 %v1569_v52 }
  0x52   : > { %1270 = vmatprep.mubr.bf16.mxu1 %v1571_v53 }
  0x58   : > { %1206 = vmatmul.mubr.bf16.gmra.mrb[24].mxu0 %v1568_v58 }
  0x59   : > { %1271 = vmatmul.mubr.bf16.gmra.mrb[24].mxu1 %v1570_v59  ;;  %1213 = vmatprep.mubr.bf16.mxu0 %v1577_v60 }
  0x5a   : > { %1278 = vmatprep.mubr.bf16.mxu1 %v1579_v61 }
  0x60   : > { %1214 = vmatmul.mubr.bf16.gmra.mrb[28].mxu0 %v1576_v62 }
  0x61   : > { %1279 = vmatmul.mubr.bf16.gmra.mrb[28].mxu1 %v1578_v63 }
  0xfb   : > { %v1702_v0 = vpop.f32.mrb[0].mxu0 }
  0xfc   : > { %v1742_v1 = vpop.f32.mrb[0].mxu1  ;;  %v1703_v3 = vpop.f32.mrb[1].mxu0 }
  0xfd   : > { %v1704_v4 = vadd.f32 %v1703_v3, %v1702_v0  ;;  %v1743_v5 = vpop.f32.mrb[1].mxu1  ;;  %v1705_v6 = vpop.f32.mrb[2].mxu0 }
  0xfe   : > { %v1744_v7 = vadd.f32 %v1743_v5, %v1742_v1  ;;  %v1745_v8 = vpop.f32.mrb[2].mxu1  ;;  %v1706_v9 = vpop.f32.mrb[3].mxu0 }
  0xff   : > { %v1062_v10 = vadd.f32 %v1704_v4, %v1547_v2  ;;  %v1707_v11 = vadd.f32 %v1706_v9, %v1705_v6  ;;  %v1746_v12 = vpop.f32.mrb[3].mxu1 }
 0x100   : > { %v1747_v13 = vadd.f32 %v1746_v12, %v1745_v8 }
 0x101   : > { %v1127_v14 = vadd.f32 %v1744_v7, %v1062_v10  ;;  %v1065_v15 = vadd.f32 %v1707_v11, %v1547_v2 }
 0x103   : > { %v2244_v16 = vadd.f32 %v1747_v13, %v1065_v15  ;;  %v1708_v17 = vpop.f32.mrb[4].mxu0 }
 0x104   : > { %v1748_v18 = vpop.f32.mrb[4].mxu1  ;;  %v1709_v19 = vpop.f32.mrb[5].mxu0 }
 0x105   : > { %v1710_v20 = vadd.f32 %v1709_v19, %v1708_v17  ;;  %v1749_v21 = vpop.f32.mrb[5].mxu1  ;;  %v1711_v22 = vpop.f32.mrb[6].mxu0 }
 0x106   : > { %v1750_v23 = vadd.f32 %v1749_v21, %v1748_v18  ;;  %v1751_v24 = vpop.f32.mrb[6].mxu1  ;;  %v1712_v25 = vpop.f32.mrb[7].mxu0 }
 0x107   : > { %v1070_v26 = vadd.f32 %v1710_v20, %v1547_v2  ;;  %v1713_v27 = vadd.f32 %v1712_v25, %v1711_v22  ;;  %v1752_v28 = vpop.f32.mrb[7].mxu1 }
 0x108   : > { %v1753_v29 = vadd.f32 %v1752_v28, %v1751_v24 }
 0x109   : > { %v2246_v30 = vadd.f32 %v1750_v23, %v1070_v26  ;;  %v1073_v31 = vadd.f32 %v1713_v27, %v1547_v2 }
 0x10b   : > { %v2248_v32 = vadd.f32 %v1753_v29, %v1073_v31  ;;  %v1714_v33 = vpop.f32.mrb[8].mxu0 }
 0x10c   : > { %v1754_v34 = vpop.f32.mrb[8].mxu1  ;;  %v1715_v35 = vpop.f32.mrb[9].mxu0 }
 0x10d   : > { %v1755_v36 = vpop.f32.mrb[9].mxu1  ;;  %v1716_v37 = vadd.f32 %v1715_v35, %v1714_v33  ;;  %v1717_v39 = vpop.f32.mrb[10].mxu0 }
 0x10e   : > { %v1756_v38 = vadd.f32 %v1755_v36, %v1754_v34  ;;  %v1757_v40 = vpop.f32.mrb[10].mxu1  ;;  %v1718_v41 = vpop.f32.mrb[11].mxu0 }
 0x10f   : > { %v1758_v42 = vpop.f32.mrb[11].mxu1  ;;  %v1078_v43 = vadd.f32 %v1716_v37, %v1547_v2  ;;  %v1719_v44 = vadd.f32 %v1718_v41, %v1717_v39 }
 0x110   : > { %v1759_v45 = vadd.f32 %v1758_v42, %v1757_v40 }
 0x111   : > { %v2250_v46 = vadd.f32 %v1756_v38, %v1078_v43  ;;  %v1081_v47 = vadd.f32 %v1719_v44, %v1547_v2 }
 0x113   : > { %v2252_v48 = vadd.f32 %v1759_v45, %v1081_v47  ;;  %v1720_v49 = vpop.f32.mrb[12].mxu0 }
 0x114   : > { %v1760_v50 = vpop.f32.mrb[12].mxu1  ;;  %v1721_v51 = vpop.f32.mrb[13].mxu0 }
 0x115   : > { %v1722_v52 = vadd.f32 %v1721_v51, %v1720_v49  ;;  %v1761_v53 = vpop.f32.mrb[13].mxu1  ;;  %v1723_v54 = vpop.f32.mrb[14].mxu0 }
 0x116   : > { %v1762_v55 = vadd.f32 %v1761_v53, %v1760_v50  ;;  %v1763_v56 = vpop.f32.mrb[14].mxu1  ;;  %v1724_v57 = vpop.f32.mrb[15].mxu0 }
 0x117   : > { %v1086_v58 = vadd.f32 %v1722_v52, %v1547_v2  ;;  %v1725_v59 = vadd.f32 %v1724_v57, %v1723_v54  ;;  %v1764_v60 = vpop.f32.mrb[15].mxu1 }
 0x118   : > { %v1765_v61 = vadd.f32 %v1764_v60, %v1763_v56 }
 0x119   : > { %v2254_v62 = vadd.f32 %v1762_v55, %v1086_v58  ;;  %v1089_v63 = vadd.f32 %v1725_v59, %v1547_v2 }
 0x11b   : > { %v2256_v0 = vadd.f32 %v1765_v61, %v1089_v63  ;;  %v1782_v1 = vpop.f32.mrb[16].mxu0 }
 0x11c   : > { %v1822_v3 = vpop.f32.mrb[16].mxu1  ;;  %v1783_v4 = vpop.f32.mrb[17].mxu0 }
 0x11d   : > { %v1784_v5 = vadd.f32 %v1783_v4, %v1782_v1  ;;  %v1823_v6 = vpop.f32.mrb[17].mxu1  ;;  %v1785_v7 = vpop.f32.mrb[18].mxu0 }
 0x11e   : > { %v1824_v8 = vadd.f32 %v1823_v6, %v1822_v3  ;;  %v1825_v9 = vpop.f32.mrb[18].mxu1  ;;  %v1786_v10 = vpop.f32.mrb[19].mxu0 }
 0x11f   : > { %v1192_v11 = vadd.f32 %v1784_v5, %v1127_v14  ;;  %v1787_v12 = vadd.f32 %v1786_v10, %v1785_v7  ;;  %v1826_v13 = vpop.f32.mrb[19].mxu1 }
 0x120   : > { %v1827_v15 = vadd.f32 %v1826_v13, %v1825_v9 }
 0x121   : > { %v1257_v17 = vadd.f32 %v1824_v8, %v1192_v11  ;;  %v1195_v18 = vadd.f32 %v1787_v12, %v2244_v16 }
 0x123   : > { %v1260_v2 = vadd.f32 %v1827_v15, %v1195_v18  ;;  %v1788_v19 = vpop.f32.mrb[20].mxu0  ;;  %v1341_v20 = vmul.f32 %v1257_v17, %v1257_v17 }
 0x124   : > { %v1828_v21 = vpop.f32.mrb[20].mxu1  ;;  %v1789_v22 = vpop.f32.mrb[21].mxu0 }
 0x125   : > { %v1666_v23 = vpack.c.bf16 %v1260_v2, %v1257_v17  ;;  %v1327_v14 = vadd.f32 %v1260_v2, %v1257_v17  ;;  %v1342_v24 = vmul.f32 %v1260_v2, %v1260_v2  ;;  %v1790_v25 = vadd.f32 %v1789_v22, %v1788_v19  ;;  %v1829_v26 = vpop.f32.mrb[21].mxu1  ;;  %v1791_v27 = vpop.f32.mrb[22].mxu0 }
 0x126   : > { %v1830_v28 = vadd.f32 %v1829_v26, %v1828_v21  ;;  %v1831_v16 = vpop.f32.mrb[22].mxu1  ;;  %v1792_v29 = vpop.f32.mrb[23].mxu0 }
 0x127   : > { %1667 = vst [vmem:[%s2263_s16] sm:$0xff] %v1666_v23   ;;  %v1349_v31 = vadd.f32 %v1342_v24, %v1341_v20  ;;  %v1200_v33 = vadd.f32 %v1790_v25, %v2246_v30  ;;  %v1793_v34 = vadd.f32 %v1792_v29, %v1791_v27  ;;  %v1832_v35 = vpop.f32.mrb[23].mxu1 }
 0x128   : > { %v1833_v36 = vadd.f32 %v1832_v35, %v1831_v16 }
 0x129   : > { %v1265_v37 = vadd.f32 %v1830_v28, %v1200_v33  ;;  %v1203_v38 = vadd.f32 %v1793_v34, %v2248_v32 }
 0x12b   : > { %v1328_v39 = vadd.f32 %v1327_v14, %v1265_v37  ;;  %v1343_v40 = vmul.f32 %v1265_v37, %v1265_v37  ;;  %v1268_v41 = vadd.f32 %v1833_v36, %v1203_v38  ;;  %v1794_v42 = vpop.f32.mrb[24].mxu0 }
 0x12c   : > { %v1834_v43 = vpop.f32.mrb[24].mxu1  ;;  %v1795_v44 = vpop.f32.mrb[25].mxu0 }
 0x12d   : > { %v1350_v45 = vadd.f32 %v1349_v31, %v1343_v40  ;;  %v1671_v47 = vpack.c.bf16 %v1268_v41, %v1265_v37  ;;  %v1329_v49 = vadd.f32 %v1328_v39, %v1268_v41  ;;  %v1344_v50 = vmul.f32 %v1268_v41, %v1268_v41  ;;  %v1835_v51 = vpop.f32.mrb[25].mxu1  ;;  %v1797_v52 = vpop.f32.mrb[26].mxu0 }
 0x12e   : > { %v1796_v30 = vadd.f32 %v1795_v44, %v1794_v42  ;;  %v1836_v53 = vadd.f32 %v1835_v51, %v1834_v43  ;;  %v1837_v54 = vpop.f32.mrb[26].mxu1  ;;  %v1798_v55 = vpop.f32.mrb[27].mxu0 }
 0x12f   : > { %1683 = vst [vmem:[%s2263_s16 + $0x8] sm:$0xff] %v1671_v47   ;;  %v1351_v56 = vadd.f32 %v1350_v45, %v1344_v50  ;;  %v1799_v32 = vadd.f32 %v1798_v55, %v1797_v52  ;;  %v1838_v57 = vpop.f32.mrb[27].mxu1 }
 0x130   : > { %v1208_v58 = vadd.f32 %v1796_v30, %v2250_v46  ;;  %v1839_v59 = vadd.f32 %v1838_v57, %v1837_v54 }
 0x131   : > { %v1211_v60 = vadd.f32 %v1799_v32, %v2252_v48 }
 0x132   : > { %v1273_v61 = vadd.f32 %v1836_v53, %v1208_v58 }
 0x133   : > { %v1276_v63 = vadd.f32 %v1839_v59, %v1211_v60  ;;  %v1800_v1 = vpop.f32.mrb[28].mxu0 }
 0x134   : > { %v1330_v3 = vadd.f32 %v1329_v49, %v1273_v61  ;;  %v1345_v4 = vmul.f32 %v1273_v61, %v1273_v61  ;;  %v1840_v5 = vpop.f32.mrb[28].mxu1  ;;  %v1801_v6 = vpop.f32.mrb[29].mxu0 }
 0x135   : > { %v1676_v7 = vpack.c.bf16 %v1276_v63, %v1273_v61  ;;  %v1346_v8 = vmul.f32 %v1276_v63, %v1276_v63  ;;  %v1802_v9 = vadd.f32 %v1801_v6, %v1800_v1  ;;  %v1841_v10 = vpop.f32.mrb[29].mxu1  ;;  %v1803_v11 = vpop.f32.mrb[30].mxu0 }
 0x136   : > { %v1352_v12 = vadd.f32 %v1351_v56, %v1345_v4  ;;  %v1331_v13 = vadd.f32 %v1330_v3, %v1276_v63  ;;  %v1842_v15 = vadd.f32 %v1841_v10, %v1840_v5  ;;  %v1843_v46 = vpop.f32.mrb[30].mxu1  ;;  %v1804_v17 = vpop.f32.mrb[31].mxu0 }
 0x137   : > { %1684 = vst [vmem:[%s2263_s16 + $0x10] sm:$0xff] %v1676_v7   ;;  %v1216_v48 = vadd.f32 %v1802_v9, %v2254_v62  ;;  %v1805_v18 = vadd.f32 %v1804_v17, %v1803_v11  ;;  %v1844_v2 = vpop.f32.mrb[31].mxu1 }
 0x138   : > { %v1353_v19 = vadd.f32 %v1352_v12, %v1346_v8  ;;  %v1845_v20 = vadd.f32 %v1844_v2, %v1843_v46 }
 0x139   : > { %v1281_v21 = vadd.f32 %v1842_v15, %v1216_v48  ;;  %v1219_v22 = vadd.f32 %v1805_v18, %v2256_v0 }
 0x13b   : > { %v1332_v23 = vadd.f32 %v1331_v13, %v1281_v21  ;;  %v1347_v14 = vmul.f32 %v1281_v21, %v1281_v21  ;;  %v1284_v24 = vadd.f32 %v1845_v20, %v1219_v22 }
 0x13d   : > { %v1354_v25 = vadd.f32 %v1353_v19, %v1347_v14  ;;  %v1681_v26 = vpack.c.bf16 %v1284_v24, %v1281_v21  ;;  %v1333_v27 = vadd.f32 %v1332_v23, %v1284_v24  ;;  %v1348_v28 = vmul.f32 %v1284_v24, %v1284_v24 }
 0x13f   : > { %1685 = vst [vmem:[%s2263_s16 + $0x18] sm:$0xff] %v1681_v26   ;;  %v1334_v16 = vrot.slane %v1333_v27, 4  ;;  %v1355_v29 = vadd.f32 %v1354_v25, %v1348_v28 }
 0x141   : > { %v1335_v62 = vadd.f32 %v1334_v16, %v1333_v27  ;;  %v1356_v31 = vrot.slane %v1355_v29, 4 }
 0x143   : > { %v1336_v33 = vrot.slane %v1335_v62, 2  ;;  %v1357_v34 = vadd.f32 %v1356_v31, %v1355_v29 }
 0x145   : > { %v1337_v35 = vadd.f32 %v1336_v33, %v1335_v62  ;;  %v1358_v36 = vrot.slane %v1357_v34, 2 }
 0x147   : > { %v1338_v0 = vrot.slane %v1337_v35, 1  ;;  %v1359_v37 = vadd.f32 %v1358_v36, %v1357_v34 }
 0x149   : > { %v1339_v38 = vadd.f32 %v1338_v0, %v1337_v35  ;;  %v1360_v39 = vrot.slane %v1359_v37, 1 }
 0x14b   : > { %1340 = vst [vmem:[%s308_s22] sm:$0x1] %v1339_v38  ;;  %v1361_v40 = vadd.f32 %v1360_v39, %v1359_v37 }
 0x14d   : > { %1362 = vst [vmem:[%s314_s26] sm:$0x1] %v1361_v40 }
 0x14e PF: > { %s16_s20 = sadd.s32 1, %s1956_s20   ;;  %s2298_s18 = smov %s1952_s19 }
 0x14f   : > { %p13_p6 = scmp.ge.s32.totalorder %s16_s20, 4   ;;  %s2299_s19 = smov %s2301_s21 }
 0x151   :  { %15 = sbr.rel (!%p13_p6) target bundleno = 2 (0x2), region = 92 }

// kernel: discriminator_forward.10
= control target key start
LH: loop header
LB: loop body
LE: loop exit
PB: predicated region body
PF: predicated region fallthrough
CT: control target
= control target key end

     0   :  { %s447_s12 = smov 0   ;;  %s477_s0 = inlined_call_operand.vmem [shape: bf16[128,128], index: 0, kind: input, shape index: {}]   ;;  %s478_s1 = inlined_call_operand.vmem [shape: f32[1,128], index: 1, kind: input, shape index: {}]   ;;  %s479_s2 = inlined_call_operand.vmem [shape: f32[1,128], index: 2, kind: input, shape index: {}]   ;;  %s480_s3 = inlined_call_operand.vmem [shape: bf16[128,128], index: 3, kind: output, shape index: {}]  }
   0x1 LB: > { %s340_s13 = sadd.s32 4294967295, %s425_s12   ;;  %p344_p0 = scmp.ge.s32.totalorder %s425_s12, 1  ;;  %s425_s12 = sphi %s447_s12, %s13_s12  }
   0x2   : > { %p138_p1 = scmp.lt.s32.totalorder %s425_s12, 3 }
   0x4   : > { %p139_p2 = pnand %p344_p0, %p138_p1 }
   0x5   : > { %s345_s14 = sshll.u32 (!%p139_p2), %s340_s13, 3  ;;  %v349_v0 = vld [vmem:[%s478_s1] ss:$0 sm:$0xff] (!%p139_p2) }
   0x6   : > { %142 = sbr.rel (%p139_p2) target bundleno = 34 (0x22), region = 32  ;;  %p163_p3 = scmp.lt.s32.totalorder (!%p139_p2), %s345_s14, 15  ;;  %v350_v13 = vld [vmem:[%s479_s2] ss:$0 sm:$0xff] (!%p139_p2) }
   0xd   : > { %s482_s14 = smov (!%p163_p3, %s345_s14), 15 }
   0xe   : > { %s346_s15 = sshll.u32 %s482_s14, 2 }
   0xf   : > { %s166_s18 = scalar_lea.vmem %s477_s0, %s346_s15  ;;  %s172_s25 = scalar_lea.vmem %s480_s3, %s346_s15 }
  0x10   : > { %v370_v1 = vld [vmem:[%s166_s18] sm:$0xff]   ;;  %v405_v2 = vld [vmem:[%s166_s18 + $0x8] sm:$0xff]   ;;  %v406_v3 = vld [vmem:[%s166_s18 + $0x10] sm:$0xff]  }
  0x11   : > { %v371_v4 = vunpack.c.l.bf16 %v370_v1  ;;  %v372_v5 = vunpack.c.h.bf16 %v370_v1  ;;  %v375_v6 = vunpack.c.l.bf16 %v405_v2  ;;  %v376_v7 = vunpack.c.h.bf16 %v405_v2  ;;  %v407_v8 = vld [vmem:[%s166_s18 + $0x18] sm:$0xff]  }
  0x12   : > { %v379_v9 = vunpack.c.l.bf16 %v406_v3  ;;  %v380_v10 = vunpack.c.h.bf16 %v406_v3  ;;  %v383_v11 = vunpack.c.l.bf16 %v407_v8  ;;  %v384_v12 = vunpack.c.h.bf16 %v407_v8 }
  0x13   : > { %v197_v14 = vmul.f32 %v371_v4, %v349_v0  ;;  %v198_v15 = vmul.f32 %v372_v5, %v349_v0  ;;  %v199_v16 = vmul.f32 %v375_v6, %v349_v0  ;;  %v200_v17 = vmul.f32 %v376_v7, %v349_v0 }
  0x14   : > { %v201_v18 = vmul.f32 %v379_v9, %v349_v0  ;;  %v202_v19 = vmul.f32 %v380_v10, %v349_v0  ;;  %v203_v20 = vmul.f32 %v383_v11, %v349_v0  ;;  %v204_v21 = vmul.f32 %v384_v12, %v349_v0 }
  0x15   : > { %v212_v22 = vadd.f32 %v350_v13, %v197_v14  ;;  %v213_v23 = vadd.f32 %v350_v13, %v198_v15  ;;  %v214_v24 = vadd.f32 %v350_v13, %v199_v16  ;;  %v215_v25 = vadd.f32 %v350_v13, %v200_v17 }
  0x16   : > { %v216_v26 = vadd.f32 %v350_v13, %v201_v18  ;;  %v217_v27 = vadd.f32 %v350_v13, %v202_v19  ;;  %v218_v28 = vadd.f32 %v350_v13, %v203_v20  ;;  %v219_v29 = vadd.f32 %v350_v13, %v204_v21 }
  0x17   : > { %vm220_vm0 = vcmp.ge.f32.partialorder %v212_v22, 0.0  ;;  %vm221_vm1 = vcmp.ge.f32.partialorder %v213_v23, 0.0  ;;  %v228_v30 = vmul.f32 0.2, %v212_v22  ;;  %v229_v31 = vmul.f32 0.2, %v213_v23 }
  0x18   : > { %vm222_vm2 = vcmp.ge.f32.partialorder %v214_v24, 0.0  ;;  %vm223_vm3 = vcmp.ge.f32.partialorder %v215_v25, 0.0  ;;  %v230_v32 = vmul.f32 0.2, %v214_v24  ;;  %v231_v33 = vmul.f32 0.2, %v215_v25 }
  0x19   : > { %v236_v34 = vsel %vm220_vm0, %v212_v22, %v228_v30  ;;  %v237_v35 = vsel %vm221_vm1, %v213_v23, %v229_v31  ;;  %vm224_vm4 = vcmp.ge.f32.partialorder %v216_v26, 0.0  ;;  %vm225_vm5 = vcmp.ge.f32.partialorder %v217_v27, 0.0 }
  0x1a   : > { %v388_v36 = vpack.c.bf16 %v237_v35, %v236_v34  ;;  %v238_v37 = vsel %vm222_vm2, %v214_v24, %v230_v32  ;;  %v239_v38 = vsel %vm223_vm3, %v215_v25, %v231_v33  ;;  %v232_v39 = vmul.f32 0.2, %v216_v26 }
  0x1b   : > { %v393_v40 = vpack.c.bf16 %v239_v38, %v238_v37  ;;  %v233_v41 = vmul.f32 0.2, %v217_v27  ;;  %vm226_vm6 = vcmp.ge.f32.partialorder %v218_v28, 0.0  ;;  %vm227_vm7 = vcmp.ge.f32.partialorder %v219_v29, 0.0 }
  0x1c   : > { %389 = vst [vmem:[%s172_s25] sm:$0xff] %v388_v36   ;;  %v240_v42 = vsel %vm224_vm4, %v216_v26, %v232_v39  ;;  %v234_v43 = vmul.f32 0.2, %v218_v28  ;;  %v235_v44 = vmul.f32 0.2, %v219_v29 }
  0x1d   : > { %408 = vst [vmem:[%s172_s25 + $0x8] sm:$0xff] %v393_v40   ;;  %v241_v45 = vsel %vm225_vm5, %v217_v27, %v233_v41 }
  0x1e   : > { %v398_v46 = vpack.c.bf16 %v241_v45, %v240_v42  ;;  %v242_v47 = vsel %vm226_vm6, %v218_v28, %v234_v43  ;;  %v243_v48 = vsel %vm227_vm7, %v219_v29, %v235_v44 }
  0x1f   : > { %v403_v49 = vpack.c.bf16 %v243_v48, %v242_v47 }
  0x20   : > { %409 = vst [vmem:[%s172_s25 + $0x10] sm:$0xff] %v398_v46  }
  0x21   : > { %410 = vst [vmem:[%s172_s25 + $0x18] sm:$0xff] %v403_v49  }
  0x22 PF: > { %s13_s12 = sadd.s32 1, %s425_s12  }
  0x23   : > { %p10_p4 = scmp.ge.s32.totalorder %s13_s12, 4  }
  0x25   :  { %12 = sbr.rel (!%p10_p4) target bundleno = 1 (0x1), region = 62 }

// kernel: discriminator_forward.12
= control target key start
LH: loop header
LB: loop body
LE: loop exit
PB: predicated region body
PF: predicated region fallthrough
CT: control target
= control target key end

     0   :  { %s356_s12 = smov 0   ;;  %s382_s0 = inlined_call_operand.vmem [shape: bf16[32,256], index: 0, kind: input, shape index: {}]   ;;  %s383_s1 = inlined_call_operand.vmem [shape: f32[1,256], index: 1, kind: input, shape index: {}]   ;;  %s384_s2 = inlined_call_operand.vmem [shape: f32[1,256], index: 2, kind: input, shape index: {}]   ;;  %s385_s3 = inlined_call_operand.vmem [shape: bf16[32,256], index: 3, kind: output, shape index: {}]  }
   0x1 LB: > { %s301_s13 = sadd.s32 4294967295, %s334_s12   ;;  %p305_p0 = scmp.ge.s32.totalorder %s334_s12, 1  ;;  %s334_s12 = sphi %s356_s12, %s13_s12  }
   0x2   : > { %p139_p1 = scmp.lt.s32.totalorder %s334_s12, 3 }
   0x4   : > { %p140_p2 = pnand %p305_p0, %p139_p1 }
   0x5   : > { %s306_s14 = sshll.u32 (!%p140_p2), %s301_s13, 1  ;;  %v187_v0 = vlaneseq (!%p140_p2)  ;;  %v185_v2 = vld [vmem:[%s383_s1] sm:$0x3] (!%p140_p2) }
   0x6   : > { %143 = sbr.rel (%p140_p2) target bundleno = 30 (0x1e), region = 32  ;;  %p166_p3 = scmp.lt.s32.totalorder (!%p140_p2), %s306_s14, 3  ;;  %v201_v5 = vld [vmem:[%s384_s2] sm:$0x3] (!%p140_p2) }
   0x7   : > { %v188_v1 = vshrl.u32 (!%p140_p2), %v187_v0, 7 }
   0x9   : > { %v189_v3 = vsub.s32 (!%p140_p2), 0, %v188_v1  ;;  %v193_v4 = vsub.s32 (!%p140_p2), 1, %v188_v1 }
   0xb   : > { %v190_v6 = vrot.slane (!%p140_p2), %v185_v2, %v189_v3  ;;  %v194_v7 = vrot.slane (!%p140_p2), %v185_v2, %v193_v4  ;;  %v206_v10 = vrot.slane (!%p140_p2), %v201_v5, %v189_v3  ;;  %v210_v11 = vrot.slane (!%p140_p2), %v201_v5, %v193_v4 }
   0xd   : > { %s387_s14 = smov (!%p166_p3, %s306_s14), 3 }
   0xe   : > { %s316_s19 = sshll.u32 %s387_s14, 3 }
   0xf   : > { %s170_s22 = scalar_lea.vmem %s382_s0, %s316_s19  ;;  %s177_s25 = scalar_lea.vmem %s385_s3, %s316_s19 }
  0x10   : > { %v179_v8 = vld [vmem:[%s170_s22] sm:$0xff]  ;;  %v180_v9 = vld [vmem:[%s170_s22 + $0x8] sm:$0xff] }
  0x11   : > { %v181_v12 = vunpack.c.l.bf16 %v179_v8  ;;  %v182_v13 = vunpack.c.h.bf16 %v179_v8  ;;  %v183_v14 = vunpack.c.l.bf16 %v180_v9  ;;  %v184_v15 = vunpack.c.h.bf16 %v180_v9 }
  0x13   : > { %v197_v16 = vmul.f32 %v190_v6, %v181_v12  ;;  %v198_v17 = vmul.f32 %v194_v7, %v182_v13  ;;  %v199_v18 = vmul.f32 %v190_v6, %v183_v14  ;;  %v200_v19 = vmul.f32 %v194_v7, %v184_v15 }
  0x15   : > { %v213_v20 = vadd.f32 %v206_v10, %v197_v16  ;;  %v214_v21 = vadd.f32 %v210_v11, %v198_v17  ;;  %v215_v22 = vadd.f32 %v206_v10, %v199_v18  ;;  %v216_v23 = vadd.f32 %v210_v11, %v200_v19 }
  0x17   : > { %vm217_vm0 = vcmp.ge.f32.partialorder %v213_v20, 0.0  ;;  %vm218_vm1 = vcmp.ge.f32.partialorder %v214_v21, 0.0  ;;  %v221_v24 = vmul.f32 0.2, %v213_v20  ;;  %v222_v25 = vmul.f32 0.2, %v214_v21 }
  0x18   : > { %vm219_vm2 = vcmp.ge.f32.partialorder %v215_v22, 0.0  ;;  %vm220_vm3 = vcmp.ge.f32.partialorder %v216_v23, 0.0  ;;  %v223_v26 = vmul.f32 0.2, %v215_v22  ;;  %v224_v27 = vmul.f32 0.2, %v216_v23 }
  0x19   : > { %v225_v28 = vsel %vm217_vm0, %v213_v20, %v221_v24  ;;  %v226_v29 = vsel %vm218_vm1, %v214_v21, %v222_v25 }
  0x1a   : > { %v318_v30 = vpack.c.bf16 %v226_v29, %v225_v28  ;;  %v227_v31 = vsel %vm219_vm2, %v215_v22, %v223_v26  ;;  %v228_v32 = vsel %vm220_vm3, %v216_v23, %v224_v27 }
  0x1b   : > { %v319_v33 = vpack.c.bf16 %v228_v32, %v227_v31 }
  0x1c   : > { %241 = vst [vmem:[%s177_s25] sm:$0xff] %v318_v30 }
  0x1d   : > { %242 = vst [vmem:[%s177_s25 + $0x8] sm:$0xff] %v319_v33 }
  0x1e PF: > { %s13_s12 = sadd.s32 1, %s334_s12  }
  0x1f   : > { %p10_p4 = scmp.ge.s32.totalorder %s13_s12, 4  }
  0x21   :  { %12 = sbr.rel (!%p10_p4) target bundleno = 1 (0x1), region = 62 }

// kernel: discriminator_forward.11
= control target key start
LH: loop header
LB: loop body
LE: loop exit
PB: predicated region body
PF: predicated region fallthrough
CT: control target
= control target key end

     0   :  { %s3406_s18 = smov 0   ;;  %s3408_s19 = smov 0   ;;  %s4293_s0 = inlined_call_operand.vmem [shape: bf16[32,2048], index: 0, kind: input, shape index: {}]   ;;  %s4294_s1 = inlined_call_operand.vmem [shape: bf16[2048,256], index: 1, kind: input, shape index: {}]   ;;  %s4295_s2 = inlined_call_operand.vmem [shape: f32[1,256], index: 2, kind: input, shape index: {}]   ;;  %s4296_s3 = inlined_call_operand.vmem [shape: bf16[32,256], index: 3, kind: output, shape index: {0}]   ;;  %s4297_s4 = inlined_call_operand.vmem [shape: f32[2,1,256], index: 4, kind: output, shape index: {1}]   ;;  %s4298_s5 = inlined_call_operand.vmem [shape: f32[2,1,256], index: 5, kind: output, shape index: {2}]  }
   0x1   :  { %s3410_s20 = smov 0  }
   0x2 LB: > { %s25_s21 = sadd.s32 1, %s3369_s19  ;;  %p2621_p0 = scmp.ge.s32.totalorder %s3373_s20, 1  ;;  %s3373_s20 = sphi %s3410_s20, %s16_s20   ;;  %s3369_s19 = sphi %s3408_s19, %s4300_s19   ;;  %s3365_s18 = sphi %s3406_s18, %s4299_s18  }
   0x3   : > { %p26_p1 = scmp.ge.s32.totalorder %s25_s21, 2  ;;  %p233_p2 = scmp.lt.s32.totalorder %s3373_s20, 3 }
   0x5   : > { %s4302_s21 = smov (%p26_p1, %s25_s21), 0  ;;  %p234_p3 = pnand %p2621_p0, %p233_p2 }
   0x6   : > { %v2967_v0 = vld [vmem:[%s4294_s1 + $0x4] ss:$8 sps:$4 sm:$0xff] (!%p234_p3)   ;;  %v2971_v2 = vld [vmem:[%s4294_s1] ss:$8 sps:$4 sm:$0xff] (!%p234_p3)   ;;  %v2973_v4 = vld [vmem:[%s4294_s1 + $0x14] ss:$8 sps:$4 sm:$0xff] (!%p234_p3)  }
   0x7   : > { %237 = sbr.rel (%p234_p3) target bundleno = 505 (0x1f9), region = 32  ;;  %v2969_v1 = vld [vmem:[%s4294_s1 + $0x404] ss:$8 sps:$4 sm:$0xff] (!%p234_p3)   ;;  %1984 = vmatprep.subr.bf16.mxu1 (!%p234_p3), %v2967_v0  ;;  %v2972_v3 = vld [vmem:[%s4294_s1 + $0x400] ss:$8 sps:$4 sm:$0xff] (!%p234_p3)   ;;  %s2622_s15 = sshll.u32 (!%p234_p3), %s3365_s18, 1 }
   0x8   : > { %2156 = vmatprep.subr.bf16.mxu0 (!%p234_p3), %v2969_v1  ;;  %1985 = vmatpush1.bf16.msra.mxu1 (!%p234_p3), %v2971_v2  ;;  %v2975_v5 = vld [vmem:[%s4294_s1 + $0x414] ss:$8 sps:$4 sm:$0xff] (!%p234_p3)   ;;  %v2977_v6 = vld [vmem:[%s4294_s1 + $0x10] ss:$8 sps:$4 sm:$0xff] (!%p234_p3)   ;;  %v2979_v8 = vld [vmem:[%s4294_s1 + $0x24] ss:$8 sps:$4 sm:$0xff] (!%p234_p3)  }
   0x9   : > { %2157 = vmatpush1.bf16.msra.mxu0 (!%p234_p3), %v2972_v3  ;;  %1986 = vmatprep.subr.bf16.mxu1 (!%p234_p3), %v2973_v4  ;;  %v2978_v7 = vld [vmem:[%s4294_s1 + $0x410] ss:$8 sps:$4 sm:$0xff] (!%p234_p3)   ;;  %v2981_v9 = vld [vmem:[%s4294_s1 + $0x424] ss:$8 sps:$4 sm:$0xff] (!%p234_p3)   ;;  %v2983_v10 = vld [vmem:[%s4294_s1 + $0x20] ss:$8 sps:$4 sm:$0xff] (!%p234_p3)  }
   0xa   : > { %2158 = vmatprep.subr.bf16.mxu0 (!%p234_p3), %v2975_v5  ;;  %v2984_v11 = vld [vmem:[%s4294_s1 + $0x420] ss:$8 sps:$4 sm:$0xff] (!%p234_p3)   ;;  %v2985_v12 = vld [vmem:[%s4294_s1 + $0x34] ss:$8 sps:$4 sm:$0xff] (!%p234_p3)   ;;  %v2989_v14 = vld [vmem:[%s4294_s1 + $0x30] ss:$8 sps:$4 sm:$0xff] (!%p234_p3)  }
   0xb   : > { %v2987_v13 = vld [vmem:[%s4294_s1 + $0x434] ss:$8 sps:$4 sm:$0xff] (!%p234_p3)   ;;  %v2990_v15 = vld [vmem:[%s4294_s1 + $0x430] ss:$8 sps:$4 sm:$0xff] (!%p234_p3)   ;;  %v2991_v16 = vld [vmem:[%s4294_s1 + $0x44] ss:$8 sps:$4 sm:$0xff] (!%p234_p3)  }
   0xc   : > { %1987 = vmatpush1.bf16.msra.mxu1 (!%p234_p3), %v2977_v6  ;;  %v2993_v17 = vld [vmem:[%s4294_s1 + $0x444] ss:$8 sps:$4 sm:$0xff] (!%p234_p3)   ;;  %v2995_v18 = vld [vmem:[%s4294_s1 + $0x40] ss:$8 sps:$4 sm:$0xff] (!%p234_p3)   ;;  %v2997_v20 = vld [vmem:[%s4294_s1 + $0x54] ss:$8 sps:$4 sm:$0xff] (!%p234_p3)  }
   0xd   : > { %2159 = vmatpush1.bf16.msra.mxu0 (!%p234_p3), %v2978_v7  ;;  %1988 = vmatprep.subr.bf16.mxu1 (!%p234_p3), %v2979_v8  ;;  %v2996_v19 = vld [vmem:[%s4294_s1 + $0x440] ss:$8 sps:$4 sm:$0xff] (!%p234_p3)   ;;  %v2999_v21 = vld [vmem:[%s4294_s1 + $0x454] ss:$8 sps:$4 sm:$0xff] (!%p234_p3)   ;;  %v3001_v22 = vld [vmem:[%s4294_s1 + $0x50] ss:$8 sps:$4 sm:$0xff] (!%p234_p3)  }
   0xe   : > { %2160 = vmatprep.subr.bf16.mxu0 %v2981_v9  ;;  %v3002_v23 = vld [vmem:[%s4294_s1 + $0x450] ss:$8 sps:$4 sm:$0xff]   ;;  %v3003_v24 = vld [vmem:[%s4294_s1 + $0x64] ss:$8 sps:$4 sm:$0xff]   ;;  %v3007_v26 = vld [vmem:[%s4294_s1 + $0x60] ss:$8 sps:$4 sm:$0xff]  }
   0xf   : > { %v3005_v25 = vld [vmem:[%s4294_s1 + $0x464] ss:$8 sps:$4 sm:$0xff]   ;;  %v3008_v27 = vld [vmem:[%s4294_s1 + $0x460] ss:$8 sps:$4 sm:$0xff]   ;;  %v3009_v28 = vld [vmem:[%s4294_s1 + $0x74] ss:$8 sps:$4 sm:$0xff]  }
  0x10   : > { %1989 = vmatpush1.bf16.msra.mxu1 %v2983_v10  ;;  %v3011_v29 = vld [vmem:[%s4294_s1 + $0x474] ss:$8 sps:$4 sm:$0xff]   ;;  %v3013_v30 = vld [vmem:[%s4294_s1 + $0x70] ss:$8 sps:$4 sm:$0xff]   ;;  %v3015_v32 = vld [vmem:[%s4294_s1 + $0x84] ss:$8 sps:$4 sm:$0xff]  }
  0x11   : > { %2161 = vmatpush1.bf16.msra.mxu0 %v2984_v11  ;;  %1990 = vmatprep.subr.bf16.mxu1 %v2985_v12  ;;  %v3014_v31 = vld [vmem:[%s4294_s1 + $0x470] ss:$8 sps:$4 sm:$0xff]   ;;  %p293_p4 = scmp.lt.s32.totalorder %s2622_s15, 3  ;;  %v3017_v33 = vld [vmem:[%s4294_s1 + $0x484] ss:$8 sps:$4 sm:$0xff]   ;;  %p323_p5 = scmp.lt.s32.totalorder %s3365_s18, 1 }
  0x12   : > { %2162 = vmatprep.subr.bf16.mxu0 %v2987_v13  ;;  %v3019_v34 = vld [vmem:[%s4294_s1 + $0x80] ss:$8 sps:$4 sm:$0xff]   ;;  %v3021_v36 = vld [vmem:[%s4294_s1 + $0x94] ss:$8 sps:$4 sm:$0xff]   ;;  %v3025_v38 = vld [vmem:[%s4294_s1 + $0x90] ss:$8 sps:$4 sm:$0xff]  }
  0x13   : > { %v3020_v35 = vld [vmem:[%s4294_s1 + $0x480] ss:$8 sps:$4 sm:$0xff]   ;;  %s4304_s15 = smov (!%p293_p4, %s2622_s15), 3  ;;  %v3023_v37 = vld [vmem:[%s4294_s1 + $0x494] ss:$8 sps:$4 sm:$0xff]   ;;  %s4306_s18 = smov (!%p323_p5, %s3365_s18), 1 }
  0x14   : > { %1991 = vmatpush1.bf16.msra.mxu1 %v2989_v14  ;;  %v3026_v39 = vld [vmem:[%s4294_s1 + $0x490] ss:$8 sps:$4 sm:$0xff]   ;;  %v3027_v40 = vld [vmem:[%s4294_s1 + $0xa4] ss:$8 sps:$4 sm:$0xff]   ;;  %s2906_s22 = sshll.u32 %s4304_s15, 6  ;;  %s2907_s9 = sshll.u32 %s4304_s15, 3 }
  0x15   : > { %2163 = vmatpush1.bf16.msra.mxu0 %v2990_v15  ;;  %1992 = vmatprep.subr.bf16.mxu1 %v2991_v16  ;;  %v3029_v41 = vld [vmem:[%s4294_s1 + $0x4a4] ss:$8 sps:$4 sm:$0xff]   ;;  %v3031_v42 = vld [vmem:[%s4294_s1 + $0xa0] ss:$8 sps:$4 sm:$0xff]   ;;  %s3565_s6 = scalar_lea.vmem %s4293_s0, %s2906_s22  ;;  %v3033_v44 = vld [vmem:[%s4294_s1 + $0xb4] ss:$8 sps:$4 sm:$0xff]   ;;  %s319_s11 = scalar_lea.vmem %s4296_s3, %s2907_s9 }
  0x16   : > { %2164 = vmatprep.subr.bf16.mxu0 %v2993_v17  ;;  %v3032_v43 = vld [vmem:[%s4294_s1 + $0x4a0] ss:$8 sps:$4 sm:$0xff]   ;;  %v3035_v45 = vld [vmem:[%s4294_s1 + $0x4b4] ss:$8 sps:$4 sm:$0xff]   ;;  %v3037_v46 = vld [vmem:[%s4294_s1 + $0xb0] ss:$8 sps:$4 sm:$0xff]  }
  0x17   : > { %v3038_v47 = vld [vmem:[%s4294_s1 + $0x4b0] ss:$8 sps:$4 sm:$0xff]   ;;  %v340_v48 = vld [vmem:[%s3565_s6] sm:$0xff]  ;;  %v3045_v58 = vld [vmem:[%s4294_s1 + $0xd4] ss:$8 sps:$4 sm:$0xff]   ;;  %s2628_s15 = sshll.u32 %s4306_s18, 1 }
  0x18   : > { %1993 = vmatpush1.bf16.msra.mxu1 %v2995_v18  ;;  %v348_v49 = vld [vmem:[%s3565_s6 + $0x40] sm:$0xff]  ;;  %v3047_v59 = vld [vmem:[%s4294_s1 + $0x4d4] ss:$8 sps:$4 sm:$0xff]   ;;  %v3049_v60 = vld [vmem:[%s4294_s1 + $0xd0] ss:$8 sps:$4 sm:$0xff]   ;;  %s329_s14 = scalar_lea.vmem %s4297_s4, %s2628_s15  ;;  %s338_s22 = scalar_lea.vmem %s4298_s5, %s2628_s15 }
  0x19   : > { %2165 = vmatpush1.bf16.msra.mxu0 %v2996_v19  ;;  %1994 = vmatprep.subr.bf16.mxu1 %v2997_v20  ;;  %v3039_v50 = vld [vmem:[%s4294_s1 + $0xc4] ss:$8 sps:$4 sm:$0xff]   ;;  %v2631_v52 = vcombine.high %v340_v48, %v348_v49  ;;  %v3043_v56 = vld [vmem:[%s4294_s1 + $0xc0] ss:$8 sps:$4 sm:$0xff]   ;;  %v3050_v61 = vld [vmem:[%s4294_s1 + $0x4d0] ss:$8 sps:$4 sm:$0xff]   ;;  %v2630_v8 = vcombine.low %v340_v48, %v348_v49 }
  0x1a   : > { %2166 = vmatprep.subr.bf16.mxu0 %v2999_v21  ;;  %v3041_v51 = vld [vmem:[%s4294_s1 + $0x4c4] ss:$8 sps:$4 sm:$0xff]   ;;  %v3044_v57 = vld [vmem:[%s4294_s1 + $0x4c0] ss:$8 sps:$4 sm:$0xff]   ;;  %v3057_v2 = vld [vmem:[%s4294_s1 + $0xf4] ss:$8 sps:$4 sm:$0xff]  }
  0x1b   : > { %v344_v53 = vld [vmem:[%s3565_s6 + $0x20] sm:$0xff]  ;;  %2016 = vmatprep.mubr.bf16.mxu1 %v2631_v52  ;;  %v3059_v3 = vld [vmem:[%s4294_s1 + $0x4f4] ss:$8 sps:$4 sm:$0xff]   ;;  %v3061_v4 = vld [vmem:[%s4294_s1 + $0xf0] ss:$8 sps:$4 sm:$0xff]  }
  0x1c   : > { %1995 = vmatpush1.bf16.msra.mxu1 %v3001_v22  ;;  %v352_v54 = vld [vmem:[%s3565_s6 + $0x60] sm:$0xff]  ;;  %v3062_v5 = vld [vmem:[%s4294_s1 + $0x4f0] ss:$8 sps:$4 sm:$0xff]   ;;  %v3071_v12 = vld [vmem:[%s4294_s1 + $0x114] ss:$8 sps:$4 sm:$0xff]  }
  0x1d   : > { %2167 = vmatpush1.bf16.msra.mxu0 %v3002_v23  ;;  %1996 = vmatprep.subr.bf16.mxu1 %v3003_v24  ;;  %v2639_v55 = vcombine.high %v344_v53, %v352_v54  ;;  %v3051_v62 = vld [vmem:[%s4294_s1 + $0xe4] ss:$8 sps:$4 sm:$0xff]   ;;  %v3055_v0 = vld [vmem:[%s4294_s1 + $0xe0] ss:$8 sps:$4 sm:$0xff]   ;;  %v2638_v10 = vcombine.low %v344_v53, %v352_v54  ;;  %v3074_v13 = vld [vmem:[%s4294_s1 + $0x514] ss:$8 sps:$4 sm:$0xff]  }
  0x1e   : > { %2168 = vmatprep.subr.bf16.mxu0 %v3005_v25  ;;  %v3053_v63 = vld [vmem:[%s4294_s1 + $0x4e4] ss:$8 sps:$4 sm:$0xff]   ;;  %v3056_v1 = vld [vmem:[%s4294_s1 + $0x4e0] ss:$8 sps:$4 sm:$0xff]   ;;  %v3069_v14 = vld [vmem:[%s4294_s1 + $0x110] ss:$8 sps:$4 sm:$0xff]  }
  0x1f   : > { %2188 = vmatprep.mubr.bf16.mxu0 %v2639_v55  ;;  %v3065_v6 = vld [vmem:[%s4294_s1 + $0x104] ss:$8 sps:$4 sm:$0xff]   ;;  %v3063_v9 = vld [vmem:[%s4294_s1 + $0x100] ss:$8 sps:$4 sm:$0xff]   ;;  %v3072_v15 = vld [vmem:[%s4294_s1 + $0x510] ss:$8 sps:$4 sm:$0xff]  }
  0x20   : > { %1997 = vmatpush1.bf16.msra.mxu1 %v3007_v26  ;;  %v3068_v7 = vld [vmem:[%s4294_s1 + $0x504] ss:$8 sps:$4 sm:$0xff]   ;;  %v3066_v11 = vld [vmem:[%s4294_s1 + $0x500] ss:$8 sps:$4 sm:$0xff]   ;;  %v3083_v20 = vld [vmem:[%s4294_s1 + $0x134] ss:$8 sps:$4 sm:$0xff]  }
  0x21   : > { %2169 = vmatpush1.bf16.msra.mxu0 %v3008_v27  ;;  %1998 = vmatprep.subr.bf16.mxu1 %v3009_v28  ;;  %v3077_v16 = vld [vmem:[%s4294_s1 + $0x124] ss:$8 sps:$4 sm:$0xff]   ;;  %v3075_v18 = vld [vmem:[%s4294_s1 + $0x120] ss:$8 sps:$4 sm:$0xff]   ;;  %v3086_v21 = vld [vmem:[%s4294_s1 + $0x534] ss:$8 sps:$4 sm:$0xff]  }
  0x22   : > { %2170 = vmatprep.subr.bf16.mxu0 %v3011_v29  ;;  %v3080_v17 = vld [vmem:[%s4294_s1 + $0x524] ss:$8 sps:$4 sm:$0xff]   ;;  %v3078_v19 = vld [vmem:[%s4294_s1 + $0x520] ss:$8 sps:$4 sm:$0xff]   ;;  %v3081_v22 = vld [vmem:[%s4294_s1 + $0x130] ss:$8 sps:$4 sm:$0xff]  }
  0x23   : > { %v3084_v23 = vld [vmem:[%s4294_s1 + $0x530] ss:$8 sps:$4 sm:$0xff]   ;;  %v3089_v24 = vld [vmem:[%s4294_s1 + $0x144] ss:$8 sps:$4 sm:$0xff]   ;;  %v3087_v26 = vld [vmem:[%s4294_s1 + $0x140] ss:$8 sps:$4 sm:$0xff]  }
  0x24   : > { %1999 = vmatpush1.bf16.msra.mxu1 %v3013_v30  ;;  %v3092_v25 = vld [vmem:[%s4294_s1 + $0x544] ss:$8 sps:$4 sm:$0xff]   ;;  %v3090_v27 = vld [vmem:[%s4294_s1 + $0x540] ss:$8 sps:$4 sm:$0xff]   ;;  %v3095_v28 = vld [vmem:[%s4294_s1 + $0x154] ss:$8 sps:$4 sm:$0xff]  }
  0x25   : > { %2171 = vmatpush1.bf16.msra.mxu0 %v3014_v31  ;;  %2000 = vmatprep.subr.bf16.mxu1 %v3015_v32  ;;  %v3098_v29 = vld [vmem:[%s4294_s1 + $0x554] ss:$8 sps:$4 sm:$0xff]   ;;  %v3093_v30 = vld [vmem:[%s4294_s1 + $0x150] ss:$8 sps:$4 sm:$0xff]   ;;  %v3101_v32 = vld [vmem:[%s4294_s1 + $0x164] ss:$8 sps:$4 sm:$0xff]  }
  0x26   : > { %2172 = vmatprep.subr.bf16.mxu0 %v3017_v33  ;;  %v3096_v31 = vld [vmem:[%s4294_s1 + $0x550] ss:$8 sps:$4 sm:$0xff]   ;;  %v3104_v33 = vld [vmem:[%s4294_s1 + $0x564] ss:$8 sps:$4 sm:$0xff]   ;;  %v3111_v48 = vld [vmem:[%s4294_s1 + $0x180] ss:$8 sps:$4 sm:$0xff]  }
  0x27   : > { %v3114_v49 = vld [vmem:[%s4294_s1 + $0x580] ss:$8 sps:$4 sm:$0xff]   ;;  %v3117_v52 = vld [vmem:[%s4294_s1 + $0x190] ss:$8 sps:$4 sm:$0xff]   ;;  %v3125_v54 = vld [vmem:[%s4294_s1 + $0x1a4] ss:$8 sps:$4 sm:$0xff]  }
  0x28   : > { %2001 = vmatpush1.bf16.msra.mxu1 %v3019_v34  ;;  %v3099_v34 = vld [vmem:[%s4294_s1 + $0x160] ss:$8 sps:$4 sm:$0xff]   ;;  %v3120_v53 = vld [vmem:[%s4294_s1 + $0x590] ss:$8 sps:$4 sm:$0xff]   ;;  %v3128_v55 = vld [vmem:[%s4294_s1 + $0x5a4] ss:$8 sps:$4 sm:$0xff]  }
  0x29   : > { %2173 = vmatpush1.bf16.msra.mxu0 %v3020_v35  ;;  %2002 = vmatprep.subr.bf16.mxu1 %v3021_v36  ;;  %v3102_v35 = vld [vmem:[%s4294_s1 + $0x560] ss:$8 sps:$4 sm:$0xff]  }
  0x2a   : > { %2174 = vmatprep.subr.bf16.mxu0 %v3023_v37  ;;  %v3716_v36 = vld [vmem:[%s3565_s6 + $0x8] sm:$0xff] }
  0x2b   : > { %v3719_v37 = vld [vmem:[%s3565_s6 + $0x48] sm:$0xff] }
  0x2c   : > { %2003 = vmatpush1.bf16.msra.mxu1 %v3025_v38  ;;  %v3107_v38 = vld [vmem:[%s4294_s1 + $0x174] ss:$8 sps:$4 sm:$0xff]  }
  0x2d   : > { %2175 = vmatpush1.bf16.msra.mxu0 %v3026_v39  ;;  %2004 = vmatprep.subr.bf16.mxu1 %v3027_v40  ;;  %v3110_v39 = vld [vmem:[%s4294_s1 + $0x574] ss:$8 sps:$4 sm:$0xff]   ;;  %v2633_v40 = vcombine.high %v3716_v36, %v3719_v37 }
  0x2e   : > { %2176 = vmatprep.subr.bf16.mxu0 %v3029_v41  ;;  %v3730_v41 = vld [vmem:[%s3565_s6 + $0x28] sm:$0xff] }
  0x30   : > { %2005 = vmatpush1.bf16.msra.mxu1 %v3031_v42  ;;  %v3733_v42 = vld [vmem:[%s3565_s6 + $0x68] sm:$0xff] }
  0x31   : > { %2177 = vmatpush1.bf16.msra.mxu0 %v3032_v43  ;;  %2006 = vmatprep.subr.bf16.mxu1 %v3033_v44  ;;  %v2641_v43 = vcombine.high %v3730_v41, %v3733_v42  ;;  %v3105_v44 = vld [vmem:[%s4294_s1 + $0x170] ss:$8 sps:$4 sm:$0xff]  }
  0x32   : > { %2178 = vmatprep.subr.bf16.mxu0 %v3035_v45  ;;  %v3108_v45 = vld [vmem:[%s4294_s1 + $0x570] ss:$8 sps:$4 sm:$0xff]  }
  0x34   : > { %2007 = vmatpush1.bf16.msra.mxu1 %v3037_v46  ;;  %v3113_v46 = vld [vmem:[%s4294_s1 + $0x184] ss:$8 sps:$4 sm:$0xff]  }
  0x35   : > { %2179 = vmatpush1.bf16.msra.mxu0 %v3038_v47  ;;  %2008 = vmatprep.subr.bf16.mxu1 %v3039_v50  ;;  %v3116_v47 = vld [vmem:[%s4294_s1 + $0x584] ss:$8 sps:$4 sm:$0xff]   ;;  %v3119_v50 = vld [vmem:[%s4294_s1 + $0x194] ss:$8 sps:$4 sm:$0xff]  }
  0x36   : > { %2180 = vmatprep.subr.bf16.mxu0 %v3041_v51  ;;  %v3122_v51 = vld [vmem:[%s4294_s1 + $0x594] ss:$8 sps:$4 sm:$0xff]  }
  0x38   : > { %2009 = vmatpush1.bf16.msra.mxu1 %v3043_v56  ;;  %v3123_v56 = vld [vmem:[%s4294_s1 + $0x1a0] ss:$8 sps:$4 sm:$0xff]  }
  0x39   : > { %2181 = vmatpush1.bf16.msra.mxu0 %v3044_v57  ;;  %2010 = vmatprep.subr.bf16.mxu1 %v3045_v58  ;;  %v3126_v57 = vld [vmem:[%s4294_s1 + $0x5a0] ss:$8 sps:$4 sm:$0xff]   ;;  %v3131_v58 = vld [vmem:[%s4294_s1 + $0x1b4] ss:$8 sps:$4 sm:$0xff]  }
  0x3a   : > { %2182 = vmatprep.subr.bf16.mxu0 %v3047_v59  ;;  %v3134_v59 = vld [vmem:[%s4294_s1 + $0x5b4] ss:$8 sps:$4 sm:$0xff]  }
  0x3c   : > { %2011 = vmatpush1.bf16.msra.mxu1 %v3049_v60  ;;  %v3129_v60 = vld [vmem:[%s4294_s1 + $0x1b0] ss:$8 sps:$4 sm:$0xff]  }
  0x3d   : > { %2183 = vmatpush1.bf16.msra.mxu0 %v3050_v61  ;;  %2012 = vmatprep.subr.bf16.mxu1 %v3051_v62  ;;  %v3132_v61 = vld [vmem:[%s4294_s1 + $0x5b0] ss:$8 sps:$4 sm:$0xff]   ;;  %v3137_v62 = vld [vmem:[%s4294_s1 + $0x1c4] ss:$8 sps:$4 sm:$0xff]  }
  0x3e   : > { %2184 = vmatprep.subr.bf16.mxu0 %v3053_v63  ;;  %v3140_v63 = vld [vmem:[%s4294_s1 + $0x5c4] ss:$8 sps:$4 sm:$0xff]  }
  0x40   : > { %2013 = vmatpush1.bf16.msra.mxu1 %v3055_v0  ;;  %v3135_v0 = vld [vmem:[%s4294_s1 + $0x1c0] ss:$8 sps:$4 sm:$0xff]  }
  0x41   : > { %2185 = vmatpush1.bf16.msra.mxu0 %v3056_v1  ;;  %2014 = vmatprep.subr.bf16.mxu1 %v3057_v2  ;;  %v3138_v1 = vld [vmem:[%s4294_s1 + $0x5c0] ss:$8 sps:$4 sm:$0xff]   ;;  %v3143_v2 = vld [vmem:[%s4294_s1 + $0x1d4] ss:$8 sps:$4 sm:$0xff]  }
  0x42   : > { %2186 = vmatprep.subr.bf16.mxu0 %v3059_v3  ;;  %v3146_v3 = vld [vmem:[%s4294_s1 + $0x5d4] ss:$8 sps:$4 sm:$0xff]  }
  0x44   : > { %2015 = vmatpush1.bf16.msra.mxu1 %v3061_v4  ;;  %v3141_v4 = vld [vmem:[%s4294_s1 + $0x1d0] ss:$8 sps:$4 sm:$0xff]  }
  0x45   : > { %2187 = vmatpush1.bf16.msra.mxu0 %v3062_v5  ;;  %2027 = vmatprep.subr.bf16.mxu1 %v3065_v6  ;;  %v3144_v5 = vld [vmem:[%s4294_s1 + $0x5d0] ss:$8 sps:$4 sm:$0xff]   ;;  %v3149_v6 = vld [vmem:[%s4294_s1 + $0x1e4] ss:$8 sps:$4 sm:$0xff]  }
  0x46   : > { %2199 = vmatprep.subr.bf16.mxu0 %v3068_v7  ;;  %v3152_v7 = vld [vmem:[%s4294_s1 + $0x5e4] ss:$8 sps:$4 sm:$0xff]  }
  0x47   : > { %2017 = vmatmul.mubr.bf16.vlgmr.msra.gmra.mrb[0].mxu1 %v2630_v8  ;;  %v3147_v8 = vld [vmem:[%s4294_s1 + $0x1e0] ss:$8 sps:$4 sm:$0xff]  }
  0x48   : > { %2189 = vmatmul.mubr.bf16.vlgmr.msra.gmra.mrb[0].mxu0 %v2638_v10  ;;  %2028 = vmatpush1.bf16.msra.mxu1 %v3063_v9  ;;  %v3150_v9 = vld [vmem:[%s4294_s1 + $0x5e0] ss:$8 sps:$4 sm:$0xff]   ;;  %v3155_v10 = vld [vmem:[%s4294_s1 + $0x1f4] ss:$8 sps:$4 sm:$0xff]  }
  0x49   : > { %2200 = vmatpush1.bf16.msra.mxu0 %v3066_v11  ;;  %2029 = vmatprep.subr.bf16.mxu1 %v3071_v12  ;;  %v3158_v11 = vld [vmem:[%s4294_s1 + $0x5f4] ss:$8 sps:$4 sm:$0xff]   ;;  %v3153_v12 = vld [vmem:[%s4294_s1 + $0x1f0] ss:$8 sps:$4 sm:$0xff]  }
  0x4a   : > { %2201 = vmatprep.subr.bf16.mxu0 %v3074_v13  ;;  %2059 = vmatprep.mubr.bf16.mxu1 %v2633_v40  ;;  %v3156_v13 = vld [vmem:[%s4294_s1 + $0x5f0] ss:$8 sps:$4 sm:$0xff]   ;;  %v3183_v40 = vld [vmem:[%s4294_s1 + $0x240] ss:$8 sps:$4 sm:$0xff]  }
  0x4b   : > { %2231 = vmatprep.mubr.bf16.mxu0 %v2641_v43  ;;  %v3194_v43 = vld [vmem:[%s4294_s1 + $0x654] ss:$8 sps:$4 sm:$0xff]  }
  0x4c   : > { %2030 = vmatpush1.bf16.msra.mxu1 %v3069_v14  ;;  %v3161_v14 = vld [vmem:[%s4294_s1 + $0x204] ss:$8 sps:$4 sm:$0xff]  }
  0x4d   : > { %2202 = vmatpush1.bf16.msra.mxu0 %v3072_v15  ;;  %2031 = vmatprep.subr.bf16.mxu1 %v3077_v16  ;;  %v3164_v15 = vld [vmem:[%s4294_s1 + $0x604] ss:$8 sps:$4 sm:$0xff]   ;;  %v2632_v16 = vcombine.low %v3716_v36, %v3719_v37  ;;  %v3177_v36 = vld [vmem:[%s4294_s1 + $0x230] ss:$8 sps:$4 sm:$0xff]  }
  0x4e   : > { %2203 = vmatprep.subr.bf16.mxu0 %v3080_v17  ;;  %v3159_v17 = vld [vmem:[%s4294_s1 + $0x200] ss:$8 sps:$4 sm:$0xff]   ;;  %v3180_v37 = vld [vmem:[%s4294_s1 + $0x630] ss:$8 sps:$4 sm:$0xff]  }
  0x50   : > { %2032 = vmatpush1.bf16.msra.mxu1 %v3075_v18  ;;  %v2640_v18 = vcombine.low %v3730_v41, %v3733_v42  ;;  %v3186_v41 = vld [vmem:[%s4294_s1 + $0x640] ss:$8 sps:$4 sm:$0xff]   ;;  %v3191_v42 = vld [vmem:[%s4294_s1 + $0x254] ss:$8 sps:$4 sm:$0xff]  }
  0x51   : > { %2204 = vmatpush1.bf16.msra.mxu0 %v3078_v19  ;;  %2033 = vmatprep.subr.bf16.mxu1 %v3083_v20  ;;  %v3162_v19 = vld [vmem:[%s4294_s1 + $0x600] ss:$8 sps:$4 sm:$0xff]   ;;  %v3167_v20 = vld [vmem:[%s4294_s1 + $0x214] ss:$8 sps:$4 sm:$0xff]  }
  0x52   : > { %2205 = vmatprep.subr.bf16.mxu0 %v3086_v21  ;;  %v3170_v21 = vld [vmem:[%s4294_s1 + $0x614] ss:$8 sps:$4 sm:$0xff]  }
  0x54   : > { %2034 = vmatpush1.bf16.msra.mxu1 %v3081_v22  ;;  %v3165_v22 = vld [vmem:[%s4294_s1 + $0x210] ss:$8 sps:$4 sm:$0xff]  }
  0x55   : > { %2206 = vmatpush1.bf16.msra.mxu0 %v3084_v23  ;;  %2035 = vmatprep.subr.bf16.mxu1 %v3089_v24  ;;  %v3168_v23 = vld [vmem:[%s4294_s1 + $0x610] ss:$8 sps:$4 sm:$0xff]  }
  0x56   : > { %2207 = vmatprep.subr.bf16.mxu0 %v3092_v25  ;;  %v3868_v24 = vld [vmem:[%s3565_s6 + $0x10] sm:$0xff] }
  0x57   : > { %v3871_v25 = vld [vmem:[%s3565_s6 + $0x50] sm:$0xff] }
  0x58   : > { %2036 = vmatpush1.bf16.msra.mxu1 %v3087_v26  ;;  %v3173_v26 = vld [vmem:[%s4294_s1 + $0x224] ss:$8 sps:$4 sm:$0xff]  }
  0x59   : > { %2208 = vmatpush1.bf16.msra.mxu0 %v3090_v27  ;;  %2037 = vmatprep.subr.bf16.mxu1 %v3095_v28  ;;  %v3176_v27 = vld [vmem:[%s4294_s1 + $0x624] ss:$8 sps:$4 sm:$0xff]   ;;  %v2635_v28 = vcombine.high %v3868_v24, %v3871_v25 }
  0x5a   : > { %2209 = vmatprep.subr.bf16.mxu0 %v3098_v29  ;;  %v3882_v29 = vld [vmem:[%s3565_s6 + $0x30] sm:$0xff] }
  0x5c   : > { %2038 = vmatpush1.bf16.msra.mxu1 %v3093_v30  ;;  %v3885_v30 = vld [vmem:[%s3565_s6 + $0x70] sm:$0xff] }
  0x5d   : > { %2210 = vmatpush1.bf16.msra.mxu0 %v3096_v31  ;;  %2039 = vmatprep.subr.bf16.mxu1 %v3101_v32  ;;  %v2643_v31 = vcombine.high %v3882_v29, %v3885_v30  ;;  %v3171_v32 = vld [vmem:[%s4294_s1 + $0x220] ss:$8 sps:$4 sm:$0xff]  }
  0x5e   : > { %2211 = vmatprep.subr.bf16.mxu0 %v3104_v33  ;;  %v3174_v33 = vld [vmem:[%s4294_s1 + $0x620] ss:$8 sps:$4 sm:$0xff]  }
  0x60   : > { %2040 = vmatpush1.bf16.msra.mxu1 %v3099_v34  ;;  %v3179_v34 = vld [vmem:[%s4294_s1 + $0x234] ss:$8 sps:$4 sm:$0xff]  }
  0x61   : > { %2212 = vmatpush1.bf16.msra.mxu0 %v3102_v35  ;;  %2041 = vmatprep.subr.bf16.mxu1 %v3107_v38  ;;  %v3182_v35 = vld [vmem:[%s4294_s1 + $0x634] ss:$8 sps:$4 sm:$0xff]   ;;  %v3185_v38 = vld [vmem:[%s4294_s1 + $0x244] ss:$8 sps:$4 sm:$0xff]  }
  0x62   : > { %2213 = vmatprep.subr.bf16.mxu0 %v3110_v39  ;;  %v3188_v39 = vld [vmem:[%s4294_s1 + $0x644] ss:$8 sps:$4 sm:$0xff]  }
  0x64   : > { %2042 = vmatpush1.bf16.msra.mxu1 %v3105_v44  ;;  %v3189_v44 = vld [vmem:[%s4294_s1 + $0x250] ss:$8 sps:$4 sm:$0xff]  }
  0x65   : > { %2214 = vmatpush1.bf16.msra.mxu0 %v3108_v45  ;;  %2043 = vmatprep.subr.bf16.mxu1 %v3113_v46  ;;  %v3192_v45 = vld [vmem:[%s4294_s1 + $0x650] ss:$8 sps:$4 sm:$0xff]   ;;  %v3197_v46 = vld [vmem:[%s4294_s1 + $0x264] ss:$8 sps:$4 sm:$0xff]  }
  0x66   : > { %2215 = vmatprep.subr.bf16.mxu0 %v3116_v47  ;;  %v3200_v47 = vld [vmem:[%s4294_s1 + $0x664] ss:$8 sps:$4 sm:$0xff]  }
  0x68   : > { %2044 = vmatpush1.bf16.msra.mxu1 %v3111_v48  ;;  %v3195_v48 = vld [vmem:[%s4294_s1 + $0x260] ss:$8 sps:$4 sm:$0xff]  }
  0x69   : > { %2216 = vmatpush1.bf16.msra.mxu0 %v3114_v49  ;;  %2045 = vmatprep.subr.bf16.mxu1 %v3119_v50  ;;  %v3198_v49 = vld [vmem:[%s4294_s1 + $0x660] ss:$8 sps:$4 sm:$0xff]   ;;  %v3203_v50 = vld [vmem:[%s4294_s1 + $0x274] ss:$8 sps:$4 sm:$0xff]  }
  0x6a   : > { %2217 = vmatprep.subr.bf16.mxu0 %v3122_v51  ;;  %v3206_v51 = vld [vmem:[%s4294_s1 + $0x674] ss:$8 sps:$4 sm:$0xff]  }
  0x6c   : > { %2046 = vmatpush1.bf16.msra.mxu1 %v3117_v52  ;;  %v3201_v52 = vld [vmem:[%s4294_s1 + $0x270] ss:$8 sps:$4 sm:$0xff]  }
  0x6d   : > { %2218 = vmatpush1.bf16.msra.mxu0 %v3120_v53  ;;  %2047 = vmatprep.subr.bf16.mxu1 %v3125_v54  ;;  %v3204_v53 = vld [vmem:[%s4294_s1 + $0x670] ss:$8 sps:$4 sm:$0xff]   ;;  %v3209_v54 = vld [vmem:[%s4294_s1 + $0x284] ss:$8 sps:$4 sm:$0xff]  }
  0x6e   : > { %2219 = vmatprep.subr.bf16.mxu0 %v3128_v55  ;;  %v3212_v55 = vld [vmem:[%s4294_s1 + $0x684] ss:$8 sps:$4 sm:$0xff]  }
  0x70   : > { %2048 = vmatpush1.bf16.msra.mxu1 %v3123_v56  ;;  %v3207_v56 = vld [vmem:[%s4294_s1 + $0x280] ss:$8 sps:$4 sm:$0xff]  }
  0x71   : > { %2220 = vmatpush1.bf16.msra.mxu0 %v3126_v57  ;;  %2049 = vmatprep.subr.bf16.mxu1 %v3131_v58  ;;  %v3210_v57 = vld [vmem:[%s4294_s1 + $0x680] ss:$8 sps:$4 sm:$0xff]   ;;  %v3215_v58 = vld [vmem:[%s4294_s1 + $0x294] ss:$8 sps:$4 sm:$0xff]  }
  0x72   : > { %2221 = vmatprep.subr.bf16.mxu0 %v3134_v59  ;;  %v3218_v59 = vld [vmem:[%s4294_s1 + $0x694] ss:$8 sps:$4 sm:$0xff]  }
  0x74   : > { %2050 = vmatpush1.bf16.msra.mxu1 %v3129_v60  ;;  %v3213_v60 = vld [vmem:[%s4294_s1 + $0x290] ss:$8 sps:$4 sm:$0xff]  }
  0x75   : > { %2222 = vmatpush1.bf16.msra.mxu0 %v3132_v61  ;;  %2051 = vmatprep.subr.bf16.mxu1 %v3137_v62  ;;  %v3216_v61 = vld [vmem:[%s4294_s1 + $0x690] ss:$8 sps:$4 sm:$0xff]   ;;  %v3221_v62 = vld [vmem:[%s4294_s1 + $0x2a4] ss:$8 sps:$4 sm:$0xff]  }
  0x76   : > { %2223 = vmatprep.subr.bf16.mxu0 %v3140_v63  ;;  %v3224_v63 = vld [vmem:[%s4294_s1 + $0x6a4] ss:$8 sps:$4 sm:$0xff]  }
  0x78   : > { %2052 = vmatpush1.bf16.msra.mxu1 %v3135_v0  ;;  %v3219_v0 = vld [vmem:[%s4294_s1 + $0x2a0] ss:$8 sps:$4 sm:$0xff]  }
  0x79   : > { %2224 = vmatpush1.bf16.msra.mxu0 %v3138_v1  ;;  %2053 = vmatprep.subr.bf16.mxu1 %v3143_v2  ;;  %v3222_v1 = vld [vmem:[%s4294_s1 + $0x6a0] ss:$8 sps:$4 sm:$0xff]   ;;  %v3227_v2 = vld [vmem:[%s4294_s1 + $0x2b4] ss:$8 sps:$4 sm:$0xff]  }
  0x7a   : > { %2225 = vmatprep.subr.bf16.mxu0 %v3146_v3  ;;  %v3230_v3 = vld [vmem:[%s4294_s1 + $0x6b4] ss:$8 sps:$4 sm:$0xff]  }
  0x7c   : > { %2054 = vmatpush1.bf16.msra.mxu1 %v3141_v4  ;;  %v3225_v4 = vld [vmem:[%s4294_s1 + $0x2b0] ss:$8 sps:$4 sm:$0xff]  }
  0x7d   : > { %2226 = vmatpush1.bf16.msra.mxu0 %v3144_v5  ;;  %2055 = vmatprep.subr.bf16.mxu1 %v3149_v6  ;;  %v3228_v5 = vld [vmem:[%s4294_s1 + $0x6b0] ss:$8 sps:$4 sm:$0xff]   ;;  %v3233_v6 = vld [vmem:[%s4294_s1 + $0x2c4] ss:$8 sps:$4 sm:$0xff]  }
  0x7e   : > { %2227 = vmatprep.subr.bf16.mxu0 %v3152_v7  ;;  %v3236_v7 = vld [vmem:[%s4294_s1 + $0x6c4] ss:$8 sps:$4 sm:$0xff]  }
  0x80   : > { %2056 = vmatpush1.bf16.msra.mxu1 %v3147_v8  ;;  %v3231_v8 = vld [vmem:[%s4294_s1 + $0x2c0] ss:$8 sps:$4 sm:$0xff]  }
  0x81   : > { %2228 = vmatpush1.bf16.msra.mxu0 %v3150_v9  ;;  %2057 = vmatprep.subr.bf16.mxu1 %v3155_v10  ;;  %v3234_v9 = vld [vmem:[%s4294_s1 + $0x6c0] ss:$8 sps:$4 sm:$0xff]   ;;  %v3239_v10 = vld [vmem:[%s4294_s1 + $0x2d4] ss:$8 sps:$4 sm:$0xff]  }
  0x82   : > { %2229 = vmatprep.subr.bf16.mxu0 %v3158_v11  ;;  %v3242_v11 = vld [vmem:[%s4294_s1 + $0x6d4] ss:$8 sps:$4 sm:$0xff]  }
  0x84   : > { %2058 = vmatpush1.bf16.msra.mxu1 %v3153_v12  ;;  %v3237_v12 = vld [vmem:[%s4294_s1 + $0x2d0] ss:$8 sps:$4 sm:$0xff]  }
  0x85   : > { %2230 = vmatpush1.bf16.msra.mxu0 %v3156_v13  ;;  %2070 = vmatprep.subr.bf16.mxu1 %v3161_v14  ;;  %v3240_v13 = vld [vmem:[%s4294_s1 + $0x6d0] ss:$8 sps:$4 sm:$0xff]   ;;  %v3245_v14 = vld [vmem:[%s4294_s1 + $0x2e4] ss:$8 sps:$4 sm:$0xff]  }
  0x86   : > { %2242 = vmatprep.subr.bf16.mxu0 %v3164_v15  ;;  %v3248_v15 = vld [vmem:[%s4294_s1 + $0x6e4] ss:$8 sps:$4 sm:$0xff]  }
  0x87   : > { %2060 = vmatmul.mubr.bf16.vlgmr.msra.gmra.mrb[0].mxu1 %v2632_v16  ;;  %v3243_v16 = vld [vmem:[%s4294_s1 + $0x2e0] ss:$8 sps:$4 sm:$0xff]  }
  0x88   : > { %2232 = vmatmul.mubr.bf16.vlgmr.msra.gmra.mrb[0].mxu0 %v2640_v18  ;;  %2071 = vmatpush1.bf16.msra.mxu1 %v3159_v17  ;;  %v3246_v17 = vld [vmem:[%s4294_s1 + $0x6e0] ss:$8 sps:$4 sm:$0xff]   ;;  %v3251_v18 = vld [vmem:[%s4294_s1 + $0x2f4] ss:$8 sps:$4 sm:$0xff]  }
  0x89   : > { %2243 = vmatpush1.bf16.msra.mxu0 %v3162_v19  ;;  %2072 = vmatprep.subr.bf16.mxu1 %v3167_v20  ;;  %v3254_v19 = vld [vmem:[%s4294_s1 + $0x6f4] ss:$8 sps:$4 sm:$0xff]   ;;  %v3249_v20 = vld [vmem:[%s4294_s1 + $0x2f0] ss:$8 sps:$4 sm:$0xff]  }
  0x8a   : > { %2244 = vmatprep.subr.bf16.mxu0 %v3170_v21  ;;  %2102 = vmatprep.mubr.bf16.mxu1 %v2635_v28  ;;  %v3252_v21 = vld [vmem:[%s4294_s1 + $0x6f0] ss:$8 sps:$4 sm:$0xff]   ;;  %v2642_v28 = vcombine.low %v3882_v29, %v3885_v30 }
  0x8b   : > { %2274 = vmatprep.mubr.bf16.mxu0 %v2643_v31  ;;  %v4065_v31 = vld [vmem:[%s3565_s6 + $0x58] sm:$0xff] }
  0x8c   : > { %2073 = vmatpush1.bf16.msra.mxu1 %v3165_v22  ;;  %v3257_v22 = vld [vmem:[%s4294_s1 + $0x304] ss:$8 sps:$4 sm:$0xff]  }
  0x8d   : > { %2245 = vmatpush1.bf16.msra.mxu0 %v3168_v23  ;;  %2074 = vmatprep.subr.bf16.mxu1 %v3173_v26  ;;  %v3260_v23 = vld [vmem:[%s4294_s1 + $0x704] ss:$8 sps:$4 sm:$0xff]   ;;  %v4058_v26 = vld [vmem:[%s3565_s6 + $0x18] sm:$0xff] }
  0x8e   : > { %2246 = vmatprep.subr.bf16.mxu0 %v3176_v27  ;;  %v2634_v27 = vcombine.low %v3868_v24, %v3871_v25  ;;  %v3263_v24 = vld [vmem:[%s4294_s1 + $0x314] ss:$8 sps:$4 sm:$0xff]   ;;  %v2637_v29 = vcombine.high %v4058_v26, %v4065_v31 }
  0x8f   : > { %v3266_v25 = vld [vmem:[%s4294_s1 + $0x714] ss:$8 sps:$4 sm:$0xff]  }
  0x90   : > { %2075 = vmatpush1.bf16.msra.mxu1 %v3171_v32  ;;  %v4068_v32 = vld [vmem:[%s3565_s6 + $0x38] sm:$0xff] }
  0x91   : > { %2247 = vmatpush1.bf16.msra.mxu0 %v3174_v33  ;;  %2076 = vmatprep.subr.bf16.mxu1 %v3179_v34  ;;  %v4071_v33 = vld [vmem:[%s3565_s6 + $0x78] sm:$0xff]  ;;  %v3255_v34 = vld [vmem:[%s4294_s1 + $0x300] ss:$8 sps:$4 sm:$0xff]  }
  0x92   : > { %2248 = vmatprep.subr.bf16.mxu0 %v3182_v35  ;;  %v3258_v35 = vld [vmem:[%s4294_s1 + $0x700] ss:$8 sps:$4 sm:$0xff]   ;;  %v2645_v30 = vcombine.high %v4068_v32, %v4071_v33 }
  0x94   : > { %2077 = vmatpush1.bf16.msra.mxu1 %v3177_v36  ;;  %v3261_v36 = vld [vmem:[%s4294_s1 + $0x310] ss:$8 sps:$4 sm:$0xff]  }
  0x95   : > { %2249 = vmatpush1.bf16.msra.mxu0 %v3180_v37  ;;  %2078 = vmatprep.subr.bf16.mxu1 %v3185_v38  ;;  %v3264_v37 = vld [vmem:[%s4294_s1 + $0x710] ss:$8 sps:$4 sm:$0xff]   ;;  %v3269_v38 = vld [vmem:[%s4294_s1 + $0x324] ss:$8 sps:$4 sm:$0xff]  }
  0x96   : > { %2250 = vmatprep.subr.bf16.mxu0 %v3188_v39  ;;  %v3272_v39 = vld [vmem:[%s4294_s1 + $0x724] ss:$8 sps:$4 sm:$0xff]  }
  0x98   : > { %2079 = vmatpush1.bf16.msra.mxu1 %v3183_v40  ;;  %v3267_v40 = vld [vmem:[%s4294_s1 + $0x320] ss:$8 sps:$4 sm:$0xff]  }
  0x99   : > { %2251 = vmatpush1.bf16.msra.mxu0 %v3186_v41  ;;  %2080 = vmatprep.subr.bf16.mxu1 %v3191_v42  ;;  %v3270_v41 = vld [vmem:[%s4294_s1 + $0x720] ss:$8 sps:$4 sm:$0xff]   ;;  %v3275_v42 = vld [vmem:[%s4294_s1 + $0x334] ss:$8 sps:$4 sm:$0xff]  }
  0x9a   : > { %2252 = vmatprep.subr.bf16.mxu0 %v3194_v43  ;;  %v3278_v43 = vld [vmem:[%s4294_s1 + $0x734] ss:$8 sps:$4 sm:$0xff]  }
  0x9c   : > { %2081 = vmatpush1.bf16.msra.mxu1 %v3189_v44  ;;  %v3273_v44 = vld [vmem:[%s4294_s1 + $0x330] ss:$8 sps:$4 sm:$0xff]  }
  0x9d   : > { %2253 = vmatpush1.bf16.msra.mxu0 %v3192_v45  ;;  %2082 = vmatprep.subr.bf16.mxu1 %v3197_v46  ;;  %v3276_v45 = vld [vmem:[%s4294_s1 + $0x730] ss:$8 sps:$4 sm:$0xff]   ;;  %v3281_v46 = vld [vmem:[%s4294_s1 + $0x344] ss:$8 sps:$4 sm:$0xff]  }
  0x9e   : > { %2254 = vmatprep.subr.bf16.mxu0 %v3200_v47  ;;  %v3284_v47 = vld [vmem:[%s4294_s1 + $0x744] ss:$8 sps:$4 sm:$0xff]  }
  0xa0   : > { %2083 = vmatpush1.bf16.msra.mxu1 %v3195_v48  ;;  %v3279_v48 = vld [vmem:[%s4294_s1 + $0x340] ss:$8 sps:$4 sm:$0xff]  }
  0xa1   : > { %2255 = vmatpush1.bf16.msra.mxu0 %v3198_v49  ;;  %2084 = vmatprep.subr.bf16.mxu1 %v3203_v50  ;;  %v3282_v49 = vld [vmem:[%s4294_s1 + $0x740] ss:$8 sps:$4 sm:$0xff]   ;;  %v3287_v50 = vld [vmem:[%s4294_s1 + $0x354] ss:$8 sps:$4 sm:$0xff]  }
  0xa2   : > { %2256 = vmatprep.subr.bf16.mxu0 %v3206_v51  ;;  %v3290_v51 = vld [vmem:[%s4294_s1 + $0x754] ss:$8 sps:$4 sm:$0xff]  }
  0xa4   : > { %2085 = vmatpush1.bf16.msra.mxu1 %v3201_v52  ;;  %v3285_v52 = vld [vmem:[%s4294_s1 + $0x350] ss:$8 sps:$4 sm:$0xff]  }
  0xa5   : > { %2257 = vmatpush1.bf16.msra.mxu0 %v3204_v53  ;;  %2086 = vmatprep.subr.bf16.mxu1 %v3209_v54  ;;  %v3288_v53 = vld [vmem:[%s4294_s1 + $0x750] ss:$8 sps:$4 sm:$0xff]   ;;  %v3293_v54 = vld [vmem:[%s4294_s1 + $0x364] ss:$8 sps:$4 sm:$0xff]  }
  0xa6   : > { %2258 = vmatprep.subr.bf16.mxu0 %v3212_v55  ;;  %v3296_v55 = vld [vmem:[%s4294_s1 + $0x764] ss:$8 sps:$4 sm:$0xff]  }
  0xa8   : > { %2087 = vmatpush1.bf16.msra.mxu1 %v3207_v56  ;;  %v3291_v56 = vld [vmem:[%s4294_s1 + $0x360] ss:$8 sps:$4 sm:$0xff]  }
  0xa9   : > { %2259 = vmatpush1.bf16.msra.mxu0 %v3210_v57  ;;  %2088 = vmatprep.subr.bf16.mxu1 %v3215_v58  ;;  %v3294_v57 = vld [vmem:[%s4294_s1 + $0x760] ss:$8 sps:$4 sm:$0xff]   ;;  %v3299_v58 = vld [vmem:[%s4294_s1 + $0x374] ss:$8 sps:$4 sm:$0xff]  }
  0xaa   : > { %2260 = vmatprep.subr.bf16.mxu0 %v3218_v59  ;;  %v3302_v59 = vld [vmem:[%s4294_s1 + $0x774] ss:$8 sps:$4 sm:$0xff]  }
  0xac   : > { %2089 = vmatpush1.bf16.msra.mxu1 %v3213_v60  ;;  %v3297_v60 = vld [vmem:[%s4294_s1 + $0x370] ss:$8 sps:$4 sm:$0xff]  }
  0xad   : > { %2261 = vmatpush1.bf16.msra.mxu0 %v3216_v61  ;;  %2090 = vmatprep.subr.bf16.mxu1 %v3221_v62  ;;  %v3300_v61 = vld [vmem:[%s4294_s1 + $0x770] ss:$8 sps:$4 sm:$0xff]   ;;  %v3305_v62 = vld [vmem:[%s4294_s1 + $0x384] ss:$8 sps:$4 sm:$0xff]  }
  0xae   : > { %2262 = vmatprep.subr.bf16.mxu0 %v3224_v63  ;;  %v3308_v63 = vld [vmem:[%s4294_s1 + $0x784] ss:$8 sps:$4 sm:$0xff]  }
  0xb0   : > { %2091 = vmatpush1.bf16.msra.mxu1 %v3219_v0  ;;  %v3303_v0 = vld [vmem:[%s4294_s1 + $0x380] ss:$8 sps:$4 sm:$0xff]  }
  0xb1   : > { %2263 = vmatpush1.bf16.msra.mxu0 %v3222_v1  ;;  %2092 = vmatprep.subr.bf16.mxu1 %v3227_v2  ;;  %v3306_v1 = vld [vmem:[%s4294_s1 + $0x780] ss:$8 sps:$4 sm:$0xff]   ;;  %v3311_v2 = vld [vmem:[%s4294_s1 + $0x394] ss:$8 sps:$4 sm:$0xff]  }
  0xb2   : > { %2264 = vmatprep.subr.bf16.mxu0 %v3230_v3  ;;  %v3314_v3 = vld [vmem:[%s4294_s1 + $0x794] ss:$8 sps:$4 sm:$0xff]  }
  0xb4   : > { %2093 = vmatpush1.bf16.msra.mxu1 %v3225_v4  ;;  %v3309_v4 = vld [vmem:[%s4294_s1 + $0x390] ss:$8 sps:$4 sm:$0xff]  }
  0xb5   : > { %2265 = vmatpush1.bf16.msra.mxu0 %v3228_v5  ;;  %2094 = vmatprep.subr.bf16.mxu1 %v3233_v6  ;;  %v3312_v5 = vld [vmem:[%s4294_s1 + $0x790] ss:$8 sps:$4 sm:$0xff]   ;;  %v3317_v6 = vld [vmem:[%s4294_s1 + $0x3a4] ss:$8 sps:$4 sm:$0xff]  }
  0xb6   : > { %2266 = vmatprep.subr.bf16.mxu0 %v3236_v7  ;;  %v3320_v7 = vld [vmem:[%s4294_s1 + $0x7a4] ss:$8 sps:$4 sm:$0xff]  }
  0xb8   : > { %2095 = vmatpush1.bf16.msra.mxu1 %v3231_v8  ;;  %v3315_v8 = vld [vmem:[%s4294_s1 + $0x3a0] ss:$8 sps:$4 sm:$0xff]  }
  0xb9   : > { %2267 = vmatpush1.bf16.msra.mxu0 %v3234_v9  ;;  %2096 = vmatprep.subr.bf16.mxu1 %v3239_v10  ;;  %v3318_v9 = vld [vmem:[%s4294_s1 + $0x7a0] ss:$8 sps:$4 sm:$0xff]   ;;  %v3323_v10 = vld [vmem:[%s4294_s1 + $0x3b4] ss:$8 sps:$4 sm:$0xff]  }
  0xba   : > { %2268 = vmatprep.subr.bf16.mxu0 %v3242_v11  ;;  %v3326_v11 = vld [vmem:[%s4294_s1 + $0x7b4] ss:$8 sps:$4 sm:$0xff]  }
  0xbc   : > { %2097 = vmatpush1.bf16.msra.mxu1 %v3237_v12  ;;  %v3321_v12 = vld [vmem:[%s4294_s1 + $0x3b0] ss:$8 sps:$4 sm:$0xff]  }
  0xbd   : > { %2269 = vmatpush1.bf16.msra.mxu0 %v3240_v13  ;;  %2098 = vmatprep.subr.bf16.mxu1 %v3245_v14  ;;  %v3324_v13 = vld [vmem:[%s4294_s1 + $0x7b0] ss:$8 sps:$4 sm:$0xff]   ;;  %v3329_v14 = vld [vmem:[%s4294_s1 + $0x3c4] ss:$8 sps:$4 sm:$0xff]  }
  0xbe   : > { %2270 = vmatprep.subr.bf16.mxu0 %v3248_v15  ;;  %v3332_v15 = vld [vmem:[%s4294_s1 + $0x7c4] ss:$8 sps:$4 sm:$0xff]  }
  0xc0   : > { %2099 = vmatpush1.bf16.msra.mxu1 %v3243_v16  ;;  %v3327_v16 = vld [vmem:[%s4294_s1 + $0x3c0] ss:$8 sps:$4 sm:$0xff]  }
  0xc1   : > { %2271 = vmatpush1.bf16.msra.mxu0 %v3246_v17  ;;  %2100 = vmatprep.subr.bf16.mxu1 %v3251_v18  ;;  %v3330_v17 = vld [vmem:[%s4294_s1 + $0x7c0] ss:$8 sps:$4 sm:$0xff]   ;;  %v3335_v18 = vld [vmem:[%s4294_s1 + $0x3d4] ss:$8 sps:$4 sm:$0xff]  }
  0xc2   : > { %2272 = vmatprep.subr.bf16.mxu0 %v3254_v19  ;;  %v3338_v19 = vld [vmem:[%s4294_s1 + $0x7d4] ss:$8 sps:$4 sm:$0xff]  }
  0xc4   : > { %2101 = vmatpush1.bf16.msra.mxu1 %v3249_v20  ;;  %v3333_v20 = vld [vmem:[%s4294_s1 + $0x3d0] ss:$8 sps:$4 sm:$0xff]  }
  0xc5   : > { %2273 = vmatpush1.bf16.msra.mxu0 %v3252_v21  ;;  %2113 = vmatprep.subr.bf16.mxu1 %v3257_v22  ;;  %v3336_v21 = vld [vmem:[%s4294_s1 + $0x7d0] ss:$8 sps:$4 sm:$0xff]   ;;  %v3341_v22 = vld [vmem:[%s4294_s1 + $0x3e4] ss:$8 sps:$4 sm:$0xff]  }
  0xc6   : > { %2285 = vmatprep.subr.bf16.mxu0 %v3260_v23  ;;  %v3344_v23 = vld [vmem:[%s4294_s1 + $0x7e4] ss:$8 sps:$4 sm:$0xff]  }
  0xc7   : > { %2103 = vmatmul.mubr.bf16.vlgmr.msra.gmra.mrb[0].mxu1 %v2634_v27  ;;  %v3339_v27 = vld [vmem:[%s4294_s1 + $0x3e0] ss:$8 sps:$4 sm:$0xff]  }
  0xc8   : > { %2275 = vmatmul.mubr.bf16.vlgmr.msra.gmra.mrb[0].mxu0 %v2642_v28  ;;  %2114 = vmatpush1.bf16.msra.mxu1 %v3255_v34  ;;  %v3342_v28 = vld [vmem:[%s4294_s1 + $0x7e0] ss:$8 sps:$4 sm:$0xff]   ;;  %v3347_v34 = vld [vmem:[%s4294_s1 + $0x3f4] ss:$8 sps:$4 sm:$0xff]  }
  0xc9   : > { %2286 = vmatpush1.bf16.msra.mxu0 %v3258_v35  ;;  %2115 = vmatprep.subr.bf16.mxu1 %v3263_v24  ;;  %v3350_v35 = vld [vmem:[%s4294_s1 + $0x7f4] ss:$8 sps:$4 sm:$0xff]   ;;  %v3345_v24 = vld [vmem:[%s4294_s1 + $0x3f0] ss:$8 sps:$4 sm:$0xff]  }
  0xca   : > { %2287 = vmatprep.subr.bf16.mxu0 %v3266_v25  ;;  %2145 = vmatprep.mubr.bf16.mxu1 %v2637_v29  ;;  %v3348_v25 = vld [vmem:[%s4294_s1 + $0x7f0] ss:$8 sps:$4 sm:$0xff]   ;;  %v2636_v29 = vcombine.low %v4058_v26, %v4065_v31 }
  0xcb   : > { %2317 = vmatprep.mubr.bf16.mxu0 %v2645_v30  ;;  %v2644_v30 = vcombine.low %v4068_v32, %v4071_v33 }
  0xcc   : > { %2116 = vmatpush1.bf16.msra.mxu1 %v3261_v36  ;;  %v614_v36 = vlaneseq }
  0xcd   : > { %2288 = vmatpush1.bf16.msra.mxu0 %v3264_v37  ;;  %2117 = vmatprep.subr.bf16.mxu1 %v3269_v38 }
  0xce   : > { %2289 = vmatprep.subr.bf16.mxu0 %v3272_v39  ;;  %v615_v37 = vshrl.u32 %v614_v36, 7  ;;  %v612_v39 = vld [vmem:[%s4295_s2] sm:$0x3]  ;;  %vm2376_vm0 = vcmp.lt.s32.totalorder %v614_v36, 256 }
  0xd0   : > { %2118 = vmatpush1.bf16.msra.mxu1 %v3267_v40  ;;  %v616_v38 = vsub.s32 0, %v615_v37  ;;  %v620_v40 = vsub.s32 1, %v615_v37 }
  0xd1   : > { %2290 = vmatpush1.bf16.msra.mxu0 %v3270_v41  ;;  %2119 = vmatprep.subr.bf16.mxu1 %v3275_v42 }
  0xd2   : > { %2291 = vmatprep.subr.bf16.mxu0 %v3278_v43  ;;  %v617_v41 = vrot.slane %v612_v39, %v616_v38  ;;  %v621_v42 = vrot.slane %v612_v39, %v620_v40 }
  0xd4   : > { %2120 = vmatpush1.bf16.msra.mxu1 %v3273_v44 }
  0xd5   : > { %2292 = vmatpush1.bf16.msra.mxu0 %v3276_v45  ;;  %2121 = vmatprep.subr.bf16.mxu1 %v3281_v46 }
  0xd6   : > { %2293 = vmatprep.subr.bf16.mxu0 %v3284_v47 }
  0xd8   : > { %2122 = vmatpush1.bf16.msra.mxu1 %v3279_v48 }
  0xd9   : > { %2294 = vmatpush1.bf16.msra.mxu0 %v3282_v49  ;;  %2123 = vmatprep.subr.bf16.mxu1 %v3287_v50 }
  0xda   : > { %2295 = vmatprep.subr.bf16.mxu0 %v3290_v51 }
  0xdc   : > { %2124 = vmatpush1.bf16.msra.mxu1 %v3285_v52 }
  0xdd   : > { %2296 = vmatpush1.bf16.msra.mxu0 %v3288_v53  ;;  %2125 = vmatprep.subr.bf16.mxu1 %v3293_v54 }
  0xde   : > { %2297 = vmatprep.subr.bf16.mxu0 %v3296_v55 }
  0xe0   : > { %2126 = vmatpush1.bf16.msra.mxu1 %v3291_v56 }
  0xe1   : > { %2298 = vmatpush1.bf16.msra.mxu0 %v3294_v57  ;;  %2127 = vmatprep.subr.bf16.mxu1 %v3299_v58 }
  0xe2   : > { %2299 = vmatprep.subr.bf16.mxu0 %v3302_v59 }
  0xe4   : > { %2128 = vmatpush1.bf16.msra.mxu1 %v3297_v60 }
  0xe5   : > { %2300 = vmatpush1.bf16.msra.mxu0 %v3300_v61  ;;  %2129 = vmatprep.subr.bf16.mxu1 %v3305_v62 }
  0xe6   : > { %2301 = vmatprep.subr.bf16.mxu0 %v3308_v63 }
  0xe8   : > { %2130 = vmatpush1.bf16.msra.mxu1 %v3303_v0 }
  0xe9   : > { %2302 = vmatpush1.bf16.msra.mxu0 %v3306_v1  ;;  %2131 = vmatprep.subr.bf16.mxu1 %v3311_v2 }
  0xea   : > { %2303 = vmatprep.subr.bf16.mxu0 %v3314_v3 }
  0xec   : > { %2132 = vmatpush1.bf16.msra.mxu1 %v3309_v4 }
  0xed   : > { %2304 = vmatpush1.bf16.msra.mxu0 %v3312_v5  ;;  %2133 = vmatprep.subr.bf16.mxu1 %v3317_v6  ;;  %v3375_v5 = vmov 1966171168  }
  0xee   : > { %2305 = vmatprep.subr.bf16.mxu0 %v3320_v7  ;;  %v2360_v6 = vunpack.c.l.s4 %v3375_v5 }
  0xf0   : > { %2134 = vmatpush1.bf16.msra.mxu1 %v3315_v8 }
  0xf1   : > { %2306 = vmatpush1.bf16.msra.mxu0 %v3318_v9  ;;  %2135 = vmatprep.subr.bf16.mxu1 %v3323_v10 }
  0xf2   : > { %2307 = vmatprep.subr.bf16.mxu0 %v3326_v11 }
  0xf4   : > { %2136 = vmatpush1.bf16.msra.mxu1 %v3321_v12 }
  0xf5   : > { %2308 = vmatpush1.bf16.msra.mxu0 %v3324_v13  ;;  %2137 = vmatprep.subr.bf16.mxu1 %v3329_v14 }
  0xf6   : > { %2309 = vmatprep.subr.bf16.mxu0 %v3332_v15  ;;  %v2361_v15 = vunpack.c.0.s8 %v2360_v6 }
  0xf8   : > { %2138 = vmatpush1.bf16.msra.mxu1 %v3327_v16 }
  0xf9   : > { %2310 = vmatpush1.bf16.msra.mxu0 %v3330_v17  ;;  %2139 = vmatprep.subr.bf16.mxu1 %v3335_v18 }
  0xfa   : > { %2311 = vmatprep.subr.bf16.mxu0 %v3338_v19 }
  0xfc   : > { %2140 = vmatpush1.bf16.msra.mxu1 %v3333_v20 }
  0xfd   : > { %2312 = vmatpush1.bf16.msra.mxu0 %v3336_v21  ;;  %2141 = vmatprep.subr.bf16.mxu1 %v3341_v22 }
  0xfe   : > { %2313 = vmatprep.subr.bf16.mxu0 %v3344_v23 }
 0x100   : > { %2142 = vmatpush1.bf16.msra.mxu1 %v3339_v27  ;;  %v2364_v27 = vsub.s32 %v2361_v15, %v615_v37 }
 0x101   : > { %2314 = vmatpush1.bf16.msra.mxu0 %v3342_v28  ;;  %2143 = vmatprep.subr.bf16.mxu1 %v3347_v34 }
 0x102   : > { %2315 = vmatprep.subr.bf16.mxu0 %v3350_v35 }
 0x104   : > { %2144 = vmatpush1.bf16.msra.mxu1 %v3345_v24 }
 0x105   : > { %2316 = vmatpush1.bf16.msra.mxu0 %v3348_v25 }
 0x107   : > { %2146 = vmatmul.mubr.bf16.vlgmr.msra.gmra.mrb[0].mxu1 %v2636_v29 }
 0x108   : > { %2318 = vmatmul.mubr.bf16.vlgmr.msra.gmra.mrb[0].mxu0 %v2644_v30 }
 0x1da   : > { %v2147_v26 = vpop.f32.mrb[0].mxu1 }
 0x1db   : > { %v2319_v31 = vpop.f32.mrb[0].mxu0  ;;  %v2910_v43 = vadd.f32 %v2147_v26, %v617_v41  ;;  %v2149_v32 = vpop.f32.mrb[1].mxu1 }
 0x1dc   : > { %v2321_v33 = vpop.f32.mrb[1].mxu0  ;;  %v2912_v44 = vadd.f32 %v2149_v32, %v621_v42  ;;  %v2151_v45 = vpop.f32.mrb[2].mxu1 }
 0x1dd   : > { %v2323_v46 = vpop.f32.mrb[2].mxu0  ;;  %v2911_v47 = vadd.f32 %v2910_v43, %v2319_v31  ;;  %v2914_v48 = vadd.f32 %v2151_v45, %v617_v41  ;;  %v2153_v49 = vpop.f32.mrb[3].mxu1 }
 0x1de   : > { %v2325_v50 = vpop.f32.mrb[3].mxu0  ;;  %v2913_v51 = vadd.f32 %v2912_v44, %v2321_v33  ;;  %v2916_v52 = vadd.f32 %v2153_v49, %v621_v42 }
 0x1df   : > { %v2915_v53 = vadd.f32 %v2914_v48, %v2323_v46  ;;  %v2379_v56 = vmul.f32 %v2911_v47, %v2911_v47 }
 0x1e0   : > { %v2908_v54 = vpack.c.bf16 %v2913_v51, %v2911_v47  ;;  %v2917_v55 = vadd.f32 %v2916_v52, %v2325_v50  ;;  %v2380_v59 = vmul.f32 %v2913_v51, %v2913_v51 }
 0x1e1   : > { %v2342_v57 = vadd.f32 %v2915_v53, %v2911_v47  ;;  %v2381_v58 = vmul.f32 %v2915_v53, %v2915_v53 }
 0x1e2   : > { %2340 = vst [vmem:[%s319_s11] sm:$0xff] %v2908_v54  ;;  %v2909_v60 = vpack.c.bf16 %v2917_v55, %v2915_v53  ;;  %v2349_v61 = vadd.f32 %v2917_v55, %v2913_v51  ;;  %v2382_v62 = vmul.f32 %v2917_v55, %v2917_v55 }
 0x1e3   : > { %v2343_v63 = vrot.slane %v2342_v57, 4  ;;  %v2383_v0 = vadd.f32 %v2381_v58, %v2379_v56 }
 0x1e4   : > { %2341 = vst [vmem:[%s319_s11 + $0x8] sm:$0xff] %v2909_v60  ;;  %v2350_v1 = vrot.slane %v2349_v61, 4  ;;  %v2390_v2 = vadd.f32 %v2382_v62, %v2380_v59 }
 0x1e5   : > { %v2344_v3 = vadd.f32 %v2343_v63, %v2342_v57  ;;  %v2384_v4 = vrot.slane %v2383_v0, 4 }
 0x1e6   : > { %v2351_v7 = vadd.f32 %v2350_v1, %v2349_v61  ;;  %v2391_v8 = vrot.slane %v2390_v2, 4 }
 0x1e7   : > { %v2345_v9 = vrot.slane %v2344_v3, 2  ;;  %v2385_v10 = vadd.f32 %v2384_v4, %v2383_v0 }
 0x1e8   : > { %v2352_v11 = vrot.slane %v2351_v7, 2  ;;  %v2392_v12 = vadd.f32 %v2391_v8, %v2390_v2 }
 0x1e9   : > { %v2346_v13 = vadd.f32 %v2345_v9, %v2344_v3  ;;  %v2386_v14 = vrot.slane %v2385_v10, 2 }
 0x1ea   : > { %v2353_v16 = vadd.f32 %v2352_v11, %v2351_v7  ;;  %v2393_v17 = vrot.slane %v2392_v12, 2 }
 0x1eb   : > { %v2347_v18 = vrot.slane %v2346_v13, 1  ;;  %v2387_v19 = vadd.f32 %v2386_v14, %v2385_v10 }
 0x1ec   : > { %v2354_v20 = vrot.slane %v2353_v16, 1  ;;  %v2394_v21 = vadd.f32 %v2393_v17, %v2392_v12 }
 0x1ed   : > { %v2348_v22 = vadd.f32 %v2347_v18, %v2346_v13  ;;  %v2388_v23 = vrot.slane %v2387_v19, 1 }
 0x1ee   : > { %v2355_v28 = vadd.f32 %v2354_v20, %v2353_v16  ;;  %v2395_v34 = vrot.slane %v2394_v21, 1 }
 0x1ef   : > { %v2389_v35 = vadd.f32 %v2388_v23, %v2387_v19 }
 0x1f0   : > { %v2358_v24 = vcombine.low %v2348_v22, %v2355_v28  ;;  %v2396_v25 = vadd.f32 %v2395_v34, %v2394_v21 }
 0x1f2   : > { %v2365_v29 = vrot.slane %v2358_v24, %v2364_v27  ;;  %v2399_v30 = vcombine.low %v2389_v35, %v2396_v25 }
 0x1f4   : > { %v2372_v38 = vrot.slane %v2365_v29, %v2364_v27  ;;  %v2406_v39 = vrot.slane %v2399_v30, %v2364_v27 }
 0x1f6   : > { %2378 = vst.msk [vmem:[%s329_s14] sm:$0x3] %vm2376_vm0, %v2372_v38  ;;  %v2413_v37 = vrot.slane %v2406_v39, %v2364_v27 }
 0x1f8   : > { %2415 = vst.msk [vmem:[%s338_s22] sm:$0x3] %vm2376_vm0, %v2413_v37 }
 0x1f9 PF: > { %s16_s20 = sadd.s32 1, %s3373_s20   ;;  %s4299_s18 = smov %s3369_s19 }
 0x1fa   : > { %p13_p6 = scmp.ge.s32.totalorder %s16_s20, 4   ;;  %s4300_s19 = smov %s4302_s21 }
 0x1fc   :  { %15 = sbr.rel (!%p13_p6) target bundleno = 2 (0x2), region = 92 }

// kernel: discriminator_forward.14
= control target key start
LH: loop header
LB: loop body
LE: loop exit
PB: predicated region body
PF: predicated region fallthrough
CT: control target
= control target key end

     0   :  { %s420_s12 = smov 0   ;;  %s450_s0 = inlined_call_operand.vmem [shape: bf16[32,512], index: 0, kind: input, shape index: {}]   ;;  %s451_s1 = inlined_call_operand.vmem [shape: f32[1,512], index: 1, kind: input, shape index: {}]   ;;  %s452_s2 = inlined_call_operand.vmem [shape: f32[1,512], index: 2, kind: input, shape index: {}]   ;;  %s453_s3 = inlined_call_operand.vmem [shape: bf16[32,512], index: 3, kind: output, shape index: {}]  }
   0x1 LB: > { %s361_s13 = sadd.s32 4294967295, %s398_s12   ;;  %p365_p0 = scmp.ge.s32.totalorder %s398_s12, 1  ;;  %s398_s12 = sphi %s420_s12, %s13_s12  }
   0x2   : > { %p139_p1 = scmp.lt.s32.totalorder %s398_s12, 3 }
   0x4   : > { %p140_p2 = pnand %p365_p0, %p139_p1 }
   0x5   : > { %s366_s14 = sshll.u32 (!%p140_p2), %s361_s13, 1  ;;  %v193_v0 = vlaneseq (!%p140_p2)  ;;  %v191_v2 = vld [vmem:[%s451_s1] sm:$0xf] (!%p140_p2) }
   0x6   : > { %143 = sbr.rel (%p140_p2) target bundleno = 34 (0x22), region = 32  ;;  %p166_p3 = scmp.lt.s32.totalorder (!%p140_p2), %s366_s14, 3  ;;  %v221_v3 = vld [vmem:[%s452_s2] sm:$0xf] (!%p140_p2) }
   0x7   : > { %v194_v1 = vshrl.u32 (!%p140_p2), %v193_v0, 7 }
   0x9   : > { %v195_v4 = vsub.s32 (!%p140_p2), 0, %v194_v1  ;;  %v199_v5 = vsub.s32 (!%p140_p2), 1, %v194_v1  ;;  %v203_v6 = vsub.s32 (!%p140_p2), 2, %v194_v1  ;;  %v207_v7 = vsub.s32 (!%p140_p2), 3, %v194_v1 }
   0xb   : > { %v196_v8 = vrot.slane (!%p140_p2), %v191_v2, %v195_v4  ;;  %v200_v9 = vrot.slane (!%p140_p2), %v191_v2, %v199_v5  ;;  %v226_v10 = vrot.slane (!%p140_p2), %v221_v3, %v195_v4  ;;  %v230_v11 = vrot.slane (!%p140_p2), %v221_v3, %v199_v5 }
   0xc   : > { %v204_v15 = vrot.slane (!%p140_p2), %v191_v2, %v203_v6  ;;  %v208_v16 = vrot.slane (!%p140_p2), %v191_v2, %v207_v7  ;;  %v234_v17 = vrot.slane (!%p140_p2), %v221_v3, %v203_v6  ;;  %v238_v18 = vrot.slane (!%p140_p2), %v221_v3, %v207_v7 }
   0xd   : > { %s455_s14 = smov (!%p166_p3, %s366_s14), 3 }
   0xe   : > { %s378_s19 = sshll.u32 %s455_s14, 4 }
   0xf   : > { %s170_s22 = scalar_lea.vmem %s450_s0, %s378_s19  ;;  %s177_s25 = scalar_lea.vmem %s453_s3, %s378_s19 }
  0x10   : > { %v179_v12 = vld [vmem:[%s170_s22] sm:$0xff]  ;;  %v180_v13 = vld [vmem:[%s170_s22 + $0x8] sm:$0xff]  ;;  %v181_v14 = vld [vmem:[%s170_s22 + $0x10] sm:$0xff] }
  0x11   : > { %v182_v19 = vld [vmem:[%s170_s22 + $0x18] sm:$0xff]  ;;  %v183_v20 = vunpack.c.l.bf16 %v179_v12  ;;  %v184_v21 = vunpack.c.h.bf16 %v179_v12  ;;  %v185_v22 = vunpack.c.l.bf16 %v180_v13  ;;  %v186_v23 = vunpack.c.h.bf16 %v180_v13 }
  0x12   : > { %v187_v24 = vunpack.c.l.bf16 %v181_v14  ;;  %v188_v25 = vunpack.c.h.bf16 %v181_v14  ;;  %v189_v26 = vunpack.c.l.bf16 %v182_v19  ;;  %v190_v27 = vunpack.c.h.bf16 %v182_v19 }
  0x13   : > { %v213_v28 = vmul.f32 %v196_v8, %v183_v20  ;;  %v214_v29 = vmul.f32 %v200_v9, %v184_v21  ;;  %v215_v30 = vmul.f32 %v204_v15, %v185_v22  ;;  %v216_v31 = vmul.f32 %v208_v16, %v186_v23 }
  0x14   : > { %v217_v32 = vmul.f32 %v196_v8, %v187_v24  ;;  %v218_v33 = vmul.f32 %v200_v9, %v188_v25  ;;  %v219_v34 = vmul.f32 %v204_v15, %v189_v26  ;;  %v220_v35 = vmul.f32 %v208_v16, %v190_v27 }
  0x15   : > { %v243_v36 = vadd.f32 %v226_v10, %v213_v28  ;;  %v244_v37 = vadd.f32 %v230_v11, %v214_v29  ;;  %v245_v38 = vadd.f32 %v234_v17, %v215_v30  ;;  %v246_v39 = vadd.f32 %v238_v18, %v216_v31 }
  0x16   : > { %v247_v40 = vadd.f32 %v226_v10, %v217_v32  ;;  %v248_v41 = vadd.f32 %v230_v11, %v218_v33  ;;  %v249_v42 = vadd.f32 %v234_v17, %v219_v34  ;;  %v250_v43 = vadd.f32 %v238_v18, %v220_v35 }
  0x17   : > { %vm251_vm0 = vcmp.ge.f32.partialorder %v243_v36, 0.0  ;;  %vm252_vm1 = vcmp.ge.f32.partialorder %v244_v37, 0.0  ;;  %v259_v44 = vmul.f32 0.2, %v243_v36  ;;  %v260_v45 = vmul.f32 0.2, %v244_v37 }
  0x18   : > { %vm253_vm2 = vcmp.ge.f32.partialorder %v245_v38, 0.0  ;;  %vm254_vm3 = vcmp.ge.f32.partialorder %v246_v39, 0.0  ;;  %v261_v46 = vmul.f32 0.2, %v245_v38  ;;  %v262_v47 = vmul.f32 0.2, %v246_v39 }
  0x19   : > { %v267_v48 = vsel %vm251_vm0, %v243_v36, %v259_v44  ;;  %v268_v49 = vsel %vm252_vm1, %v244_v37, %v260_v45  ;;  %vm255_vm4 = vcmp.ge.f32.partialorder %v247_v40, 0.0  ;;  %vm256_vm5 = vcmp.ge.f32.partialorder %v248_v41, 0.0 }
  0x1a   : > { %v380_v50 = vpack.c.bf16 %v268_v49, %v267_v48  ;;  %v269_v51 = vsel %vm253_vm2, %v245_v38, %v261_v46  ;;  %v270_v52 = vsel %vm254_vm3, %v246_v39, %v262_v47  ;;  %v263_v53 = vmul.f32 0.2, %v247_v40 }
  0x1b   : > { %v381_v54 = vpack.c.bf16 %v270_v52, %v269_v51  ;;  %v264_v55 = vmul.f32 0.2, %v248_v41  ;;  %vm257_vm6 = vcmp.ge.f32.partialorder %v249_v42, 0.0  ;;  %vm258_vm7 = vcmp.ge.f32.partialorder %v250_v43, 0.0 }
  0x1c   : > { %299 = vst [vmem:[%s177_s25] sm:$0xff] %v380_v50  ;;  %v271_v56 = vsel %vm255_vm4, %v247_v40, %v263_v53  ;;  %v265_v57 = vmul.f32 0.2, %v249_v42  ;;  %v266_v58 = vmul.f32 0.2, %v250_v43 }
  0x1d   : > { %300 = vst [vmem:[%s177_s25 + $0x8] sm:$0xff] %v381_v54  ;;  %v272_v59 = vsel %vm256_vm5, %v248_v41, %v264_v55 }
  0x1e   : > { %v382_v60 = vpack.c.bf16 %v272_v59, %v271_v56  ;;  %v273_v61 = vsel %vm257_vm6, %v249_v42, %v265_v57  ;;  %v274_v62 = vsel %vm258_vm7, %v250_v43, %v266_v58 }
  0x1f   : > { %v383_v63 = vpack.c.bf16 %v274_v62, %v273_v61 }
  0x20   : > { %301 = vst [vmem:[%s177_s25 + $0x10] sm:$0xff] %v382_v60 }
  0x21   : > { %302 = vst [vmem:[%s177_s25 + $0x18] sm:$0xff] %v383_v63 }
  0x22 PF: > { %s13_s12 = sadd.s32 1, %s398_s12  }
  0x23   : > { %p10_p4 = scmp.ge.s32.totalorder %s13_s12, 4  }
  0x25   :  { %12 = sbr.rel (!%p10_p4) target bundleno = 1 (0x1), region = 62 }

// kernel: discriminator_forward.13
= control target key start
LH: loop header
LB: loop body
LE: loop exit
PB: predicated region body
PF: predicated region fallthrough
CT: control target
= control target key end

     0   :  { %s10363_s18 = smov 0   ;;  %s10365_s19 = smov 0   ;;  %s12212_s0 = inlined_call_operand.vmem [shape: bf16[32,4096], index: 0, kind: input, shape index: {}]   ;;  %s12213_s1 = inlined_call_operand.vmem [shape: bf16[4096,512], index: 1, kind: input, shape index: {}]   ;;  %s12214_s2 = inlined_call_operand.vmem [shape: f32[1,512], index: 2, kind: input, shape index: {}]   ;;  %s12215_s3 = inlined_call_operand.vmem [shape: bf16[32,512], index: 3, kind: output, shape index: {0}]   ;;  %s12216_s4 = inlined_call_operand.vmem [shape: f32[2,1,512], index: 4, kind: output, shape index: {1}]   ;;  %s12217_s5 = inlined_call_operand.vmem [shape: f32[2,1,512], index: 5, kind: output, shape index: {2}]  }
   0x1   :  { %s10367_s20 = smov 0   ;;  %s10369_s21 = smov 0  }
   0x2   :  { %s10371_s22 = smov 0   ;;  %s10373_s23 = smov 0  }
   0x3   :  { %s10375_s24 = smov 0   ;;  %s10377_s25 = smov 0  }
   0x4   :  { %s10379_s26 = smov 0  }
   0x5 LB: > { %s25_s27 = sadd.s32 1, %s10322_s24  ;;  %s28_s28 = sadd.s32 1, %s10326_s25  ;;  %s10330_s26 = sphi %s10379_s26, %s16_s26   ;;  %s10326_s25 = sphi %s10377_s25, %s12227_s25   ;;  %s10322_s24 = sphi %s10375_s24, %s12226_s24   ;;  %s10318_s23 = sphi %s10373_s23, %s12225_s23   ;;  %s10314_s22 = sphi %s10371_s22, %s12224_s22   ;;  %s10310_s21 = sphi %s10369_s21, %s12223_s21   ;;  %s10306_s20 = sphi %s10367_s20, %s12222_s20   ;;  %s10302_s19 = sphi %s10365_s19, %s12221_s19   ;;  %s10298_s18 = sphi %s10363_s18, %s12220_s18  }
   0x6   : > { %p26_p0 = scmp.ge.s32.totalorder %s25_s27, 2  ;;  %p68_p1 = scmp.ne.s32.totalorder %s10310_s21, %s10306_s20 }
   0x7   : > { %s8779_s29 = sadd.s32 4294967295, %s10330_s26   ;;  %p69_p2 = scmp.eq.s32.totalorder %s10330_s26, 0 }
   0x8   : > { %s12229_s27 = smov (%p26_p0, %s25_s27), 0  ;;  %s12231_s28 = smov (!%p26_p0, %s28_s28), %s10326_s25 }
   0x9   : > { %p30_p3 = scmp.ge.s32.totalorder %s12231_s28, 2  ;;  %s110_s30 = ssub.s32 %s10322_s24, %s12229_s27 }
   0xa   : > { %p10419_p4 = por %p69_p2, %p68_p1  ;;  %p125_p5 = scmp.ne.s32.totalorder %s10302_s19, %s10298_s18 }
   0xb   : > { %s12233_s28 = smov (%p30_p3, %s12231_s28), 0  ;;  %s61_s7 = sadd.s32 1, %s10310_s21 }
   0xc   : > { %p126_p6 = scmp.eq.s32.totalorder %s8779_s29, 3  ;;  %s58_s8 = ssub.s32 %s10326_s25, %s12233_s28 }
   0xd   : > { %s115_s9 = sadd.s32 1, %s10302_s19  ;;  %p59_p7 = scmp.eq.s32.totalorder %s58_s8, 0 }
   0xe   : > { %s112_s10 = sor.u32 %s110_s30, %s58_s8  ;;  %p10431_p9 = por %p126_p6, %p125_p5 }
   0xf   : > { %p113_p8 = scmp.eq.s32.totalorder %s112_s10, 0  ;;  %p8782_p10 = scmp.ge.s32.totalorder %s10330_s26, 4 }
  0x10   : > { %s10436_s12 = scalar_select %p59_p7, %s10310_s21, %s61_s7  }
  0x11   : > { %s10439_s13 = scalar_select %p113_p8, %s10302_s19, %s115_s9  }
  0x12   : > { %204 = sbr.rel (%p8782_p10) target bundleno = 285 (0x11d), region = 16 }
  0x19   : > { %217 = sbr.rel (!%p10419_p4) target bundleno = 285 (0x11d), region = 24  ;;  %s219_s14 = sand.u32 (%p10419_p4), 1, %s10310_s21  }
  0x1a   : > { %s9350_s15 = sshll.u32 (%p10419_p4), %s10326_s25, 3  ;;  %s8783_s16 = sshll.u32 (%p10419_p4), %s219_s14, 12 }
  0x1b   : > { %s10449_s30 = scalar_lea.vmem (%p10419_p4), %s12213_s1, %s9350_s15  ;;  %s10454_s6 = scalar_lea.vmem (%p10419_p4), [#allocation2], %s8783_s16 }
  0x1c   : > { %v1277_v0 = vld [vmem:[%s10449_s30] sm:$0xff] (%p10419_p4)  ;;  %v1279_v1 = vld [vmem:[%s10449_s30 + $0x10] sm:$0xff] (%p10419_p4) }
  0x1d   : > { %v1281_v2 = vld [vmem:[%s10449_s30 + $0x20] sm:$0xff] (%p10419_p4)  ;;  %1278 = vst [vmem:[%s10454_s6] sm:$0xff] (%p10419_p4), %v1277_v0  ;;  %1280 = vst [vmem:[%s10454_s6 + $0x8] sm:$0xff] (%p10419_p4), %v1279_v1  ;;  %v1283_v3 = vld [vmem:[%s10449_s30 + $0x30] sm:$0xff] (%p10419_p4) }
  0x1e   : > { %1282 = vst [vmem:[%s10454_s6 + $0x10] sm:$0xff] (%p10419_p4), %v1281_v2  ;;  %v1285_v4 = vld [vmem:[%s10449_s30 + $0x40] sm:$0xff] (%p10419_p4)  ;;  %v1287_v5 = vld [vmem:[%s10449_s30 + $0x50] sm:$0xff] (%p10419_p4)  ;;  %1284 = vst [vmem:[%s10454_s6 + $0x18] sm:$0xff] (%p10419_p4), %v1283_v3 }
  0x1f   : > { %1286 = vst [vmem:[%s10454_s6 + $0x20] sm:$0xff] (%p10419_p4), %v1285_v4  ;;  %1288 = vst [vmem:[%s10454_s6 + $0x28] sm:$0xff] (%p10419_p4), %v1287_v5  ;;  %v1289_v6 = vld [vmem:[%s10449_s30 + $0x60] sm:$0xff] (%p10419_p4)  ;;  %v1291_v7 = vld [vmem:[%s10449_s30 + $0x70] sm:$0xff] (%p10419_p4) }
  0x20   : > { %v1293_v8 = vld [vmem:[%s10449_s30 + $0x80] sm:$0xff]  ;;  %1290 = vst [vmem:[%s10454_s6 + $0x30] sm:$0xff] %v1289_v6  ;;  %1292 = vst [vmem:[%s10454_s6 + $0x38] sm:$0xff] %v1291_v7  ;;  %v1295_v9 = vld [vmem:[%s10449_s30 + $0x90] sm:$0xff] }
  0x21   : > { %1294 = vst [vmem:[%s10454_s6 + $0x40] sm:$0xff] %v1293_v8  ;;  %v1297_v10 = vld [vmem:[%s10449_s30 + $0xa0] sm:$0xff]  ;;  %v1299_v11 = vld [vmem:[%s10449_s30 + $0xb0] sm:$0xff]  ;;  %1296 = vst [vmem:[%s10454_s6 + $0x48] sm:$0xff] %v1295_v9 }
  0x22   : > { %1298 = vst [vmem:[%s10454_s6 + $0x50] sm:$0xff] %v1297_v10  ;;  %1300 = vst [vmem:[%s10454_s6 + $0x58] sm:$0xff] %v1299_v11  ;;  %v1301_v12 = vld [vmem:[%s10449_s30 + $0xc0] sm:$0xff]  ;;  %v1303_v13 = vld [vmem:[%s10449_s30 + $0xd0] sm:$0xff] }
  0x23   : > { %v1305_v14 = vld [vmem:[%s10449_s30 + $0xe0] sm:$0xff]  ;;  %1302 = vst [vmem:[%s10454_s6 + $0x60] sm:$0xff] %v1301_v12  ;;  %1304 = vst [vmem:[%s10454_s6 + $0x68] sm:$0xff] %v1303_v13  ;;  %v1307_v15 = vld [vmem:[%s10449_s30 + $0xf0] sm:$0xff] }
  0x24   : > { %1306 = vst [vmem:[%s10454_s6 + $0x70] sm:$0xff] %v1305_v14  ;;  %v1309_v16 = vld [vmem:[%s10449_s30 + $0x100] sm:$0xff]  ;;  %v1311_v17 = vld [vmem:[%s10449_s30 + $0x110] sm:$0xff]  ;;  %1308 = vst [vmem:[%s10454_s6 + $0x78] sm:$0xff] %v1307_v15 }
  0x25   : > { %1310 = vst [vmem:[%s10454_s6 + $0x80] sm:$0xff] %v1309_v16  ;;  %1312 = vst [vmem:[%s10454_s6 + $0x88] sm:$0xff] %v1311_v17  ;;  %v1313_v18 = vld [vmem:[%s10449_s30 + $0x120] sm:$0xff]  ;;  %v1315_v19 = vld [vmem:[%s10449_s30 + $0x130] sm:$0xff] }
  0x26   : > { %v1317_v20 = vld [vmem:[%s10449_s30 + $0x140] sm:$0xff]  ;;  %1314 = vst [vmem:[%s10454_s6 + $0x90] sm:$0xff] %v1313_v18  ;;  %1316 = vst [vmem:[%s10454_s6 + $0x98] sm:$0xff] %v1315_v19  ;;  %v1319_v21 = vld [vmem:[%s10449_s30 + $0x150] sm:$0xff] }
  0x27   : > { %1318 = vst [vmem:[%s10454_s6 + $0xa0] sm:$0xff] %v1317_v20  ;;  %v1321_v22 = vld [vmem:[%s10449_s30 + $0x160] sm:$0xff]  ;;  %v1323_v23 = vld [vmem:[%s10449_s30 + $0x170] sm:$0xff]  ;;  %1320 = vst [vmem:[%s10454_s6 + $0xa8] sm:$0xff] %v1319_v21 }
  0x28   : > { %1322 = vst [vmem:[%s10454_s6 + $0xb0] sm:$0xff] %v1321_v22  ;;  %1324 = vst [vmem:[%s10454_s6 + $0xb8] sm:$0xff] %v1323_v23  ;;  %v1325_v24 = vld [vmem:[%s10449_s30 + $0x180] sm:$0xff]  ;;  %v1327_v25 = vld [vmem:[%s10449_s30 + $0x190] sm:$0xff] }
  0x29   : > { %v1329_v26 = vld [vmem:[%s10449_s30 + $0x1a0] sm:$0xff]  ;;  %1326 = vst [vmem:[%s10454_s6 + $0xc0] sm:$0xff] %v1325_v24  ;;  %1328 = vst [vmem:[%s10454_s6 + $0xc8] sm:$0xff] %v1327_v25  ;;  %v1331_v27 = vld [vmem:[%s10449_s30 + $0x1b0] sm:$0xff] }
  0x2a   : > { %1330 = vst [vmem:[%s10454_s6 + $0xd0] sm:$0xff] %v1329_v26  ;;  %v1333_v28 = vld [vmem:[%s10449_s30 + $0x1c0] sm:$0xff]  ;;  %v1335_v29 = vld [vmem:[%s10449_s30 + $0x1d0] sm:$0xff]  ;;  %1332 = vst [vmem:[%s10454_s6 + $0xd8] sm:$0xff] %v1331_v27 }
  0x2b   : > { %1334 = vst [vmem:[%s10454_s6 + $0xe0] sm:$0xff] %v1333_v28  ;;  %1336 = vst [vmem:[%s10454_s6 + $0xe8] sm:$0xff] %v1335_v29  ;;  %v1337_v30 = vld [vmem:[%s10449_s30 + $0x1e0] sm:$0xff]  ;;  %v1339_v31 = vld [vmem:[%s10449_s30 + $0x1f0] sm:$0xff] }
  0x2c   : > { %v1341_v32 = vld [vmem:[%s10449_s30 + $0x200] sm:$0xff]  ;;  %1338 = vst [vmem:[%s10454_s6 + $0xf0] sm:$0xff] %v1337_v30  ;;  %1340 = vst [vmem:[%s10454_s6 + $0xf8] sm:$0xff] %v1339_v31  ;;  %v1343_v33 = vld [vmem:[%s10449_s30 + $0x210] sm:$0xff] }
  0x2d   : > { %1342 = vst [vmem:[%s10454_s6 + $0x100] sm:$0xff] %v1341_v32  ;;  %v1345_v34 = vld [vmem:[%s10449_s30 + $0x220] sm:$0xff]  ;;  %v1347_v35 = vld [vmem:[%s10449_s30 + $0x230] sm:$0xff]  ;;  %1344 = vst [vmem:[%s10454_s6 + $0x108] sm:$0xff] %v1343_v33 }
  0x2e   : > { %1346 = vst [vmem:[%s10454_s6 + $0x110] sm:$0xff] %v1345_v34  ;;  %1348 = vst [vmem:[%s10454_s6 + $0x118] sm:$0xff] %v1347_v35  ;;  %v1349_v36 = vld [vmem:[%s10449_s30 + $0x240] sm:$0xff]  ;;  %v1351_v37 = vld [vmem:[%s10449_s30 + $0x250] sm:$0xff] }
  0x2f   : > { %v1353_v38 = vld [vmem:[%s10449_s30 + $0x260] sm:$0xff]  ;;  %1350 = vst [vmem:[%s10454_s6 + $0x120] sm:$0xff] %v1349_v36  ;;  %1352 = vst [vmem:[%s10454_s6 + $0x128] sm:$0xff] %v1351_v37  ;;  %v1355_v39 = vld [vmem:[%s10449_s30 + $0x270] sm:$0xff] }
  0x30   : > { %1354 = vst [vmem:[%s10454_s6 + $0x130] sm:$0xff] %v1353_v38  ;;  %v1357_v40 = vld [vmem:[%s10449_s30 + $0x280] sm:$0xff]  ;;  %v1359_v41 = vld [vmem:[%s10449_s30 + $0x290] sm:$0xff]  ;;  %1356 = vst [vmem:[%s10454_s6 + $0x138] sm:$0xff] %v1355_v39 }
  0x31   : > { %1358 = vst [vmem:[%s10454_s6 + $0x140] sm:$0xff] %v1357_v40  ;;  %1360 = vst [vmem:[%s10454_s6 + $0x148] sm:$0xff] %v1359_v41  ;;  %v1361_v42 = vld [vmem:[%s10449_s30 + $0x2a0] sm:$0xff]  ;;  %v1363_v43 = vld [vmem:[%s10449_s30 + $0x2b0] sm:$0xff] }
  0x32   : > { %v1365_v44 = vld [vmem:[%s10449_s30 + $0x2c0] sm:$0xff]  ;;  %1362 = vst [vmem:[%s10454_s6 + $0x150] sm:$0xff] %v1361_v42  ;;  %1364 = vst [vmem:[%s10454_s6 + $0x158] sm:$0xff] %v1363_v43  ;;  %v1367_v45 = vld [vmem:[%s10449_s30 + $0x2d0] sm:$0xff] }
  0x33   : > { %1366 = vst [vmem:[%s10454_s6 + $0x160] sm:$0xff] %v1365_v44  ;;  %v1369_v46 = vld [vmem:[%s10449_s30 + $0x2e0] sm:$0xff]  ;;  %v1371_v47 = vld [vmem:[%s10449_s30 + $0x2f0] sm:$0xff]  ;;  %1368 = vst [vmem:[%s10454_s6 + $0x168] sm:$0xff] %v1367_v45 }
  0x34   : > { %1370 = vst [vmem:[%s10454_s6 + $0x170] sm:$0xff] %v1369_v46  ;;  %1372 = vst [vmem:[%s10454_s6 + $0x178] sm:$0xff] %v1371_v47  ;;  %v1373_v48 = vld [vmem:[%s10449_s30 + $0x300] sm:$0xff]  ;;  %v1375_v49 = vld [vmem:[%s10449_s30 + $0x310] sm:$0xff] }
  0x35   : > { %v1377_v50 = vld [vmem:[%s10449_s30 + $0x320] sm:$0xff]  ;;  %1374 = vst [vmem:[%s10454_s6 + $0x180] sm:$0xff] %v1373_v48  ;;  %1376 = vst [vmem:[%s10454_s6 + $0x188] sm:$0xff] %v1375_v49  ;;  %v1379_v51 = vld [vmem:[%s10449_s30 + $0x330] sm:$0xff] }
  0x36   : > { %1378 = vst [vmem:[%s10454_s6 + $0x190] sm:$0xff] %v1377_v50  ;;  %v1381_v52 = vld [vmem:[%s10449_s30 + $0x340] sm:$0xff]  ;;  %v1383_v53 = vld [vmem:[%s10449_s30 + $0x350] sm:$0xff]  ;;  %1380 = vst [vmem:[%s10454_s6 + $0x198] sm:$0xff] %v1379_v51 }
  0x37   : > { %1382 = vst [vmem:[%s10454_s6 + $0x1a0] sm:$0xff] %v1381_v52  ;;  %1384 = vst [vmem:[%s10454_s6 + $0x1a8] sm:$0xff] %v1383_v53  ;;  %v1385_v54 = vld [vmem:[%s10449_s30 + $0x360] sm:$0xff]  ;;  %v1387_v55 = vld [vmem:[%s10449_s30 + $0x370] sm:$0xff] }
  0x38   : > { %v1389_v56 = vld [vmem:[%s10449_s30 + $0x380] sm:$0xff]  ;;  %1386 = vst [vmem:[%s10454_s6 + $0x1b0] sm:$0xff] %v1385_v54  ;;  %1388 = vst [vmem:[%s10454_s6 + $0x1b8] sm:$0xff] %v1387_v55  ;;  %v1391_v57 = vld [vmem:[%s10449_s30 + $0x390] sm:$0xff] }
  0x39   : > { %1390 = vst [vmem:[%s10454_s6 + $0x1c0] sm:$0xff] %v1389_v56  ;;  %v1393_v58 = vld [vmem:[%s10449_s30 + $0x3a0] sm:$0xff]  ;;  %v1395_v59 = vld [vmem:[%s10449_s30 + $0x3b0] sm:$0xff]  ;;  %1392 = vst [vmem:[%s10454_s6 + $0x1c8] sm:$0xff] %v1391_v57 }
  0x3a   : > { %1394 = vst [vmem:[%s10454_s6 + $0x1d0] sm:$0xff] %v1393_v58  ;;  %1396 = vst [vmem:[%s10454_s6 + $0x1d8] sm:$0xff] %v1395_v59  ;;  %v1397_v60 = vld [vmem:[%s10449_s30 + $0x3c0] sm:$0xff]  ;;  %v1399_v61 = vld [vmem:[%s10449_s30 + $0x3d0] sm:$0xff] }
  0x3b   : > { %v1401_v62 = vld [vmem:[%s10449_s30 + $0x3e0] sm:$0xff]  ;;  %1398 = vst [vmem:[%s10454_s6 + $0x1e0] sm:$0xff] %v1397_v60  ;;  %1400 = vst [vmem:[%s10454_s6 + $0x1e8] sm:$0xff] %v1399_v61  ;;  %v1403_v63 = vld [vmem:[%s10449_s30 + $0x3f0] sm:$0xff] }
  0x3c   : > { %1402 = vst [vmem:[%s10454_s6 + $0x1f0] sm:$0xff] %v1401_v62  ;;  %v1405_v0 = vld [vmem:[%s10449_s30 + $0x400] sm:$0xff]  ;;  %v1407_v1 = vld [vmem:[%s10449_s30 + $0x410] sm:$0xff]  ;;  %1404 = vst [vmem:[%s10454_s6 + $0x1f8] sm:$0xff] %v1403_v63 }
  0x3d   : > { %1406 = vst [vmem:[%s10454_s6 + $0x200] sm:$0xff] %v1405_v0  ;;  %1408 = vst [vmem:[%s10454_s6 + $0x208] sm:$0xff] %v1407_v1  ;;  %v1409_v2 = vld [vmem:[%s10449_s30 + $0x420] sm:$0xff]  ;;  %v1411_v3 = vld [vmem:[%s10449_s30 + $0x430] sm:$0xff] }
  0x3e   : > { %v1413_v4 = vld [vmem:[%s10449_s30 + $0x440] sm:$0xff]  ;;  %1410 = vst [vmem:[%s10454_s6 + $0x210] sm:$0xff] %v1409_v2  ;;  %1412 = vst [vmem:[%s10454_s6 + $0x218] sm:$0xff] %v1411_v3  ;;  %v1415_v5 = vld [vmem:[%s10449_s30 + $0x450] sm:$0xff] }
  0x3f   : > { %1414 = vst [vmem:[%s10454_s6 + $0x220] sm:$0xff] %v1413_v4  ;;  %v1417_v6 = vld [vmem:[%s10449_s30 + $0x460] sm:$0xff]  ;;  %v1419_v7 = vld [vmem:[%s10449_s30 + $0x470] sm:$0xff]  ;;  %1416 = vst [vmem:[%s10454_s6 + $0x228] sm:$0xff] %v1415_v5 }
  0x40   : > { %1418 = vst [vmem:[%s10454_s6 + $0x230] sm:$0xff] %v1417_v6  ;;  %1420 = vst [vmem:[%s10454_s6 + $0x238] sm:$0xff] %v1419_v7  ;;  %v1421_v8 = vld [vmem:[%s10449_s30 + $0x480] sm:$0xff]  ;;  %v1423_v9 = vld [vmem:[%s10449_s30 + $0x490] sm:$0xff] }
  0x41   : > { %v1425_v10 = vld [vmem:[%s10449_s30 + $0x4a0] sm:$0xff]  ;;  %1422 = vst [vmem:[%s10454_s6 + $0x240] sm:$0xff] %v1421_v8  ;;  %1424 = vst [vmem:[%s10454_s6 + $0x248] sm:$0xff] %v1423_v9  ;;  %v1427_v11 = vld [vmem:[%s10449_s30 + $0x4b0] sm:$0xff] }
  0x42   : > { %1426 = vst [vmem:[%s10454_s6 + $0x250] sm:$0xff] %v1425_v10  ;;  %v1429_v12 = vld [vmem:[%s10449_s30 + $0x4c0] sm:$0xff]  ;;  %v1431_v13 = vld [vmem:[%s10449_s30 + $0x4d0] sm:$0xff]  ;;  %1428 = vst [vmem:[%s10454_s6 + $0x258] sm:$0xff] %v1427_v11 }
  0x43   : > { %1430 = vst [vmem:[%s10454_s6 + $0x260] sm:$0xff] %v1429_v12  ;;  %1432 = vst [vmem:[%s10454_s6 + $0x268] sm:$0xff] %v1431_v13  ;;  %v1433_v14 = vld [vmem:[%s10449_s30 + $0x4e0] sm:$0xff]  ;;  %v1435_v15 = vld [vmem:[%s10449_s30 + $0x4f0] sm:$0xff] }
  0x44   : > { %v1437_v16 = vld [vmem:[%s10449_s30 + $0x500] sm:$0xff]  ;;  %1434 = vst [vmem:[%s10454_s6 + $0x270] sm:$0xff] %v1433_v14  ;;  %1436 = vst [vmem:[%s10454_s6 + $0x278] sm:$0xff] %v1435_v15  ;;  %v1439_v17 = vld [vmem:[%s10449_s30 + $0x510] sm:$0xff] }
  0x45   : > { %1438 = vst [vmem:[%s10454_s6 + $0x280] sm:$0xff] %v1437_v16  ;;  %v1441_v18 = vld [vmem:[%s10449_s30 + $0x520] sm:$0xff]  ;;  %v1443_v19 = vld [vmem:[%s10449_s30 + $0x530] sm:$0xff]  ;;  %1440 = vst [vmem:[%s10454_s6 + $0x288] sm:$0xff] %v1439_v17 }
  0x46   : > { %1442 = vst [vmem:[%s10454_s6 + $0x290] sm:$0xff] %v1441_v18  ;;  %1444 = vst [vmem:[%s10454_s6 + $0x298] sm:$0xff] %v1443_v19  ;;  %v1445_v20 = vld [vmem:[%s10449_s30 + $0x540] sm:$0xff]  ;;  %v1447_v21 = vld [vmem:[%s10449_s30 + $0x550] sm:$0xff] }
  0x47   : > { %v1449_v22 = vld [vmem:[%s10449_s30 + $0x560] sm:$0xff]  ;;  %1446 = vst [vmem:[%s10454_s6 + $0x2a0] sm:$0xff] %v1445_v20  ;;  %1448 = vst [vmem:[%s10454_s6 + $0x2a8] sm:$0xff] %v1447_v21  ;;  %v1451_v23 = vld [vmem:[%s10449_s30 + $0x570] sm:$0xff] }
  0x48   : > { %1450 = vst [vmem:[%s10454_s6 + $0x2b0] sm:$0xff] %v1449_v22  ;;  %v1453_v24 = vld [vmem:[%s10449_s30 + $0x580] sm:$0xff]  ;;  %v1455_v25 = vld [vmem:[%s10449_s30 + $0x590] sm:$0xff]  ;;  %1452 = vst [vmem:[%s10454_s6 + $0x2b8] sm:$0xff] %v1451_v23 }
  0x49   : > { %1454 = vst [vmem:[%s10454_s6 + $0x2c0] sm:$0xff] %v1453_v24  ;;  %1456 = vst [vmem:[%s10454_s6 + $0x2c8] sm:$0xff] %v1455_v25  ;;  %v1457_v26 = vld [vmem:[%s10449_s30 + $0x5a0] sm:$0xff]  ;;  %v1459_v27 = vld [vmem:[%s10449_s30 + $0x5b0] sm:$0xff] }
  0x4a   : > { %v1461_v28 = vld [vmem:[%s10449_s30 + $0x5c0] sm:$0xff]  ;;  %1458 = vst [vmem:[%s10454_s6 + $0x2d0] sm:$0xff] %v1457_v26  ;;  %1460 = vst [vmem:[%s10454_s6 + $0x2d8] sm:$0xff] %v1459_v27  ;;  %v1463_v29 = vld [vmem:[%s10449_s30 + $0x5d0] sm:$0xff] }
  0x4b   : > { %1462 = vst [vmem:[%s10454_s6 + $0x2e0] sm:$0xff] %v1461_v28  ;;  %v1465_v30 = vld [vmem:[%s10449_s30 + $0x5e0] sm:$0xff]  ;;  %v1467_v31 = vld [vmem:[%s10449_s30 + $0x5f0] sm:$0xff]  ;;  %1464 = vst [vmem:[%s10454_s6 + $0x2e8] sm:$0xff] %v1463_v29 }
  0x4c   : > { %1466 = vst [vmem:[%s10454_s6 + $0x2f0] sm:$0xff] %v1465_v30  ;;  %1468 = vst [vmem:[%s10454_s6 + $0x2f8] sm:$0xff] %v1467_v31  ;;  %v1469_v32 = vld [vmem:[%s10449_s30 + $0x600] sm:$0xff]  ;;  %v1471_v33 = vld [vmem:[%s10449_s30 + $0x610] sm:$0xff] }
  0x4d   : > { %v1473_v34 = vld [vmem:[%s10449_s30 + $0x620] sm:$0xff]  ;;  %1470 = vst [vmem:[%s10454_s6 + $0x300] sm:$0xff] %v1469_v32  ;;  %1472 = vst [vmem:[%s10454_s6 + $0x308] sm:$0xff] %v1471_v33  ;;  %v1475_v35 = vld [vmem:[%s10449_s30 + $0x630] sm:$0xff] }
  0x4e   : > { %1474 = vst [vmem:[%s10454_s6 + $0x310] sm:$0xff] %v1473_v34  ;;  %v1477_v36 = vld [vmem:[%s10449_s30 + $0x640] sm:$0xff]  ;;  %v1479_v37 = vld [vmem:[%s10449_s30 + $0x650] sm:$0xff]  ;;  %1476 = vst [vmem:[%s10454_s6 + $0x318] sm:$0xff] %v1475_v35 }
  0x4f   : > { %1478 = vst [vmem:[%s10454_s6 + $0x320] sm:$0xff] %v1477_v36  ;;  %1480 = vst [vmem:[%s10454_s6 + $0x328] sm:$0xff] %v1479_v37  ;;  %v1481_v38 = vld [vmem:[%s10449_s30 + $0x660] sm:$0xff]  ;;  %v1483_v39 = vld [vmem:[%s10449_s30 + $0x670] sm:$0xff] }
  0x50   : > { %v1485_v40 = vld [vmem:[%s10449_s30 + $0x680] sm:$0xff]  ;;  %1482 = vst [vmem:[%s10454_s6 + $0x330] sm:$0xff] %v1481_v38  ;;  %1484 = vst [vmem:[%s10454_s6 + $0x338] sm:$0xff] %v1483_v39  ;;  %v1487_v41 = vld [vmem:[%s10449_s30 + $0x690] sm:$0xff] }
  0x51   : > { %1486 = vst [vmem:[%s10454_s6 + $0x340] sm:$0xff] %v1485_v40  ;;  %v1489_v42 = vld [vmem:[%s10449_s30 + $0x6a0] sm:$0xff]  ;;  %v1491_v43 = vld [vmem:[%s10449_s30 + $0x6b0] sm:$0xff]  ;;  %1488 = vst [vmem:[%s10454_s6 + $0x348] sm:$0xff] %v1487_v41 }
  0x52   : > { %1490 = vst [vmem:[%s10454_s6 + $0x350] sm:$0xff] %v1489_v42  ;;  %1492 = vst [vmem:[%s10454_s6 + $0x358] sm:$0xff] %v1491_v43  ;;  %v1493_v44 = vld [vmem:[%s10449_s30 + $0x6c0] sm:$0xff]  ;;  %v1495_v45 = vld [vmem:[%s10449_s30 + $0x6d0] sm:$0xff] }
  0x53   : > { %v1497_v46 = vld [vmem:[%s10449_s30 + $0x6e0] sm:$0xff]  ;;  %1494 = vst [vmem:[%s10454_s6 + $0x360] sm:$0xff] %v1493_v44  ;;  %1496 = vst [vmem:[%s10454_s6 + $0x368] sm:$0xff] %v1495_v45  ;;  %v1499_v47 = vld [vmem:[%s10449_s30 + $0x6f0] sm:$0xff] }
  0x54   : > { %1498 = vst [vmem:[%s10454_s6 + $0x370] sm:$0xff] %v1497_v46  ;;  %v1501_v48 = vld [vmem:[%s10449_s30 + $0x700] sm:$0xff]  ;;  %v1503_v49 = vld [vmem:[%s10449_s30 + $0x710] sm:$0xff]  ;;  %1500 = vst [vmem:[%s10454_s6 + $0x378] sm:$0xff] %v1499_v47 }
  0x55   : > { %1502 = vst [vmem:[%s10454_s6 + $0x380] sm:$0xff] %v1501_v48  ;;  %1504 = vst [vmem:[%s10454_s6 + $0x388] sm:$0xff] %v1503_v49  ;;  %v1505_v50 = vld [vmem:[%s10449_s30 + $0x720] sm:$0xff]  ;;  %v1507_v51 = vld [vmem:[%s10449_s30 + $0x730] sm:$0xff] }
  0x56   : > { %v1509_v52 = vld [vmem:[%s10449_s30 + $0x740] sm:$0xff]  ;;  %1506 = vst [vmem:[%s10454_s6 + $0x390] sm:$0xff] %v1505_v50  ;;  %1508 = vst [vmem:[%s10454_s6 + $0x398] sm:$0xff] %v1507_v51  ;;  %v1511_v53 = vld [vmem:[%s10449_s30 + $0x750] sm:$0xff] }
  0x57   : > { %1510 = vst [vmem:[%s10454_s6 + $0x3a0] sm:$0xff] %v1509_v52  ;;  %v1513_v54 = vld [vmem:[%s10449_s30 + $0x760] sm:$0xff]  ;;  %v1515_v55 = vld [vmem:[%s10449_s30 + $0x770] sm:$0xff]  ;;  %1512 = vst [vmem:[%s10454_s6 + $0x3a8] sm:$0xff] %v1511_v53 }
  0x58   : > { %1514 = vst [vmem:[%s10454_s6 + $0x3b0] sm:$0xff] %v1513_v54  ;;  %1516 = vst [vmem:[%s10454_s6 + $0x3b8] sm:$0xff] %v1515_v55  ;;  %v1517_v56 = vld [vmem:[%s10449_s30 + $0x780] sm:$0xff]  ;;  %v1519_v57 = vld [vmem:[%s10449_s30 + $0x790] sm:$0xff] }
  0x59   : > { %v1521_v58 = vld [vmem:[%s10449_s30 + $0x7a0] sm:$0xff]  ;;  %1518 = vst [vmem:[%s10454_s6 + $0x3c0] sm:$0xff] %v1517_v56  ;;  %1520 = vst [vmem:[%s10454_s6 + $0x3c8] sm:$0xff] %v1519_v57  ;;  %v1523_v59 = vld [vmem:[%s10449_s30 + $0x7b0] sm:$0xff] }
  0x5a   : > { %1522 = vst [vmem:[%s10454_s6 + $0x3d0] sm:$0xff] %v1521_v58  ;;  %v1525_v60 = vld [vmem:[%s10449_s30 + $0x7c0] sm:$0xff]  ;;  %v1527_v61 = vld [vmem:[%s10449_s30 + $0x7d0] sm:$0xff]  ;;  %1524 = vst [vmem:[%s10454_s6 + $0x3d8] sm:$0xff] %v1523_v59 }
  0x5b   : > { %1526 = vst [vmem:[%s10454_s6 + $0x3e0] sm:$0xff] %v1525_v60  ;;  %1528 = vst [vmem:[%s10454_s6 + $0x3e8] sm:$0xff] %v1527_v61  ;;  %v1529_v62 = vld [vmem:[%s10449_s30 + $0x7e0] sm:$0xff]  ;;  %v1531_v63 = vld [vmem:[%s10449_s30 + $0x7f0] sm:$0xff] }
  0x5c   : > { %v1533_v0 = vld [vmem:[%s10449_s30 + $0x800] sm:$0xff]  ;;  %1530 = vst [vmem:[%s10454_s6 + $0x3f0] sm:$0xff] %v1529_v62  ;;  %1532 = vst [vmem:[%s10454_s6 + $0x3f8] sm:$0xff] %v1531_v63  ;;  %v1535_v1 = vld [vmem:[%s10449_s30 + $0x810] sm:$0xff] }
  0x5d   : > { %1534 = vst [vmem:[%s10454_s6 + $0x400] sm:$0xff] %v1533_v0  ;;  %v1537_v2 = vld [vmem:[%s10449_s30 + $0x820] sm:$0xff]  ;;  %v1539_v3 = vld [vmem:[%s10449_s30 + $0x830] sm:$0xff]  ;;  %1536 = vst [vmem:[%s10454_s6 + $0x408] sm:$0xff] %v1535_v1 }
  0x5e   : > { %1538 = vst [vmem:[%s10454_s6 + $0x410] sm:$0xff] %v1537_v2  ;;  %1540 = vst [vmem:[%s10454_s6 + $0x418] sm:$0xff] %v1539_v3  ;;  %v1541_v4 = vld [vmem:[%s10449_s30 + $0x840] sm:$0xff]  ;;  %v1543_v5 = vld [vmem:[%s10449_s30 + $0x850] sm:$0xff] }
  0x5f   : > { %v1545_v6 = vld [vmem:[%s10449_s30 + $0x860] sm:$0xff]  ;;  %1542 = vst [vmem:[%s10454_s6 + $0x420] sm:$0xff] %v1541_v4  ;;  %1544 = vst [vmem:[%s10454_s6 + $0x428] sm:$0xff] %v1543_v5  ;;  %v1547_v7 = vld [vmem:[%s10449_s30 + $0x870] sm:$0xff] }
  0x60   : > { %1546 = vst [vmem:[%s10454_s6 + $0x430] sm:$0xff] %v1545_v6  ;;  %v1549_v8 = vld [vmem:[%s10449_s30 + $0x880] sm:$0xff]  ;;  %v1551_v9 = vld [vmem:[%s10449_s30 + $0x890] sm:$0xff]  ;;  %1548 = vst [vmem:[%s10454_s6 + $0x438] sm:$0xff] %v1547_v7 }
  0x61   : > { %1550 = vst [vmem:[%s10454_s6 + $0x440] sm:$0xff] %v1549_v8  ;;  %1552 = vst [vmem:[%s10454_s6 + $0x448] sm:$0xff] %v1551_v9  ;;  %v1553_v10 = vld [vmem:[%s10449_s30 + $0x8a0] sm:$0xff]  ;;  %v1555_v11 = vld [vmem:[%s10449_s30 + $0x8b0] sm:$0xff] }
  0x62   : > { %v1557_v12 = vld [vmem:[%s10449_s30 + $0x8c0] sm:$0xff]  ;;  %1554 = vst [vmem:[%s10454_s6 + $0x450] sm:$0xff] %v1553_v10  ;;  %1556 = vst [vmem:[%s10454_s6 + $0x458] sm:$0xff] %v1555_v11  ;;  %v1559_v13 = vld [vmem:[%s10449_s30 + $0x8d0] sm:$0xff] }
  0x63   : > { %1558 = vst [vmem:[%s10454_s6 + $0x460] sm:$0xff] %v1557_v12  ;;  %v1561_v14 = vld [vmem:[%s10449_s30 + $0x8e0] sm:$0xff]  ;;  %v1563_v15 = vld [vmem:[%s10449_s30 + $0x8f0] sm:$0xff]  ;;  %1560 = vst [vmem:[%s10454_s6 + $0x468] sm:$0xff] %v1559_v13 }
  0x64   : > { %1562 = vst [vmem:[%s10454_s6 + $0x470] sm:$0xff] %v1561_v14  ;;  %1564 = vst [vmem:[%s10454_s6 + $0x478] sm:$0xff] %v1563_v15  ;;  %v1565_v16 = vld [vmem:[%s10449_s30 + $0x900] sm:$0xff]  ;;  %v1567_v17 = vld [vmem:[%s10449_s30 + $0x910] sm:$0xff] }
  0x65   : > { %v1569_v18 = vld [vmem:[%s10449_s30 + $0x920] sm:$0xff]  ;;  %1566 = vst [vmem:[%s10454_s6 + $0x480] sm:$0xff] %v1565_v16  ;;  %1568 = vst [vmem:[%s10454_s6 + $0x488] sm:$0xff] %v1567_v17  ;;  %v1571_v19 = vld [vmem:[%s10449_s30 + $0x930] sm:$0xff] }
  0x66   : > { %1570 = vst [vmem:[%s10454_s6 + $0x490] sm:$0xff] %v1569_v18  ;;  %v1573_v20 = vld [vmem:[%s10449_s30 + $0x940] sm:$0xff]  ;;  %v1575_v21 = vld [vmem:[%s10449_s30 + $0x950] sm:$0xff]  ;;  %1572 = vst [vmem:[%s10454_s6 + $0x498] sm:$0xff] %v1571_v19 }
  0x67   : > { %1574 = vst [vmem:[%s10454_s6 + $0x4a0] sm:$0xff] %v1573_v20  ;;  %1576 = vst [vmem:[%s10454_s6 + $0x4a8] sm:$0xff] %v1575_v21  ;;  %v1577_v22 = vld [vmem:[%s10449_s30 + $0x960] sm:$0xff]  ;;  %v1579_v23 = vld [vmem:[%s10449_s30 + $0x970] sm:$0xff] }
  0x68   : > { %v1581_v24 = vld [vmem:[%s10449_s30 + $0x980] sm:$0xff]  ;;  %1578 = vst [vmem:[%s10454_s6 + $0x4b0] sm:$0xff] %v1577_v22  ;;  %1580 = vst [vmem:[%s10454_s6 + $0x4b8] sm:$0xff] %v1579_v23  ;;  %v1583_v25 = vld [vmem:[%s10449_s30 + $0x990] sm:$0xff] }
  0x69   : > { %1582 = vst [vmem:[%s10454_s6 + $0x4c0] sm:$0xff] %v1581_v24  ;;  %v1585_v26 = vld [vmem:[%s10449_s30 + $0x9a0] sm:$0xff]  ;;  %v1587_v27 = vld [vmem:[%s10449_s30 + $0x9b0] sm:$0xff]  ;;  %1584 = vst [vmem:[%s10454_s6 + $0x4c8] sm:$0xff] %v1583_v25 }
  0x6a   : > { %1586 = vst [vmem:[%s10454_s6 + $0x4d0] sm:$0xff] %v1585_v26  ;;  %1588 = vst [vmem:[%s10454_s6 + $0x4d8] sm:$0xff] %v1587_v27  ;;  %v1589_v28 = vld [vmem:[%s10449_s30 + $0x9c0] sm:$0xff]  ;;  %v1591_v29 = vld [vmem:[%s10449_s30 + $0x9d0] sm:$0xff] }
  0x6b   : > { %v1593_v30 = vld [vmem:[%s10449_s30 + $0x9e0] sm:$0xff]  ;;  %1590 = vst [vmem:[%s10454_s6 + $0x4e0] sm:$0xff] %v1589_v28  ;;  %1592 = vst [vmem:[%s10454_s6 + $0x4e8] sm:$0xff] %v1591_v29  ;;  %v1595_v31 = vld [vmem:[%s10449_s30 + $0x9f0] sm:$0xff] }
  0x6c   : > { %1594 = vst [vmem:[%s10454_s6 + $0x4f0] sm:$0xff] %v1593_v30  ;;  %v1597_v32 = vld [vmem:[%s10449_s30 + $0xa00] sm:$0xff]  ;;  %v1599_v33 = vld [vmem:[%s10449_s30 + $0xa10] sm:$0xff]  ;;  %1596 = vst [vmem:[%s10454_s6 + $0x4f8] sm:$0xff] %v1595_v31 }
  0x6d   : > { %1598 = vst [vmem:[%s10454_s6 + $0x500] sm:$0xff] %v1597_v32  ;;  %1600 = vst [vmem:[%s10454_s6 + $0x508] sm:$0xff] %v1599_v33  ;;  %v1601_v34 = vld [vmem:[%s10449_s30 + $0xa20] sm:$0xff]  ;;  %v1603_v35 = vld [vmem:[%s10449_s30 + $0xa30] sm:$0xff] }
  0x6e   : > { %v1605_v36 = vld [vmem:[%s10449_s30 + $0xa40] sm:$0xff]  ;;  %1602 = vst [vmem:[%s10454_s6 + $0x510] sm:$0xff] %v1601_v34  ;;  %1604 = vst [vmem:[%s10454_s6 + $0x518] sm:$0xff] %v1603_v35  ;;  %v1607_v37 = vld [vmem:[%s10449_s30 + $0xa50] sm:$0xff] }
  0x6f   : > { %1606 = vst [vmem:[%s10454_s6 + $0x520] sm:$0xff] %v1605_v36  ;;  %v1609_v38 = vld [vmem:[%s10449_s30 + $0xa60] sm:$0xff]  ;;  %v1611_v39 = vld [vmem:[%s10449_s30 + $0xa70] sm:$0xff]  ;;  %1608 = vst [vmem:[%s10454_s6 + $0x528] sm:$0xff] %v1607_v37 }
  0x70   : > { %1610 = vst [vmem:[%s10454_s6 + $0x530] sm:$0xff] %v1609_v38  ;;  %1612 = vst [vmem:[%s10454_s6 + $0x538] sm:$0xff] %v1611_v39  ;;  %v1613_v40 = vld [vmem:[%s10449_s30 + $0xa80] sm:$0xff]  ;;  %v1615_v41 = vld [vmem:[%s10449_s30 + $0xa90] sm:$0xff] }
  0x71   : > { %v1617_v42 = vld [vmem:[%s10449_s30 + $0xaa0] sm:$0xff]  ;;  %1614 = vst [vmem:[%s10454_s6 + $0x540] sm:$0xff] %v1613_v40  ;;  %1616 = vst [vmem:[%s10454_s6 + $0x548] sm:$0xff] %v1615_v41  ;;  %v1619_v43 = vld [vmem:[%s10449_s30 + $0xab0] sm:$0xff] }
  0x72   : > { %1618 = vst [vmem:[%s10454_s6 + $0x550] sm:$0xff] %v1617_v42  ;;  %v1621_v44 = vld [vmem:[%s10449_s30 + $0xac0] sm:$0xff]  ;;  %v1623_v45 = vld [vmem:[%s10449_s30 + $0xad0] sm:$0xff]  ;;  %1620 = vst [vmem:[%s10454_s6 + $0x558] sm:$0xff] %v1619_v43 }
  0x73   : > { %1622 = vst [vmem:[%s10454_s6 + $0x560] sm:$0xff] %v1621_v44  ;;  %1624 = vst [vmem:[%s10454_s6 + $0x568] sm:$0xff] %v1623_v45  ;;  %v1625_v46 = vld [vmem:[%s10449_s30 + $0xae0] sm:$0xff]  ;;  %v1627_v47 = vld [vmem:[%s10449_s30 + $0xaf0] sm:$0xff] }
  0x74   : > { %v1629_v48 = vld [vmem:[%s10449_s30 + $0xb00] sm:$0xff]  ;;  %1626 = vst [vmem:[%s10454_s6 + $0x570] sm:$0xff] %v1625_v46  ;;  %1628 = vst [vmem:[%s10454_s6 + $0x578] sm:$0xff] %v1627_v47  ;;  %v1631_v49 = vld [vmem:[%s10449_s30 + $0xb10] sm:$0xff] }
  0x75   : > { %1630 = vst [vmem:[%s10454_s6 + $0x580] sm:$0xff] %v1629_v48  ;;  %v1633_v50 = vld [vmem:[%s10449_s30 + $0xb20] sm:$0xff]  ;;  %v1635_v51 = vld [vmem:[%s10449_s30 + $0xb30] sm:$0xff]  ;;  %1632 = vst [vmem:[%s10454_s6 + $0x588] sm:$0xff] %v1631_v49 }
  0x76   : > { %1634 = vst [vmem:[%s10454_s6 + $0x590] sm:$0xff] %v1633_v50  ;;  %1636 = vst [vmem:[%s10454_s6 + $0x598] sm:$0xff] %v1635_v51  ;;  %v1637_v52 = vld [vmem:[%s10449_s30 + $0xb40] sm:$0xff]  ;;  %v1639_v53 = vld [vmem:[%s10449_s30 + $0xb50] sm:$0xff] }
  0x77   : > { %v1641_v54 = vld [vmem:[%s10449_s30 + $0xb60] sm:$0xff]  ;;  %1638 = vst [vmem:[%s10454_s6 + $0x5a0] sm:$0xff] %v1637_v52  ;;  %1640 = vst [vmem:[%s10454_s6 + $0x5a8] sm:$0xff] %v1639_v53  ;;  %v1643_v55 = vld [vmem:[%s10449_s30 + $0xb70] sm:$0xff] }
  0x78   : > { %1642 = vst [vmem:[%s10454_s6 + $0x5b0] sm:$0xff] %v1641_v54  ;;  %v1645_v56 = vld [vmem:[%s10449_s30 + $0xb80] sm:$0xff]  ;;  %v1647_v57 = vld [vmem:[%s10449_s30 + $0xb90] sm:$0xff]  ;;  %1644 = vst [vmem:[%s10454_s6 + $0x5b8] sm:$0xff] %v1643_v55 }
  0x79   : > { %1646 = vst [vmem:[%s10454_s6 + $0x5c0] sm:$0xff] %v1645_v56  ;;  %1648 = vst [vmem:[%s10454_s6 + $0x5c8] sm:$0xff] %v1647_v57  ;;  %v1649_v58 = vld [vmem:[%s10449_s30 + $0xba0] sm:$0xff]  ;;  %v1651_v59 = vld [vmem:[%s10449_s30 + $0xbb0] sm:$0xff] }
  0x7a   : > { %v1653_v60 = vld [vmem:[%s10449_s30 + $0xbc0] sm:$0xff]  ;;  %1650 = vst [vmem:[%s10454_s6 + $0x5d0] sm:$0xff] %v1649_v58  ;;  %1652 = vst [vmem:[%s10454_s6 + $0x5d8] sm:$0xff] %v1651_v59  ;;  %v1655_v61 = vld [vmem:[%s10449_s30 + $0xbd0] sm:$0xff] }
  0x7b   : > { %1654 = vst [vmem:[%s10454_s6 + $0x5e0] sm:$0xff] %v1653_v60  ;;  %v1657_v62 = vld [vmem:[%s10449_s30 + $0xbe0] sm:$0xff]  ;;  %v1659_v63 = vld [vmem:[%s10449_s30 + $0xbf0] sm:$0xff]  ;;  %1656 = vst [vmem:[%s10454_s6 + $0x5e8] sm:$0xff] %v1655_v61 }
  0x7c   : > { %1658 = vst [vmem:[%s10454_s6 + $0x5f0] sm:$0xff] %v1657_v62  ;;  %1660 = vst [vmem:[%s10454_s6 + $0x5f8] sm:$0xff] %v1659_v63  ;;  %v1661_v0 = vld [vmem:[%s10449_s30 + $0xc00] sm:$0xff]  ;;  %v1663_v1 = vld [vmem:[%s10449_s30 + $0xc10] sm:$0xff] }
  0x7d   : > { %v1665_v2 = vld [vmem:[%s10449_s30 + $0xc20] sm:$0xff]  ;;  %1662 = vst [vmem:[%s10454_s6 + $0x600] sm:$0xff] %v1661_v0  ;;  %1664 = vst [vmem:[%s10454_s6 + $0x608] sm:$0xff] %v1663_v1  ;;  %v1667_v3 = vld [vmem:[%s10449_s30 + $0xc30] sm:$0xff] }
  0x7e   : > { %1666 = vst [vmem:[%s10454_s6 + $0x610] sm:$0xff] %v1665_v2  ;;  %v1669_v4 = vld [vmem:[%s10449_s30 + $0xc40] sm:$0xff]  ;;  %v1671_v5 = vld [vmem:[%s10449_s30 + $0xc50] sm:$0xff]  ;;  %1668 = vst [vmem:[%s10454_s6 + $0x618] sm:$0xff] %v1667_v3 }
  0x7f   : > { %1670 = vst [vmem:[%s10454_s6 + $0x620] sm:$0xff] %v1669_v4  ;;  %1672 = vst [vmem:[%s10454_s6 + $0x628] sm:$0xff] %v1671_v5  ;;  %v1673_v6 = vld [vmem:[%s10449_s30 + $0xc60] sm:$0xff]  ;;  %v1675_v7 = vld [vmem:[%s10449_s30 + $0xc70] sm:$0xff] }
  0x80   : > { %v1677_v8 = vld [vmem:[%s10449_s30 + $0xc80] sm:$0xff]  ;;  %1674 = vst [vmem:[%s10454_s6 + $0x630] sm:$0xff] %v1673_v6  ;;  %1676 = vst [vmem:[%s10454_s6 + $0x638] sm:$0xff] %v1675_v7  ;;  %v1679_v9 = vld [vmem:[%s10449_s30 + $0xc90] sm:$0xff] }
  0x81   : > { %1678 = vst [vmem:[%s10454_s6 + $0x640] sm:$0xff] %v1677_v8  ;;  %v1681_v10 = vld [vmem:[%s10449_s30 + $0xca0] sm:$0xff]  ;;  %v1683_v11 = vld [vmem:[%s10449_s30 + $0xcb0] sm:$0xff]  ;;  %1680 = vst [vmem:[%s10454_s6 + $0x648] sm:$0xff] %v1679_v9 }
  0x82   : > { %1682 = vst [vmem:[%s10454_s6 + $0x650] sm:$0xff] %v1681_v10  ;;  %1684 = vst [vmem:[%s10454_s6 + $0x658] sm:$0xff] %v1683_v11  ;;  %v1685_v12 = vld [vmem:[%s10449_s30 + $0xcc0] sm:$0xff]  ;;  %v1687_v13 = vld [vmem:[%s10449_s30 + $0xcd0] sm:$0xff] }
  0x83   : > { %v1689_v14 = vld [vmem:[%s10449_s30 + $0xce0] sm:$0xff]  ;;  %1686 = vst [vmem:[%s10454_s6 + $0x660] sm:$0xff] %v1685_v12  ;;  %1688 = vst [vmem:[%s10454_s6 + $0x668] sm:$0xff] %v1687_v13  ;;  %v1691_v15 = vld [vmem:[%s10449_s30 + $0xcf0] sm:$0xff] }
  0x84   : > { %1690 = vst [vmem:[%s10454_s6 + $0x670] sm:$0xff] %v1689_v14  ;;  %v1693_v16 = vld [vmem:[%s10449_s30 + $0xd00] sm:$0xff]  ;;  %v1695_v17 = vld [vmem:[%s10449_s30 + $0xd10] sm:$0xff]  ;;  %1692 = vst [vmem:[%s10454_s6 + $0x678] sm:$0xff] %v1691_v15 }
  0x85   : > { %1694 = vst [vmem:[%s10454_s6 + $0x680] sm:$0xff] %v1693_v16  ;;  %1696 = vst [vmem:[%s10454_s6 + $0x688] sm:$0xff] %v1695_v17  ;;  %v1697_v18 = vld [vmem:[%s10449_s30 + $0xd20] sm:$0xff]  ;;  %v1699_v19 = vld [vmem:[%s10449_s30 + $0xd30] sm:$0xff] }
  0x86   : > { %v1701_v20 = vld [vmem:[%s10449_s30 + $0xd40] sm:$0xff]  ;;  %1698 = vst [vmem:[%s10454_s6 + $0x690] sm:$0xff] %v1697_v18  ;;  %1700 = vst [vmem:[%s10454_s6 + $0x698] sm:$0xff] %v1699_v19  ;;  %v1703_v21 = vld [vmem:[%s10449_s30 + $0xd50] sm:$0xff] }
  0x87   : > { %1702 = vst [vmem:[%s10454_s6 + $0x6a0] sm:$0xff] %v1701_v20  ;;  %v1705_v22 = vld [vmem:[%s10449_s30 + $0xd60] sm:$0xff]  ;;  %v1707_v23 = vld [vmem:[%s10449_s30 + $0xd70] sm:$0xff]  ;;  %1704 = vst [vmem:[%s10454_s6 + $0x6a8] sm:$0xff] %v1703_v21 }
  0x88   : > { %1706 = vst [vmem:[%s10454_s6 + $0x6b0] sm:$0xff] %v1705_v22  ;;  %1708 = vst [vmem:[%s10454_s6 + $0x6b8] sm:$0xff] %v1707_v23  ;;  %v1709_v24 = vld [vmem:[%s10449_s30 + $0xd80] sm:$0xff]  ;;  %v1711_v25 = vld [vmem:[%s10449_s30 + $0xd90] sm:$0xff] }
  0x89   : > { %v1713_v26 = vld [vmem:[%s10449_s30 + $0xda0] sm:$0xff]  ;;  %1710 = vst [vmem:[%s10454_s6 + $0x6c0] sm:$0xff] %v1709_v24  ;;  %1712 = vst [vmem:[%s10454_s6 + $0x6c8] sm:$0xff] %v1711_v25  ;;  %v1715_v27 = vld [vmem:[%s10449_s30 + $0xdb0] sm:$0xff] }
  0x8a   : > { %1714 = vst [vmem:[%s10454_s6 + $0x6d0] sm:$0xff] %v1713_v26  ;;  %v1717_v28 = vld [vmem:[%s10449_s30 + $0xdc0] sm:$0xff]  ;;  %v1719_v29 = vld [vmem:[%s10449_s30 + $0xdd0] sm:$0xff]  ;;  %1716 = vst [vmem:[%s10454_s6 + $0x6d8] sm:$0xff] %v1715_v27 }
  0x8b   : > { %1718 = vst [vmem:[%s10454_s6 + $0x6e0] sm:$0xff] %v1717_v28  ;;  %1720 = vst [vmem:[%s10454_s6 + $0x6e8] sm:$0xff] %v1719_v29  ;;  %v1721_v30 = vld [vmem:[%s10449_s30 + $0xde0] sm:$0xff]  ;;  %v1723_v31 = vld [vmem:[%s10449_s30 + $0xdf0] sm:$0xff] }
  0x8c   : > { %v1725_v32 = vld [vmem:[%s10449_s30 + $0xe00] sm:$0xff]  ;;  %1722 = vst [vmem:[%s10454_s6 + $0x6f0] sm:$0xff] %v1721_v30  ;;  %1724 = vst [vmem:[%s10454_s6 + $0x6f8] sm:$0xff] %v1723_v31  ;;  %v1727_v33 = vld [vmem:[%s10449_s30 + $0xe10] sm:$0xff] }
  0x8d   : > { %1726 = vst [vmem:[%s10454_s6 + $0x700] sm:$0xff] %v1725_v32  ;;  %v1729_v34 = vld [vmem:[%s10449_s30 + $0xe20] sm:$0xff]  ;;  %v1731_v35 = vld [vmem:[%s10449_s30 + $0xe30] sm:$0xff]  ;;  %1728 = vst [vmem:[%s10454_s6 + $0x708] sm:$0xff] %v1727_v33 }
  0x8e   : > { %1730 = vst [vmem:[%s10454_s6 + $0x710] sm:$0xff] %v1729_v34  ;;  %1732 = vst [vmem:[%s10454_s6 + $0x718] sm:$0xff] %v1731_v35  ;;  %v1733_v36 = vld [vmem:[%s10449_s30 + $0xe40] sm:$0xff]  ;;  %v1735_v37 = vld [vmem:[%s10449_s30 + $0xe50] sm:$0xff] }
  0x8f   : > { %v1737_v38 = vld [vmem:[%s10449_s30 + $0xe60] sm:$0xff]  ;;  %1734 = vst [vmem:[%s10454_s6 + $0x720] sm:$0xff] %v1733_v36  ;;  %1736 = vst [vmem:[%s10454_s6 + $0x728] sm:$0xff] %v1735_v37  ;;  %v1739_v39 = vld [vmem:[%s10449_s30 + $0xe70] sm:$0xff] }
  0x90   : > { %1738 = vst [vmem:[%s10454_s6 + $0x730] sm:$0xff] %v1737_v38  ;;  %v1741_v40 = vld [vmem:[%s10449_s30 + $0xe80] sm:$0xff]  ;;  %v1743_v41 = vld [vmem:[%s10449_s30 + $0xe90] sm:$0xff]  ;;  %1740 = vst [vmem:[%s10454_s6 + $0x738] sm:$0xff] %v1739_v39 }
  0x91   : > { %1742 = vst [vmem:[%s10454_s6 + $0x740] sm:$0xff] %v1741_v40  ;;  %1744 = vst [vmem:[%s10454_s6 + $0x748] sm:$0xff] %v1743_v41  ;;  %v1745_v42 = vld [vmem:[%s10449_s30 + $0xea0] sm:$0xff]  ;;  %v1747_v43 = vld [vmem:[%s10449_s30 + $0xeb0] sm:$0xff] }
  0x92   : > { %v1749_v44 = vld [vmem:[%s10449_s30 + $0xec0] sm:$0xff]  ;;  %1746 = vst [vmem:[%s10454_s6 + $0x750] sm:$0xff] %v1745_v42  ;;  %1748 = vst [vmem:[%s10454_s6 + $0x758] sm:$0xff] %v1747_v43  ;;  %v1751_v45 = vld [vmem:[%s10449_s30 + $0xed0] sm:$0xff] }
  0x93   : > { %1750 = vst [vmem:[%s10454_s6 + $0x760] sm:$0xff] %v1749_v44  ;;  %v1753_v46 = vld [vmem:[%s10449_s30 + $0xee0] sm:$0xff]  ;;  %v1755_v47 = vld [vmem:[%s10449_s30 + $0xef0] sm:$0xff]  ;;  %1752 = vst [vmem:[%s10454_s6 + $0x768] sm:$0xff] %v1751_v45 }
  0x94   : > { %1754 = vst [vmem:[%s10454_s6 + $0x770] sm:$0xff] %v1753_v46  ;;  %1756 = vst [vmem:[%s10454_s6 + $0x778] sm:$0xff] %v1755_v47  ;;  %v1757_v48 = vld [vmem:[%s10449_s30 + $0xf00] sm:$0xff]  ;;  %v1759_v49 = vld [vmem:[%s10449_s30 + $0xf10] sm:$0xff] }
  0x95   : > { %v1761_v50 = vld [vmem:[%s10449_s30 + $0xf20] sm:$0xff]  ;;  %1758 = vst [vmem:[%s10454_s6 + $0x780] sm:$0xff] %v1757_v48  ;;  %1760 = vst [vmem:[%s10454_s6 + $0x788] sm:$0xff] %v1759_v49  ;;  %v1763_v51 = vld [vmem:[%s10449_s30 + $0xf30] sm:$0xff] }
  0x96   : > { %1762 = vst [vmem:[%s10454_s6 + $0x790] sm:$0xff] %v1761_v50  ;;  %v1765_v52 = vld [vmem:[%s10449_s30 + $0xf40] sm:$0xff]  ;;  %v1767_v53 = vld [vmem:[%s10449_s30 + $0xf50] sm:$0xff]  ;;  %1764 = vst [vmem:[%s10454_s6 + $0x798] sm:$0xff] %v1763_v51 }
  0x97   : > { %1766 = vst [vmem:[%s10454_s6 + $0x7a0] sm:$0xff] %v1765_v52  ;;  %1768 = vst [vmem:[%s10454_s6 + $0x7a8] sm:$0xff] %v1767_v53  ;;  %v1769_v54 = vld [vmem:[%s10449_s30 + $0xf60] sm:$0xff]  ;;  %v1771_v55 = vld [vmem:[%s10449_s30 + $0xf70] sm:$0xff] }
  0x98   : > { %v1773_v56 = vld [vmem:[%s10449_s30 + $0xf80] sm:$0xff]  ;;  %1770 = vst [vmem:[%s10454_s6 + $0x7b0] sm:$0xff] %v1769_v54  ;;  %1772 = vst [vmem:[%s10454_s6 + $0x7b8] sm:$0xff] %v1771_v55  ;;  %v1775_v57 = vld [vmem:[%s10449_s30 + $0xf90] sm:$0xff] }
  0x99   : > { %1774 = vst [vmem:[%s10454_s6 + $0x7c0] sm:$0xff] %v1773_v56  ;;  %v1777_v58 = vld [vmem:[%s10449_s30 + $0xfa0] sm:$0xff]  ;;  %v1779_v59 = vld [vmem:[%s10449_s30 + $0xfb0] sm:$0xff]  ;;  %1776 = vst [vmem:[%s10454_s6 + $0x7c8] sm:$0xff] %v1775_v57 }
  0x9a   : > { %1778 = vst [vmem:[%s10454_s6 + $0x7d0] sm:$0xff] %v1777_v58  ;;  %1780 = vst [vmem:[%s10454_s6 + $0x7d8] sm:$0xff] %v1779_v59  ;;  %v1781_v60 = vld [vmem:[%s10449_s30 + $0xfc0] sm:$0xff]  ;;  %v1783_v61 = vld [vmem:[%s10449_s30 + $0xfd0] sm:$0xff] }
  0x9b   : > { %v1785_v62 = vld [vmem:[%s10449_s30 + $0xfe0] sm:$0xff]  ;;  %1782 = vst [vmem:[%s10454_s6 + $0x7e0] sm:$0xff] %v1781_v60  ;;  %1784 = vst [vmem:[%s10454_s6 + $0x7e8] sm:$0xff] %v1783_v61  ;;  %v1787_v63 = vld [vmem:[%s10449_s30 + $0xff0] sm:$0xff] }
  0x9c   : > { %1786 = vst [vmem:[%s10454_s6 + $0x7f0] sm:$0xff] %v1785_v62  ;;  %v1789_v0 = vld [vmem:[%s10449_s30 + $0x1000] sm:$0xff]  ;;  %v1791_v1 = vld [vmem:[%s10449_s30 + $0x1010] sm:$0xff]  ;;  %1788 = vst [vmem:[%s10454_s6 + $0x7f8] sm:$0xff] %v1787_v63 }
  0x9d   : > { %1790 = vst [vmem:[%s10454_s6 + $0x800] sm:$0xff] %v1789_v0  ;;  %1792 = vst [vmem:[%s10454_s6 + $0x808] sm:$0xff] %v1791_v1  ;;  %v1793_v2 = vld [vmem:[%s10449_s30 + $0x1020] sm:$0xff]  ;;  %v1795_v3 = vld [vmem:[%s10449_s30 + $0x1030] sm:$0xff] }
  0x9e   : > { %v1797_v4 = vld [vmem:[%s10449_s30 + $0x1040] sm:$0xff]  ;;  %1794 = vst [vmem:[%s10454_s6 + $0x810] sm:$0xff] %v1793_v2  ;;  %1796 = vst [vmem:[%s10454_s6 + $0x818] sm:$0xff] %v1795_v3  ;;  %v1799_v5 = vld [vmem:[%s10449_s30 + $0x1050] sm:$0xff] }
  0x9f   : > { %1798 = vst [vmem:[%s10454_s6 + $0x820] sm:$0xff] %v1797_v4  ;;  %v1801_v6 = vld [vmem:[%s10449_s30 + $0x1060] sm:$0xff]  ;;  %v1803_v7 = vld [vmem:[%s10449_s30 + $0x1070] sm:$0xff]  ;;  %1800 = vst [vmem:[%s10454_s6 + $0x828] sm:$0xff] %v1799_v5 }
  0xa0   : > { %1802 = vst [vmem:[%s10454_s6 + $0x830] sm:$0xff] %v1801_v6  ;;  %1804 = vst [vmem:[%s10454_s6 + $0x838] sm:$0xff] %v1803_v7  ;;  %v1805_v8 = vld [vmem:[%s10449_s30 + $0x1080] sm:$0xff]  ;;  %v1807_v9 = vld [vmem:[%s10449_s30 + $0x1090] sm:$0xff] }
  0xa1   : > { %v1809_v10 = vld [vmem:[%s10449_s30 + $0x10a0] sm:$0xff]  ;;  %1806 = vst [vmem:[%s10454_s6 + $0x840] sm:$0xff] %v1805_v8  ;;  %1808 = vst [vmem:[%s10454_s6 + $0x848] sm:$0xff] %v1807_v9  ;;  %v1811_v11 = vld [vmem:[%s10449_s30 + $0x10b0] sm:$0xff] }
  0xa2   : > { %1810 = vst [vmem:[%s10454_s6 + $0x850] sm:$0xff] %v1809_v10  ;;  %v1813_v12 = vld [vmem:[%s10449_s30 + $0x10c0] sm:$0xff]  ;;  %v1815_v13 = vld [vmem:[%s10449_s30 + $0x10d0] sm:$0xff]  ;;  %1812 = vst [vmem:[%s10454_s6 + $0x858] sm:$0xff] %v1811_v11 }
  0xa3   : > { %1814 = vst [vmem:[%s10454_s6 + $0x860] sm:$0xff] %v1813_v12  ;;  %1816 = vst [vmem:[%s10454_s6 + $0x868] sm:$0xff] %v1815_v13  ;;  %v1817_v14 = vld [vmem:[%s10449_s30 + $0x10e0] sm:$0xff]  ;;  %v1819_v15 = vld [vmem:[%s10449_s30 + $0x10f0] sm:$0xff] }
  0xa4   : > { %v1821_v16 = vld [vmem:[%s10449_s30 + $0x1100] sm:$0xff]  ;;  %1818 = vst [vmem:[%s10454_s6 + $0x870] sm:$0xff] %v1817_v14  ;;  %1820 = vst [vmem:[%s10454_s6 + $0x878] sm:$0xff] %v1819_v15  ;;  %v1823_v17 = vld [vmem:[%s10449_s30 + $0x1110] sm:$0xff] }
  0xa5   : > { %1822 = vst [vmem:[%s10454_s6 + $0x880] sm:$0xff] %v1821_v16  ;;  %v1825_v18 = vld [vmem:[%s10449_s30 + $0x1120] sm:$0xff]  ;;  %v1827_v19 = vld [vmem:[%s10449_s30 + $0x1130] sm:$0xff]  ;;  %1824 = vst [vmem:[%s10454_s6 + $0x888] sm:$0xff] %v1823_v17 }
  0xa6   : > { %1826 = vst [vmem:[%s10454_s6 + $0x890] sm:$0xff] %v1825_v18  ;;  %1828 = vst [vmem:[%s10454_s6 + $0x898] sm:$0xff] %v1827_v19  ;;  %v1829_v20 = vld [vmem:[%s10449_s30 + $0x1140] sm:$0xff]  ;;  %v1831_v21 = vld [vmem:[%s10449_s30 + $0x1150] sm:$0xff] }
  0xa7   : > { %v1833_v22 = vld [vmem:[%s10449_s30 + $0x1160] sm:$0xff]  ;;  %1830 = vst [vmem:[%s10454_s6 + $0x8a0] sm:$0xff] %v1829_v20  ;;  %1832 = vst [vmem:[%s10454_s6 + $0x8a8] sm:$0xff] %v1831_v21  ;;  %v1835_v23 = vld [vmem:[%s10449_s30 + $0x1170] sm:$0xff] }
  0xa8   : > { %1834 = vst [vmem:[%s10454_s6 + $0x8b0] sm:$0xff] %v1833_v22  ;;  %v1837_v24 = vld [vmem:[%s10449_s30 + $0x1180] sm:$0xff]  ;;  %v1839_v25 = vld [vmem:[%s10449_s30 + $0x1190] sm:$0xff]  ;;  %1836 = vst [vmem:[%s10454_s6 + $0x8b8] sm:$0xff] %v1835_v23 }
  0xa9   : > { %1838 = vst [vmem:[%s10454_s6 + $0x8c0] sm:$0xff] %v1837_v24  ;;  %1840 = vst [vmem:[%s10454_s6 + $0x8c8] sm:$0xff] %v1839_v25  ;;  %v1841_v26 = vld [vmem:[%s10449_s30 + $0x11a0] sm:$0xff]  ;;  %v1843_v27 = vld [vmem:[%s10449_s30 + $0x11b0] sm:$0xff] }
  0xaa   : > { %v1845_v28 = vld [vmem:[%s10449_s30 + $0x11c0] sm:$0xff]  ;;  %1842 = vst [vmem:[%s10454_s6 + $0x8d0] sm:$0xff] %v1841_v26  ;;  %1844 = vst [vmem:[%s10454_s6 + $0x8d8] sm:$0xff] %v1843_v27  ;;  %v1847_v29 = vld [vmem:[%s10449_s30 + $0x11d0] sm:$0xff] }
  0xab   : > { %1846 = vst [vmem:[%s10454_s6 + $0x8e0] sm:$0xff] %v1845_v28  ;;  %v1849_v30 = vld [vmem:[%s10449_s30 + $0x11e0] sm:$0xff]  ;;  %v1851_v31 = vld [vmem:[%s10449_s30 + $0x11f0] sm:$0xff]  ;;  %1848 = vst [vmem:[%s10454_s6 + $0x8e8] sm:$0xff] %v1847_v29 }
  0xac   : > { %1850 = vst [vmem:[%s10454_s6 + $0x8f0] sm:$0xff] %v1849_v30  ;;  %1852 = vst [vmem:[%s10454_s6 + $0x8f8] sm:$0xff] %v1851_v31  ;;  %v1853_v32 = vld [vmem:[%s10449_s30 + $0x1200] sm:$0xff]  ;;  %v1855_v33 = vld [vmem:[%s10449_s30 + $0x1210] sm:$0xff] }
  0xad   : > { %v1857_v34 = vld [vmem:[%s10449_s30 + $0x1220] sm:$0xff]  ;;  %1854 = vst [vmem:[%s10454_s6 + $0x900] sm:$0xff] %v1853_v32  ;;  %1856 = vst [vmem:[%s10454_s6 + $0x908] sm:$0xff] %v1855_v33  ;;  %v1859_v35 = vld [vmem:[%s10449_s30 + $0x1230] sm:$0xff] }
  0xae   : > { %1858 = vst [vmem:[%s10454_s6 + $0x910] sm:$0xff] %v1857_v34  ;;  %v1861_v36 = vld [vmem:[%s10449_s30 + $0x1240] sm:$0xff]  ;;  %v1863_v37 = vld [vmem:[%s10449_s30 + $0x1250] sm:$0xff]  ;;  %1860 = vst [vmem:[%s10454_s6 + $0x918] sm:$0xff] %v1859_v35 }
  0xaf   : > { %1862 = vst [vmem:[%s10454_s6 + $0x920] sm:$0xff] %v1861_v36  ;;  %1864 = vst [vmem:[%s10454_s6 + $0x928] sm:$0xff] %v1863_v37  ;;  %v1865_v38 = vld [vmem:[%s10449_s30 + $0x1260] sm:$0xff]  ;;  %v1867_v39 = vld [vmem:[%s10449_s30 + $0x1270] sm:$0xff] }
  0xb0   : > { %v1869_v40 = vld [vmem:[%s10449_s30 + $0x1280] sm:$0xff]  ;;  %1866 = vst [vmem:[%s10454_s6 + $0x930] sm:$0xff] %v1865_v38  ;;  %1868 = vst [vmem:[%s10454_s6 + $0x938] sm:$0xff] %v1867_v39  ;;  %v1871_v41 = vld [vmem:[%s10449_s30 + $0x1290] sm:$0xff] }
  0xb1   : > { %1870 = vst [vmem:[%s10454_s6 + $0x940] sm:$0xff] %v1869_v40  ;;  %v1873_v42 = vld [vmem:[%s10449_s30 + $0x12a0] sm:$0xff]  ;;  %v1875_v43 = vld [vmem:[%s10449_s30 + $0x12b0] sm:$0xff]  ;;  %1872 = vst [vmem:[%s10454_s6 + $0x948] sm:$0xff] %v1871_v41 }
  0xb2   : > { %1874 = vst [vmem:[%s10454_s6 + $0x950] sm:$0xff] %v1873_v42  ;;  %1876 = vst [vmem:[%s10454_s6 + $0x958] sm:$0xff] %v1875_v43  ;;  %v1877_v44 = vld [vmem:[%s10449_s30 + $0x12c0] sm:$0xff]  ;;  %v1879_v45 = vld [vmem:[%s10449_s30 + $0x12d0] sm:$0xff] }
  0xb3   : > { %v1881_v46 = vld [vmem:[%s10449_s30 + $0x12e0] sm:$0xff]  ;;  %1878 = vst [vmem:[%s10454_s6 + $0x960] sm:$0xff] %v1877_v44  ;;  %1880 = vst [vmem:[%s10454_s6 + $0x968] sm:$0xff] %v1879_v45  ;;  %v1883_v47 = vld [vmem:[%s10449_s30 + $0x12f0] sm:$0xff] }
  0xb4   : > { %1882 = vst [vmem:[%s10454_s6 + $0x970] sm:$0xff] %v1881_v46  ;;  %v1885_v48 = vld [vmem:[%s10449_s30 + $0x1300] sm:$0xff]  ;;  %v1887_v49 = vld [vmem:[%s10449_s30 + $0x1310] sm:$0xff]  ;;  %1884 = vst [vmem:[%s10454_s6 + $0x978] sm:$0xff] %v1883_v47 }
  0xb5   : > { %1886 = vst [vmem:[%s10454_s6 + $0x980] sm:$0xff] %v1885_v48  ;;  %1888 = vst [vmem:[%s10454_s6 + $0x988] sm:$0xff] %v1887_v49  ;;  %v1889_v50 = vld [vmem:[%s10449_s30 + $0x1320] sm:$0xff]  ;;  %v1891_v51 = vld [vmem:[%s10449_s30 + $0x1330] sm:$0xff] }
  0xb6   : > { %v1893_v52 = vld [vmem:[%s10449_s30 + $0x1340] sm:$0xff]  ;;  %1890 = vst [vmem:[%s10454_s6 + $0x990] sm:$0xff] %v1889_v50  ;;  %1892 = vst [vmem:[%s10454_s6 + $0x998] sm:$0xff] %v1891_v51  ;;  %v1895_v53 = vld [vmem:[%s10449_s30 + $0x1350] sm:$0xff] }
  0xb7   : > { %1894 = vst [vmem:[%s10454_s6 + $0x9a0] sm:$0xff] %v1893_v52  ;;  %v1897_v54 = vld [vmem:[%s10449_s30 + $0x1360] sm:$0xff]  ;;  %v1899_v55 = vld [vmem:[%s10449_s30 + $0x1370] sm:$0xff]  ;;  %1896 = vst [vmem:[%s10454_s6 + $0x9a8] sm:$0xff] %v1895_v53 }
  0xb8   : > { %1898 = vst [vmem:[%s10454_s6 + $0x9b0] sm:$0xff] %v1897_v54  ;;  %1900 = vst [vmem:[%s10454_s6 + $0x9b8] sm:$0xff] %v1899_v55  ;;  %v1901_v56 = vld [vmem:[%s10449_s30 + $0x1380] sm:$0xff]  ;;  %v1903_v57 = vld [vmem:[%s10449_s30 + $0x1390] sm:$0xff] }
  0xb9   : > { %v1905_v58 = vld [vmem:[%s10449_s30 + $0x13a0] sm:$0xff]  ;;  %1902 = vst [vmem:[%s10454_s6 + $0x9c0] sm:$0xff] %v1901_v56  ;;  %1904 = vst [vmem:[%s10454_s6 + $0x9c8] sm:$0xff] %v1903_v57  ;;  %v1907_v59 = vld [vmem:[%s10449_s30 + $0x13b0] sm:$0xff] }
  0xba   : > { %1906 = vst [vmem:[%s10454_s6 + $0x9d0] sm:$0xff] %v1905_v58  ;;  %v1909_v60 = vld [vmem:[%s10449_s30 + $0x13c0] sm:$0xff]  ;;  %v1911_v61 = vld [vmem:[%s10449_s30 + $0x13d0] sm:$0xff]  ;;  %1908 = vst [vmem:[%s10454_s6 + $0x9d8] sm:$0xff] %v1907_v59 }
  0xbb   : > { %1910 = vst [vmem:[%s10454_s6 + $0x9e0] sm:$0xff] %v1909_v60  ;;  %1912 = vst [vmem:[%s10454_s6 + $0x9e8] sm:$0xff] %v1911_v61  ;;  %v1913_v62 = vld [vmem:[%s10449_s30 + $0x13e0] sm:$0xff]  ;;  %v1915_v63 = vld [vmem:[%s10449_s30 + $0x13f0] sm:$0xff] }
  0xbc   : > { %v1917_v0 = vld [vmem:[%s10449_s30 + $0x1400] sm:$0xff]  ;;  %1914 = vst [vmem:[%s10454_s6 + $0x9f0] sm:$0xff] %v1913_v62  ;;  %1916 = vst [vmem:[%s10454_s6 + $0x9f8] sm:$0xff] %v1915_v63  ;;  %v1919_v1 = vld [vmem:[%s10449_s30 + $0x1410] sm:$0xff] }
  0xbd   : > { %1918 = vst [vmem:[%s10454_s6 + $0xa00] sm:$0xff] %v1917_v0  ;;  %v1921_v2 = vld [vmem:[%s10449_s30 + $0x1420] sm:$0xff]  ;;  %v1923_v3 = vld [vmem:[%s10449_s30 + $0x1430] sm:$0xff]  ;;  %1920 = vst [vmem:[%s10454_s6 + $0xa08] sm:$0xff] %v1919_v1 }
  0xbe   : > { %1922 = vst [vmem:[%s10454_s6 + $0xa10] sm:$0xff] %v1921_v2  ;;  %1924 = vst [vmem:[%s10454_s6 + $0xa18] sm:$0xff] %v1923_v3  ;;  %v1925_v4 = vld [vmem:[%s10449_s30 + $0x1440] sm:$0xff]  ;;  %v1927_v5 = vld [vmem:[%s10449_s30 + $0x1450] sm:$0xff] }
  0xbf   : > { %v1929_v6 = vld [vmem:[%s10449_s30 + $0x1460] sm:$0xff]  ;;  %1926 = vst [vmem:[%s10454_s6 + $0xa20] sm:$0xff] %v1925_v4  ;;  %1928 = vst [vmem:[%s10454_s6 + $0xa28] sm:$0xff] %v1927_v5  ;;  %v1931_v7 = vld [vmem:[%s10449_s30 + $0x1470] sm:$0xff] }
  0xc0   : > { %1930 = vst [vmem:[%s10454_s6 + $0xa30] sm:$0xff] %v1929_v6  ;;  %v1933_v8 = vld [vmem:[%s10449_s30 + $0x1480] sm:$0xff]  ;;  %v1935_v9 = vld [vmem:[%s10449_s30 + $0x1490] sm:$0xff]  ;;  %1932 = vst [vmem:[%s10454_s6 + $0xa38] sm:$0xff] %v1931_v7 }
  0xc1   : > { %1934 = vst [vmem:[%s10454_s6 + $0xa40] sm:$0xff] %v1933_v8  ;;  %1936 = vst [vmem:[%s10454_s6 + $0xa48] sm:$0xff] %v1935_v9  ;;  %v1937_v10 = vld [vmem:[%s10449_s30 + $0x14a0] sm:$0xff]  ;;  %v1939_v11 = vld [vmem:[%s10449_s30 + $0x14b0] sm:$0xff] }
  0xc2   : > { %v1941_v12 = vld [vmem:[%s10449_s30 + $0x14c0] sm:$0xff]  ;;  %1938 = vst [vmem:[%s10454_s6 + $0xa50] sm:$0xff] %v1937_v10  ;;  %1940 = vst [vmem:[%s10454_s6 + $0xa58] sm:$0xff] %v1939_v11  ;;  %v1943_v13 = vld [vmem:[%s10449_s30 + $0x14d0] sm:$0xff] }
  0xc3   : > { %1942 = vst [vmem:[%s10454_s6 + $0xa60] sm:$0xff] %v1941_v12  ;;  %v1945_v14 = vld [vmem:[%s10449_s30 + $0x14e0] sm:$0xff]  ;;  %v1947_v15 = vld [vmem:[%s10449_s30 + $0x14f0] sm:$0xff]  ;;  %1944 = vst [vmem:[%s10454_s6 + $0xa68] sm:$0xff] %v1943_v13 }
  0xc4   : > { %1946 = vst [vmem:[%s10454_s6 + $0xa70] sm:$0xff] %v1945_v14  ;;  %1948 = vst [vmem:[%s10454_s6 + $0xa78] sm:$0xff] %v1947_v15  ;;  %v1949_v16 = vld [vmem:[%s10449_s30 + $0x1500] sm:$0xff]  ;;  %v1951_v17 = vld [vmem:[%s10449_s30 + $0x1510] sm:$0xff] }
  0xc5   : > { %v1953_v18 = vld [vmem:[%s10449_s30 + $0x1520] sm:$0xff]  ;;  %1950 = vst [vmem:[%s10454_s6 + $0xa80] sm:$0xff] %v1949_v16  ;;  %1952 = vst [vmem:[%s10454_s6 + $0xa88] sm:$0xff] %v1951_v17  ;;  %v1955_v19 = vld [vmem:[%s10449_s30 + $0x1530] sm:$0xff] }
  0xc6   : > { %1954 = vst [vmem:[%s10454_s6 + $0xa90] sm:$0xff] %v1953_v18  ;;  %v1957_v20 = vld [vmem:[%s10449_s30 + $0x1540] sm:$0xff]  ;;  %v1959_v21 = vld [vmem:[%s10449_s30 + $0x1550] sm:$0xff]  ;;  %1956 = vst [vmem:[%s10454_s6 + $0xa98] sm:$0xff] %v1955_v19 }
  0xc7   : > { %1958 = vst [vmem:[%s10454_s6 + $0xaa0] sm:$0xff] %v1957_v20  ;;  %1960 = vst [vmem:[%s10454_s6 + $0xaa8] sm:$0xff] %v1959_v21  ;;  %v1961_v22 = vld [vmem:[%s10449_s30 + $0x1560] sm:$0xff]  ;;  %v1963_v23 = vld [vmem:[%s10449_s30 + $0x1570] sm:$0xff] }
  0xc8   : > { %v1965_v24 = vld [vmem:[%s10449_s30 + $0x1580] sm:$0xff]  ;;  %1962 = vst [vmem:[%s10454_s6 + $0xab0] sm:$0xff] %v1961_v22  ;;  %1964 = vst [vmem:[%s10454_s6 + $0xab8] sm:$0xff] %v1963_v23  ;;  %v1967_v25 = vld [vmem:[%s10449_s30 + $0x1590] sm:$0xff] }
  0xc9   : > { %1966 = vst [vmem:[%s10454_s6 + $0xac0] sm:$0xff] %v1965_v24  ;;  %v1969_v26 = vld [vmem:[%s10449_s30 + $0x15a0] sm:$0xff]  ;;  %v1971_v27 = vld [vmem:[%s10449_s30 + $0x15b0] sm:$0xff]  ;;  %1968 = vst [vmem:[%s10454_s6 + $0xac8] sm:$0xff] %v1967_v25 }
  0xca   : > { %1970 = vst [vmem:[%s10454_s6 + $0xad0] sm:$0xff] %v1969_v26  ;;  %1972 = vst [vmem:[%s10454_s6 + $0xad8] sm:$0xff] %v1971_v27  ;;  %v1973_v28 = vld [vmem:[%s10449_s30 + $0x15c0] sm:$0xff]  ;;  %v1975_v29 = vld [vmem:[%s10449_s30 + $0x15d0] sm:$0xff] }
  0xcb   : > { %v1977_v30 = vld [vmem:[%s10449_s30 + $0x15e0] sm:$0xff]  ;;  %1974 = vst [vmem:[%s10454_s6 + $0xae0] sm:$0xff] %v1973_v28  ;;  %1976 = vst [vmem:[%s10454_s6 + $0xae8] sm:$0xff] %v1975_v29  ;;  %v1979_v31 = vld [vmem:[%s10449_s30 + $0x15f0] sm:$0xff] }
  0xcc   : > { %1978 = vst [vmem:[%s10454_s6 + $0xaf0] sm:$0xff] %v1977_v30  ;;  %v1981_v32 = vld [vmem:[%s10449_s30 + $0x1600] sm:$0xff]  ;;  %v1983_v33 = vld [vmem:[%s10449_s30 + $0x1610] sm:$0xff]  ;;  %1980 = vst [vmem:[%s10454_s6 + $0xaf8] sm:$0xff] %v1979_v31 }
  0xcd   : > { %1982 = vst [vmem:[%s10454_s6 + $0xb00] sm:$0xff] %v1981_v32  ;;  %1984 = vst [vmem:[%s10454_s6 + $0xb08] sm:$0xff] %v1983_v33  ;;  %v1985_v34 = vld [vmem:[%s10449_s30 + $0x1620] sm:$0xff]  ;;  %v1987_v35 = vld [vmem:[%s10449_s30 + $0x1630] sm:$0xff] }
  0xce   : > { %v1989_v36 = vld [vmem:[%s10449_s30 + $0x1640] sm:$0xff]  ;;  %1986 = vst [vmem:[%s10454_s6 + $0xb10] sm:$0xff] %v1985_v34  ;;  %1988 = vst [vmem:[%s10454_s6 + $0xb18] sm:$0xff] %v1987_v35  ;;  %v1991_v37 = vld [vmem:[%s10449_s30 + $0x1650] sm:$0xff] }
  0xcf   : > { %1990 = vst [vmem:[%s10454_s6 + $0xb20] sm:$0xff] %v1989_v36  ;;  %v1993_v38 = vld [vmem:[%s10449_s30 + $0x1660] sm:$0xff]  ;;  %v1995_v39 = vld [vmem:[%s10449_s30 + $0x1670] sm:$0xff]  ;;  %1992 = vst [vmem:[%s10454_s6 + $0xb28] sm:$0xff] %v1991_v37 }
  0xd0   : > { %1994 = vst [vmem:[%s10454_s6 + $0xb30] sm:$0xff] %v1993_v38  ;;  %1996 = vst [vmem:[%s10454_s6 + $0xb38] sm:$0xff] %v1995_v39  ;;  %v1997_v40 = vld [vmem:[%s10449_s30 + $0x1680] sm:$0xff]  ;;  %v1999_v41 = vld [vmem:[%s10449_s30 + $0x1690] sm:$0xff] }
  0xd1   : > { %v2001_v42 = vld [vmem:[%s10449_s30 + $0x16a0] sm:$0xff]  ;;  %1998 = vst [vmem:[%s10454_s6 + $0xb40] sm:$0xff] %v1997_v40  ;;  %2000 = vst [vmem:[%s10454_s6 + $0xb48] sm:$0xff] %v1999_v41  ;;  %v2003_v43 = vld [vmem:[%s10449_s30 + $0x16b0] sm:$0xff] }
  0xd2   : > { %2002 = vst [vmem:[%s10454_s6 + $0xb50] sm:$0xff] %v2001_v42  ;;  %v2005_v44 = vld [vmem:[%s10449_s30 + $0x16c0] sm:$0xff]  ;;  %v2007_v45 = vld [vmem:[%s10449_s30 + $0x16d0] sm:$0xff]  ;;  %2004 = vst [vmem:[%s10454_s6 + $0xb58] sm:$0xff] %v2003_v43 }
  0xd3   : > { %2006 = vst [vmem:[%s10454_s6 + $0xb60] sm:$0xff] %v2005_v44  ;;  %2008 = vst [vmem:[%s10454_s6 + $0xb68] sm:$0xff] %v2007_v45  ;;  %v2009_v46 = vld [vmem:[%s10449_s30 + $0x16e0] sm:$0xff]  ;;  %v2011_v47 = vld [vmem:[%s10449_s30 + $0x16f0] sm:$0xff] }
  0xd4   : > { %v2013_v48 = vld [vmem:[%s10449_s30 + $0x1700] sm:$0xff]  ;;  %2010 = vst [vmem:[%s10454_s6 + $0xb70] sm:$0xff] %v2009_v46  ;;  %2012 = vst [vmem:[%s10454_s6 + $0xb78] sm:$0xff] %v2011_v47  ;;  %v2015_v49 = vld [vmem:[%s10449_s30 + $0x1710] sm:$0xff] }
  0xd5   : > { %2014 = vst [vmem:[%s10454_s6 + $0xb80] sm:$0xff] %v2013_v48  ;;  %v2017_v50 = vld [vmem:[%s10449_s30 + $0x1720] sm:$0xff]  ;;  %v2019_v51 = vld [vmem:[%s10449_s30 + $0x1730] sm:$0xff]  ;;  %2016 = vst [vmem:[%s10454_s6 + $0xb88] sm:$0xff] %v2015_v49 }
  0xd6   : > { %2018 = vst [vmem:[%s10454_s6 + $0xb90] sm:$0xff] %v2017_v50  ;;  %2020 = vst [vmem:[%s10454_s6 + $0xb98] sm:$0xff] %v2019_v51  ;;  %v2021_v52 = vld [vmem:[%s10449_s30 + $0x1740] sm:$0xff]  ;;  %v2023_v53 = vld [vmem:[%s10449_s30 + $0x1750] sm:$0xff] }
  0xd7   : > { %v2025_v54 = vld [vmem:[%s10449_s30 + $0x1760] sm:$0xff]  ;;  %2022 = vst [vmem:[%s10454_s6 + $0xba0] sm:$0xff] %v2021_v52  ;;  %2024 = vst [vmem:[%s10454_s6 + $0xba8] sm:$0xff] %v2023_v53  ;;  %v2027_v55 = vld [vmem:[%s10449_s30 + $0x1770] sm:$0xff] }
  0xd8   : > { %2026 = vst [vmem:[%s10454_s6 + $0xbb0] sm:$0xff] %v2025_v54  ;;  %v2029_v56 = vld [vmem:[%s10449_s30 + $0x1780] sm:$0xff]  ;;  %v2031_v57 = vld [vmem:[%s10449_s30 + $0x1790] sm:$0xff]  ;;  %2028 = vst [vmem:[%s10454_s6 + $0xbb8] sm:$0xff] %v2027_v55 }
  0xd9   : > { %2030 = vst [vmem:[%s10454_s6 + $0xbc0] sm:$0xff] %v2029_v56  ;;  %2032 = vst [vmem:[%s10454_s6 + $0xbc8] sm:$0xff] %v2031_v57  ;;  %v2033_v58 = vld [vmem:[%s10449_s30 + $0x17a0] sm:$0xff]  ;;  %v2035_v59 = vld [vmem:[%s10449_s30 + $0x17b0] sm:$0xff] }
  0xda   : > { %v2037_v60 = vld [vmem:[%s10449_s30 + $0x17c0] sm:$0xff]  ;;  %2034 = vst [vmem:[%s10454_s6 + $0xbd0] sm:$0xff] %v2033_v58  ;;  %2036 = vst [vmem:[%s10454_s6 + $0xbd8] sm:$0xff] %v2035_v59  ;;  %v2039_v61 = vld [vmem:[%s10449_s30 + $0x17d0] sm:$0xff] }
  0xdb   : > { %2038 = vst [vmem:[%s10454_s6 + $0xbe0] sm:$0xff] %v2037_v60  ;;  %v2041_v62 = vld [vmem:[%s10449_s30 + $0x17e0] sm:$0xff]  ;;  %v2043_v63 = vld [vmem:[%s10449_s30 + $0x17f0] sm:$0xff]  ;;  %2040 = vst [vmem:[%s10454_s6 + $0xbe8] sm:$0xff] %v2039_v61 }
  0xdc   : > { %2042 = vst [vmem:[%s10454_s6 + $0xbf0] sm:$0xff] %v2041_v62  ;;  %2044 = vst [vmem:[%s10454_s6 + $0xbf8] sm:$0xff] %v2043_v63  ;;  %v2045_v0 = vld [vmem:[%s10449_s30 + $0x1800] sm:$0xff]  ;;  %v2047_v1 = vld [vmem:[%s10449_s30 + $0x1810] sm:$0xff] }
  0xdd   : > { %v2049_v2 = vld [vmem:[%s10449_s30 + $0x1820] sm:$0xff]  ;;  %2046 = vst [vmem:[%s10454_s6 + $0xc00] sm:$0xff] %v2045_v0  ;;  %2048 = vst [vmem:[%s10454_s6 + $0xc08] sm:$0xff] %v2047_v1  ;;  %v2051_v3 = vld [vmem:[%s10449_s30 + $0x1830] sm:$0xff] }
  0xde   : > { %2050 = vst [vmem:[%s10454_s6 + $0xc10] sm:$0xff] %v2049_v2  ;;  %v2053_v4 = vld [vmem:[%s10449_s30 + $0x1840] sm:$0xff]  ;;  %v2055_v5 = vld [vmem:[%s10449_s30 + $0x1850] sm:$0xff]  ;;  %2052 = vst [vmem:[%s10454_s6 + $0xc18] sm:$0xff] %v2051_v3 }
  0xdf   : > { %2054 = vst [vmem:[%s10454_s6 + $0xc20] sm:$0xff] %v2053_v4  ;;  %2056 = vst [vmem:[%s10454_s6 + $0xc28] sm:$0xff] %v2055_v5  ;;  %v2057_v6 = vld [vmem:[%s10449_s30 + $0x1860] sm:$0xff]  ;;  %v2059_v7 = vld [vmem:[%s10449_s30 + $0x1870] sm:$0xff] }
  0xe0   : > { %v2061_v8 = vld [vmem:[%s10449_s30 + $0x1880] sm:$0xff]  ;;  %2058 = vst [vmem:[%s10454_s6 + $0xc30] sm:$0xff] %v2057_v6  ;;  %2060 = vst [vmem:[%s10454_s6 + $0xc38] sm:$0xff] %v2059_v7  ;;  %v2063_v9 = vld [vmem:[%s10449_s30 + $0x1890] sm:$0xff] }
  0xe1   : > { %2062 = vst [vmem:[%s10454_s6 + $0xc40] sm:$0xff] %v2061_v8  ;;  %v2065_v10 = vld [vmem:[%s10449_s30 + $0x18a0] sm:$0xff]  ;;  %v2067_v11 = vld [vmem:[%s10449_s30 + $0x18b0] sm:$0xff]  ;;  %2064 = vst [vmem:[%s10454_s6 + $0xc48] sm:$0xff] %v2063_v9 }
  0xe2   : > { %2066 = vst [vmem:[%s10454_s6 + $0xc50] sm:$0xff] %v2065_v10  ;;  %2068 = vst [vmem:[%s10454_s6 + $0xc58] sm:$0xff] %v2067_v11  ;;  %v2069_v12 = vld [vmem:[%s10449_s30 + $0x18c0] sm:$0xff]  ;;  %v2071_v13 = vld [vmem:[%s10449_s30 + $0x18d0] sm:$0xff] }
  0xe3   : > { %v2073_v14 = vld [vmem:[%s10449_s30 + $0x18e0] sm:$0xff]  ;;  %2070 = vst [vmem:[%s10454_s6 + $0xc60] sm:$0xff] %v2069_v12  ;;  %2072 = vst [vmem:[%s10454_s6 + $0xc68] sm:$0xff] %v2071_v13  ;;  %v2075_v15 = vld [vmem:[%s10449_s30 + $0x18f0] sm:$0xff] }
  0xe4   : > { %2074 = vst [vmem:[%s10454_s6 + $0xc70] sm:$0xff] %v2073_v14  ;;  %v2077_v16 = vld [vmem:[%s10449_s30 + $0x1900] sm:$0xff]  ;;  %v2079_v17 = vld [vmem:[%s10449_s30 + $0x1910] sm:$0xff]  ;;  %2076 = vst [vmem:[%s10454_s6 + $0xc78] sm:$0xff] %v2075_v15 }
  0xe5   : > { %2078 = vst [vmem:[%s10454_s6 + $0xc80] sm:$0xff] %v2077_v16  ;;  %2080 = vst [vmem:[%s10454_s6 + $0xc88] sm:$0xff] %v2079_v17  ;;  %v2081_v18 = vld [vmem:[%s10449_s30 + $0x1920] sm:$0xff]  ;;  %v2083_v19 = vld [vmem:[%s10449_s30 + $0x1930] sm:$0xff] }
  0xe6   : > { %v2085_v20 = vld [vmem:[%s10449_s30 + $0x1940] sm:$0xff]  ;;  %2082 = vst [vmem:[%s10454_s6 + $0xc90] sm:$0xff] %v2081_v18  ;;  %2084 = vst [vmem:[%s10454_s6 + $0xc98] sm:$0xff] %v2083_v19  ;;  %v2087_v21 = vld [vmem:[%s10449_s30 + $0x1950] sm:$0xff] }
  0xe7   : > { %2086 = vst [vmem:[%s10454_s6 + $0xca0] sm:$0xff] %v2085_v20  ;;  %v2089_v22 = vld [vmem:[%s10449_s30 + $0x1960] sm:$0xff]  ;;  %v2091_v23 = vld [vmem:[%s10449_s30 + $0x1970] sm:$0xff]  ;;  %2088 = vst [vmem:[%s10454_s6 + $0xca8] sm:$0xff] %v2087_v21 }
  0xe8   : > { %2090 = vst [vmem:[%s10454_s6 + $0xcb0] sm:$0xff] %v2089_v22  ;;  %2092 = vst [vmem:[%s10454_s6 + $0xcb8] sm:$0xff] %v2091_v23  ;;  %v2093_v24 = vld [vmem:[%s10449_s30 + $0x1980] sm:$0xff]  ;;  %v2095_v25 = vld [vmem:[%s10449_s30 + $0x1990] sm:$0xff] }
  0xe9   : > { %v2097_v26 = vld [vmem:[%s10449_s30 + $0x19a0] sm:$0xff]  ;;  %2094 = vst [vmem:[%s10454_s6 + $0xcc0] sm:$0xff] %v2093_v24  ;;  %2096 = vst [vmem:[%s10454_s6 + $0xcc8] sm:$0xff] %v2095_v25  ;;  %v2099_v27 = vld [vmem:[%s10449_s30 + $0x19b0] sm:$0xff] }
  0xea   : > { %2098 = vst [vmem:[%s10454_s6 + $0xcd0] sm:$0xff] %v2097_v26  ;;  %v2101_v28 = vld [vmem:[%s10449_s30 + $0x19c0] sm:$0xff]  ;;  %v2103_v29 = vld [vmem:[%s10449_s30 + $0x19d0] sm:$0xff]  ;;  %2100 = vst [vmem:[%s10454_s6 + $0xcd8] sm:$0xff] %v2099_v27 }
  0xeb   : > { %2102 = vst [vmem:[%s10454_s6 + $0xce0] sm:$0xff] %v2101_v28  ;;  %2104 = vst [vmem:[%s10454_s6 + $0xce8] sm:$0xff] %v2103_v29  ;;  %v2105_v30 = vld [vmem:[%s10449_s30 + $0x19e0] sm:$0xff]  ;;  %v2107_v31 = vld [vmem:[%s10449_s30 + $0x19f0] sm:$0xff] }
  0xec   : > { %v2109_v32 = vld [vmem:[%s10449_s30 + $0x1a00] sm:$0xff]  ;;  %2106 = vst [vmem:[%s10454_s6 + $0xcf0] sm:$0xff] %v2105_v30  ;;  %2108 = vst [vmem:[%s10454_s6 + $0xcf8] sm:$0xff] %v2107_v31  ;;  %v2111_v33 = vld [vmem:[%s10449_s30 + $0x1a10] sm:$0xff] }
  0xed   : > { %2110 = vst [vmem:[%s10454_s6 + $0xd00] sm:$0xff] %v2109_v32  ;;  %v2113_v34 = vld [vmem:[%s10449_s30 + $0x1a20] sm:$0xff]  ;;  %v2115_v35 = vld [vmem:[%s10449_s30 + $0x1a30] sm:$0xff]  ;;  %2112 = vst [vmem:[%s10454_s6 + $0xd08] sm:$0xff] %v2111_v33 }
  0xee   : > { %2114 = vst [vmem:[%s10454_s6 + $0xd10] sm:$0xff] %v2113_v34  ;;  %2116 = vst [vmem:[%s10454_s6 + $0xd18] sm:$0xff] %v2115_v35  ;;  %v2117_v36 = vld [vmem:[%s10449_s30 + $0x1a40] sm:$0xff]  ;;  %v2119_v37 = vld [vmem:[%s10449_s30 + $0x1a50] sm:$0xff] }
  0xef   : > { %v2121_v38 = vld [vmem:[%s10449_s30 + $0x1a60] sm:$0xff]  ;;  %2118 = vst [vmem:[%s10454_s6 + $0xd20] sm:$0xff] %v2117_v36  ;;  %2120 = vst [vmem:[%s10454_s6 + $0xd28] sm:$0xff] %v2119_v37  ;;  %v2123_v39 = vld [vmem:[%s10449_s30 + $0x1a70] sm:$0xff] }
  0xf0   : > { %2122 = vst [vmem:[%s10454_s6 + $0xd30] sm:$0xff] %v2121_v38  ;;  %v2125_v40 = vld [vmem:[%s10449_s30 + $0x1a80] sm:$0xff]  ;;  %v2127_v41 = vld [vmem:[%s10449_s30 + $0x1a90] sm:$0xff]  ;;  %2124 = vst [vmem:[%s10454_s6 + $0xd38] sm:$0xff] %v2123_v39 }
  0xf1   : > { %2126 = vst [vmem:[%s10454_s6 + $0xd40] sm:$0xff] %v2125_v40  ;;  %2128 = vst [vmem:[%s10454_s6 + $0xd48] sm:$0xff] %v2127_v41  ;;  %v2129_v42 = vld [vmem:[%s10449_s30 + $0x1aa0] sm:$0xff]  ;;  %v2131_v43 = vld [vmem:[%s10449_s30 + $0x1ab0] sm:$0xff] }
  0xf2   : > { %v2133_v44 = vld [vmem:[%s10449_s30 + $0x1ac0] sm:$0xff]  ;;  %2130 = vst [vmem:[%s10454_s6 + $0xd50] sm:$0xff] %v2129_v42  ;;  %2132 = vst [vmem:[%s10454_s6 + $0xd58] sm:$0xff] %v2131_v43  ;;  %v2135_v45 = vld [vmem:[%s10449_s30 + $0x1ad0] sm:$0xff] }
  0xf3   : > { %2134 = vst [vmem:[%s10454_s6 + $0xd60] sm:$0xff] %v2133_v44  ;;  %v2137_v46 = vld [vmem:[%s10449_s30 + $0x1ae0] sm:$0xff]  ;;  %v2139_v47 = vld [vmem:[%s10449_s30 + $0x1af0] sm:$0xff]  ;;  %2136 = vst [vmem:[%s10454_s6 + $0xd68] sm:$0xff] %v2135_v45 }
  0xf4   : > { %2138 = vst [vmem:[%s10454_s6 + $0xd70] sm:$0xff] %v2137_v46  ;;  %2140 = vst [vmem:[%s10454_s6 + $0xd78] sm:$0xff] %v2139_v47  ;;  %v2141_v48 = vld [vmem:[%s10449_s30 + $0x1b00] sm:$0xff]  ;;  %v2143_v49 = vld [vmem:[%s10449_s30 + $0x1b10] sm:$0xff] }
  0xf5   : > { %v2145_v50 = vld [vmem:[%s10449_s30 + $0x1b20] sm:$0xff]  ;;  %2142 = vst [vmem:[%s10454_s6 + $0xd80] sm:$0xff] %v2141_v48  ;;  %2144 = vst [vmem:[%s10454_s6 + $0xd88] sm:$0xff] %v2143_v49  ;;  %v2147_v51 = vld [vmem:[%s10449_s30 + $0x1b30] sm:$0xff] }
  0xf6   : > { %2146 = vst [vmem:[%s10454_s6 + $0xd90] sm:$0xff] %v2145_v50  ;;  %v2149_v52 = vld [vmem:[%s10449_s30 + $0x1b40] sm:$0xff]  ;;  %v2151_v53 = vld [vmem:[%s10449_s30 + $0x1b50] sm:$0xff]  ;;  %2148 = vst [vmem:[%s10454_s6 + $0xd98] sm:$0xff] %v2147_v51 }
  0xf7   : > { %2150 = vst [vmem:[%s10454_s6 + $0xda0] sm:$0xff] %v2149_v52  ;;  %2152 = vst [vmem:[%s10454_s6 + $0xda8] sm:$0xff] %v2151_v53  ;;  %v2153_v54 = vld [vmem:[%s10449_s30 + $0x1b60] sm:$0xff]  ;;  %v2155_v55 = vld [vmem:[%s10449_s30 + $0x1b70] sm:$0xff] }
  0xf8   : > { %v2157_v56 = vld [vmem:[%s10449_s30 + $0x1b80] sm:$0xff]  ;;  %2154 = vst [vmem:[%s10454_s6 + $0xdb0] sm:$0xff] %v2153_v54  ;;  %2156 = vst [vmem:[%s10454_s6 + $0xdb8] sm:$0xff] %v2155_v55  ;;  %v2159_v57 = vld [vmem:[%s10449_s30 + $0x1b90] sm:$0xff] }
  0xf9   : > { %2158 = vst [vmem:[%s10454_s6 + $0xdc0] sm:$0xff] %v2157_v56  ;;  %v2161_v58 = vld [vmem:[%s10449_s30 + $0x1ba0] sm:$0xff]  ;;  %v2163_v59 = vld [vmem:[%s10449_s30 + $0x1bb0] sm:$0xff]  ;;  %2160 = vst [vmem:[%s10454_s6 + $0xdc8] sm:$0xff] %v2159_v57 }
  0xfa   : > { %2162 = vst [vmem:[%s10454_s6 + $0xdd0] sm:$0xff] %v2161_v58  ;;  %2164 = vst [vmem:[%s10454_s6 + $0xdd8] sm:$0xff] %v2163_v59  ;;  %v2165_v60 = vld [vmem:[%s10449_s30 + $0x1bc0] sm:$0xff]  ;;  %v2167_v61 = vld [vmem:[%s10449_s30 + $0x1bd0] sm:$0xff] }
  0xfb   : > { %v2169_v62 = vld [vmem:[%s10449_s30 + $0x1be0] sm:$0xff]  ;;  %2166 = vst [vmem:[%s10454_s6 + $0xde0] sm:$0xff] %v2165_v60  ;;  %2168 = vst [vmem:[%s10454_s6 + $0xde8] sm:$0xff] %v2167_v61  ;;  %v2171_v63 = vld [vmem:[%s10449_s30 + $0x1bf0] sm:$0xff] }
  0xfc   : > { %2170 = vst [vmem:[%s10454_s6 + $0xdf0] sm:$0xff] %v2169_v62  ;;  %v2173_v0 = vld [vmem:[%s10449_s30 + $0x1c00] sm:$0xff]  ;;  %v2175_v1 = vld [vmem:[%s10449_s30 + $0x1c10] sm:$0xff]  ;;  %2172 = vst [vmem:[%s10454_s6 + $0xdf8] sm:$0xff] %v2171_v63 }
  0xfd   : > { %2174 = vst [vmem:[%s10454_s6 + $0xe00] sm:$0xff] %v2173_v0  ;;  %2176 = vst [vmem:[%s10454_s6 + $0xe08] sm:$0xff] %v2175_v1  ;;  %v2177_v2 = vld [vmem:[%s10449_s30 + $0x1c20] sm:$0xff]  ;;  %v2179_v3 = vld [vmem:[%s10449_s30 + $0x1c30] sm:$0xff] }
  0xfe   : > { %v2181_v4 = vld [vmem:[%s10449_s30 + $0x1c40] sm:$0xff]  ;;  %2178 = vst [vmem:[%s10454_s6 + $0xe10] sm:$0xff] %v2177_v2  ;;  %2180 = vst [vmem:[%s10454_s6 + $0xe18] sm:$0xff] %v2179_v3  ;;  %v2183_v5 = vld [vmem:[%s10449_s30 + $0x1c50] sm:$0xff] }
  0xff   : > { %2182 = vst [vmem:[%s10454_s6 + $0xe20] sm:$0xff] %v2181_v4  ;;  %v2185_v6 = vld [vmem:[%s10449_s30 + $0x1c60] sm:$0xff]  ;;  %v2187_v7 = vld [vmem:[%s10449_s30 + $0x1c70] sm:$0xff]  ;;  %2184 = vst [vmem:[%s10454_s6 + $0xe28] sm:$0xff] %v2183_v5 }
 0x100   : > { %2186 = vst [vmem:[%s10454_s6 + $0xe30] sm:$0xff] %v2185_v6  ;;  %2188 = vst [vmem:[%s10454_s6 + $0xe38] sm:$0xff] %v2187_v7  ;;  %v2189_v8 = vld [vmem:[%s10449_s30 + $0x1c80] sm:$0xff]  ;;  %v2191_v9 = vld [vmem:[%s10449_s30 + $0x1c90] sm:$0xff] }
 0x101   : > { %v2193_v10 = vld [vmem:[%s10449_s30 + $0x1ca0] sm:$0xff]  ;;  %2190 = vst [vmem:[%s10454_s6 + $0xe40] sm:$0xff] %v2189_v8  ;;  %2192 = vst [vmem:[%s10454_s6 + $0xe48] sm:$0xff] %v2191_v9  ;;  %v2195_v11 = vld [vmem:[%s10449_s30 + $0x1cb0] sm:$0xff] }
 0x102   : > { %2194 = vst [vmem:[%s10454_s6 + $0xe50] sm:$0xff] %v2193_v10  ;;  %v2197_v12 = vld [vmem:[%s10449_s30 + $0x1cc0] sm:$0xff]  ;;  %v2199_v13 = vld [vmem:[%s10449_s30 + $0x1cd0] sm:$0xff]  ;;  %2196 = vst [vmem:[%s10454_s6 + $0xe58] sm:$0xff] %v2195_v11 }
 0x103   : > { %2198 = vst [vmem:[%s10454_s6 + $0xe60] sm:$0xff] %v2197_v12  ;;  %2200 = vst [vmem:[%s10454_s6 + $0xe68] sm:$0xff] %v2199_v13  ;;  %v2201_v14 = vld [vmem:[%s10449_s30 + $0x1ce0] sm:$0xff]  ;;  %v2203_v15 = vld [vmem:[%s10449_s30 + $0x1cf0] sm:$0xff] }
 0x104   : > { %v2205_v16 = vld [vmem:[%s10449_s30 + $0x1d00] sm:$0xff]  ;;  %2202 = vst [vmem:[%s10454_s6 + $0xe70] sm:$0xff] %v2201_v14  ;;  %2204 = vst [vmem:[%s10454_s6 + $0xe78] sm:$0xff] %v2203_v15  ;;  %v2207_v17 = vld [vmem:[%s10449_s30 + $0x1d10] sm:$0xff] }
 0x105   : > { %2206 = vst [vmem:[%s10454_s6 + $0xe80] sm:$0xff] %v2205_v16  ;;  %v2209_v18 = vld [vmem:[%s10449_s30 + $0x1d20] sm:$0xff]  ;;  %v2211_v19 = vld [vmem:[%s10449_s30 + $0x1d30] sm:$0xff]  ;;  %2208 = vst [vmem:[%s10454_s6 + $0xe88] sm:$0xff] %v2207_v17 }
 0x106   : > { %2210 = vst [vmem:[%s10454_s6 + $0xe90] sm:$0xff] %v2209_v18  ;;  %2212 = vst [vmem:[%s10454_s6 + $0xe98] sm:$0xff] %v2211_v19  ;;  %v2213_v20 = vld [vmem:[%s10449_s30 + $0x1d40] sm:$0xff]  ;;  %v2215_v21 = vld [vmem:[%s10449_s30 + $0x1d50] sm:$0xff] }
 0x107   : > { %v2217_v22 = vld [vmem:[%s10449_s30 + $0x1d60] sm:$0xff]  ;;  %2214 = vst [vmem:[%s10454_s6 + $0xea0] sm:$0xff] %v2213_v20  ;;  %2216 = vst [vmem:[%s10454_s6 + $0xea8] sm:$0xff] %v2215_v21  ;;  %v2219_v23 = vld [vmem:[%s10449_s30 + $0x1d70] sm:$0xff] }
 0x108   : > { %2218 = vst [vmem:[%s10454_s6 + $0xeb0] sm:$0xff] %v2217_v22  ;;  %v2221_v24 = vld [vmem:[%s10449_s30 + $0x1d80] sm:$0xff]  ;;  %v2223_v25 = vld [vmem:[%s10449_s30 + $0x1d90] sm:$0xff]  ;;  %2220 = vst [vmem:[%s10454_s6 + $0xeb8] sm:$0xff] %v2219_v23 }
 0x109   : > { %2222 = vst [vmem:[%s10454_s6 + $0xec0] sm:$0xff] %v2221_v24  ;;  %2224 = vst [vmem:[%s10454_s6 + $0xec8] sm:$0xff] %v2223_v25  ;;  %v2225_v26 = vld [vmem:[%s10449_s30 + $0x1da0] sm:$0xff]  ;;  %v2227_v27 = vld [vmem:[%s10449_s30 + $0x1db0] sm:$0xff] }
 0x10a   : > { %v2229_v28 = vld [vmem:[%s10449_s30 + $0x1dc0] sm:$0xff]  ;;  %2226 = vst [vmem:[%s10454_s6 + $0xed0] sm:$0xff] %v2225_v26  ;;  %2228 = vst [vmem:[%s10454_s6 + $0xed8] sm:$0xff] %v2227_v27  ;;  %v2231_v29 = vld [vmem:[%s10449_s30 + $0x1dd0] sm:$0xff] }
 0x10b   : > { %2230 = vst [vmem:[%s10454_s6 + $0xee0] sm:$0xff] %v2229_v28  ;;  %v2233_v30 = vld [vmem:[%s10449_s30 + $0x1de0] sm:$0xff]  ;;  %v2235_v31 = vld [vmem:[%s10449_s30 + $0x1df0] sm:$0xff]  ;;  %2232 = vst [vmem:[%s10454_s6 + $0xee8] sm:$0xff] %v2231_v29 }
 0x10c   : > { %2234 = vst [vmem:[%s10454_s6 + $0xef0] sm:$0xff] %v2233_v30  ;;  %2236 = vst [vmem:[%s10454_s6 + $0xef8] sm:$0xff] %v2235_v31  ;;  %v2237_v32 = vld [vmem:[%s10449_s30 + $0x1e00] sm:$0xff]  ;;  %v2239_v33 = vld [vmem:[%s10449_s30 + $0x1e10] sm:$0xff] }
 0x10d   : > { %v2241_v34 = vld [vmem:[%s10449_s30 + $0x1e20] sm:$0xff]  ;;  %2238 = vst [vmem:[%s10454_s6 + $0xf00] sm:$0xff] %v2237_v32  ;;  %2240 = vst [vmem:[%s10454_s6 + $0xf08] sm:$0xff] %v2239_v33  ;;  %v2243_v35 = vld [vmem:[%s10449_s30 + $0x1e30] sm:$0xff] }
 0x10e   : > { %2242 = vst [vmem:[%s10454_s6 + $0xf10] sm:$0xff] %v2241_v34  ;;  %v2245_v36 = vld [vmem:[%s10449_s30 + $0x1e40] sm:$0xff]  ;;  %v2247_v37 = vld [vmem:[%s10449_s30 + $0x1e50] sm:$0xff]  ;;  %2244 = vst [vmem:[%s10454_s6 + $0xf18] sm:$0xff] %v2243_v35 }
 0x10f   : > { %2246 = vst [vmem:[%s10454_s6 + $0xf20] sm:$0xff] %v2245_v36  ;;  %2248 = vst [vmem:[%s10454_s6 + $0xf28] sm:$0xff] %v2247_v37  ;;  %v2249_v38 = vld [vmem:[%s10449_s30 + $0x1e60] sm:$0xff]  ;;  %v2251_v39 = vld [vmem:[%s10449_s30 + $0x1e70] sm:$0xff] }
 0x110   : > { %v2253_v40 = vld [vmem:[%s10449_s30 + $0x1e80] sm:$0xff]  ;;  %2250 = vst [vmem:[%s10454_s6 + $0xf30] sm:$0xff] %v2249_v38  ;;  %2252 = vst [vmem:[%s10454_s6 + $0xf38] sm:$0xff] %v2251_v39  ;;  %v2255_v41 = vld [vmem:[%s10449_s30 + $0x1e90] sm:$0xff] }
 0x111   : > { %2254 = vst [vmem:[%s10454_s6 + $0xf40] sm:$0xff] %v2253_v40  ;;  %v2257_v42 = vld [vmem:[%s10449_s30 + $0x1ea0] sm:$0xff]  ;;  %v2259_v43 = vld [vmem:[%s10449_s30 + $0x1eb0] sm:$0xff]  ;;  %2256 = vst [vmem:[%s10454_s6 + $0xf48] sm:$0xff] %v2255_v41 }
 0x112   : > { %2258 = vst [vmem:[%s10454_s6 + $0xf50] sm:$0xff] %v2257_v42  ;;  %2260 = vst [vmem:[%s10454_s6 + $0xf58] sm:$0xff] %v2259_v43  ;;  %v2261_v44 = vld [vmem:[%s10449_s30 + $0x1ec0] sm:$0xff]  ;;  %v2263_v45 = vld [vmem:[%s10449_s30 + $0x1ed0] sm:$0xff] }
 0x113   : > { %v2265_v46 = vld [vmem:[%s10449_s30 + $0x1ee0] sm:$0xff]  ;;  %2262 = vst [vmem:[%s10454_s6 + $0xf60] sm:$0xff] %v2261_v44  ;;  %2264 = vst [vmem:[%s10454_s6 + $0xf68] sm:$0xff] %v2263_v45  ;;  %v2267_v47 = vld [vmem:[%s10449_s30 + $0x1ef0] sm:$0xff] }
 0x114   : > { %2266 = vst [vmem:[%s10454_s6 + $0xf70] sm:$0xff] %v2265_v46  ;;  %v2269_v48 = vld [vmem:[%s10449_s30 + $0x1f00] sm:$0xff]  ;;  %v2271_v49 = vld [vmem:[%s10449_s30 + $0x1f10] sm:$0xff]  ;;  %2268 = vst [vmem:[%s10454_s6 + $0xf78] sm:$0xff] %v2267_v47 }
 0x115   : > { %2270 = vst [vmem:[%s10454_s6 + $0xf80] sm:$0xff] %v2269_v48  ;;  %2272 = vst [vmem:[%s10454_s6 + $0xf88] sm:$0xff] %v2271_v49  ;;  %v2273_v50 = vld [vmem:[%s10449_s30 + $0x1f20] sm:$0xff]  ;;  %v2275_v51 = vld [vmem:[%s10449_s30 + $0x1f30] sm:$0xff] }
 0x116   : > { %v2277_v52 = vld [vmem:[%s10449_s30 + $0x1f40] sm:$0xff]  ;;  %2274 = vst [vmem:[%s10454_s6 + $0xf90] sm:$0xff] %v2273_v50  ;;  %2276 = vst [vmem:[%s10454_s6 + $0xf98] sm:$0xff] %v2275_v51  ;;  %v2279_v53 = vld [vmem:[%s10449_s30 + $0x1f50] sm:$0xff] }
 0x117   : > { %2278 = vst [vmem:[%s10454_s6 + $0xfa0] sm:$0xff] %v2277_v52  ;;  %v2281_v54 = vld [vmem:[%s10449_s30 + $0x1f60] sm:$0xff]  ;;  %v2283_v55 = vld [vmem:[%s10449_s30 + $0x1f70] sm:$0xff]  ;;  %2280 = vst [vmem:[%s10454_s6 + $0xfa8] sm:$0xff] %v2279_v53 }
 0x118   : > { %2282 = vst [vmem:[%s10454_s6 + $0xfb0] sm:$0xff] %v2281_v54  ;;  %2284 = vst [vmem:[%s10454_s6 + $0xfb8] sm:$0xff] %v2283_v55  ;;  %v2285_v56 = vld [vmem:[%s10449_s30 + $0x1f80] sm:$0xff]  ;;  %v2287_v57 = vld [vmem:[%s10449_s30 + $0x1f90] sm:$0xff] }
 0x119   : > { %v2289_v58 = vld [vmem:[%s10449_s30 + $0x1fa0] sm:$0xff]  ;;  %2286 = vst [vmem:[%s10454_s6 + $0xfc0] sm:$0xff] %v2285_v56  ;;  %2288 = vst [vmem:[%s10454_s6 + $0xfc8] sm:$0xff] %v2287_v57  ;;  %v2291_v59 = vld [vmem:[%s10449_s30 + $0x1fb0] sm:$0xff] }
 0x11a   : > { %2290 = vst [vmem:[%s10454_s6 + $0xfd0] sm:$0xff] %v2289_v58  ;;  %v2293_v60 = vld [vmem:[%s10449_s30 + $0x1fc0] sm:$0xff]  ;;  %v2295_v61 = vld [vmem:[%s10449_s30 + $0x1fd0] sm:$0xff]  ;;  %2292 = vst [vmem:[%s10454_s6 + $0xfd8] sm:$0xff] %v2291_v59 }
 0x11b   : > { %2294 = vst [vmem:[%s10454_s6 + $0xfe0] sm:$0xff] %v2293_v60  ;;  %2296 = vst [vmem:[%s10454_s6 + $0xfe8] sm:$0xff] %v2295_v61  ;;  %v2297_v62 = vld [vmem:[%s10449_s30 + $0x1fe0] sm:$0xff]  ;;  %v2299_v63 = vld [vmem:[%s10449_s30 + $0x1ff0] sm:$0xff] }
 0x11c   : > { %2298 = vst [vmem:[%s10454_s6 + $0xff0] sm:$0xff] %v2297_v62  ;;  %2300 = vst [vmem:[%s10454_s6 + $0xff8] sm:$0xff] %v2299_v63 }
 0x11d PF: > { %p8786_p11 = scmp.ge.s32.totalorder %s10330_s26, 1  ;;  %p4397_p12 = scmp.lt.s32.totalorder %s10330_s26, 5 }
 0x11f   : > { %p4398_p13 = pnand %p8786_p11, %p4397_p12 }
 0x120   : > { %s4404_s7 = sand.u32 (!%p4398_p13), 1, %s10306_s20   ;;  %s8789_s20 = sshll.u32 (!%p4398_p13), %s10314_s22, 1 }
 0x121   : > { %4401 = sbr.rel (%p4398_p13) target bundleno = 1046 (0x416), region = 80  ;;  %s8787_s8 = sshll.u32 (!%p4398_p13), %s4404_s7, 12 }
 0x122   : > { %s11480_s9 = scalar_lea.vmem (!%p4398_p13), [#allocation2], %s8787_s8  ;;  %p4457_p0 = scmp.lt.s32.totalorder (!%p4398_p13), %s8789_s20, 3 }
 0x123   : > { %v9492_v0 = vld [vmem:[%s11480_s9 + $0x4] ss:$8 sps:$4 sm:$0xff] (!%p4398_p13)   ;;  %v9496_v2 = vld [vmem:[%s11480_s9] ss:$8 sps:$4 sm:$0xff] (!%p4398_p13)   ;;  %v9498_v4 = vld [vmem:[%s11480_s9 + $0x14] ss:$8 sps:$4 sm:$0xff] (!%p4398_p13)  }
 0x124   : > { %v9494_v1 = vld [vmem:[%s11480_s9 + $0x804] ss:$8 sps:$4 sm:$0xff] (!%p4398_p13)   ;;  %7765 = vmatprep.subr.bf16.mxu1 (!%p4398_p13), %v9492_v0  ;;  %v9497_v3 = vld [vmem:[%s11480_s9 + $0x800] ss:$8 sps:$4 sm:$0xff] (!%p4398_p13)   ;;  %v9500_v5 = vld [vmem:[%s11480_s9 + $0x814] ss:$8 sps:$4 sm:$0xff] (!%p4398_p13)  }
 0x125   : > { %8109 = vmatprep.subr.bf16.mxu0 (!%p4398_p13), %v9494_v1  ;;  %7766 = vmatpush1.bf16.msra.mxu1 (!%p4398_p13), %v9496_v2  ;;  %v9502_v6 = vld [vmem:[%s11480_s9 + $0x10] ss:$8 sps:$4 sm:$0xff] (!%p4398_p13)   ;;  %v9504_v8 = vld [vmem:[%s11480_s9 + $0x24] ss:$8 sps:$4 sm:$0xff] (!%p4398_p13)   ;;  %v9508_v10 = vld [vmem:[%s11480_s9 + $0x20] ss:$8 sps:$4 sm:$0xff] (!%p4398_p13)  }
 0x126   : > { %8110 = vmatpush1.bf16.msra.mxu0 (!%p4398_p13), %v9497_v3  ;;  %7767 = vmatprep.subr.bf16.mxu1 (!%p4398_p13), %v9498_v4  ;;  %v9503_v7 = vld [vmem:[%s11480_s9 + $0x810] ss:$8 sps:$4 sm:$0xff] (!%p4398_p13)   ;;  %v9506_v9 = vld [vmem:[%s11480_s9 + $0x824] ss:$8 sps:$4 sm:$0xff] (!%p4398_p13)   ;;  %v9509_v11 = vld [vmem:[%s11480_s9 + $0x820] ss:$8 sps:$4 sm:$0xff] (!%p4398_p13)  }
 0x127   : > { %8111 = vmatprep.subr.bf16.mxu0 (!%p4398_p13), %v9500_v5  ;;  %v9510_v12 = vld [vmem:[%s11480_s9 + $0x34] ss:$8 sps:$4 sm:$0xff] (!%p4398_p13)   ;;  %v9514_v14 = vld [vmem:[%s11480_s9 + $0x30] ss:$8 sps:$4 sm:$0xff] (!%p4398_p13)   ;;  %v9516_v16 = vld [vmem:[%s11480_s9 + $0x44] ss:$8 sps:$4 sm:$0xff] (!%p4398_p13)  }
 0x128   : > { %v9512_v13 = vld [vmem:[%s11480_s9 + $0x834] ss:$8 sps:$4 sm:$0xff]   ;;  %v9515_v15 = vld [vmem:[%s11480_s9 + $0x830] ss:$8 sps:$4 sm:$0xff]   ;;  %v9518_v17 = vld [vmem:[%s11480_s9 + $0x844] ss:$8 sps:$4 sm:$0xff]  }
 0x129   : > { %7768 = vmatpush1.bf16.msra.mxu1 %v9502_v6  ;;  %v9520_v18 = vld [vmem:[%s11480_s9 + $0x40] ss:$8 sps:$4 sm:$0xff]   ;;  %v9522_v20 = vld [vmem:[%s11480_s9 + $0x54] ss:$8 sps:$4 sm:$0xff]   ;;  %v9526_v22 = vld [vmem:[%s11480_s9 + $0x50] ss:$8 sps:$4 sm:$0xff]  }
 0x12a   : > { %8112 = vmatpush1.bf16.msra.mxu0 %v9503_v7  ;;  %7769 = vmatprep.subr.bf16.mxu1 %v9504_v8  ;;  %v9521_v19 = vld [vmem:[%s11480_s9 + $0x840] ss:$8 sps:$4 sm:$0xff]   ;;  %v9524_v21 = vld [vmem:[%s11480_s9 + $0x854] ss:$8 sps:$4 sm:$0xff]   ;;  %v9527_v23 = vld [vmem:[%s11480_s9 + $0x850] ss:$8 sps:$4 sm:$0xff]  }
 0x12b   : > { %8113 = vmatprep.subr.bf16.mxu0 %v9506_v9  ;;  %v9528_v24 = vld [vmem:[%s11480_s9 + $0x64] ss:$8 sps:$4 sm:$0xff]   ;;  %v9532_v26 = vld [vmem:[%s11480_s9 + $0x60] ss:$8 sps:$4 sm:$0xff]   ;;  %v9534_v28 = vld [vmem:[%s11480_s9 + $0x74] ss:$8 sps:$4 sm:$0xff]  }
 0x12c   : > { %v9530_v25 = vld [vmem:[%s11480_s9 + $0x864] ss:$8 sps:$4 sm:$0xff]   ;;  %v9533_v27 = vld [vmem:[%s11480_s9 + $0x860] ss:$8 sps:$4 sm:$0xff]   ;;  %v9536_v29 = vld [vmem:[%s11480_s9 + $0x874] ss:$8 sps:$4 sm:$0xff]  }
 0x12d   : > { %7770 = vmatpush1.bf16.msra.mxu1 %v9508_v10  ;;  %v9538_v30 = vld [vmem:[%s11480_s9 + $0x70] ss:$8 sps:$4 sm:$0xff]   ;;  %v9540_v32 = vld [vmem:[%s11480_s9 + $0x84] ss:$8 sps:$4 sm:$0xff]   ;;  %v9544_v34 = vld [vmem:[%s11480_s9 + $0x80] ss:$8 sps:$4 sm:$0xff]  }
 0x12e   : > { %8114 = vmatpush1.bf16.msra.mxu0 %v9509_v11  ;;  %7771 = vmatprep.subr.bf16.mxu1 %v9510_v12  ;;  %v9539_v31 = vld [vmem:[%s11480_s9 + $0x870] ss:$8 sps:$4 sm:$0xff]   ;;  %v9542_v33 = vld [vmem:[%s11480_s9 + $0x884] ss:$8 sps:$4 sm:$0xff]   ;;  %v9545_v35 = vld [vmem:[%s11480_s9 + $0x880] ss:$8 sps:$4 sm:$0xff]  }
 0x12f   : > { %8115 = vmatprep.subr.bf16.mxu0 %v9512_v13  ;;  %v9546_v36 = vld [vmem:[%s11480_s9 + $0x94] ss:$8 sps:$4 sm:$0xff]   ;;  %s12235_s20 = smov (!%p4457_p0, %s8789_s20), 3  ;;  %v9550_v38 = vld [vmem:[%s11480_s9 + $0x90] ss:$8 sps:$4 sm:$0xff]   ;;  %s12145_s17 = sshll.u32 %s10318_s23, 1 }
 0x130   : > { %v9548_v37 = vld [vmem:[%s11480_s9 + $0x894] ss:$8 sps:$4 sm:$0xff]   ;;  %v9551_v39 = vld [vmem:[%s11480_s9 + $0x890] ss:$8 sps:$4 sm:$0xff]   ;;  %v9552_v40 = vld [vmem:[%s11480_s9 + $0xa4] ss:$8 sps:$4 sm:$0xff]  }
 0x131   : > { %7772 = vmatpush1.bf16.msra.mxu1 %v9514_v14  ;;  %s9351_s10 = sshll.u32 %s12235_s20, 7  ;;  %v9554_v41 = vld [vmem:[%s11480_s9 + $0x8a4] ss:$8 sps:$4 sm:$0xff]   ;;  %v9556_v42 = vld [vmem:[%s11480_s9 + $0xa0] ss:$8 sps:$4 sm:$0xff]   ;;  %p4465_p1 = scmp.lt.s32.totalorder %s12145_s17, 3 }
 0x132   : > { %8116 = vmatpush1.bf16.msra.mxu0 %v9515_v15  ;;  %7773 = vmatprep.subr.bf16.mxu1 %v9516_v16  ;;  %v9557_v43 = vld [vmem:[%s11480_s9 + $0x8a0] ss:$8 sps:$4 sm:$0xff]   ;;  %s11530_s16 = scalar_lea.vmem %s12212_s0, %s9351_s10  ;;  %v9558_v44 = vld [vmem:[%s11480_s9 + $0xb4] ss:$8 sps:$4 sm:$0xff]   ;;  %v9562_v46 = vld [vmem:[%s11480_s9 + $0xb0] ss:$8 sps:$4 sm:$0xff]  }
 0x133   : > { %8117 = vmatprep.subr.bf16.mxu0 %v9518_v17  ;;  %v9560_v45 = vld [vmem:[%s11480_s9 + $0x8b4] ss:$8 sps:$4 sm:$0xff]   ;;  %v9563_v47 = vld [vmem:[%s11480_s9 + $0x8b0] ss:$8 sps:$4 sm:$0xff]   ;;  %v4489_v48 = vld [vmem:[%s11530_s16] sm:$0xff]  ;;  %s12149_s29 = scalar_select %p4465_p1, %s12145_s17, 3 }
 0x134   : > { %v4505_v49 = vld [vmem:[%s11530_s16 + $0x80] sm:$0xff]  ;;  %v9570_v58 = vld [vmem:[%s11480_s9 + $0xd4] ss:$8 sps:$4 sm:$0xff]   ;;  %v9574_v60 = vld [vmem:[%s11480_s9 + $0xd0] ss:$8 sps:$4 sm:$0xff]   ;;  %s4433_s23 = sand.u32 1, %s10298_s18  }
 0x135   : > { %7774 = vmatpush1.bf16.msra.mxu1 %v9520_v18  ;;  %v9564_v50 = vld [vmem:[%s11480_s9 + $0xc4] ss:$8 sps:$4 sm:$0xff]   ;;  %v8798_v52 = vcombine.high %v4489_v48, %v4505_v49  ;;  %v9568_v56 = vld [vmem:[%s11480_s9 + $0xc0] ss:$8 sps:$4 sm:$0xff]   ;;  %v9572_v59 = vld [vmem:[%s11480_s9 + $0x8d4] ss:$8 sps:$4 sm:$0xff]   ;;  %v8797_v8 = vcombine.low %v4489_v48, %v4505_v49  ;;  %s4467_s7 = scalar_lea.vmem %s12214_s2, %s12149_s29 }
 0x136   : > { %8118 = vmatpush1.bf16.msra.mxu0 %v9521_v19  ;;  %7775 = vmatprep.subr.bf16.mxu1 %v9522_v20  ;;  %v9566_v51 = vld [vmem:[%s11480_s9 + $0x8c4] ss:$8 sps:$4 sm:$0xff]   ;;  %v9569_v57 = vld [vmem:[%s11480_s9 + $0x8c0] ss:$8 sps:$4 sm:$0xff]   ;;  %v9575_v61 = vld [vmem:[%s11480_s9 + $0x8d0] ss:$8 sps:$4 sm:$0xff]  }
 0x137   : > { %8119 = vmatprep.subr.bf16.mxu0 %v9524_v21  ;;  %v4497_v53 = vld [vmem:[%s11530_s16 + $0x40] sm:$0xff]  ;;  %7797 = vmatprep.mubr.bf16.mxu1 %v8798_v52  ;;  %v9582_v2 = vld [vmem:[%s11480_s9 + $0xf4] ss:$8 sps:$4 sm:$0xff]   ;;  %v9586_v4 = vld [vmem:[%s11480_s9 + $0xf0] ss:$8 sps:$4 sm:$0xff]   ;;  %s8788_s8 = sshll.u32 %s4433_s23, 4 }
 0x138   : > { %v4513_v54 = vld [vmem:[%s11530_s16 + $0xc0] sm:$0xff]  ;;  %v9584_v3 = vld [vmem:[%s11480_s9 + $0x8f4] ss:$8 sps:$4 sm:$0xff]   ;;  %v9587_v5 = vld [vmem:[%s11480_s9 + $0x8f0] ss:$8 sps:$4 sm:$0xff]   ;;  %s12161_s18 = scalar_lea.vmem [#allocation3], %s8788_s8 }
 0x139   : > { %7776 = vmatpush1.bf16.msra.mxu1 %v9526_v22  ;;  %v8814_v55 = vcombine.high %v4497_v53, %v4513_v54  ;;  %v9576_v62 = vld [vmem:[%s11480_s9 + $0xe4] ss:$8 sps:$4 sm:$0xff]   ;;  %v9580_v0 = vld [vmem:[%s11480_s9 + $0xe0] ss:$8 sps:$4 sm:$0xff]   ;;  %v8813_v10 = vcombine.low %v4497_v53, %v4513_v54  ;;  %v9596_v12 = vld [vmem:[%s11480_s9 + $0x114] ss:$8 sps:$4 sm:$0xff]  }
 0x13a   : > { %8120 = vmatpush1.bf16.msra.mxu0 %v9527_v23  ;;  %7777 = vmatprep.subr.bf16.mxu1 %v9528_v24  ;;  %v9578_v63 = vld [vmem:[%s11480_s9 + $0x8e4] ss:$8 sps:$4 sm:$0xff]   ;;  %v9581_v1 = vld [vmem:[%s11480_s9 + $0x8e0] ss:$8 sps:$4 sm:$0xff]   ;;  %v9599_v13 = vld [vmem:[%s11480_s9 + $0x914] ss:$8 sps:$4 sm:$0xff]  }
 0x13b   : > { %8121 = vmatprep.subr.bf16.mxu0 %v9530_v25  ;;  %8141 = vmatprep.mubr.bf16.mxu0 %v8814_v55  ;;  %v9590_v6 = vld [vmem:[%s11480_s9 + $0x104] ss:$8 sps:$4 sm:$0xff]   ;;  %v9588_v9 = vld [vmem:[%s11480_s9 + $0x100] ss:$8 sps:$4 sm:$0xff]   ;;  %v9594_v14 = vld [vmem:[%s11480_s9 + $0x110] ss:$8 sps:$4 sm:$0xff]  }
 0x13c   : > { %v9593_v7 = vld [vmem:[%s11480_s9 + $0x904] ss:$8 sps:$4 sm:$0xff]   ;;  %v9591_v11 = vld [vmem:[%s11480_s9 + $0x900] ss:$8 sps:$4 sm:$0xff]   ;;  %v9597_v15 = vld [vmem:[%s11480_s9 + $0x910] ss:$8 sps:$4 sm:$0xff]  }
 0x13d   : > { %7778 = vmatpush1.bf16.msra.mxu1 %v9532_v26  ;;  %v9602_v16 = vld [vmem:[%s11480_s9 + $0x124] ss:$8 sps:$4 sm:$0xff]   ;;  %v9600_v18 = vld [vmem:[%s11480_s9 + $0x120] ss:$8 sps:$4 sm:$0xff]   ;;  %v9608_v20 = vld [vmem:[%s11480_s9 + $0x134] ss:$8 sps:$4 sm:$0xff]  }
 0x13e   : > { %8122 = vmatpush1.bf16.msra.mxu0 %v9533_v27  ;;  %7779 = vmatprep.subr.bf16.mxu1 %v9534_v28  ;;  %v9605_v17 = vld [vmem:[%s11480_s9 + $0x924] ss:$8 sps:$4 sm:$0xff]   ;;  %v9603_v19 = vld [vmem:[%s11480_s9 + $0x920] ss:$8 sps:$4 sm:$0xff]   ;;  %v9611_v21 = vld [vmem:[%s11480_s9 + $0x934] ss:$8 sps:$4 sm:$0xff]  }
 0x13f   : > { %8123 = vmatprep.subr.bf16.mxu0 %v9536_v29  ;;  %v9606_v22 = vld [vmem:[%s11480_s9 + $0x130] ss:$8 sps:$4 sm:$0xff]   ;;  %v9614_v24 = vld [vmem:[%s11480_s9 + $0x144] ss:$8 sps:$4 sm:$0xff]   ;;  %v9612_v26 = vld [vmem:[%s11480_s9 + $0x140] ss:$8 sps:$4 sm:$0xff]  }
 0x140   : > { %v9609_v23 = vld [vmem:[%s11480_s9 + $0x930] ss:$8 sps:$4 sm:$0xff]   ;;  %v9617_v25 = vld [vmem:[%s11480_s9 + $0x944] ss:$8 sps:$4 sm:$0xff]   ;;  %v9615_v27 = vld [vmem:[%s11480_s9 + $0x940] ss:$8 sps:$4 sm:$0xff]  }
 0x141   : > { %7780 = vmatpush1.bf16.msra.mxu1 %v9538_v30  ;;  %v9620_v28 = vld [vmem:[%s11480_s9 + $0x154] ss:$8 sps:$4 sm:$0xff]   ;;  %v9618_v30 = vld [vmem:[%s11480_s9 + $0x150] ss:$8 sps:$4 sm:$0xff]   ;;  %v9636_v48 = vld [vmem:[%s11480_s9 + $0x180] ss:$8 sps:$4 sm:$0xff]  }
 0x142   : > { %8124 = vmatpush1.bf16.msra.mxu0 %v9539_v31  ;;  %7781 = vmatprep.subr.bf16.mxu1 %v9540_v32  ;;  %v9623_v29 = vld [vmem:[%s11480_s9 + $0x954] ss:$8 sps:$4 sm:$0xff]   ;;  %v9621_v31 = vld [vmem:[%s11480_s9 + $0x950] ss:$8 sps:$4 sm:$0xff]   ;;  %v9626_v32 = vld [vmem:[%s11480_s9 + $0x164] ss:$8 sps:$4 sm:$0xff]  }
 0x143   : > { %8125 = vmatprep.subr.bf16.mxu0 %v9542_v33  ;;  %v9629_v33 = vld [vmem:[%s11480_s9 + $0x964] ss:$8 sps:$4 sm:$0xff]   ;;  %v9639_v49 = vld [vmem:[%s11480_s9 + $0x980] ss:$8 sps:$4 sm:$0xff]   ;;  %v9642_v52 = vld [vmem:[%s11480_s9 + $0x190] ss:$8 sps:$4 sm:$0xff]  }
 0x144   : > { %v9645_v53 = vld [vmem:[%s11480_s9 + $0x990] ss:$8 sps:$4 sm:$0xff]   ;;  %v9650_v54 = vld [vmem:[%s11480_s9 + $0x1a4] ss:$8 sps:$4 sm:$0xff]   ;;  %p4472_p2 = scmp.lt.s32.totalorder %s10314_s22, 1 }
 0x145   : > { %7782 = vmatpush1.bf16.msra.mxu1 %v9544_v34  ;;  %v9624_v34 = vld [vmem:[%s11480_s9 + $0x160] ss:$8 sps:$4 sm:$0xff]   ;;  %v9653_v55 = vld [vmem:[%s11480_s9 + $0x9a4] ss:$8 sps:$4 sm:$0xff]  }
 0x146   : > { %8126 = vmatpush1.bf16.msra.mxu0 %v9545_v35  ;;  %7783 = vmatprep.subr.bf16.mxu1 %v9546_v36  ;;  %v9627_v35 = vld [vmem:[%s11480_s9 + $0x960] ss:$8 sps:$4 sm:$0xff]  }
 0x147   : > { %8127 = vmatprep.subr.bf16.mxu0 %v9548_v37  ;;  %v11585_v36 = vld [vmem:[%s11530_s16 + $0x8] sm:$0xff] }
 0x148   : > { %v11588_v37 = vld [vmem:[%s11530_s16 + $0x88] sm:$0xff] }
 0x149   : > { %7784 = vmatpush1.bf16.msra.mxu1 %v9550_v38  ;;  %v9632_v38 = vld [vmem:[%s11480_s9 + $0x174] ss:$8 sps:$4 sm:$0xff]  }
 0x14a   : > { %8128 = vmatpush1.bf16.msra.mxu0 %v9551_v39  ;;  %7785 = vmatprep.subr.bf16.mxu1 %v9552_v40  ;;  %v9635_v39 = vld [vmem:[%s11480_s9 + $0x974] ss:$8 sps:$4 sm:$0xff]   ;;  %v8800_v40 = vcombine.high %v11585_v36, %v11588_v37 }
 0x14b   : > { %8129 = vmatprep.subr.bf16.mxu0 %v9554_v41  ;;  %v11595_v41 = vld [vmem:[%s11530_s16 + $0x48] sm:$0xff] }
 0x14d   : > { %7786 = vmatpush1.bf16.msra.mxu1 %v9556_v42  ;;  %v11598_v42 = vld [vmem:[%s11530_s16 + $0xc8] sm:$0xff] }
 0x14e   : > { %8130 = vmatpush1.bf16.msra.mxu0 %v9557_v43  ;;  %7787 = vmatprep.subr.bf16.mxu1 %v9558_v44  ;;  %v8816_v43 = vcombine.high %v11595_v41, %v11598_v42  ;;  %v9630_v44 = vld [vmem:[%s11480_s9 + $0x170] ss:$8 sps:$4 sm:$0xff]  }
 0x14f   : > { %8131 = vmatprep.subr.bf16.mxu0 %v9560_v45  ;;  %v9633_v45 = vld [vmem:[%s11480_s9 + $0x970] ss:$8 sps:$4 sm:$0xff]  }
 0x151   : > { %7788 = vmatpush1.bf16.msra.mxu1 %v9562_v46  ;;  %v9638_v46 = vld [vmem:[%s11480_s9 + $0x184] ss:$8 sps:$4 sm:$0xff]  }
 0x152   : > { %8132 = vmatpush1.bf16.msra.mxu0 %v9563_v47  ;;  %7789 = vmatprep.subr.bf16.mxu1 %v9564_v50  ;;  %v9641_v47 = vld [vmem:[%s11480_s9 + $0x984] ss:$8 sps:$4 sm:$0xff]   ;;  %v9644_v50 = vld [vmem:[%s11480_s9 + $0x194] ss:$8 sps:$4 sm:$0xff]  }
 0x153   : > { %8133 = vmatprep.subr.bf16.mxu0 %v9566_v51  ;;  %v9647_v51 = vld [vmem:[%s11480_s9 + $0x994] ss:$8 sps:$4 sm:$0xff]  }
 0x155   : > { %7790 = vmatpush1.bf16.msra.mxu1 %v9568_v56  ;;  %v9648_v56 = vld [vmem:[%s11480_s9 + $0x1a0] ss:$8 sps:$4 sm:$0xff]  }
 0x156   : > { %8134 = vmatpush1.bf16.msra.mxu0 %v9569_v57  ;;  %7791 = vmatprep.subr.bf16.mxu1 %v9570_v58  ;;  %v9651_v57 = vld [vmem:[%s11480_s9 + $0x9a0] ss:$8 sps:$4 sm:$0xff]   ;;  %v9656_v58 = vld [vmem:[%s11480_s9 + $0x1b4] ss:$8 sps:$4 sm:$0xff]  }
 0x157   : > { %8135 = vmatprep.subr.bf16.mxu0 %v9572_v59  ;;  %v9659_v59 = vld [vmem:[%s11480_s9 + $0x9b4] ss:$8 sps:$4 sm:$0xff]  }
 0x159   : > { %7792 = vmatpush1.bf16.msra.mxu1 %v9574_v60  ;;  %v9654_v60 = vld [vmem:[%s11480_s9 + $0x1b0] ss:$8 sps:$4 sm:$0xff]  }
 0x15a   : > { %8136 = vmatpush1.bf16.msra.mxu0 %v9575_v61  ;;  %7793 = vmatprep.subr.bf16.mxu1 %v9576_v62  ;;  %v9657_v61 = vld [vmem:[%s11480_s9 + $0x9b0] ss:$8 sps:$4 sm:$0xff]   ;;  %v9662_v62 = vld [vmem:[%s11480_s9 + $0x1c4] ss:$8 sps:$4 sm:$0xff]  }
 0x15b   : > { %8137 = vmatprep.subr.bf16.mxu0 %v9578_v63  ;;  %v9665_v63 = vld [vmem:[%s11480_s9 + $0x9c4] ss:$8 sps:$4 sm:$0xff]  }
 0x15d   : > { %7794 = vmatpush1.bf16.msra.mxu1 %v9580_v0  ;;  %v9660_v0 = vld [vmem:[%s11480_s9 + $0x1c0] ss:$8 sps:$4 sm:$0xff]  }
 0x15e   : > { %8138 = vmatpush1.bf16.msra.mxu0 %v9581_v1  ;;  %7795 = vmatprep.subr.bf16.mxu1 %v9582_v2  ;;  %v9663_v1 = vld [vmem:[%s11480_s9 + $0x9c0] ss:$8 sps:$4 sm:$0xff]   ;;  %v9668_v2 = vld [vmem:[%s11480_s9 + $0x1d4] ss:$8 sps:$4 sm:$0xff]  }
 0x15f   : > { %8139 = vmatprep.subr.bf16.mxu0 %v9584_v3  ;;  %v9671_v3 = vld [vmem:[%s11480_s9 + $0x9d4] ss:$8 sps:$4 sm:$0xff]  }
 0x161   : > { %7796 = vmatpush1.bf16.msra.mxu1 %v9586_v4  ;;  %v9666_v4 = vld [vmem:[%s11480_s9 + $0x1d0] ss:$8 sps:$4 sm:$0xff]  }
 0x162   : > { %8140 = vmatpush1.bf16.msra.mxu0 %v9587_v5  ;;  %7808 = vmatprep.subr.bf16.mxu1 %v9590_v6  ;;  %v9669_v5 = vld [vmem:[%s11480_s9 + $0x9d0] ss:$8 sps:$4 sm:$0xff]   ;;  %v9674_v6 = vld [vmem:[%s11480_s9 + $0x1e4] ss:$8 sps:$4 sm:$0xff]  }
 0x163   : > { %8152 = vmatprep.subr.bf16.mxu0 %v9593_v7  ;;  %v9677_v7 = vld [vmem:[%s11480_s9 + $0x9e4] ss:$8 sps:$4 sm:$0xff]  }
 0x164   : > { %7798 = vmatmul.mubr.bf16.vlgmr.msra.gmra.mrb[0].mxu1 %v8797_v8  ;;  %v9672_v8 = vld [vmem:[%s11480_s9 + $0x1e0] ss:$8 sps:$4 sm:$0xff]  }
 0x165   : > { %8142 = vmatmul.mubr.bf16.vlgmr.msra.gmra.mrb[0].mxu0 %v8813_v10  ;;  %7809 = vmatpush1.bf16.msra.mxu1 %v9588_v9  ;;  %v9675_v9 = vld [vmem:[%s11480_s9 + $0x9e0] ss:$8 sps:$4 sm:$0xff]   ;;  %v9680_v10 = vld [vmem:[%s11480_s9 + $0x1f4] ss:$8 sps:$4 sm:$0xff]  }
 0x166   : > { %8153 = vmatpush1.bf16.msra.mxu0 %v9591_v11  ;;  %7810 = vmatprep.subr.bf16.mxu1 %v9596_v12  ;;  %v9683_v11 = vld [vmem:[%s11480_s9 + $0x9f4] ss:$8 sps:$4 sm:$0xff]   ;;  %v9678_v12 = vld [vmem:[%s11480_s9 + $0x1f0] ss:$8 sps:$4 sm:$0xff]  }
 0x167   : > { %8154 = vmatprep.subr.bf16.mxu0 %v9599_v13  ;;  %7840 = vmatprep.mubr.bf16.mxu1 %v8800_v40  ;;  %v9681_v13 = vld [vmem:[%s11480_s9 + $0x9f0] ss:$8 sps:$4 sm:$0xff]   ;;  %v9708_v40 = vld [vmem:[%s11480_s9 + $0x240] ss:$8 sps:$4 sm:$0xff]  }
 0x168   : > { %8184 = vmatprep.mubr.bf16.mxu0 %v8816_v43  ;;  %v9719_v43 = vld [vmem:[%s11480_s9 + $0xa54] ss:$8 sps:$4 sm:$0xff]  }
 0x169   : > { %7811 = vmatpush1.bf16.msra.mxu1 %v9594_v14  ;;  %v9686_v14 = vld [vmem:[%s11480_s9 + $0x204] ss:$8 sps:$4 sm:$0xff]  }
 0x16a   : > { %8155 = vmatpush1.bf16.msra.mxu0 %v9597_v15  ;;  %7812 = vmatprep.subr.bf16.mxu1 %v9602_v16  ;;  %v9689_v15 = vld [vmem:[%s11480_s9 + $0xa04] ss:$8 sps:$4 sm:$0xff]   ;;  %v8799_v16 = vcombine.low %v11585_v36, %v11588_v37  ;;  %v9702_v36 = vld [vmem:[%s11480_s9 + $0x230] ss:$8 sps:$4 sm:$0xff]  }
 0x16b   : > { %8156 = vmatprep.subr.bf16.mxu0 %v9605_v17  ;;  %v9684_v17 = vld [vmem:[%s11480_s9 + $0x200] ss:$8 sps:$4 sm:$0xff]   ;;  %v9705_v37 = vld [vmem:[%s11480_s9 + $0xa30] ss:$8 sps:$4 sm:$0xff]  }
 0x16d   : > { %7813 = vmatpush1.bf16.msra.mxu1 %v9600_v18  ;;  %v8815_v18 = vcombine.low %v11595_v41, %v11598_v42  ;;  %v9711_v41 = vld [vmem:[%s11480_s9 + $0xa40] ss:$8 sps:$4 sm:$0xff]   ;;  %v9716_v42 = vld [vmem:[%s11480_s9 + $0x254] ss:$8 sps:$4 sm:$0xff]  }
 0x16e   : > { %8157 = vmatpush1.bf16.msra.mxu0 %v9603_v19  ;;  %7814 = vmatprep.subr.bf16.mxu1 %v9608_v20  ;;  %v9687_v19 = vld [vmem:[%s11480_s9 + $0xa00] ss:$8 sps:$4 sm:$0xff]   ;;  %v9692_v20 = vld [vmem:[%s11480_s9 + $0x214] ss:$8 sps:$4 sm:$0xff]  }
 0x16f   : > { %8158 = vmatprep.subr.bf16.mxu0 %v9611_v21  ;;  %v9695_v21 = vld [vmem:[%s11480_s9 + $0xa14] ss:$8 sps:$4 sm:$0xff]  }
 0x171   : > { %7815 = vmatpush1.bf16.msra.mxu1 %v9606_v22  ;;  %v9690_v22 = vld [vmem:[%s11480_s9 + $0x210] ss:$8 sps:$4 sm:$0xff]  }
 0x172   : > { %8159 = vmatpush1.bf16.msra.mxu0 %v9609_v23  ;;  %7816 = vmatprep.subr.bf16.mxu1 %v9614_v24  ;;  %v9693_v23 = vld [vmem:[%s11480_s9 + $0xa10] ss:$8 sps:$4 sm:$0xff]  }
 0x173   : > { %8160 = vmatprep.subr.bf16.mxu0 %v9617_v25  ;;  %v11649_v24 = vld [vmem:[%s11530_s16 + $0x10] sm:$0xff] }
 0x174   : > { %v11652_v25 = vld [vmem:[%s11530_s16 + $0x90] sm:$0xff] }
 0x175   : > { %7817 = vmatpush1.bf16.msra.mxu1 %v9612_v26  ;;  %v9698_v26 = vld [vmem:[%s11480_s9 + $0x224] ss:$8 sps:$4 sm:$0xff]  }
 0x176   : > { %8161 = vmatpush1.bf16.msra.mxu0 %v9615_v27  ;;  %7818 = vmatprep.subr.bf16.mxu1 %v9620_v28  ;;  %v9701_v27 = vld [vmem:[%s11480_s9 + $0xa24] ss:$8 sps:$4 sm:$0xff]   ;;  %v8802_v28 = vcombine.high %v11649_v24, %v11652_v25 }
 0x177   : > { %8162 = vmatprep.subr.bf16.mxu0 %v9623_v29  ;;  %v11659_v29 = vld [vmem:[%s11530_s16 + $0x50] sm:$0xff] }
 0x179   : > { %7819 = vmatpush1.bf16.msra.mxu1 %v9618_v30  ;;  %v11662_v30 = vld [vmem:[%s11530_s16 + $0xd0] sm:$0xff] }
 0x17a   : > { %8163 = vmatpush1.bf16.msra.mxu0 %v9621_v31  ;;  %7820 = vmatprep.subr.bf16.mxu1 %v9626_v32  ;;  %v8818_v31 = vcombine.high %v11659_v29, %v11662_v30  ;;  %v9696_v32 = vld [vmem:[%s11480_s9 + $0x220] ss:$8 sps:$4 sm:$0xff]  }
 0x17b   : > { %8164 = vmatprep.subr.bf16.mxu0 %v9629_v33  ;;  %v9699_v33 = vld [vmem:[%s11480_s9 + $0xa20] ss:$8 sps:$4 sm:$0xff]  }
 0x17d   : > { %7821 = vmatpush1.bf16.msra.mxu1 %v9624_v34  ;;  %v9704_v34 = vld [vmem:[%s11480_s9 + $0x234] ss:$8 sps:$4 sm:$0xff]  }
 0x17e   : > { %8165 = vmatpush1.bf16.msra.mxu0 %v9627_v35  ;;  %7822 = vmatprep.subr.bf16.mxu1 %v9632_v38  ;;  %v9707_v35 = vld [vmem:[%s11480_s9 + $0xa34] ss:$8 sps:$4 sm:$0xff]   ;;  %v9710_v38 = vld [vmem:[%s11480_s9 + $0x244] ss:$8 sps:$4 sm:$0xff]  }
 0x17f   : > { %8166 = vmatprep.subr.bf16.mxu0 %v9635_v39  ;;  %v9713_v39 = vld [vmem:[%s11480_s9 + $0xa44] ss:$8 sps:$4 sm:$0xff]  }
 0x181   : > { %7823 = vmatpush1.bf16.msra.mxu1 %v9630_v44  ;;  %v9714_v44 = vld [vmem:[%s11480_s9 + $0x250] ss:$8 sps:$4 sm:$0xff]  }
 0x182   : > { %8167 = vmatpush1.bf16.msra.mxu0 %v9633_v45  ;;  %7824 = vmatprep.subr.bf16.mxu1 %v9638_v46  ;;  %v9717_v45 = vld [vmem:[%s11480_s9 + $0xa50] ss:$8 sps:$4 sm:$0xff]   ;;  %v9722_v46 = vld [vmem:[%s11480_s9 + $0x264] ss:$8 sps:$4 sm:$0xff]  }
 0x183   : > { %8168 = vmatprep.subr.bf16.mxu0 %v9641_v47  ;;  %v9725_v47 = vld [vmem:[%s11480_s9 + $0xa64] ss:$8 sps:$4 sm:$0xff]  }
 0x185   : > { %7825 = vmatpush1.bf16.msra.mxu1 %v9636_v48  ;;  %v9720_v48 = vld [vmem:[%s11480_s9 + $0x260] ss:$8 sps:$4 sm:$0xff]  }
 0x186   : > { %8169 = vmatpush1.bf16.msra.mxu0 %v9639_v49  ;;  %7826 = vmatprep.subr.bf16.mxu1 %v9644_v50  ;;  %v9723_v49 = vld [vmem:[%s11480_s9 + $0xa60] ss:$8 sps:$4 sm:$0xff]   ;;  %v9728_v50 = vld [vmem:[%s11480_s9 + $0x274] ss:$8 sps:$4 sm:$0xff]  }
 0x187   : > { %8170 = vmatprep.subr.bf16.mxu0 %v9647_v51  ;;  %v9731_v51 = vld [vmem:[%s11480_s9 + $0xa74] ss:$8 sps:$4 sm:$0xff]  }
 0x189   : > { %7827 = vmatpush1.bf16.msra.mxu1 %v9642_v52  ;;  %v9726_v52 = vld [vmem:[%s11480_s9 + $0x270] ss:$8 sps:$4 sm:$0xff]  }
 0x18a   : > { %8171 = vmatpush1.bf16.msra.mxu0 %v9645_v53  ;;  %7828 = vmatprep.subr.bf16.mxu1 %v9650_v54  ;;  %v9729_v53 = vld [vmem:[%s11480_s9 + $0xa70] ss:$8 sps:$4 sm:$0xff]   ;;  %v9734_v54 = vld [vmem:[%s11480_s9 + $0x284] ss:$8 sps:$4 sm:$0xff]  }
 0x18b   : > { %8172 = vmatprep.subr.bf16.mxu0 %v9653_v55  ;;  %v9737_v55 = vld [vmem:[%s11480_s9 + $0xa84] ss:$8 sps:$4 sm:$0xff]  }
 0x18d   : > { %7829 = vmatpush1.bf16.msra.mxu1 %v9648_v56  ;;  %v9732_v56 = vld [vmem:[%s11480_s9 + $0x280] ss:$8 sps:$4 sm:$0xff]  }
 0x18e   : > { %8173 = vmatpush1.bf16.msra.mxu0 %v9651_v57  ;;  %7830 = vmatprep.subr.bf16.mxu1 %v9656_v58  ;;  %v9735_v57 = vld [vmem:[%s11480_s9 + $0xa80] ss:$8 sps:$4 sm:$0xff]   ;;  %v9740_v58 = vld [vmem:[%s11480_s9 + $0x294] ss:$8 sps:$4 sm:$0xff]  }
 0x18f   : > { %8174 = vmatprep.subr.bf16.mxu0 %v9659_v59  ;;  %v9743_v59 = vld [vmem:[%s11480_s9 + $0xa94] ss:$8 sps:$4 sm:$0xff]  }
 0x191   : > { %7831 = vmatpush1.bf16.msra.mxu1 %v9654_v60  ;;  %v9738_v60 = vld [vmem:[%s11480_s9 + $0x290] ss:$8 sps:$4 sm:$0xff]  }
 0x192   : > { %8175 = vmatpush1.bf16.msra.mxu0 %v9657_v61  ;;  %7832 = vmatprep.subr.bf16.mxu1 %v9662_v62  ;;  %v9741_v61 = vld [vmem:[%s11480_s9 + $0xa90] ss:$8 sps:$4 sm:$0xff]   ;;  %v9746_v62 = vld [vmem:[%s11480_s9 + $0x2a4] ss:$8 sps:$4 sm:$0xff]  }
 0x193   : > { %8176 = vmatprep.subr.bf16.mxu0 %v9665_v63  ;;  %v9749_v63 = vld [vmem:[%s11480_s9 + $0xaa4] ss:$8 sps:$4 sm:$0xff]  }
 0x195   : > { %7833 = vmatpush1.bf16.msra.mxu1 %v9660_v0  ;;  %v9744_v0 = vld [vmem:[%s11480_s9 + $0x2a0] ss:$8 sps:$4 sm:$0xff]  }
 0x196   : > { %8177 = vmatpush1.bf16.msra.mxu0 %v9663_v1  ;;  %7834 = vmatprep.subr.bf16.mxu1 %v9668_v2  ;;  %v9747_v1 = vld [vmem:[%s11480_s9 + $0xaa0] ss:$8 sps:$4 sm:$0xff]   ;;  %v9752_v2 = vld [vmem:[%s11480_s9 + $0x2b4] ss:$8 sps:$4 sm:$0xff]  }
 0x197   : > { %8178 = vmatprep.subr.bf16.mxu0 %v9671_v3  ;;  %v9755_v3 = vld [vmem:[%s11480_s9 + $0xab4] ss:$8 sps:$4 sm:$0xff]  }
 0x199   : > { %7835 = vmatpush1.bf16.msra.mxu1 %v9666_v4  ;;  %v9750_v4 = vld [vmem:[%s11480_s9 + $0x2b0] ss:$8 sps:$4 sm:$0xff]  }
 0x19a   : > { %8179 = vmatpush1.bf16.msra.mxu0 %v9669_v5  ;;  %7836 = vmatprep.subr.bf16.mxu1 %v9674_v6  ;;  %v9753_v5 = vld [vmem:[%s11480_s9 + $0xab0] ss:$8 sps:$4 sm:$0xff]   ;;  %v9758_v6 = vld [vmem:[%s11480_s9 + $0x2c4] ss:$8 sps:$4 sm:$0xff]  }
 0x19b   : > { %8180 = vmatprep.subr.bf16.mxu0 %v9677_v7  ;;  %v9761_v7 = vld [vmem:[%s11480_s9 + $0xac4] ss:$8 sps:$4 sm:$0xff]  }
 0x19d   : > { %7837 = vmatpush1.bf16.msra.mxu1 %v9672_v8  ;;  %v9756_v8 = vld [vmem:[%s11480_s9 + $0x2c0] ss:$8 sps:$4 sm:$0xff]  }
 0x19e   : > { %8181 = vmatpush1.bf16.msra.mxu0 %v9675_v9  ;;  %7838 = vmatprep.subr.bf16.mxu1 %v9680_v10  ;;  %v9759_v9 = vld [vmem:[%s11480_s9 + $0xac0] ss:$8 sps:$4 sm:$0xff]   ;;  %v9764_v10 = vld [vmem:[%s11480_s9 + $0x2d4] ss:$8 sps:$4 sm:$0xff]  }
 0x19f   : > { %8182 = vmatprep.subr.bf16.mxu0 %v9683_v11  ;;  %v9767_v11 = vld [vmem:[%s11480_s9 + $0xad4] ss:$8 sps:$4 sm:$0xff]  }
 0x1a1   : > { %7839 = vmatpush1.bf16.msra.mxu1 %v9678_v12  ;;  %v9762_v12 = vld [vmem:[%s11480_s9 + $0x2d0] ss:$8 sps:$4 sm:$0xff]  }
 0x1a2   : > { %8183 = vmatpush1.bf16.msra.mxu0 %v9681_v13  ;;  %7851 = vmatprep.subr.bf16.mxu1 %v9686_v14  ;;  %v9765_v13 = vld [vmem:[%s11480_s9 + $0xad0] ss:$8 sps:$4 sm:$0xff]   ;;  %v9770_v14 = vld [vmem:[%s11480_s9 + $0x2e4] ss:$8 sps:$4 sm:$0xff]  }
 0x1a3   : > { %8195 = vmatprep.subr.bf16.mxu0 %v9689_v15  ;;  %v9773_v15 = vld [vmem:[%s11480_s9 + $0xae4] ss:$8 sps:$4 sm:$0xff]  }
 0x1a4   : > { %7841 = vmatmul.mubr.bf16.vlgmr.msra.gmra.mrb[0].mxu1 %v8799_v16  ;;  %v9768_v16 = vld [vmem:[%s11480_s9 + $0x2e0] ss:$8 sps:$4 sm:$0xff]  }
 0x1a5   : > { %8185 = vmatmul.mubr.bf16.vlgmr.msra.gmra.mrb[0].mxu0 %v8815_v18  ;;  %7852 = vmatpush1.bf16.msra.mxu1 %v9684_v17  ;;  %v9771_v17 = vld [vmem:[%s11480_s9 + $0xae0] ss:$8 sps:$4 sm:$0xff]   ;;  %v9776_v18 = vld [vmem:[%s11480_s9 + $0x2f4] ss:$8 sps:$4 sm:$0xff]  }
 0x1a6   : > { %8196 = vmatpush1.bf16.msra.mxu0 %v9687_v19  ;;  %7853 = vmatprep.subr.bf16.mxu1 %v9692_v20  ;;  %v9779_v19 = vld [vmem:[%s11480_s9 + $0xaf4] ss:$8 sps:$4 sm:$0xff]   ;;  %v9774_v20 = vld [vmem:[%s11480_s9 + $0x2f0] ss:$8 sps:$4 sm:$0xff]  }
 0x1a7   : > { %8197 = vmatprep.subr.bf16.mxu0 %v9695_v21  ;;  %7883 = vmatprep.mubr.bf16.mxu1 %v8802_v28  ;;  %v9777_v21 = vld [vmem:[%s11480_s9 + $0xaf0] ss:$8 sps:$4 sm:$0xff]  }
 0x1a8   : > { %8227 = vmatprep.mubr.bf16.mxu0 %v8818_v31  ;;  %v11725_v28 = vld [vmem:[%s11530_s16 + $0x18] sm:$0xff] }
 0x1a9   : > { %7854 = vmatpush1.bf16.msra.mxu1 %v9690_v22  ;;  %v9782_v22 = vld [vmem:[%s11480_s9 + $0x304] ss:$8 sps:$4 sm:$0xff]   ;;  %v11728_v31 = vld [vmem:[%s11530_s16 + $0x98] sm:$0xff] }
 0x1aa   : > { %8198 = vmatpush1.bf16.msra.mxu0 %v9693_v23  ;;  %7855 = vmatprep.subr.bf16.mxu1 %v9698_v26  ;;  %v9785_v23 = vld [vmem:[%s11480_s9 + $0xb04] ss:$8 sps:$4 sm:$0xff]   ;;  %v9780_v26 = vld [vmem:[%s11480_s9 + $0x300] ss:$8 sps:$4 sm:$0xff]  }
 0x1ab   : > { %8199 = vmatprep.subr.bf16.mxu0 %v9701_v27  ;;  %v9783_v27 = vld [vmem:[%s11480_s9 + $0xb00] ss:$8 sps:$4 sm:$0xff]  }
 0x1ad   : > { %7856 = vmatpush1.bf16.msra.mxu1 %v9696_v32  ;;  %v8801_v32 = vcombine.low %v11649_v24, %v11652_v25  ;;  %v8804_v24 = vcombine.high %v11725_v28, %v11728_v31 }
 0x1ae   : > { %8200 = vmatpush1.bf16.msra.mxu0 %v9699_v33  ;;  %7857 = vmatprep.subr.bf16.mxu1 %v9704_v34  ;;  %v8817_v33 = vcombine.low %v11659_v29, %v11662_v30  ;;  %v11735_v34 = vld [vmem:[%s11530_s16 + $0x58] sm:$0xff] }
 0x1af   : > { %8201 = vmatprep.subr.bf16.mxu0 %v9707_v35  ;;  %v11738_v35 = vld [vmem:[%s11530_s16 + $0xd8] sm:$0xff] }
 0x1b0   : > { %v8820_v25 = vcombine.high %v11735_v34, %v11738_v35  ;;  %v9786_v29 = vld [vmem:[%s11480_s9 + $0x310] ss:$8 sps:$4 sm:$0xff]  }
 0x1b1   : > { %7858 = vmatpush1.bf16.msra.mxu1 %v9702_v36  ;;  %v9788_v36 = vld [vmem:[%s11480_s9 + $0x314] ss:$8 sps:$4 sm:$0xff]   ;;  %v9789_v30 = vld [vmem:[%s11480_s9 + $0xb10] ss:$8 sps:$4 sm:$0xff]  }
 0x1b2   : > { %8202 = vmatpush1.bf16.msra.mxu0 %v9705_v37  ;;  %7859 = vmatprep.subr.bf16.mxu1 %v9710_v38  ;;  %v9791_v37 = vld [vmem:[%s11480_s9 + $0xb14] ss:$8 sps:$4 sm:$0xff]   ;;  %v9794_v38 = vld [vmem:[%s11480_s9 + $0x324] ss:$8 sps:$4 sm:$0xff]  }
 0x1b3   : > { %8203 = vmatprep.subr.bf16.mxu0 %v9713_v39  ;;  %v9797_v39 = vld [vmem:[%s11480_s9 + $0xb24] ss:$8 sps:$4 sm:$0xff]  }
 0x1b5   : > { %7860 = vmatpush1.bf16.msra.mxu1 %v9708_v40  ;;  %v9792_v40 = vld [vmem:[%s11480_s9 + $0x320] ss:$8 sps:$4 sm:$0xff]  }
 0x1b6   : > { %8204 = vmatpush1.bf16.msra.mxu0 %v9711_v41  ;;  %7861 = vmatprep.subr.bf16.mxu1 %v9716_v42  ;;  %v9795_v41 = vld [vmem:[%s11480_s9 + $0xb20] ss:$8 sps:$4 sm:$0xff]   ;;  %v9800_v42 = vld [vmem:[%s11480_s9 + $0x334] ss:$8 sps:$4 sm:$0xff]  }
 0x1b7   : > { %8205 = vmatprep.subr.bf16.mxu0 %v9719_v43  ;;  %v9803_v43 = vld [vmem:[%s11480_s9 + $0xb34] ss:$8 sps:$4 sm:$0xff]  }
 0x1b9   : > { %7862 = vmatpush1.bf16.msra.mxu1 %v9714_v44  ;;  %v9798_v44 = vld [vmem:[%s11480_s9 + $0x330] ss:$8 sps:$4 sm:$0xff]  }
 0x1ba   : > { %8206 = vmatpush1.bf16.msra.mxu0 %v9717_v45  ;;  %7863 = vmatprep.subr.bf16.mxu1 %v9722_v46  ;;  %v9801_v45 = vld [vmem:[%s11480_s9 + $0xb30] ss:$8 sps:$4 sm:$0xff]   ;;  %v9806_v46 = vld [vmem:[%s11480_s9 + $0x344] ss:$8 sps:$4 sm:$0xff]  }
 0x1bb   : > { %8207 = vmatprep.subr.bf16.mxu0 %v9725_v47  ;;  %v9809_v47 = vld [vmem:[%s11480_s9 + $0xb44] ss:$8 sps:$4 sm:$0xff]  }
 0x1bd   : > { %7864 = vmatpush1.bf16.msra.mxu1 %v9720_v48  ;;  %v9804_v48 = vld [vmem:[%s11480_s9 + $0x340] ss:$8 sps:$4 sm:$0xff]  }
 0x1be   : > { %8208 = vmatpush1.bf16.msra.mxu0 %v9723_v49  ;;  %7865 = vmatprep.subr.bf16.mxu1 %v9728_v50  ;;  %v9807_v49 = vld [vmem:[%s11480_s9 + $0xb40] ss:$8 sps:$4 sm:$0xff]   ;;  %v9812_v50 = vld [vmem:[%s11480_s9 + $0x354] ss:$8 sps:$4 sm:$0xff]  }
 0x1bf   : > { %8209 = vmatprep.subr.bf16.mxu0 %v9731_v51  ;;  %v9815_v51 = vld [vmem:[%s11480_s9 + $0xb54] ss:$8 sps:$4 sm:$0xff]  }
 0x1c1   : > { %7866 = vmatpush1.bf16.msra.mxu1 %v9726_v52  ;;  %v9810_v52 = vld [vmem:[%s11480_s9 + $0x350] ss:$8 sps:$4 sm:$0xff]  }
 0x1c2   : > { %8210 = vmatpush1.bf16.msra.mxu0 %v9729_v53  ;;  %7867 = vmatprep.subr.bf16.mxu1 %v9734_v54  ;;  %v9813_v53 = vld [vmem:[%s11480_s9 + $0xb50] ss:$8 sps:$4 sm:$0xff]   ;;  %v9818_v54 = vld [vmem:[%s11480_s9 + $0x364] ss:$8 sps:$4 sm:$0xff]  }
 0x1c3   : > { %8211 = vmatprep.subr.bf16.mxu0 %v9737_v55  ;;  %v9821_v55 = vld [vmem:[%s11480_s9 + $0xb64] ss:$8 sps:$4 sm:$0xff]  }
 0x1c5   : > { %7868 = vmatpush1.bf16.msra.mxu1 %v9732_v56  ;;  %v9816_v56 = vld [vmem:[%s11480_s9 + $0x360] ss:$8 sps:$4 sm:$0xff]  }
 0x1c6   : > { %8212 = vmatpush1.bf16.msra.mxu0 %v9735_v57  ;;  %7869 = vmatprep.subr.bf16.mxu1 %v9740_v58  ;;  %v9819_v57 = vld [vmem:[%s11480_s9 + $0xb60] ss:$8 sps:$4 sm:$0xff]   ;;  %v9824_v58 = vld [vmem:[%s11480_s9 + $0x374] ss:$8 sps:$4 sm:$0xff]  }
 0x1c7   : > { %8213 = vmatprep.subr.bf16.mxu0 %v9743_v59  ;;  %v9827_v59 = vld [vmem:[%s11480_s9 + $0xb74] ss:$8 sps:$4 sm:$0xff]  }
 0x1c9   : > { %7870 = vmatpush1.bf16.msra.mxu1 %v9738_v60  ;;  %v9822_v60 = vld [vmem:[%s11480_s9 + $0x370] ss:$8 sps:$4 sm:$0xff]  }
 0x1ca   : > { %8214 = vmatpush1.bf16.msra.mxu0 %v9741_v61  ;;  %7871 = vmatprep.subr.bf16.mxu1 %v9746_v62  ;;  %v9825_v61 = vld [vmem:[%s11480_s9 + $0xb70] ss:$8 sps:$4 sm:$0xff]   ;;  %v9830_v62 = vld [vmem:[%s11480_s9 + $0x384] ss:$8 sps:$4 sm:$0xff]  }
 0x1cb   : > { %8215 = vmatprep.subr.bf16.mxu0 %v9749_v63  ;;  %v9833_v63 = vld [vmem:[%s11480_s9 + $0xb84] ss:$8 sps:$4 sm:$0xff]  }
 0x1cd   : > { %7872 = vmatpush1.bf16.msra.mxu1 %v9744_v0  ;;  %v9828_v0 = vld [vmem:[%s11480_s9 + $0x380] ss:$8 sps:$4 sm:$0xff]  }
 0x1ce   : > { %8216 = vmatpush1.bf16.msra.mxu0 %v9747_v1  ;;  %7873 = vmatprep.subr.bf16.mxu1 %v9752_v2  ;;  %v9831_v1 = vld [vmem:[%s11480_s9 + $0xb80] ss:$8 sps:$4 sm:$0xff]   ;;  %v9836_v2 = vld [vmem:[%s11480_s9 + $0x394] ss:$8 sps:$4 sm:$0xff]  }
 0x1cf   : > { %8217 = vmatprep.subr.bf16.mxu0 %v9755_v3  ;;  %v9839_v3 = vld [vmem:[%s11480_s9 + $0xb94] ss:$8 sps:$4 sm:$0xff]  }
 0x1d1   : > { %7874 = vmatpush1.bf16.msra.mxu1 %v9750_v4  ;;  %v9834_v4 = vld [vmem:[%s11480_s9 + $0x390] ss:$8 sps:$4 sm:$0xff]  }
 0x1d2   : > { %8218 = vmatpush1.bf16.msra.mxu0 %v9753_v5  ;;  %7875 = vmatprep.subr.bf16.mxu1 %v9758_v6  ;;  %v9837_v5 = vld [vmem:[%s11480_s9 + $0xb90] ss:$8 sps:$4 sm:$0xff]   ;;  %v9842_v6 = vld [vmem:[%s11480_s9 + $0x3a4] ss:$8 sps:$4 sm:$0xff]  }
 0x1d3   : > { %8219 = vmatprep.subr.bf16.mxu0 %v9761_v7  ;;  %v9845_v7 = vld [vmem:[%s11480_s9 + $0xba4] ss:$8 sps:$4 sm:$0xff]  }
 0x1d5   : > { %7876 = vmatpush1.bf16.msra.mxu1 %v9756_v8  ;;  %v9840_v8 = vld [vmem:[%s11480_s9 + $0x3a0] ss:$8 sps:$4 sm:$0xff]  }
 0x1d6   : > { %8220 = vmatpush1.bf16.msra.mxu0 %v9759_v9  ;;  %7877 = vmatprep.subr.bf16.mxu1 %v9764_v10  ;;  %v9843_v9 = vld [vmem:[%s11480_s9 + $0xba0] ss:$8 sps:$4 sm:$0xff]   ;;  %v9848_v10 = vld [vmem:[%s11480_s9 + $0x3b4] ss:$8 sps:$4 sm:$0xff]  }
 0x1d7   : > { %8221 = vmatprep.subr.bf16.mxu0 %v9767_v11  ;;  %v9851_v11 = vld [vmem:[%s11480_s9 + $0xbb4] ss:$8 sps:$4 sm:$0xff]  }
 0x1d9   : > { %7878 = vmatpush1.bf16.msra.mxu1 %v9762_v12  ;;  %v9846_v12 = vld [vmem:[%s11480_s9 + $0x3b0] ss:$8 sps:$4 sm:$0xff]  }
 0x1da   : > { %8222 = vmatpush1.bf16.msra.mxu0 %v9765_v13  ;;  %7879 = vmatprep.subr.bf16.mxu1 %v9770_v14  ;;  %v9849_v13 = vld [vmem:[%s11480_s9 + $0xbb0] ss:$8 sps:$4 sm:$0xff]   ;;  %v9854_v14 = vld [vmem:[%s11480_s9 + $0x3c4] ss:$8 sps:$4 sm:$0xff]  }
 0x1db   : > { %8223 = vmatprep.subr.bf16.mxu0 %v9773_v15  ;;  %v9857_v15 = vld [vmem:[%s11480_s9 + $0xbc4] ss:$8 sps:$4 sm:$0xff]  }
 0x1dd   : > { %7880 = vmatpush1.bf16.msra.mxu1 %v9768_v16  ;;  %v9852_v16 = vld [vmem:[%s11480_s9 + $0x3c0] ss:$8 sps:$4 sm:$0xff]  }
 0x1de   : > { %8224 = vmatpush1.bf16.msra.mxu0 %v9771_v17  ;;  %7881 = vmatprep.subr.bf16.mxu1 %v9776_v18  ;;  %v9855_v17 = vld [vmem:[%s11480_s9 + $0xbc0] ss:$8 sps:$4 sm:$0xff]   ;;  %v9860_v18 = vld [vmem:[%s11480_s9 + $0x3d4] ss:$8 sps:$4 sm:$0xff]  }
 0x1df   : > { %8225 = vmatprep.subr.bf16.mxu0 %v9779_v19  ;;  %v9863_v19 = vld [vmem:[%s11480_s9 + $0xbd4] ss:$8 sps:$4 sm:$0xff]  }
 0x1e1   : > { %7882 = vmatpush1.bf16.msra.mxu1 %v9774_v20  ;;  %v9858_v20 = vld [vmem:[%s11480_s9 + $0x3d0] ss:$8 sps:$4 sm:$0xff]  }
 0x1e2   : > { %8226 = vmatpush1.bf16.msra.mxu0 %v9777_v21  ;;  %7894 = vmatprep.subr.bf16.mxu1 %v9782_v22  ;;  %v9861_v21 = vld [vmem:[%s11480_s9 + $0xbd0] ss:$8 sps:$4 sm:$0xff]   ;;  %v9866_v22 = vld [vmem:[%s11480_s9 + $0x3e4] ss:$8 sps:$4 sm:$0xff]  }
 0x1e3   : > { %8238 = vmatprep.subr.bf16.mxu0 %v9785_v23  ;;  %v9869_v23 = vld [vmem:[%s11480_s9 + $0xbe4] ss:$8 sps:$4 sm:$0xff]  }
 0x1e4   : > { %7884 = vmatmul.mubr.bf16.vlgmr.msra.gmra.mrb[0].mxu1 %v8801_v32  ;;  %v9872_v32 = vld [vmem:[%s11480_s9 + $0x3f4] ss:$8 sps:$4 sm:$0xff]  }
 0x1e5   : > { %8228 = vmatmul.mubr.bf16.vlgmr.msra.gmra.mrb[0].mxu0 %v8817_v33  ;;  %7895 = vmatpush1.bf16.msra.mxu1 %v9780_v26  ;;  %v9864_v26 = vld [vmem:[%s11480_s9 + $0x3e0] ss:$8 sps:$4 sm:$0xff]   ;;  %v9875_v33 = vld [vmem:[%s11480_s9 + $0xbf4] ss:$8 sps:$4 sm:$0xff]  }
 0x1e6   : > { %8239 = vmatpush1.bf16.msra.mxu0 %v9783_v27  ;;  %7896 = vmatprep.subr.bf16.mxu1 %v9788_v36  ;;  %v9867_v27 = vld [vmem:[%s11480_s9 + $0xbe0] ss:$8 sps:$4 sm:$0xff]   ;;  %v9870_v36 = vld [vmem:[%s11480_s9 + $0x3f0] ss:$8 sps:$4 sm:$0xff]  }
 0x1e7   : > { %8240 = vmatprep.subr.bf16.mxu0 %v9791_v37  ;;  %7926 = vmatprep.mubr.bf16.mxu1 %v8804_v24  ;;  %v9873_v37 = vld [vmem:[%s11480_s9 + $0xbf0] ss:$8 sps:$4 sm:$0xff]   ;;  %v9878_v24 = vld [vmem:[%s11480_s9 + $0x404] ss:$8 sps:$4 sm:$0xff]  }
 0x1e8   : > { %8270 = vmatprep.mubr.bf16.mxu0 %v8820_v25  ;;  %v9881_v25 = vld [vmem:[%s11480_s9 + $0xc04] ss:$8 sps:$4 sm:$0xff]  }
 0x1e9   : > { %7897 = vmatpush1.bf16.msra.mxu1 %v9786_v29  ;;  %v9876_v29 = vld [vmem:[%s11480_s9 + $0x400] ss:$8 sps:$4 sm:$0xff]  }
 0x1ea   : > { %8241 = vmatpush1.bf16.msra.mxu0 %v9789_v30  ;;  %7898 = vmatprep.subr.bf16.mxu1 %v9794_v38  ;;  %v9879_v30 = vld [vmem:[%s11480_s9 + $0xc00] ss:$8 sps:$4 sm:$0xff]  }
 0x1eb   : > { %8242 = vmatprep.subr.bf16.mxu0 %v9797_v39  ;;  %v11809_v38 = vld [vmem:[%s11530_s16 + $0x20] sm:$0xff] }
 0x1ec   : > { %v11812_v39 = vld [vmem:[%s11530_s16 + $0xa0] sm:$0xff] }
 0x1ed   : > { %7899 = vmatpush1.bf16.msra.mxu1 %v9792_v40  ;;  %v8803_v40 = vcombine.low %v11725_v28, %v11728_v31  ;;  %v9882_v31 = vld [vmem:[%s11480_s9 + $0x410] ss:$8 sps:$4 sm:$0xff]  }
 0x1ee   : > { %8243 = vmatpush1.bf16.msra.mxu0 %v9795_v41  ;;  %7900 = vmatprep.subr.bf16.mxu1 %v9800_v42  ;;  %v8819_v41 = vcombine.low %v11735_v34, %v11738_v35  ;;  %v11819_v42 = vld [vmem:[%s11530_s16 + $0x60] sm:$0xff]  ;;  %v9885_v34 = vld [vmem:[%s11480_s9 + $0xc10] ss:$8 sps:$4 sm:$0xff]  }
 0x1ef   : > { %8244 = vmatprep.subr.bf16.mxu0 %v9803_v43  ;;  %v11822_v43 = vld [vmem:[%s11530_s16 + $0xe0] sm:$0xff] }
 0x1f0   : > { %v8822_v28 = vcombine.high %v11819_v42, %v11822_v43  ;;  %v9890_v35 = vld [vmem:[%s11480_s9 + $0x424] ss:$8 sps:$4 sm:$0xff]  }
 0x1f1   : > { %7901 = vmatpush1.bf16.msra.mxu1 %v9798_v44  ;;  %v9884_v44 = vld [vmem:[%s11480_s9 + $0x414] ss:$8 sps:$4 sm:$0xff]  }
 0x1f2   : > { %8245 = vmatpush1.bf16.msra.mxu0 %v9801_v45  ;;  %7902 = vmatprep.subr.bf16.mxu1 %v9806_v46  ;;  %v9887_v45 = vld [vmem:[%s11480_s9 + $0xc14] ss:$8 sps:$4 sm:$0xff]   ;;  %v8806_v46 = vcombine.high %v11809_v38, %v11812_v39 }
 0x1f3   : > { %8246 = vmatprep.subr.bf16.mxu0 %v9809_v47  ;;  %v9893_v47 = vld [vmem:[%s11480_s9 + $0xc24] ss:$8 sps:$4 sm:$0xff]  }
 0x1f5   : > { %7903 = vmatpush1.bf16.msra.mxu1 %v9804_v48  ;;  %v9888_v48 = vld [vmem:[%s11480_s9 + $0x420] ss:$8 sps:$4 sm:$0xff]  }
 0x1f6   : > { %8247 = vmatpush1.bf16.msra.mxu0 %v9807_v49  ;;  %7904 = vmatprep.subr.bf16.mxu1 %v9812_v50  ;;  %v9891_v49 = vld [vmem:[%s11480_s9 + $0xc20] ss:$8 sps:$4 sm:$0xff]   ;;  %v9896_v50 = vld [vmem:[%s11480_s9 + $0x434] ss:$8 sps:$4 sm:$0xff]  }
 0x1f7   : > { %8248 = vmatprep.subr.bf16.mxu0 %v9815_v51  ;;  %v9899_v51 = vld [vmem:[%s11480_s9 + $0xc34] ss:$8 sps:$4 sm:$0xff]  }
 0x1f9   : > { %7905 = vmatpush1.bf16.msra.mxu1 %v9810_v52  ;;  %v9894_v52 = vld [vmem:[%s11480_s9 + $0x430] ss:$8 sps:$4 sm:$0xff]  }
 0x1fa   : > { %8249 = vmatpush1.bf16.msra.mxu0 %v9813_v53  ;;  %7906 = vmatprep.subr.bf16.mxu1 %v9818_v54  ;;  %v9897_v53 = vld [vmem:[%s11480_s9 + $0xc30] ss:$8 sps:$4 sm:$0xff]   ;;  %v9902_v54 = vld [vmem:[%s11480_s9 + $0x444] ss:$8 sps:$4 sm:$0xff]  }
 0x1fb   : > { %8250 = vmatprep.subr.bf16.mxu0 %v9821_v55  ;;  %v9905_v55 = vld [vmem:[%s11480_s9 + $0xc44] ss:$8 sps:$4 sm:$0xff]  }
 0x1fd   : > { %7907 = vmatpush1.bf16.msra.mxu1 %v9816_v56  ;;  %v9900_v56 = vld [vmem:[%s11480_s9 + $0x440] ss:$8 sps:$4 sm:$0xff]  }
 0x1fe   : > { %8251 = vmatpush1.bf16.msra.mxu0 %v9819_v57  ;;  %7908 = vmatprep.subr.bf16.mxu1 %v9824_v58  ;;  %v9903_v57 = vld [vmem:[%s11480_s9 + $0xc40] ss:$8 sps:$4 sm:$0xff]   ;;  %v9908_v58 = vld [vmem:[%s11480_s9 + $0x454] ss:$8 sps:$4 sm:$0xff]  }
 0x1ff   : > { %8252 = vmatprep.subr.bf16.mxu0 %v9827_v59  ;;  %v9911_v59 = vld [vmem:[%s11480_s9 + $0xc54] ss:$8 sps:$4 sm:$0xff]  }
 0x201   : > { %7909 = vmatpush1.bf16.msra.mxu1 %v9822_v60  ;;  %v9906_v60 = vld [vmem:[%s11480_s9 + $0x450] ss:$8 sps:$4 sm:$0xff]  }
 0x202   : > { %8253 = vmatpush1.bf16.msra.mxu0 %v9825_v61  ;;  %7910 = vmatprep.subr.bf16.mxu1 %v9830_v62  ;;  %v9909_v61 = vld [vmem:[%s11480_s9 + $0xc50] ss:$8 sps:$4 sm:$0xff]   ;;  %v9914_v62 = vld [vmem:[%s11480_s9 + $0x464] ss:$8 sps:$4 sm:$0xff]  }
 0x203   : > { %8254 = vmatprep.subr.bf16.mxu0 %v9833_v63  ;;  %v9917_v63 = vld [vmem:[%s11480_s9 + $0xc64] ss:$8 sps:$4 sm:$0xff]  }
 0x205   : > { %7911 = vmatpush1.bf16.msra.mxu1 %v9828_v0  ;;  %v9912_v0 = vld [vmem:[%s11480_s9 + $0x460] ss:$8 sps:$4 sm:$0xff]  }
 0x206   : > { %8255 = vmatpush1.bf16.msra.mxu0 %v9831_v1  ;;  %7912 = vmatprep.subr.bf16.mxu1 %v9836_v2  ;;  %v9915_v1 = vld [vmem:[%s11480_s9 + $0xc60] ss:$8 sps:$4 sm:$0xff]   ;;  %v9920_v2 = vld [vmem:[%s11480_s9 + $0x474] ss:$8 sps:$4 sm:$0xff]  }
 0x207   : > { %8256 = vmatprep.subr.bf16.mxu0 %v9839_v3  ;;  %v9923_v3 = vld [vmem:[%s11480_s9 + $0xc74] ss:$8 sps:$4 sm:$0xff]  }
 0x209   : > { %7913 = vmatpush1.bf16.msra.mxu1 %v9834_v4  ;;  %v9918_v4 = vld [vmem:[%s11480_s9 + $0x470] ss:$8 sps:$4 sm:$0xff]  }
 0x20a   : > { %8257 = vmatpush1.bf16.msra.mxu0 %v9837_v5  ;;  %7914 = vmatprep.subr.bf16.mxu1 %v9842_v6  ;;  %v9921_v5 = vld [vmem:[%s11480_s9 + $0xc70] ss:$8 sps:$4 sm:$0xff]   ;;  %v9926_v6 = vld [vmem:[%s11480_s9 + $0x484] ss:$8 sps:$4 sm:$0xff]  }
 0x20b   : > { %8258 = vmatprep.subr.bf16.mxu0 %v9845_v7  ;;  %v9929_v7 = vld [vmem:[%s11480_s9 + $0xc84] ss:$8 sps:$4 sm:$0xff]  }
 0x20d   : > { %7915 = vmatpush1.bf16.msra.mxu1 %v9840_v8  ;;  %v9924_v8 = vld [vmem:[%s11480_s9 + $0x480] ss:$8 sps:$4 sm:$0xff]  }
 0x20e   : > { %8259 = vmatpush1.bf16.msra.mxu0 %v9843_v9  ;;  %7916 = vmatprep.subr.bf16.mxu1 %v9848_v10  ;;  %v9927_v9 = vld [vmem:[%s11480_s9 + $0xc80] ss:$8 sps:$4 sm:$0xff]   ;;  %v9932_v10 = vld [vmem:[%s11480_s9 + $0x494] ss:$8 sps:$4 sm:$0xff]  }
 0x20f   : > { %8260 = vmatprep.subr.bf16.mxu0 %v9851_v11  ;;  %v9935_v11 = vld [vmem:[%s11480_s9 + $0xc94] ss:$8 sps:$4 sm:$0xff]  }
 0x211   : > { %7917 = vmatpush1.bf16.msra.mxu1 %v9846_v12  ;;  %v9930_v12 = vld [vmem:[%s11480_s9 + $0x490] ss:$8 sps:$4 sm:$0xff]  }
 0x212   : > { %8261 = vmatpush1.bf16.msra.mxu0 %v9849_v13  ;;  %7918 = vmatprep.subr.bf16.mxu1 %v9854_v14  ;;  %v9933_v13 = vld [vmem:[%s11480_s9 + $0xc90] ss:$8 sps:$4 sm:$0xff]   ;;  %v9938_v14 = vld [vmem:[%s11480_s9 + $0x4a4] ss:$8 sps:$4 sm:$0xff]  }
 0x213   : > { %8262 = vmatprep.subr.bf16.mxu0 %v9857_v15  ;;  %v9941_v15 = vld [vmem:[%s11480_s9 + $0xca4] ss:$8 sps:$4 sm:$0xff]  }
 0x215   : > { %7919 = vmatpush1.bf16.msra.mxu1 %v9852_v16  ;;  %v9936_v16 = vld [vmem:[%s11480_s9 + $0x4a0] ss:$8 sps:$4 sm:$0xff]  }
 0x216   : > { %8263 = vmatpush1.bf16.msra.mxu0 %v9855_v17  ;;  %7920 = vmatprep.subr.bf16.mxu1 %v9860_v18  ;;  %v9939_v17 = vld [vmem:[%s11480_s9 + $0xca0] ss:$8 sps:$4 sm:$0xff]   ;;  %v9944_v18 = vld [vmem:[%s11480_s9 + $0x4b4] ss:$8 sps:$4 sm:$0xff]  }
 0x217   : > { %8264 = vmatprep.subr.bf16.mxu0 %v9863_v19  ;;  %v9947_v19 = vld [vmem:[%s11480_s9 + $0xcb4] ss:$8 sps:$4 sm:$0xff]  }
 0x219   : > { %7921 = vmatpush1.bf16.msra.mxu1 %v9858_v20  ;;  %v9942_v20 = vld [vmem:[%s11480_s9 + $0x4b0] ss:$8 sps:$4 sm:$0xff]  }
 0x21a   : > { %8265 = vmatpush1.bf16.msra.mxu0 %v9861_v21  ;;  %7922 = vmatprep.subr.bf16.mxu1 %v9866_v22  ;;  %v9945_v21 = vld [vmem:[%s11480_s9 + $0xcb0] ss:$8 sps:$4 sm:$0xff]   ;;  %v9950_v22 = vld [vmem:[%s11480_s9 + $0x4c4] ss:$8 sps:$4 sm:$0xff]  }
 0x21b   : > { %8266 = vmatprep.subr.bf16.mxu0 %v9869_v23  ;;  %v9953_v23 = vld [vmem:[%s11480_s9 + $0xcc4] ss:$8 sps:$4 sm:$0xff]  }
 0x21d   : > { %7923 = vmatpush1.bf16.msra.mxu1 %v9864_v26  ;;  %v9948_v26 = vld [vmem:[%s11480_s9 + $0x4c0] ss:$8 sps:$4 sm:$0xff]  }
 0x21e   : > { %8267 = vmatpush1.bf16.msra.mxu0 %v9867_v27  ;;  %7924 = vmatprep.subr.bf16.mxu1 %v9872_v32  ;;  %v9951_v27 = vld [vmem:[%s11480_s9 + $0xcc0] ss:$8 sps:$4 sm:$0xff]   ;;  %v9956_v32 = vld [vmem:[%s11480_s9 + $0x4d4] ss:$8 sps:$4 sm:$0xff]  }
 0x21f   : > { %8268 = vmatprep.subr.bf16.mxu0 %v9875_v33  ;;  %v9959_v33 = vld [vmem:[%s11480_s9 + $0xcd4] ss:$8 sps:$4 sm:$0xff]  }
 0x221   : > { %7925 = vmatpush1.bf16.msra.mxu1 %v9870_v36  ;;  %v9954_v36 = vld [vmem:[%s11480_s9 + $0x4d0] ss:$8 sps:$4 sm:$0xff]  }
 0x222   : > { %8269 = vmatpush1.bf16.msra.mxu0 %v9873_v37  ;;  %7937 = vmatprep.subr.bf16.mxu1 %v9878_v24  ;;  %v9957_v37 = vld [vmem:[%s11480_s9 + $0xcd0] ss:$8 sps:$4 sm:$0xff]   ;;  %v9962_v24 = vld [vmem:[%s11480_s9 + $0x4e4] ss:$8 sps:$4 sm:$0xff]  }
 0x223   : > { %8281 = vmatprep.subr.bf16.mxu0 %v9881_v25  ;;  %v9965_v25 = vld [vmem:[%s11480_s9 + $0xce4] ss:$8 sps:$4 sm:$0xff]  }
 0x224   : > { %7927 = vmatmul.mubr.bf16.vlgmr.msra.gmra.mrb[0].mxu1 %v8803_v40  ;;  %v9968_v40 = vld [vmem:[%s11480_s9 + $0x4f4] ss:$8 sps:$4 sm:$0xff]  }
 0x225   : > { %8271 = vmatmul.mubr.bf16.vlgmr.msra.gmra.mrb[0].mxu0 %v8819_v41  ;;  %7938 = vmatpush1.bf16.msra.mxu1 %v9876_v29  ;;  %v9960_v29 = vld [vmem:[%s11480_s9 + $0x4e0] ss:$8 sps:$4 sm:$0xff]   ;;  %v9971_v41 = vld [vmem:[%s11480_s9 + $0xcf4] ss:$8 sps:$4 sm:$0xff]  }
 0x226   : > { %8282 = vmatpush1.bf16.msra.mxu0 %v9879_v30  ;;  %7939 = vmatprep.subr.bf16.mxu1 %v9884_v44  ;;  %v9963_v30 = vld [vmem:[%s11480_s9 + $0xce0] ss:$8 sps:$4 sm:$0xff]   ;;  %v9966_v44 = vld [vmem:[%s11480_s9 + $0x4f0] ss:$8 sps:$4 sm:$0xff]  }
 0x227   : > { %8283 = vmatprep.subr.bf16.mxu0 %v9887_v45  ;;  %7969 = vmatprep.mubr.bf16.mxu1 %v8806_v46  ;;  %v9969_v45 = vld [vmem:[%s11480_s9 + $0xcf0] ss:$8 sps:$4 sm:$0xff]   ;;  %v9974_v46 = vld [vmem:[%s11480_s9 + $0x504] ss:$8 sps:$4 sm:$0xff]  }
 0x228   : > { %8313 = vmatprep.mubr.bf16.mxu0 %v8822_v28  ;;  %v9977_v28 = vld [vmem:[%s11480_s9 + $0xd04] ss:$8 sps:$4 sm:$0xff]  }
 0x229   : > { %7940 = vmatpush1.bf16.msra.mxu1 %v9882_v31  ;;  %v11891_v31 = vld [vmem:[%s11530_s16 + $0x28] sm:$0xff] }
 0x22a   : > { %8284 = vmatpush1.bf16.msra.mxu0 %v9885_v34  ;;  %7941 = vmatprep.subr.bf16.mxu1 %v9890_v35  ;;  %v11894_v34 = vld [vmem:[%s11530_s16 + $0xa8] sm:$0xff] }
 0x22b   : > { %8285 = vmatprep.subr.bf16.mxu0 %v9893_v47  ;;  %v11897_v35 = vld [vmem:[%s11530_s16 + $0x68] sm:$0xff] }
 0x22c   : > { %v11900_v47 = vld [vmem:[%s11530_s16 + $0xe8] sm:$0xff] }
 0x22d   : > { %7942 = vmatpush1.bf16.msra.mxu1 %v9888_v48  ;;  %v8805_v48 = vcombine.low %v11809_v38, %v11812_v39  ;;  %v8824_v38 = vcombine.high %v11897_v35, %v11900_v47  ;;  %v9978_v39 = vld [vmem:[%s11480_s9 + $0x510] ss:$8 sps:$4 sm:$0xff]  }
 0x22e   : > { %8286 = vmatpush1.bf16.msra.mxu0 %v9891_v49  ;;  %7943 = vmatprep.subr.bf16.mxu1 %v9896_v50  ;;  %v8821_v49 = vcombine.low %v11819_v42, %v11822_v43  ;;  %v9972_v50 = vld [vmem:[%s11480_s9 + $0x500] ss:$8 sps:$4 sm:$0xff]   ;;  %v9981_v42 = vld [vmem:[%s11480_s9 + $0xd10] ss:$8 sps:$4 sm:$0xff]   ;;  %v9986_v43 = vld [vmem:[%s11480_s9 + $0x524] ss:$8 sps:$4 sm:$0xff]  }
 0x22f   : > { %8287 = vmatprep.subr.bf16.mxu0 %v9899_v51  ;;  %v9975_v51 = vld [vmem:[%s11480_s9 + $0xd00] ss:$8 sps:$4 sm:$0xff]  }
 0x231   : > { %7944 = vmatpush1.bf16.msra.mxu1 %v9894_v52  ;;  %v9980_v52 = vld [vmem:[%s11480_s9 + $0x514] ss:$8 sps:$4 sm:$0xff]  }
 0x232   : > { %8288 = vmatpush1.bf16.msra.mxu0 %v9897_v53  ;;  %7945 = vmatprep.subr.bf16.mxu1 %v9902_v54  ;;  %v9983_v53 = vld [vmem:[%s11480_s9 + $0xd14] ss:$8 sps:$4 sm:$0xff]   ;;  %v8808_v54 = vcombine.high %v11891_v31, %v11894_v34 }
 0x233   : > { %8289 = vmatprep.subr.bf16.mxu0 %v9905_v55  ;;  %v9989_v55 = vld [vmem:[%s11480_s9 + $0xd24] ss:$8 sps:$4 sm:$0xff]  }
 0x235   : > { %7946 = vmatpush1.bf16.msra.mxu1 %v9900_v56  ;;  %v9984_v56 = vld [vmem:[%s11480_s9 + $0x520] ss:$8 sps:$4 sm:$0xff]  }
 0x236   : > { %8290 = vmatpush1.bf16.msra.mxu0 %v9903_v57  ;;  %7947 = vmatprep.subr.bf16.mxu1 %v9908_v58  ;;  %v9987_v57 = vld [vmem:[%s11480_s9 + $0xd20] ss:$8 sps:$4 sm:$0xff]   ;;  %v9992_v58 = vld [vmem:[%s11480_s9 + $0x534] ss:$8 sps:$4 sm:$0xff]  }
 0x237   : > { %8291 = vmatprep.subr.bf16.mxu0 %v9911_v59  ;;  %v9995_v59 = vld [vmem:[%s11480_s9 + $0xd34] ss:$8 sps:$4 sm:$0xff]  }
 0x239   : > { %7948 = vmatpush1.bf16.msra.mxu1 %v9906_v60  ;;  %v9990_v60 = vld [vmem:[%s11480_s9 + $0x530] ss:$8 sps:$4 sm:$0xff]  }
 0x23a   : > { %8292 = vmatpush1.bf16.msra.mxu0 %v9909_v61  ;;  %7949 = vmatprep.subr.bf16.mxu1 %v9914_v62  ;;  %v9993_v61 = vld [vmem:[%s11480_s9 + $0xd30] ss:$8 sps:$4 sm:$0xff]   ;;  %v9998_v62 = vld [vmem:[%s11480_s9 + $0x544] ss:$8 sps:$4 sm:$0xff]  }
 0x23b   : > { %8293 = vmatprep.subr.bf16.mxu0 %v9917_v63  ;;  %v10001_v63 = vld [vmem:[%s11480_s9 + $0xd44] ss:$8 sps:$4 sm:$0xff]  }
 0x23d   : > { %7950 = vmatpush1.bf16.msra.mxu1 %v9912_v0  ;;  %v9996_v0 = vld [vmem:[%s11480_s9 + $0x540] ss:$8 sps:$4 sm:$0xff]  }
 0x23e   : > { %8294 = vmatpush1.bf16.msra.mxu0 %v9915_v1  ;;  %7951 = vmatprep.subr.bf16.mxu1 %v9920_v2  ;;  %v9999_v1 = vld [vmem:[%s11480_s9 + $0xd40] ss:$8 sps:$4 sm:$0xff]   ;;  %v10004_v2 = vld [vmem:[%s11480_s9 + $0x554] ss:$8 sps:$4 sm:$0xff]  }
 0x23f   : > { %8295 = vmatprep.subr.bf16.mxu0 %v9923_v3  ;;  %v10007_v3 = vld [vmem:[%s11480_s9 + $0xd54] ss:$8 sps:$4 sm:$0xff]  }
 0x241   : > { %7952 = vmatpush1.bf16.msra.mxu1 %v9918_v4  ;;  %v10002_v4 = vld [vmem:[%s11480_s9 + $0x550] ss:$8 sps:$4 sm:$0xff]  }
 0x242   : > { %8296 = vmatpush1.bf16.msra.mxu0 %v9921_v5  ;;  %7953 = vmatprep.subr.bf16.mxu1 %v9926_v6  ;;  %v10005_v5 = vld [vmem:[%s11480_s9 + $0xd50] ss:$8 sps:$4 sm:$0xff]   ;;  %v10010_v6 = vld [vmem:[%s11480_s9 + $0x564] ss:$8 sps:$4 sm:$0xff]  }
 0x243   : > { %8297 = vmatprep.subr.bf16.mxu0 %v9929_v7  ;;  %v10013_v7 = vld [vmem:[%s11480_s9 + $0xd64] ss:$8 sps:$4 sm:$0xff]  }
 0x245   : > { %7954 = vmatpush1.bf16.msra.mxu1 %v9924_v8  ;;  %v10008_v8 = vld [vmem:[%s11480_s9 + $0x560] ss:$8 sps:$4 sm:$0xff]  }
 0x246   : > { %8298 = vmatpush1.bf16.msra.mxu0 %v9927_v9  ;;  %7955 = vmatprep.subr.bf16.mxu1 %v9932_v10  ;;  %v10011_v9 = vld [vmem:[%s11480_s9 + $0xd60] ss:$8 sps:$4 sm:$0xff]   ;;  %v10016_v10 = vld [vmem:[%s11480_s9 + $0x574] ss:$8 sps:$4 sm:$0xff]  }
 0x247   : > { %8299 = vmatprep.subr.bf16.mxu0 %v9935_v11  ;;  %v10019_v11 = vld [vmem:[%s11480_s9 + $0xd74] ss:$8 sps:$4 sm:$0xff]  }
 0x249   : > { %7956 = vmatpush1.bf16.msra.mxu1 %v9930_v12  ;;  %v10014_v12 = vld [vmem:[%s11480_s9 + $0x570] ss:$8 sps:$4 sm:$0xff]  }
 0x24a   : > { %8300 = vmatpush1.bf16.msra.mxu0 %v9933_v13  ;;  %7957 = vmatprep.subr.bf16.mxu1 %v9938_v14  ;;  %v10017_v13 = vld [vmem:[%s11480_s9 + $0xd70] ss:$8 sps:$4 sm:$0xff]   ;;  %v10022_v14 = vld [vmem:[%s11480_s9 + $0x584] ss:$8 sps:$4 sm:$0xff]  }
 0x24b   : > { %8301 = vmatprep.subr.bf16.mxu0 %v9941_v15  ;;  %v10025_v15 = vld [vmem:[%s11480_s9 + $0xd84] ss:$8 sps:$4 sm:$0xff]  }
 0x24d   : > { %7958 = vmatpush1.bf16.msra.mxu1 %v9936_v16  ;;  %v10020_v16 = vld [vmem:[%s11480_s9 + $0x580] ss:$8 sps:$4 sm:$0xff]  }
 0x24e   : > { %8302 = vmatpush1.bf16.msra.mxu0 %v9939_v17  ;;  %7959 = vmatprep.subr.bf16.mxu1 %v9944_v18  ;;  %v10023_v17 = vld [vmem:[%s11480_s9 + $0xd80] ss:$8 sps:$4 sm:$0xff]   ;;  %v10028_v18 = vld [vmem:[%s11480_s9 + $0x594] ss:$8 sps:$4 sm:$0xff]  }
 0x24f   : > { %8303 = vmatprep.subr.bf16.mxu0 %v9947_v19  ;;  %v10031_v19 = vld [vmem:[%s11480_s9 + $0xd94] ss:$8 sps:$4 sm:$0xff]  }
 0x251   : > { %7960 = vmatpush1.bf16.msra.mxu1 %v9942_v20  ;;  %v10026_v20 = vld [vmem:[%s11480_s9 + $0x590] ss:$8 sps:$4 sm:$0xff]  }
 0x252   : > { %8304 = vmatpush1.bf16.msra.mxu0 %v9945_v21  ;;  %7961 = vmatprep.subr.bf16.mxu1 %v9950_v22  ;;  %v10029_v21 = vld [vmem:[%s11480_s9 + $0xd90] ss:$8 sps:$4 sm:$0xff]   ;;  %v10034_v22 = vld [vmem:[%s11480_s9 + $0x5a4] ss:$8 sps:$4 sm:$0xff]  }
 0x253   : > { %8305 = vmatprep.subr.bf16.mxu0 %v9953_v23  ;;  %v10037_v23 = vld [vmem:[%s11480_s9 + $0xda4] ss:$8 sps:$4 sm:$0xff]  }
 0x255   : > { %7962 = vmatpush1.bf16.msra.mxu1 %v9948_v26  ;;  %v10032_v26 = vld [vmem:[%s11480_s9 + $0x5a0] ss:$8 sps:$4 sm:$0xff]  }
 0x256   : > { %8306 = vmatpush1.bf16.msra.mxu0 %v9951_v27  ;;  %7963 = vmatprep.subr.bf16.mxu1 %v9956_v32  ;;  %v10035_v27 = vld [vmem:[%s11480_s9 + $0xda0] ss:$8 sps:$4 sm:$0xff]   ;;  %v10040_v32 = vld [vmem:[%s11480_s9 + $0x5b4] ss:$8 sps:$4 sm:$0xff]  }
 0x257   : > { %8307 = vmatprep.subr.bf16.mxu0 %v9959_v33  ;;  %v10043_v33 = vld [vmem:[%s11480_s9 + $0xdb4] ss:$8 sps:$4 sm:$0xff]  }
 0x259   : > { %7964 = vmatpush1.bf16.msra.mxu1 %v9954_v36  ;;  %v10038_v36 = vld [vmem:[%s11480_s9 + $0x5b0] ss:$8 sps:$4 sm:$0xff]  }
 0x25a   : > { %8308 = vmatpush1.bf16.msra.mxu0 %v9957_v37  ;;  %7965 = vmatprep.subr.bf16.mxu1 %v9962_v24  ;;  %v10041_v37 = vld [vmem:[%s11480_s9 + $0xdb0] ss:$8 sps:$4 sm:$0xff]   ;;  %v10046_v24 = vld [vmem:[%s11480_s9 + $0x5c4] ss:$8 sps:$4 sm:$0xff]  }
 0x25b   : > { %8309 = vmatprep.subr.bf16.mxu0 %v9965_v25  ;;  %v10049_v25 = vld [vmem:[%s11480_s9 + $0xdc4] ss:$8 sps:$4 sm:$0xff]  }
 0x25d   : > { %7966 = vmatpush1.bf16.msra.mxu1 %v9960_v29  ;;  %v10044_v29 = vld [vmem:[%s11480_s9 + $0x5c0] ss:$8 sps:$4 sm:$0xff]  }
 0x25e   : > { %8310 = vmatpush1.bf16.msra.mxu0 %v9963_v30  ;;  %7967 = vmatprep.subr.bf16.mxu1 %v9968_v40  ;;  %v10047_v30 = vld [vmem:[%s11480_s9 + $0xdc0] ss:$8 sps:$4 sm:$0xff]   ;;  %v10052_v40 = vld [vmem:[%s11480_s9 + $0x5d4] ss:$8 sps:$4 sm:$0xff]  }
 0x25f   : > { %8311 = vmatprep.subr.bf16.mxu0 %v9971_v41  ;;  %v10055_v41 = vld [vmem:[%s11480_s9 + $0xdd4] ss:$8 sps:$4 sm:$0xff]  }
 0x261   : > { %7968 = vmatpush1.bf16.msra.mxu1 %v9966_v44  ;;  %v10050_v44 = vld [vmem:[%s11480_s9 + $0x5d0] ss:$8 sps:$4 sm:$0xff]  }
 0x262   : > { %8312 = vmatpush1.bf16.msra.mxu0 %v9969_v45  ;;  %7980 = vmatprep.subr.bf16.mxu1 %v9974_v46  ;;  %v10053_v45 = vld [vmem:[%s11480_s9 + $0xdd0] ss:$8 sps:$4 sm:$0xff]   ;;  %v10058_v46 = vld [vmem:[%s11480_s9 + $0x5e4] ss:$8 sps:$4 sm:$0xff]  }
 0x263   : > { %8324 = vmatprep.subr.bf16.mxu0 %v9977_v28  ;;  %v10061_v28 = vld [vmem:[%s11480_s9 + $0xde4] ss:$8 sps:$4 sm:$0xff]  }
 0x264   : > { %7970 = vmatmul.mubr.bf16.vlgmr.msra.gmra.mrb[0].mxu1 %v8805_v48  ;;  %v10056_v48 = vld [vmem:[%s11480_s9 + $0x5e0] ss:$8 sps:$4 sm:$0xff]  }
 0x265   : > { %8314 = vmatmul.mubr.bf16.vlgmr.msra.gmra.mrb[0].mxu0 %v8821_v49  ;;  %7981 = vmatpush1.bf16.msra.mxu1 %v9972_v50  ;;  %v10059_v49 = vld [vmem:[%s11480_s9 + $0xde0] ss:$8 sps:$4 sm:$0xff]   ;;  %v10064_v50 = vld [vmem:[%s11480_s9 + $0x5f4] ss:$8 sps:$4 sm:$0xff]  }
 0x266   : > { %8325 = vmatpush1.bf16.msra.mxu0 %v9975_v51  ;;  %7982 = vmatprep.subr.bf16.mxu1 %v9980_v52  ;;  %v10067_v51 = vld [vmem:[%s11480_s9 + $0xdf4] ss:$8 sps:$4 sm:$0xff]   ;;  %v10062_v52 = vld [vmem:[%s11480_s9 + $0x5f0] ss:$8 sps:$4 sm:$0xff]  }
 0x267   : > { %8326 = vmatprep.subr.bf16.mxu0 %v9983_v53  ;;  %8012 = vmatprep.mubr.bf16.mxu1 %v8808_v54  ;;  %v10065_v53 = vld [vmem:[%s11480_s9 + $0xdf0] ss:$8 sps:$4 sm:$0xff]   ;;  %v10070_v54 = vld [vmem:[%s11480_s9 + $0x604] ss:$8 sps:$4 sm:$0xff]  }
 0x268   : > { %8356 = vmatprep.mubr.bf16.mxu0 %v8824_v38  ;;  %v10073_v38 = vld [vmem:[%s11480_s9 + $0xe04] ss:$8 sps:$4 sm:$0xff]  }
 0x269   : > { %7983 = vmatpush1.bf16.msra.mxu1 %v9978_v39  ;;  %v11975_v39 = vld [vmem:[%s11530_s16 + $0x30] sm:$0xff] }
 0x26a   : > { %8327 = vmatpush1.bf16.msra.mxu0 %v9981_v42  ;;  %7984 = vmatprep.subr.bf16.mxu1 %v9986_v43  ;;  %v8807_v42 = vcombine.low %v11891_v31, %v11894_v34  ;;  %v8823_v43 = vcombine.low %v11897_v35, %v11900_v47  ;;  %v10076_v31 = vld [vmem:[%s11480_s9 + $0x614] ss:$8 sps:$4 sm:$0xff]  }
 0x26b   : > { %8328 = vmatprep.subr.bf16.mxu0 %v9989_v55  ;;  %v11982_v55 = vld [vmem:[%s11530_s16 + $0xb0] sm:$0xff] }
 0x26c   : > { %v10079_v34 = vld [vmem:[%s11480_s9 + $0xe14] ss:$8 sps:$4 sm:$0xff]   ;;  %v8810_v35 = vcombine.high %v11975_v39, %v11982_v55 }
 0x26d   : > { %7985 = vmatpush1.bf16.msra.mxu1 %v9984_v56  ;;  %v11985_v56 = vld [vmem:[%s11530_s16 + $0x70] sm:$0xff] }
 0x26e   : > { %8329 = vmatpush1.bf16.msra.mxu0 %v9987_v57  ;;  %7986 = vmatprep.subr.bf16.mxu1 %v9992_v58  ;;  %v11988_v57 = vld [vmem:[%s11530_s16 + $0xf0] sm:$0xff]  ;;  %v10068_v58 = vld [vmem:[%s11480_s9 + $0x600] ss:$8 sps:$4 sm:$0xff]  }
 0x26f   : > { %8330 = vmatprep.subr.bf16.mxu0 %v9995_v59  ;;  %v10071_v59 = vld [vmem:[%s11480_s9 + $0xe00] ss:$8 sps:$4 sm:$0xff]   ;;  %v8826_v47 = vcombine.high %v11985_v56, %v11988_v57 }
 0x271   : > { %7987 = vmatpush1.bf16.msra.mxu1 %v9990_v60  ;;  %v10074_v60 = vld [vmem:[%s11480_s9 + $0x610] ss:$8 sps:$4 sm:$0xff]  }
 0x272   : > { %8331 = vmatpush1.bf16.msra.mxu0 %v9993_v61  ;;  %7988 = vmatprep.subr.bf16.mxu1 %v9998_v62  ;;  %v10077_v61 = vld [vmem:[%s11480_s9 + $0xe10] ss:$8 sps:$4 sm:$0xff]   ;;  %v10082_v62 = vld [vmem:[%s11480_s9 + $0x624] ss:$8 sps:$4 sm:$0xff]  }
 0x273   : > { %8332 = vmatprep.subr.bf16.mxu0 %v10001_v63  ;;  %v10085_v63 = vld [vmem:[%s11480_s9 + $0xe24] ss:$8 sps:$4 sm:$0xff]  }
 0x275   : > { %7989 = vmatpush1.bf16.msra.mxu1 %v9996_v0  ;;  %v10080_v0 = vld [vmem:[%s11480_s9 + $0x620] ss:$8 sps:$4 sm:$0xff]  }
 0x276   : > { %8333 = vmatpush1.bf16.msra.mxu0 %v9999_v1  ;;  %7990 = vmatprep.subr.bf16.mxu1 %v10004_v2  ;;  %v10083_v1 = vld [vmem:[%s11480_s9 + $0xe20] ss:$8 sps:$4 sm:$0xff]   ;;  %v10088_v2 = vld [vmem:[%s11480_s9 + $0x634] ss:$8 sps:$4 sm:$0xff]  }
 0x277   : > { %8334 = vmatprep.subr.bf16.mxu0 %v10007_v3  ;;  %v10091_v3 = vld [vmem:[%s11480_s9 + $0xe34] ss:$8 sps:$4 sm:$0xff]  }
 0x279   : > { %7991 = vmatpush1.bf16.msra.mxu1 %v10002_v4  ;;  %v10086_v4 = vld [vmem:[%s11480_s9 + $0x630] ss:$8 sps:$4 sm:$0xff]  }
 0x27a   : > { %8335 = vmatpush1.bf16.msra.mxu0 %v10005_v5  ;;  %7992 = vmatprep.subr.bf16.mxu1 %v10010_v6  ;;  %v10089_v5 = vld [vmem:[%s11480_s9 + $0xe30] ss:$8 sps:$4 sm:$0xff]   ;;  %v10094_v6 = vld [vmem:[%s11480_s9 + $0x644] ss:$8 sps:$4 sm:$0xff]  }
 0x27b   : > { %8336 = vmatprep.subr.bf16.mxu0 %v10013_v7  ;;  %v10097_v7 = vld [vmem:[%s11480_s9 + $0xe44] ss:$8 sps:$4 sm:$0xff]  }
 0x27d   : > { %7993 = vmatpush1.bf16.msra.mxu1 %v10008_v8  ;;  %v10092_v8 = vld [vmem:[%s11480_s9 + $0x640] ss:$8 sps:$4 sm:$0xff]  }
 0x27e   : > { %8337 = vmatpush1.bf16.msra.mxu0 %v10011_v9  ;;  %7994 = vmatprep.subr.bf16.mxu1 %v10016_v10  ;;  %v10095_v9 = vld [vmem:[%s11480_s9 + $0xe40] ss:$8 sps:$4 sm:$0xff]   ;;  %v10100_v10 = vld [vmem:[%s11480_s9 + $0x654] ss:$8 sps:$4 sm:$0xff]  }
 0x27f   : > { %8338 = vmatprep.subr.bf16.mxu0 %v10019_v11  ;;  %v10103_v11 = vld [vmem:[%s11480_s9 + $0xe54] ss:$8 sps:$4 sm:$0xff]  }
 0x281   : > { %7995 = vmatpush1.bf16.msra.mxu1 %v10014_v12  ;;  %v10098_v12 = vld [vmem:[%s11480_s9 + $0x650] ss:$8 sps:$4 sm:$0xff]  }
 0x282   : > { %8339 = vmatpush1.bf16.msra.mxu0 %v10017_v13  ;;  %7996 = vmatprep.subr.bf16.mxu1 %v10022_v14  ;;  %v10101_v13 = vld [vmem:[%s11480_s9 + $0xe50] ss:$8 sps:$4 sm:$0xff]   ;;  %v10106_v14 = vld [vmem:[%s11480_s9 + $0x664] ss:$8 sps:$4 sm:$0xff]  }
 0x283   : > { %8340 = vmatprep.subr.bf16.mxu0 %v10025_v15  ;;  %v10109_v15 = vld [vmem:[%s11480_s9 + $0xe64] ss:$8 sps:$4 sm:$0xff]  }
 0x285   : > { %7997 = vmatpush1.bf16.msra.mxu1 %v10020_v16  ;;  %v10104_v16 = vld [vmem:[%s11480_s9 + $0x660] ss:$8 sps:$4 sm:$0xff]  }
 0x286   : > { %8341 = vmatpush1.bf16.msra.mxu0 %v10023_v17  ;;  %7998 = vmatprep.subr.bf16.mxu1 %v10028_v18  ;;  %v10107_v17 = vld [vmem:[%s11480_s9 + $0xe60] ss:$8 sps:$4 sm:$0xff]   ;;  %v10112_v18 = vld [vmem:[%s11480_s9 + $0x674] ss:$8 sps:$4 sm:$0xff]  }
 0x287   : > { %8342 = vmatprep.subr.bf16.mxu0 %v10031_v19  ;;  %v10115_v19 = vld [vmem:[%s11480_s9 + $0xe74] ss:$8 sps:$4 sm:$0xff]  }
 0x289   : > { %7999 = vmatpush1.bf16.msra.mxu1 %v10026_v20  ;;  %v10110_v20 = vld [vmem:[%s11480_s9 + $0x670] ss:$8 sps:$4 sm:$0xff]  }
 0x28a   : > { %8343 = vmatpush1.bf16.msra.mxu0 %v10029_v21  ;;  %8000 = vmatprep.subr.bf16.mxu1 %v10034_v22  ;;  %v10113_v21 = vld [vmem:[%s11480_s9 + $0xe70] ss:$8 sps:$4 sm:$0xff]   ;;  %v10118_v22 = vld [vmem:[%s11480_s9 + $0x684] ss:$8 sps:$4 sm:$0xff]  }
 0x28b   : > { %8344 = vmatprep.subr.bf16.mxu0 %v10037_v23  ;;  %v10121_v23 = vld [vmem:[%s11480_s9 + $0xe84] ss:$8 sps:$4 sm:$0xff]  }
 0x28d   : > { %8001 = vmatpush1.bf16.msra.mxu1 %v10032_v26  ;;  %v10116_v26 = vld [vmem:[%s11480_s9 + $0x680] ss:$8 sps:$4 sm:$0xff]  }
 0x28e   : > { %8345 = vmatpush1.bf16.msra.mxu0 %v10035_v27  ;;  %8002 = vmatprep.subr.bf16.mxu1 %v10040_v32  ;;  %v10119_v27 = vld [vmem:[%s11480_s9 + $0xe80] ss:$8 sps:$4 sm:$0xff]   ;;  %v10124_v32 = vld [vmem:[%s11480_s9 + $0x694] ss:$8 sps:$4 sm:$0xff]  }
 0x28f   : > { %8346 = vmatprep.subr.bf16.mxu0 %v10043_v33  ;;  %v10127_v33 = vld [vmem:[%s11480_s9 + $0xe94] ss:$8 sps:$4 sm:$0xff]  }
 0x291   : > { %8003 = vmatpush1.bf16.msra.mxu1 %v10038_v36  ;;  %v10122_v36 = vld [vmem:[%s11480_s9 + $0x690] ss:$8 sps:$4 sm:$0xff]  }
 0x292   : > { %8347 = vmatpush1.bf16.msra.mxu0 %v10041_v37  ;;  %8004 = vmatprep.subr.bf16.mxu1 %v10046_v24  ;;  %v10125_v37 = vld [vmem:[%s11480_s9 + $0xe90] ss:$8 sps:$4 sm:$0xff]   ;;  %v10130_v24 = vld [vmem:[%s11480_s9 + $0x6a4] ss:$8 sps:$4 sm:$0xff]  }
 0x293   : > { %8348 = vmatprep.subr.bf16.mxu0 %v10049_v25  ;;  %v10133_v25 = vld [vmem:[%s11480_s9 + $0xea4] ss:$8 sps:$4 sm:$0xff]  }
 0x295   : > { %8005 = vmatpush1.bf16.msra.mxu1 %v10044_v29  ;;  %v10128_v29 = vld [vmem:[%s11480_s9 + $0x6a0] ss:$8 sps:$4 sm:$0xff]  }
 0x296   : > { %8349 = vmatpush1.bf16.msra.mxu0 %v10047_v30  ;;  %8006 = vmatprep.subr.bf16.mxu1 %v10052_v40  ;;  %v10131_v30 = vld [vmem:[%s11480_s9 + $0xea0] ss:$8 sps:$4 sm:$0xff]   ;;  %v10136_v40 = vld [vmem:[%s11480_s9 + $0x6b4] ss:$8 sps:$4 sm:$0xff]  }
 0x297   : > { %8350 = vmatprep.subr.bf16.mxu0 %v10055_v41  ;;  %v10139_v41 = vld [vmem:[%s11480_s9 + $0xeb4] ss:$8 sps:$4 sm:$0xff]  }
 0x299   : > { %8007 = vmatpush1.bf16.msra.mxu1 %v10050_v44  ;;  %v10134_v44 = vld [vmem:[%s11480_s9 + $0x6b0] ss:$8 sps:$4 sm:$0xff]  }
 0x29a   : > { %8351 = vmatpush1.bf16.msra.mxu0 %v10053_v45  ;;  %8008 = vmatprep.subr.bf16.mxu1 %v10058_v46  ;;  %v10137_v45 = vld [vmem:[%s11480_s9 + $0xeb0] ss:$8 sps:$4 sm:$0xff]   ;;  %v10142_v46 = vld [vmem:[%s11480_s9 + $0x6c4] ss:$8 sps:$4 sm:$0xff]  }
 0x29b   : > { %8352 = vmatprep.subr.bf16.mxu0 %v10061_v28  ;;  %v10145_v28 = vld [vmem:[%s11480_s9 + $0xec4] ss:$8 sps:$4 sm:$0xff]  }
 0x29d   : > { %8009 = vmatpush1.bf16.msra.mxu1 %v10056_v48  ;;  %v10140_v48 = vld [vmem:[%s11480_s9 + $0x6c0] ss:$8 sps:$4 sm:$0xff]  }
 0x29e   : > { %8353 = vmatpush1.bf16.msra.mxu0 %v10059_v49  ;;  %8010 = vmatprep.subr.bf16.mxu1 %v10064_v50  ;;  %v10143_v49 = vld [vmem:[%s11480_s9 + $0xec0] ss:$8 sps:$4 sm:$0xff]   ;;  %v10148_v50 = vld [vmem:[%s11480_s9 + $0x6d4] ss:$8 sps:$4 sm:$0xff]  }
 0x29f   : > { %8354 = vmatprep.subr.bf16.mxu0 %v10067_v51  ;;  %v10151_v51 = vld [vmem:[%s11480_s9 + $0xed4] ss:$8 sps:$4 sm:$0xff]  }
 0x2a1   : > { %8011 = vmatpush1.bf16.msra.mxu1 %v10062_v52  ;;  %v10146_v52 = vld [vmem:[%s11480_s9 + $0x6d0] ss:$8 sps:$4 sm:$0xff]  }
 0x2a2   : > { %8355 = vmatpush1.bf16.msra.mxu0 %v10065_v53  ;;  %8023 = vmatprep.subr.bf16.mxu1 %v10070_v54  ;;  %v10149_v53 = vld [vmem:[%s11480_s9 + $0xed0] ss:$8 sps:$4 sm:$0xff]   ;;  %v10154_v54 = vld [vmem:[%s11480_s9 + $0x6e4] ss:$8 sps:$4 sm:$0xff]  }
 0x2a3   : > { %8367 = vmatprep.subr.bf16.mxu0 %v10073_v38  ;;  %v10157_v38 = vld [vmem:[%s11480_s9 + $0xee4] ss:$8 sps:$4 sm:$0xff]  }
 0x2a4   : > { %8013 = vmatmul.mubr.bf16.vlgmr.msra.gmra.mrb[0].mxu1 %v8807_v42  ;;  %v10152_v42 = vld [vmem:[%s11480_s9 + $0x6e0] ss:$8 sps:$4 sm:$0xff]  }
 0x2a5   : > { %8357 = vmatmul.mubr.bf16.vlgmr.msra.gmra.mrb[0].mxu0 %v8823_v43  ;;  %8024 = vmatpush1.bf16.msra.mxu1 %v10068_v58  ;;  %v10155_v43 = vld [vmem:[%s11480_s9 + $0xee0] ss:$8 sps:$4 sm:$0xff]   ;;  %v10160_v58 = vld [vmem:[%s11480_s9 + $0x6f4] ss:$8 sps:$4 sm:$0xff]  }
 0x2a6   : > { %8368 = vmatpush1.bf16.msra.mxu0 %v10071_v59  ;;  %8025 = vmatprep.subr.bf16.mxu1 %v10076_v31  ;;  %v10163_v59 = vld [vmem:[%s11480_s9 + $0xef4] ss:$8 sps:$4 sm:$0xff]   ;;  %v10158_v31 = vld [vmem:[%s11480_s9 + $0x6f0] ss:$8 sps:$4 sm:$0xff]  }
 0x2a7   : > { %8369 = vmatprep.subr.bf16.mxu0 %v10079_v34  ;;  %8055 = vmatprep.mubr.bf16.mxu1 %v8810_v35  ;;  %v10161_v34 = vld [vmem:[%s11480_s9 + $0xef0] ss:$8 sps:$4 sm:$0xff]   ;;  %v10166_v35 = vld [vmem:[%s11480_s9 + $0x704] ss:$8 sps:$4 sm:$0xff]  }
 0x2a8   : > { %8399 = vmatprep.mubr.bf16.mxu0 %v8826_v47  ;;  %v10169_v47 = vld [vmem:[%s11480_s9 + $0xf04] ss:$8 sps:$4 sm:$0xff]  }
 0x2a9   : > { %8026 = vmatpush1.bf16.msra.mxu1 %v10074_v60  ;;  %v12059_v60 = vld [vmem:[%s11530_s16 + $0x38] sm:$0xff] }
 0x2aa   : > { %8370 = vmatpush1.bf16.msra.mxu0 %v10077_v61  ;;  %8027 = vmatprep.subr.bf16.mxu1 %v10082_v62  ;;  %v8809_v61 = vcombine.low %v11975_v39, %v11982_v55  ;;  %v8825_v62 = vcombine.low %v11985_v56, %v11988_v57  ;;  %v10172_v39 = vld [vmem:[%s11480_s9 + $0x714] ss:$8 sps:$4 sm:$0xff]  }
 0x2ab   : > { %8371 = vmatprep.subr.bf16.mxu0 %v10085_v63  ;;  %v12066_v63 = vld [vmem:[%s11530_s16 + $0xb8] sm:$0xff] }
 0x2ac   : > { %v10175_v55 = vld [vmem:[%s11480_s9 + $0xf14] ss:$8 sps:$4 sm:$0xff]   ;;  %v8812_v56 = vcombine.high %v12059_v60, %v12066_v63 }
 0x2ad   : > { %8028 = vmatpush1.bf16.msra.mxu1 %v10080_v0  ;;  %v12069_v0 = vld [vmem:[%s11530_s16 + $0x78] sm:$0xff] }
 0x2ae   : > { %8372 = vmatpush1.bf16.msra.mxu0 %v10083_v1  ;;  %8029 = vmatprep.subr.bf16.mxu1 %v10088_v2  ;;  %v12072_v1 = vld [vmem:[%s11530_s16 + $0xf8] sm:$0xff]  ;;  %v10164_v2 = vld [vmem:[%s11480_s9 + $0x700] ss:$8 sps:$4 sm:$0xff]  }
 0x2af   : > { %8373 = vmatprep.subr.bf16.mxu0 %v10091_v3  ;;  %v10167_v3 = vld [vmem:[%s11480_s9 + $0xf00] ss:$8 sps:$4 sm:$0xff]   ;;  %v8828_v57 = vcombine.high %v12069_v0, %v12072_v1 }
 0x2b1   : > { %8030 = vmatpush1.bf16.msra.mxu1 %v10086_v4  ;;  %v10170_v4 = vld [vmem:[%s11480_s9 + $0x710] ss:$8 sps:$4 sm:$0xff]  }
 0x2b2   : > { %8374 = vmatpush1.bf16.msra.mxu0 %v10089_v5  ;;  %8031 = vmatprep.subr.bf16.mxu1 %v10094_v6  ;;  %v10173_v5 = vld [vmem:[%s11480_s9 + $0xf10] ss:$8 sps:$4 sm:$0xff]   ;;  %v10178_v6 = vld [vmem:[%s11480_s9 + $0x724] ss:$8 sps:$4 sm:$0xff]  }
 0x2b3   : > { %8375 = vmatprep.subr.bf16.mxu0 %v10097_v7  ;;  %v10181_v7 = vld [vmem:[%s11480_s9 + $0xf24] ss:$8 sps:$4 sm:$0xff]  }
 0x2b5   : > { %8032 = vmatpush1.bf16.msra.mxu1 %v10092_v8  ;;  %v10176_v8 = vld [vmem:[%s11480_s9 + $0x720] ss:$8 sps:$4 sm:$0xff]  }
 0x2b6   : > { %8376 = vmatpush1.bf16.msra.mxu0 %v10095_v9  ;;  %8033 = vmatprep.subr.bf16.mxu1 %v10100_v10  ;;  %v10179_v9 = vld [vmem:[%s11480_s9 + $0xf20] ss:$8 sps:$4 sm:$0xff]   ;;  %v10184_v10 = vld [vmem:[%s11480_s9 + $0x734] ss:$8 sps:$4 sm:$0xff]  }
 0x2b7   : > { %8377 = vmatprep.subr.bf16.mxu0 %v10103_v11  ;;  %v10187_v11 = vld [vmem:[%s11480_s9 + $0xf34] ss:$8 sps:$4 sm:$0xff]  }
 0x2b9   : > { %8034 = vmatpush1.bf16.msra.mxu1 %v10098_v12  ;;  %v10182_v12 = vld [vmem:[%s11480_s9 + $0x730] ss:$8 sps:$4 sm:$0xff]  }
 0x2ba   : > { %8378 = vmatpush1.bf16.msra.mxu0 %v10101_v13  ;;  %8035 = vmatprep.subr.bf16.mxu1 %v10106_v14  ;;  %v10185_v13 = vld [vmem:[%s11480_s9 + $0xf30] ss:$8 sps:$4 sm:$0xff]   ;;  %v10190_v14 = vld [vmem:[%s11480_s9 + $0x744] ss:$8 sps:$4 sm:$0xff]  }
 0x2bb   : > { %8379 = vmatprep.subr.bf16.mxu0 %v10109_v15  ;;  %v10193_v15 = vld [vmem:[%s11480_s9 + $0xf44] ss:$8 sps:$4 sm:$0xff]  }
 0x2bd   : > { %8036 = vmatpush1.bf16.msra.mxu1 %v10104_v16  ;;  %v10188_v16 = vld [vmem:[%s11480_s9 + $0x740] ss:$8 sps:$4 sm:$0xff]  }
 0x2be   : > { %8380 = vmatpush1.bf16.msra.mxu0 %v10107_v17  ;;  %8037 = vmatprep.subr.bf16.mxu1 %v10112_v18  ;;  %v10191_v17 = vld [vmem:[%s11480_s9 + $0xf40] ss:$8 sps:$4 sm:$0xff]   ;;  %v10196_v18 = vld [vmem:[%s11480_s9 + $0x754] ss:$8 sps:$4 sm:$0xff]  }
 0x2bf   : > { %8381 = vmatprep.subr.bf16.mxu0 %v10115_v19  ;;  %v10199_v19 = vld [vmem:[%s11480_s9 + $0xf54] ss:$8 sps:$4 sm:$0xff]  }
 0x2c1   : > { %8038 = vmatpush1.bf16.msra.mxu1 %v10110_v20  ;;  %v10194_v20 = vld [vmem:[%s11480_s9 + $0x750] ss:$8 sps:$4 sm:$0xff]  }
 0x2c2   : > { %8382 = vmatpush1.bf16.msra.mxu0 %v10113_v21  ;;  %8039 = vmatprep.subr.bf16.mxu1 %v10118_v22  ;;  %v10197_v21 = vld [vmem:[%s11480_s9 + $0xf50] ss:$8 sps:$4 sm:$0xff]   ;;  %v10202_v22 = vld [vmem:[%s11480_s9 + $0x764] ss:$8 sps:$4 sm:$0xff]  }
 0x2c3   : > { %8383 = vmatprep.subr.bf16.mxu0 %v10121_v23  ;;  %v10205_v23 = vld [vmem:[%s11480_s9 + $0xf64] ss:$8 sps:$4 sm:$0xff]  }
 0x2c5   : > { %8040 = vmatpush1.bf16.msra.mxu1 %v10116_v26  ;;  %v10200_v26 = vld [vmem:[%s11480_s9 + $0x760] ss:$8 sps:$4 sm:$0xff]  }
 0x2c6   : > { %8384 = vmatpush1.bf16.msra.mxu0 %v10119_v27  ;;  %8041 = vmatprep.subr.bf16.mxu1 %v10124_v32  ;;  %v10203_v27 = vld [vmem:[%s11480_s9 + $0xf60] ss:$8 sps:$4 sm:$0xff]   ;;  %v10208_v32 = vld [vmem:[%s11480_s9 + $0x774] ss:$8 sps:$4 sm:$0xff]  }
 0x2c7   : > { %8385 = vmatprep.subr.bf16.mxu0 %v10127_v33  ;;  %v10211_v33 = vld [vmem:[%s11480_s9 + $0xf74] ss:$8 sps:$4 sm:$0xff]  }
 0x2c9   : > { %8042 = vmatpush1.bf16.msra.mxu1 %v10122_v36  ;;  %v10206_v36 = vld [vmem:[%s11480_s9 + $0x770] ss:$8 sps:$4 sm:$0xff]  }
 0x2ca   : > { %8386 = vmatpush1.bf16.msra.mxu0 %v10125_v37  ;;  %8043 = vmatprep.subr.bf16.mxu1 %v10130_v24  ;;  %v10209_v37 = vld [vmem:[%s11480_s9 + $0xf70] ss:$8 sps:$4 sm:$0xff]   ;;  %v10214_v24 = vld [vmem:[%s11480_s9 + $0x784] ss:$8 sps:$4 sm:$0xff]  }
 0x2cb   : > { %8387 = vmatprep.subr.bf16.mxu0 %v10133_v25  ;;  %v10217_v25 = vld [vmem:[%s11480_s9 + $0xf84] ss:$8 sps:$4 sm:$0xff]  }
 0x2cd   : > { %8044 = vmatpush1.bf16.msra.mxu1 %v10128_v29  ;;  %v10212_v29 = vld [vmem:[%s11480_s9 + $0x780] ss:$8 sps:$4 sm:$0xff]  }
 0x2ce   : > { %8388 = vmatpush1.bf16.msra.mxu0 %v10131_v30  ;;  %8045 = vmatprep.subr.bf16.mxu1 %v10136_v40  ;;  %v10215_v30 = vld [vmem:[%s11480_s9 + $0xf80] ss:$8 sps:$4 sm:$0xff]   ;;  %v10220_v40 = vld [vmem:[%s11480_s9 + $0x794] ss:$8 sps:$4 sm:$0xff]  }
 0x2cf   : > { %8389 = vmatprep.subr.bf16.mxu0 %v10139_v41  ;;  %v10223_v41 = vld [vmem:[%s11480_s9 + $0xf94] ss:$8 sps:$4 sm:$0xff]  }
 0x2d1   : > { %8046 = vmatpush1.bf16.msra.mxu1 %v10134_v44  ;;  %v10218_v44 = vld [vmem:[%s11480_s9 + $0x790] ss:$8 sps:$4 sm:$0xff]  }
 0x2d2   : > { %8390 = vmatpush1.bf16.msra.mxu0 %v10137_v45  ;;  %8047 = vmatprep.subr.bf16.mxu1 %v10142_v46  ;;  %v10221_v45 = vld [vmem:[%s11480_s9 + $0xf90] ss:$8 sps:$4 sm:$0xff]   ;;  %v10226_v46 = vld [vmem:[%s11480_s9 + $0x7a4] ss:$8 sps:$4 sm:$0xff]  }
 0x2d3   : > { %8391 = vmatprep.subr.bf16.mxu0 %v10145_v28  ;;  %v10229_v28 = vld [vmem:[%s11480_s9 + $0xfa4] ss:$8 sps:$4 sm:$0xff]  }
 0x2d5   : > { %8048 = vmatpush1.bf16.msra.mxu1 %v10140_v48  ;;  %v10224_v48 = vld [vmem:[%s11480_s9 + $0x7a0] ss:$8 sps:$4 sm:$0xff]  }
 0x2d6   : > { %8392 = vmatpush1.bf16.msra.mxu0 %v10143_v49  ;;  %8049 = vmatprep.subr.bf16.mxu1 %v10148_v50  ;;  %v10227_v49 = vld [vmem:[%s11480_s9 + $0xfa0] ss:$8 sps:$4 sm:$0xff]   ;;  %v10232_v50 = vld [vmem:[%s11480_s9 + $0x7b4] ss:$8 sps:$4 sm:$0xff]  }
 0x2d7   : > { %8393 = vmatprep.subr.bf16.mxu0 %v10151_v51  ;;  %v10235_v51 = vld [vmem:[%s11480_s9 + $0xfb4] ss:$8 sps:$4 sm:$0xff]  }
 0x2d9   : > { %8050 = vmatpush1.bf16.msra.mxu1 %v10146_v52  ;;  %v10230_v52 = vld [vmem:[%s11480_s9 + $0x7b0] ss:$8 sps:$4 sm:$0xff]  }
 0x2da   : > { %8394 = vmatpush1.bf16.msra.mxu0 %v10149_v53  ;;  %8051 = vmatprep.subr.bf16.mxu1 %v10154_v54  ;;  %v10233_v53 = vld [vmem:[%s11480_s9 + $0xfb0] ss:$8 sps:$4 sm:$0xff]   ;;  %v10238_v54 = vld [vmem:[%s11480_s9 + $0x7c4] ss:$8 sps:$4 sm:$0xff]  }
 0x2db   : > { %8395 = vmatprep.subr.bf16.mxu0 %v10157_v38  ;;  %v10241_v38 = vld [vmem:[%s11480_s9 + $0xfc4] ss:$8 sps:$4 sm:$0xff]  }
 0x2dd   : > { %8052 = vmatpush1.bf16.msra.mxu1 %v10152_v42  ;;  %v10236_v42 = vld [vmem:[%s11480_s9 + $0x7c0] ss:$8 sps:$4 sm:$0xff]  }
 0x2de   : > { %8396 = vmatpush1.bf16.msra.mxu0 %v10155_v43  ;;  %8053 = vmatprep.subr.bf16.mxu1 %v10160_v58  ;;  %v10239_v43 = vld [vmem:[%s11480_s9 + $0xfc0] ss:$8 sps:$4 sm:$0xff]   ;;  %v10244_v58 = vld [vmem:[%s11480_s9 + $0x7d4] ss:$8 sps:$4 sm:$0xff]  }
 0x2df   : > { %8397 = vmatprep.subr.bf16.mxu0 %v10163_v59  ;;  %v10247_v59 = vld [vmem:[%s11480_s9 + $0xfd4] ss:$8 sps:$4 sm:$0xff]  }
 0x2e1   : > { %8054 = vmatpush1.bf16.msra.mxu1 %v10158_v31  ;;  %v10242_v31 = vld [vmem:[%s11480_s9 + $0x7d0] ss:$8 sps:$4 sm:$0xff]  }
 0x2e2   : > { %8398 = vmatpush1.bf16.msra.mxu0 %v10161_v34  ;;  %8066 = vmatprep.subr.bf16.mxu1 %v10166_v35  ;;  %v10245_v34 = vld [vmem:[%s11480_s9 + $0xfd0] ss:$8 sps:$4 sm:$0xff]   ;;  %v10250_v35 = vld [vmem:[%s11480_s9 + $0x7e4] ss:$8 sps:$4 sm:$0xff]  }
 0x2e3   : > { %8410 = vmatprep.subr.bf16.mxu0 %v10169_v47  ;;  %v10253_v47 = vld [vmem:[%s11480_s9 + $0xfe4] ss:$8 sps:$4 sm:$0xff]  }
 0x2e4   : > { %8056 = vmatmul.mubr.bf16.vlgmr.msra.gmra.mrb[0].mxu1 %v8809_v61  ;;  %v10248_v61 = vld [vmem:[%s11480_s9 + $0x7e0] ss:$8 sps:$4 sm:$0xff]  }
 0x2e5   : > { %8400 = vmatmul.mubr.bf16.vlgmr.msra.gmra.mrb[0].mxu0 %v8825_v62  ;;  %8067 = vmatpush1.bf16.msra.mxu1 %v10164_v2  ;;  %v10251_v62 = vld [vmem:[%s11480_s9 + $0xfe0] ss:$8 sps:$4 sm:$0xff]   ;;  %v10256_v2 = vld [vmem:[%s11480_s9 + $0x7f4] ss:$8 sps:$4 sm:$0xff]  }
 0x2e6   : > { %8411 = vmatpush1.bf16.msra.mxu0 %v10167_v3  ;;  %8068 = vmatprep.subr.bf16.mxu1 %v10172_v39  ;;  %v10259_v3 = vld [vmem:[%s11480_s9 + $0xff4] ss:$8 sps:$4 sm:$0xff]   ;;  %v10254_v39 = vld [vmem:[%s11480_s9 + $0x7f0] ss:$8 sps:$4 sm:$0xff]  }
 0x2e7   : > { %8412 = vmatprep.subr.bf16.mxu0 %v10175_v55  ;;  %8098 = vmatprep.mubr.bf16.mxu1 %v8812_v56  ;;  %v10257_v55 = vld [vmem:[%s11480_s9 + $0xff0] ss:$8 sps:$4 sm:$0xff]   ;;  %v8811_v56 = vcombine.low %v12059_v60, %v12066_v63  ;;  %v5033_v63 = vld [vmem:[%s4467_s7] sm:$0x3]  ;;  %s4473_s9 = scalar_select %p4472_p2, %s10314_s22, 1 }
 0x2e8   : > { %8442 = vmatprep.mubr.bf16.mxu0 %v8828_v57  ;;  %v8827_v57 = vcombine.low %v12069_v0, %v12072_v1 }
 0x2e9   : > { %8069 = vmatpush1.bf16.msra.mxu1 %v10170_v4  ;;  %v5035_v4 = vlaneseq  ;;  %s8794_s20 = sshll.u32 %s4473_s9, 2 }
 0x2ea   : > { %8413 = vmatpush1.bf16.msra.mxu0 %v10173_v5  ;;  %8070 = vmatprep.subr.bf16.mxu1 %v10178_v6  ;;  %s4477_s10 = sadd.s32 %s8794_s20, %s12149_s29  ;;  %s9354_s29 = sshll.u32 (%p10431_p9), %s10314_s22, 3 }
 0x2eb   : > { %8414 = vmatprep.subr.bf16.mxu0 %v10181_v7  ;;  %v12152_v5 = vshrl.u32 %v5035_v4, 7  ;;  %s4478_s16 = scalar_lea.vmem %s12216_s4, %s4477_s10  ;;  %vm8501_vm0 = vcmp.lt.s32.totalorder %v5035_v4, 256  ;;  %s4487_s7 = scalar_lea.vmem %s12217_s5, %s4477_s10 }
 0x2ec   : > { %s8567_s23 = sadd.s32 (%p10431_p9), %s9354_s29, %s12145_s17 }
 0x2ed   : > { %8071 = vmatpush1.bf16.msra.mxu1 %v10176_v8  ;;  %v5037_v60 = vsub.s32 0, %v12152_v5  ;;  %v5041_v0 = vsub.s32 1, %v12152_v5  ;;  %s9347_s8 = sshll.u32 (%p10431_p9), %s8567_s23, 2 }
 0x2ee   : > { %8415 = vmatpush1.bf16.msra.mxu0 %v10179_v9  ;;  %8072 = vmatprep.subr.bf16.mxu1 %v10184_v10  ;;  %s8569_s14 = scalar_lea.vmem (%p10431_p9), %s12215_s3, %s9347_s8 }
 0x2ef   : > { %8416 = vmatprep.subr.bf16.mxu0 %v10187_v11  ;;  %v5038_v1 = vrot.slane %v5033_v63, %v5037_v60  ;;  %v5042_v6 = vrot.slane %v5033_v63, %v5041_v0 }
 0x2f1   : > { %8073 = vmatpush1.bf16.msra.mxu1 %v10182_v12 }
 0x2f2   : > { %8417 = vmatpush1.bf16.msra.mxu0 %v10185_v13  ;;  %8074 = vmatprep.subr.bf16.mxu1 %v10190_v14 }
 0x2f3   : > { %8418 = vmatprep.subr.bf16.mxu0 %v10193_v15 }
 0x2f5   : > { %8075 = vmatpush1.bf16.msra.mxu1 %v10188_v16 }
 0x2f6   : > { %8419 = vmatpush1.bf16.msra.mxu0 %v10191_v17  ;;  %8076 = vmatprep.subr.bf16.mxu1 %v10196_v18 }
 0x2f7   : > { %8420 = vmatprep.subr.bf16.mxu0 %v10199_v19 }
 0x2f9   : > { %8077 = vmatpush1.bf16.msra.mxu1 %v10194_v20 }
 0x2fa   : > { %8421 = vmatpush1.bf16.msra.mxu0 %v10197_v21  ;;  %8078 = vmatprep.subr.bf16.mxu1 %v10202_v22 }
 0x2fb   : > { %8422 = vmatprep.subr.bf16.mxu0 %v10205_v23 }
 0x2fd   : > { %8079 = vmatpush1.bf16.msra.mxu1 %v10200_v26 }
 0x2fe   : > { %8423 = vmatpush1.bf16.msra.mxu0 %v10203_v27  ;;  %8080 = vmatprep.subr.bf16.mxu1 %v10208_v32 }
 0x2ff   : > { %8424 = vmatprep.subr.bf16.mxu0 %v10211_v33 }
 0x301   : > { %8081 = vmatpush1.bf16.msra.mxu1 %v10206_v36 }
 0x302   : > { %8425 = vmatpush1.bf16.msra.mxu0 %v10209_v37  ;;  %8082 = vmatprep.subr.bf16.mxu1 %v10214_v24 }
 0x303   : > { %8426 = vmatprep.subr.bf16.mxu0 %v10217_v25 }
 0x305   : > { %8083 = vmatpush1.bf16.msra.mxu1 %v10212_v29 }
 0x306   : > { %8427 = vmatpush1.bf16.msra.mxu0 %v10215_v30  ;;  %8084 = vmatprep.subr.bf16.mxu1 %v10220_v40 }
 0x307   : > { %8428 = vmatprep.subr.bf16.mxu0 %v10223_v41 }
 0x309   : > { %8085 = vmatpush1.bf16.msra.mxu1 %v10218_v44 }
 0x30a   : > { %8429 = vmatpush1.bf16.msra.mxu0 %v10221_v45  ;;  %8086 = vmatprep.subr.bf16.mxu1 %v10226_v46  ;;  %v10332_v45 = vmov 1966171168  }
 0x30b   : > { %8430 = vmatprep.subr.bf16.mxu0 %v10229_v28  ;;  %v8485_v46 = vunpack.c.l.s4 %v10332_v45 }
 0x30d   : > { %8087 = vmatpush1.bf16.msra.mxu1 %v10224_v48 }
 0x30e   : > { %8431 = vmatpush1.bf16.msra.mxu0 %v10227_v49  ;;  %8088 = vmatprep.subr.bf16.mxu1 %v10232_v50 }
 0x30f   : > { %8432 = vmatprep.subr.bf16.mxu0 %v10235_v51 }
 0x311   : > { %8089 = vmatpush1.bf16.msra.mxu1 %v10230_v52 }
 0x312   : > { %8433 = vmatpush1.bf16.msra.mxu0 %v10233_v53  ;;  %8090 = vmatprep.subr.bf16.mxu1 %v10238_v54 }
 0x313   : > { %8434 = vmatprep.subr.bf16.mxu0 %v10241_v38  ;;  %v8486_v38 = vunpack.c.0.s8 %v8485_v46 }
 0x315   : > { %8091 = vmatpush1.bf16.msra.mxu1 %v10236_v42 }
 0x316   : > { %8435 = vmatpush1.bf16.msra.mxu0 %v10239_v43  ;;  %8092 = vmatprep.subr.bf16.mxu1 %v10244_v58 }
 0x317   : > { %8436 = vmatprep.subr.bf16.mxu0 %v10247_v59 }
 0x319   : > { %8093 = vmatpush1.bf16.msra.mxu1 %v10242_v31 }
 0x31a   : > { %8437 = vmatpush1.bf16.msra.mxu0 %v10245_v34  ;;  %8094 = vmatprep.subr.bf16.mxu1 %v10250_v35 }
 0x31b   : > { %8438 = vmatprep.subr.bf16.mxu0 %v10253_v47 }
 0x31d   : > { %8095 = vmatpush1.bf16.msra.mxu1 %v10248_v61  ;;  %v8489_v61 = vsub.s32 %v8486_v38, %v12152_v5 }
 0x31e   : > { %8439 = vmatpush1.bf16.msra.mxu0 %v10251_v62  ;;  %8096 = vmatprep.subr.bf16.mxu1 %v10256_v2 }
 0x31f   : > { %8440 = vmatprep.subr.bf16.mxu0 %v10259_v3 }
 0x321   : > { %8097 = vmatpush1.bf16.msra.mxu1 %v10254_v39 }
 0x322   : > { %8441 = vmatpush1.bf16.msra.mxu0 %v10257_v55 }
 0x324   : > { %8099 = vmatmul.mubr.bf16.vlgmr.msra.gmra.mrb[0].mxu1 %v8811_v56 }
 0x325   : > { %8443 = vmatmul.mubr.bf16.vlgmr.msra.gmra.mrb[0].mxu0 %v8827_v57 }
 0x3f7   : > { %v8100_v7 = vpop.f32.mrb[0].mxu1 }
 0x3f8   : > { %v8444_v8 = vpop.f32.mrb[0].mxu0  ;;  %v9355_v9 = vadd.f32 %v8100_v7, %v5038_v1  ;;  %v8102_v10 = vpop.f32.mrb[1].mxu1 }
 0x3f9   : > { %v8446_v11 = vpop.f32.mrb[1].mxu0  ;;  %v9357_v12 = vadd.f32 %v8102_v10, %v5042_v6  ;;  %v8104_v13 = vpop.f32.mrb[2].mxu1 }
 0x3fa   : > { %v8448_v14 = vpop.f32.mrb[2].mxu0  ;;  %v9356_v15 = vadd.f32 %v9355_v9, %v8444_v8  ;;  %v9359_v16 = vadd.f32 %v8104_v13, %v5038_v1  ;;  %v8106_v17 = vpop.f32.mrb[3].mxu1 }
 0x3fb   : > { %v8450_v18 = vpop.f32.mrb[3].mxu0  ;;  %v9358_v19 = vadd.f32 %v9357_v12, %v8446_v11  ;;  %v9361_v20 = vadd.f32 %v8106_v17, %v5042_v6 }
 0x3fc   : > { %v9360_v21 = vadd.f32 %v9359_v16, %v8448_v14  ;;  %v8504_v26 = vmul.f32 %v9356_v15, %v9356_v15 }
 0x3fd   : > { %v9352_v22 = vpack.c.bf16 %v9358_v19, %v9356_v15  ;;  %v9362_v23 = vadd.f32 %v9361_v20, %v8450_v18  ;;  %v8505_v33 = vmul.f32 %v9358_v19, %v9358_v19 }
 0x3fe   : > { %v8467_v27 = vadd.f32 %v9360_v21, %v9356_v15  ;;  %v8506_v32 = vmul.f32 %v9360_v21, %v9360_v21 }
 0x3ff   : > { %8465 = vst [vmem:[%s12161_s18] sm:$0xff] %v9352_v22  ;;  %v9353_v36 = vpack.c.bf16 %v9362_v23, %v9360_v21  ;;  %v8474_v37 = vadd.f32 %v9362_v23, %v9358_v19  ;;  %v8507_v24 = vmul.f32 %v9362_v23, %v9362_v23 }
 0x400   : > { %v8468_v25 = vrot.slane %v8467_v27, 4  ;;  %v8508_v29 = vadd.f32 %v8506_v32, %v8504_v26 }
 0x401   : > { %8466 = vst [vmem:[%s12161_s18 + $0x8] sm:$0xff] %v9353_v36  ;;  %v8475_v30 = vrot.slane %v8474_v37, 4  ;;  %v8515_v40 = vadd.f32 %v8507_v24, %v8505_v33 }
 0x402   : > { %v8469_v41 = vadd.f32 %v8468_v25, %v8467_v27  ;;  %v8509_v44 = vrot.slane %v8508_v29, 4 }
 0x403   : > { %v8476_v28 = vadd.f32 %v8475_v30, %v8474_v37  ;;  %v8516_v48 = vrot.slane %v8515_v40, 4 }
 0x404   : > { %v8470_v49 = vrot.slane %v8469_v41, 2  ;;  %v8510_v50 = vadd.f32 %v8509_v44, %v8508_v29 }
 0x405   : > { %v8477_v51 = vrot.slane %v8476_v28, 2  ;;  %v8517_v52 = vadd.f32 %v8516_v48, %v8515_v40 }
 0x406   : > { %v8471_v53 = vadd.f32 %v8470_v49, %v8469_v41  ;;  %v8511_v54 = vrot.slane %v8510_v50, 2  ;;  %v8599_v0 = vld [vmem:[%s12161_s18] sm:$0xff] (%p10431_p9) }
 0x407   : > { %v8478_v42 = vadd.f32 %v8477_v51, %v8476_v28  ;;  %v8518_v43 = vrot.slane %v8517_v52, 2  ;;  %8600 = vst [vmem:[%s8569_s14] sm:$0xff] (%p10431_p9), %v8599_v0 }
 0x408   : > { %v8472_v58 = vrot.slane %v8471_v53, 1  ;;  %v8512_v59 = vadd.f32 %v8511_v54, %v8510_v50  ;;  %v8601_v4 = vld [vmem:[%s12161_s18 + $0x8] sm:$0xff] (%p10431_p9) }
 0x409   : > { %v8479_v31 = vrot.slane %v8478_v42, 1  ;;  %v8519_v34 = vadd.f32 %v8518_v43, %v8517_v52  ;;  %8602 = vst [vmem:[%s8569_s14 + $0x10] sm:$0xff] (%p10431_p9), %v8601_v4 }
 0x40a   : > { %v8473_v35 = vadd.f32 %v8472_v58, %v8471_v53  ;;  %v8513_v47 = vrot.slane %v8512_v59, 1 }
 0x40b   : > { %v8480_v62 = vadd.f32 %v8479_v31, %v8478_v42  ;;  %v8520_v2 = vrot.slane %v8519_v34, 1 }
 0x40c   : > { %v8514_v3 = vadd.f32 %v8513_v47, %v8512_v59 }
 0x40d   : > { %v8483_v39 = vcombine.low %v8473_v35, %v8480_v62  ;;  %v8521_v55 = vadd.f32 %v8520_v2, %v8519_v34 }
 0x40f   : > { %v8490_v56 = vrot.slane %v8483_v39, %v8489_v61  ;;  %v8524_v57 = vcombine.low %v8514_v3, %v8521_v55  ;;  %8563 = sbr.rel (!%p10431_p9) target bundleno = 1046 (0x416), region = 88 }
 0x411   : > { %v8497_v60 = vrot.slane %v8490_v56, %v8489_v61  ;;  %v8531_v63 = vrot.slane %v8524_v57, %v8489_v61 }
 0x413   : > { %8503 = vst.msk [vmem:[%s4478_s16] sm:$0x3] %vm8501_vm0, %v8497_v60  ;;  %v8538_v5 = vrot.slane %v8531_v63, %v8489_v61 }
 0x415   : > { %8540 = vst.msk [vmem:[%s4487_s7] sm:$0x3] %vm8501_vm0, %v8538_v5 }
 0x416 PF: > { %s16_s26 = sadd.s32 1, %s10330_s26   ;;  %s12220_s18 = smov %s10302_s19 }
 0x417   : > { %p13_p3 = scmp.ge.s32.totalorder %s16_s26, 6   ;;  %s12221_s19 = smov %s10439_s13 }
 0x418   : > { %s12222_s20 = smov %s10310_s21  ;;  %s12223_s21 = smov %s10436_s12 }
 0x419   : > { %s12224_s22 = smov %s10322_s24  ;;  %s12225_s23 = smov %s10326_s25 }
 0x41a   : > { %s12226_s24 = smov %s12229_s27  ;;  %s12227_s25 = smov %s12233_s28 }
 0x41b   :  { %15 = sbr.rel (!%p13_p3) target bundleno = 5 (0x5), region = 193 }

// kernel: discriminator_forward.15
= control target key start
LH: loop header
LB: loop body
LE: loop exit
PB: predicated region body
PF: predicated region fallthrough
CT: control target
= control target key end

     0   :  { %s9418_s1 = inlined_call_operand.vmem [shape: bf16[8192,128], index: 1, kind: input, shape index: {}]   ;;  %s9419_s0 = inlined_call_operand.vmem [shape: bf16[16,8192], index: 0, kind: input, shape index: {}]   ;;  %s9420_s2 = inlined_call_operand.vmem [shape: f32[1,128], index: 2, kind: input, shape index: {}]   ;;  %s9421_s3 = inlined_call_operand.vmem [shape: f32[16,128], index: 3, kind: output, shape index: {}]  }
   0x1   :  { %v7101_v0 = vld [vmem:[%s9418_s1 + $0x40] sm:$0xff]   ;;  %v7105_v4 = vld [vmem:[%s9418_s1 + $0x48] sm:$0xff]   ;;  %v7109_v8 = vld [vmem:[%s9418_s1 + $0x50] sm:$0xff]  }
   0x2   :  { %v7102_v1 = vld [vmem:[%s9418_s1 + $0xc0] sm:$0xff]   ;;  %6397 = vmatprep.subr.bf16.mxu0 %v7101_v0  ;;  %v7106_v5 = vld [vmem:[%s9418_s1 + $0xc8] sm:$0xff]   ;;  %v7110_v9 = vld [vmem:[%s9418_s1 + $0xd0] sm:$0xff]  }
   0x3   :  { %v7103_v2 = vld [vmem:[%s9418_s1] sm:$0xff]   ;;  %6419 = vmatprep.subr.bf16.mxu1 %v7102_v1  ;;  %v7107_v6 = vld [vmem:[%s9418_s1 + $0x8] sm:$0xff]   ;;  %v7111_v10 = vld [vmem:[%s9418_s1 + $0x10] sm:$0xff]  }
   0x4   :  { %v7104_v3 = vld [vmem:[%s9418_s1 + $0x80] sm:$0xff]   ;;  %6398 = vmatpush3.bf16.msra.mxu0 %v7103_v2  ;;  %v7108_v7 = vld [vmem:[%s9418_s1 + $0x88] sm:$0xff]   ;;  %v7112_v11 = vld [vmem:[%s9418_s1 + $0x90] sm:$0xff]  }
   0x5   :  { %6420 = vmatpush3.bf16.msra.mxu1 %v7104_v3  ;;  %6399 = vmatprep.subr.bf16.mxu0 %v7105_v4  ;;  %v7113_v12 = vld [vmem:[%s9418_s1 + $0x58] sm:$0xff]   ;;  %v7117_v16 = vld [vmem:[%s9418_s1 + $0x60] sm:$0xff]   ;;  %v7121_v20 = vld [vmem:[%s9418_s1 + $0x68] sm:$0xff]  }
   0x6   :  { %6421 = vmatprep.subr.bf16.mxu1 %v7106_v5  ;;  %v7114_v13 = vld [vmem:[%s9418_s1 + $0xd8] sm:$0xff]   ;;  %v7118_v17 = vld [vmem:[%s9418_s1 + $0xe0] sm:$0xff]   ;;  %v7122_v21 = vld [vmem:[%s9418_s1 + $0xe8] sm:$0xff]  }
   0x7   :  { %v7115_v14 = vld [vmem:[%s9418_s1 + $0x18] sm:$0xff]   ;;  %v7119_v18 = vld [vmem:[%s9418_s1 + $0x20] sm:$0xff]   ;;  %v7123_v22 = vld [vmem:[%s9418_s1 + $0x28] sm:$0xff]  }
   0x8   :  { %6400 = vmatpush3.bf16.msra.mxu0 %v7107_v6  ;;  %v7116_v15 = vld [vmem:[%s9418_s1 + $0x98] sm:$0xff]   ;;  %v7120_v19 = vld [vmem:[%s9418_s1 + $0xa0] sm:$0xff]   ;;  %v7124_v23 = vld [vmem:[%s9418_s1 + $0xa8] sm:$0xff]  }
   0x9   :  { %6422 = vmatpush3.bf16.msra.mxu1 %v7108_v7  ;;  %6401 = vmatprep.subr.bf16.mxu0 %v7109_v8  ;;  %v7125_v24 = vld [vmem:[%s9418_s1 + $0x70] sm:$0xff]   ;;  %v7129_v28 = vld [vmem:[%s9418_s1 + $0x78] sm:$0xff]   ;;  %v15_v32 = vld [vmem:[%s9419_s0] sm:$0xff] }
   0xa   :  { %6423 = vmatprep.subr.bf16.mxu1 %v7110_v9  ;;  %v7126_v25 = vld [vmem:[%s9418_s1 + $0xf0] sm:$0xff]   ;;  %v7130_v29 = vld [vmem:[%s9418_s1 + $0xf8] sm:$0xff]   ;;  %v47_v33 = vld [vmem:[%s9419_s0 + $0x100] sm:$0xff] }
   0xb   :  { %v7127_v26 = vld [vmem:[%s9418_s1 + $0x30] sm:$0xff]   ;;  %v7131_v30 = vld [vmem:[%s9418_s1 + $0x38] sm:$0xff]   ;;  %v16_v34 = vld [vmem:[%s9419_s0 + $0x8] sm:$0xff]  ;;  %v5821_v35 = vcombine.low %v15_v32, %v47_v33  ;;  %v5822_v36 = vcombine.high %v15_v32, %v47_v33 }
   0xc   :  { %6402 = vmatpush3.bf16.msra.mxu0 %v7111_v10  ;;  %v7128_v27 = vld [vmem:[%s9418_s1 + $0xb0] sm:$0xff]   ;;  %v7132_v31 = vld [vmem:[%s9418_s1 + $0xb8] sm:$0xff]   ;;  %v48_v37 = vld [vmem:[%s9419_s0 + $0x108] sm:$0xff] }
   0xd   :  { %6424 = vmatpush3.bf16.msra.mxu1 %v7112_v11  ;;  %6403 = vmatprep.subr.bf16.mxu0 %v7113_v12  ;;  %v5823_v38 = vcombine.low %v16_v34, %v48_v37  ;;  %v5824_v39 = vcombine.high %v16_v34, %v48_v37  ;;  %v7133_v40 = vld [vmem:[%s9418_s1 + $0x140] sm:$0xff]   ;;  %v7137_v44 = vld [vmem:[%s9418_s1 + $0x148] sm:$0xff]   ;;  %v7141_v48 = vld [vmem:[%s9418_s1 + $0x150] sm:$0xff]  }
   0xe   :  { %6425 = vmatprep.subr.bf16.mxu1 %v7114_v13  ;;  %4534 = vmatprep.mubr.bf16.mxu0 %v5822_v36  ;;  %v7134_v41 = vld [vmem:[%s9418_s1 + $0x1c0] sm:$0xff]   ;;  %v7138_v45 = vld [vmem:[%s9418_s1 + $0x1c8] sm:$0xff]   ;;  %v7142_v49 = vld [vmem:[%s9418_s1 + $0x1d0] sm:$0xff]  }
   0xf   :  { %4575 = vmatprep.mubr.bf16.mxu1 %v5824_v39  ;;  %v7135_v42 = vld [vmem:[%s9418_s1 + $0x100] sm:$0xff]   ;;  %v7139_v46 = vld [vmem:[%s9418_s1 + $0x108] sm:$0xff]   ;;  %v7143_v50 = vld [vmem:[%s9418_s1 + $0x110] sm:$0xff]  }
  0x10   :  { %6404 = vmatpush3.bf16.msra.mxu0 %v7115_v14  ;;  %v7136_v43 = vld [vmem:[%s9418_s1 + $0x180] sm:$0xff]   ;;  %v7140_v47 = vld [vmem:[%s9418_s1 + $0x188] sm:$0xff]   ;;  %v7144_v51 = vld [vmem:[%s9418_s1 + $0x190] sm:$0xff]  }
  0x11   :  { %6426 = vmatpush3.bf16.msra.mxu1 %v7116_v15  ;;  %6405 = vmatprep.subr.bf16.mxu0 %v7117_v16  ;;  %v7145_v52 = vld [vmem:[%s9418_s1 + $0x158] sm:$0xff]   ;;  %v7149_v56 = vld [vmem:[%s9418_s1 + $0x160] sm:$0xff]   ;;  %v7153_v60 = vld [vmem:[%s9418_s1 + $0x168] sm:$0xff]  }
  0x12   :  { %6427 = vmatprep.subr.bf16.mxu1 %v7118_v17  ;;  %v7146_v53 = vld [vmem:[%s9418_s1 + $0x1d8] sm:$0xff]   ;;  %v7150_v57 = vld [vmem:[%s9418_s1 + $0x1e0] sm:$0xff]   ;;  %v7154_v61 = vld [vmem:[%s9418_s1 + $0x1e8] sm:$0xff]  }
  0x13   :  { %v7147_v54 = vld [vmem:[%s9418_s1 + $0x118] sm:$0xff]   ;;  %v7151_v58 = vld [vmem:[%s9418_s1 + $0x120] sm:$0xff]   ;;  %v7155_v62 = vld [vmem:[%s9418_s1 + $0x128] sm:$0xff]  }
  0x14   :  { %6406 = vmatpush3.bf16.msra.mxu0 %v7119_v18  ;;  %v7148_v55 = vld [vmem:[%s9418_s1 + $0x198] sm:$0xff]   ;;  %v7152_v59 = vld [vmem:[%s9418_s1 + $0x1a0] sm:$0xff]   ;;  %v7156_v63 = vld [vmem:[%s9418_s1 + $0x1a8] sm:$0xff]  }
  0x15   :  { %6428 = vmatpush3.bf16.msra.mxu1 %v7120_v19  ;;  %6407 = vmatprep.subr.bf16.mxu0 %v7121_v20  ;;  %v7157_v0 = vld [vmem:[%s9418_s1 + $0x170] sm:$0xff]   ;;  %v7161_v4 = vld [vmem:[%s9418_s1 + $0x178] sm:$0xff]   ;;  %v7165_v16 = vld [vmem:[%s9418_s1 + $0x240] sm:$0xff]  }
  0x16   :  { %6429 = vmatprep.subr.bf16.mxu1 %v7122_v21  ;;  %v7158_v1 = vld [vmem:[%s9418_s1 + $0x1f0] sm:$0xff]   ;;  %v7162_v5 = vld [vmem:[%s9418_s1 + $0x1f8] sm:$0xff]   ;;  %v7166_v17 = vld [vmem:[%s9418_s1 + $0x2c0] sm:$0xff]  }
  0x17   :  { %v7159_v2 = vld [vmem:[%s9418_s1 + $0x130] sm:$0xff]   ;;  %v7163_v6 = vld [vmem:[%s9418_s1 + $0x138] sm:$0xff]   ;;  %v7167_v18 = vld [vmem:[%s9418_s1 + $0x200] sm:$0xff]  }
  0x18   :  { %6408 = vmatpush3.bf16.msra.mxu0 %v7123_v22  ;;  %v7160_v3 = vld [vmem:[%s9418_s1 + $0x1b0] sm:$0xff]   ;;  %v7164_v7 = vld [vmem:[%s9418_s1 + $0x1b8] sm:$0xff]   ;;  %v7168_v19 = vld [vmem:[%s9418_s1 + $0x280] sm:$0xff]  }
  0x19   :  { %6430 = vmatpush3.bf16.msra.mxu1 %v7124_v23  ;;  %6409 = vmatprep.subr.bf16.mxu0 %v7125_v24  ;;  %v17_v8 = vld [vmem:[%s9419_s0 + $0x10] sm:$0xff]  ;;  %v18_v12 = vld [vmem:[%s9419_s0 + $0x18] sm:$0xff]  ;;  %v7169_v20 = vld [vmem:[%s9418_s1 + $0x248] sm:$0xff]  }
  0x1a   :  { %6431 = vmatprep.subr.bf16.mxu1 %v7126_v25  ;;  %v49_v9 = vld [vmem:[%s9419_s0 + $0x110] sm:$0xff]  ;;  %v50_v13 = vld [vmem:[%s9419_s0 + $0x118] sm:$0xff]  ;;  %v7170_v21 = vld [vmem:[%s9418_s1 + $0x2c8] sm:$0xff]  }
  0x1b   :  { %v5825_v10 = vcombine.low %v17_v8, %v49_v9  ;;  %v5826_v11 = vcombine.high %v17_v8, %v49_v9  ;;  %v5827_v14 = vcombine.low %v18_v12, %v50_v13  ;;  %v5828_v15 = vcombine.high %v18_v12, %v50_v13  ;;  %v7171_v22 = vld [vmem:[%s9418_s1 + $0x208] sm:$0xff]   ;;  %v7173_v24 = vld [vmem:[%s9418_s1 + $0x250] sm:$0xff]   ;;  %v7181_v32 = vld [vmem:[%s9418_s1 + $0x260] sm:$0xff]  }
  0x1c   :  { %6410 = vmatpush3.bf16.msra.mxu0 %v7127_v26  ;;  %v7172_v23 = vld [vmem:[%s9418_s1 + $0x288] sm:$0xff]   ;;  %v7174_v25 = vld [vmem:[%s9418_s1 + $0x2d0] sm:$0xff]   ;;  %v7182_v33 = vld [vmem:[%s9418_s1 + $0x2e0] sm:$0xff]  }
  0x1d   :  { %6432 = vmatpush3.bf16.msra.mxu1 %v7128_v27  ;;  %6411 = vmatprep.subr.bf16.mxu0 %v7129_v28  ;;  %v7175_v26 = vld [vmem:[%s9418_s1 + $0x210] sm:$0xff]   ;;  %v7177_v28 = vld [vmem:[%s9418_s1 + $0x258] sm:$0xff]   ;;  %v7183_v34 = vld [vmem:[%s9418_s1 + $0x220] sm:$0xff]  }
  0x1e   :  { %6433 = vmatprep.subr.bf16.mxu1 %v7130_v29  ;;  %v7176_v27 = vld [vmem:[%s9418_s1 + $0x290] sm:$0xff]   ;;  %v7178_v29 = vld [vmem:[%s9418_s1 + $0x2d8] sm:$0xff]   ;;  %v7185_v36 = vld [vmem:[%s9418_s1 + $0x268] sm:$0xff]  }
  0x1f   :  { %v7186_v37 = vld [vmem:[%s9418_s1 + $0x2e8] sm:$0xff]   ;;  %v7213_v8 = vld [vmem:[%s9418_s1 + $0x360] sm:$0xff]  }
  0x20   :  { %6412 = vmatpush3.bf16.msra.mxu0 %v7131_v30  ;;  %v7179_v30 = vld [vmem:[%s9418_s1 + $0x218] sm:$0xff]   ;;  %v7188_v39 = vld [vmem:[%s9418_s1 + $0x2a8] sm:$0xff]   ;;  %v7214_v9 = vld [vmem:[%s9418_s1 + $0x3e0] sm:$0xff]  }
  0x21   :  { %6434 = vmatpush3.bf16.msra.mxu1 %v7132_v31  ;;  %6441 = vmatprep.subr.bf16.mxu0 %v7133_v40  ;;  %v7180_v31 = vld [vmem:[%s9418_s1 + $0x298] sm:$0xff]   ;;  %v7189_v40 = vld [vmem:[%s9418_s1 + $0x270] sm:$0xff]   ;;  %v7217_v12 = vld [vmem:[%s9418_s1 + $0x368] sm:$0xff]  }
  0x22   :  { %6463 = vmatprep.subr.bf16.mxu1 %v7134_v41  ;;  %v7190_v41 = vld [vmem:[%s9418_s1 + $0x2f0] sm:$0xff]   ;;  %v7218_v13 = vld [vmem:[%s9418_s1 + $0x3e8] sm:$0xff]  }
  0x23   :  { %4535 = vmatmul.mubr.bf16.vlgmr.msra.gmra.mrb[0].mxu0 %v5821_v35  ;;  %v7184_v35 = vld [vmem:[%s9418_s1 + $0x2a0] sm:$0xff]  }
  0x24   :  { %4576 = vmatmul.mubr.bf16.vlgmr.msra.gmra.mrb[0].mxu1 %v5823_v38  ;;  %6442 = vmatpush3.bf16.msra.mxu0 %v7135_v42  ;;  %v7187_v38 = vld [vmem:[%s9418_s1 + $0x228] sm:$0xff]   ;;  %v7191_v42 = vld [vmem:[%s9418_s1 + $0x230] sm:$0xff]  }
  0x25   :  { %6464 = vmatpush3.bf16.msra.mxu1 %v7136_v43  ;;  %6443 = vmatprep.subr.bf16.mxu0 %v7137_v44  ;;  %v7192_v43 = vld [vmem:[%s9418_s1 + $0x2b0] sm:$0xff]   ;;  %v7193_v44 = vld [vmem:[%s9418_s1 + $0x278] sm:$0xff]  }
  0x26   :  { %6465 = vmatprep.subr.bf16.mxu1 %v7138_v45  ;;  %4616 = vmatprep.mubr.bf16.mxu0 %v5826_v11  ;;  %v7194_v45 = vld [vmem:[%s9418_s1 + $0x2f8] sm:$0xff]   ;;  %v7216_v11 = vld [vmem:[%s9418_s1 + $0x3a0] sm:$0xff]  }
  0x27   :  { %4657 = vmatprep.mubr.bf16.mxu1 %v5828_v15  ;;  %v7220_v15 = vld [vmem:[%s9418_s1 + $0x3a8] sm:$0xff]  }
  0x28   :  { %6444 = vmatpush3.bf16.msra.mxu0 %v7139_v46  ;;  %v7195_v46 = vld [vmem:[%s9418_s1 + $0x238] sm:$0xff]  }
  0x29   :  { %6466 = vmatpush3.bf16.msra.mxu1 %v7140_v47  ;;  %6445 = vmatprep.subr.bf16.mxu0 %v7141_v48  ;;  %v7196_v47 = vld [vmem:[%s9418_s1 + $0x2b8] sm:$0xff]   ;;  %v19_v48 = vld [vmem:[%s9419_s0 + $0x20] sm:$0xff] }
  0x2a   :  { %6467 = vmatprep.subr.bf16.mxu1 %v7142_v49  ;;  %v51_v49 = vld [vmem:[%s9419_s0 + $0x120] sm:$0xff] }
  0x2c   :  { %6446 = vmatpush3.bf16.msra.mxu0 %v7143_v50  ;;  %v20_v50 = vld [vmem:[%s9419_s0 + $0x28] sm:$0xff] }
  0x2d   :  { %6468 = vmatpush3.bf16.msra.mxu1 %v7144_v51  ;;  %6447 = vmatprep.subr.bf16.mxu0 %v7145_v52  ;;  %v52_v51 = vld [vmem:[%s9419_s0 + $0x128] sm:$0xff]  ;;  %v5829_v52 = vcombine.low %v19_v48, %v51_v49 }
  0x2e   :  { %6469 = vmatprep.subr.bf16.mxu1 %v7146_v53  ;;  %v5830_v53 = vcombine.high %v19_v48, %v51_v49  ;;  %v7245_v48 = vld [vmem:[%s9418_s1 + $0x460] sm:$0xff]  }
  0x2f   :  { %v7246_v49 = vld [vmem:[%s9418_s1 + $0x4e0] sm:$0xff]  }
  0x30   :  { %6448 = vmatpush3.bf16.msra.mxu0 %v7147_v54  ;;  %v5831_v54 = vcombine.low %v20_v50, %v52_v51 }
  0x31   :  { %6470 = vmatpush3.bf16.msra.mxu1 %v7148_v55  ;;  %6449 = vmatprep.subr.bf16.mxu0 %v7149_v56  ;;  %v5832_v55 = vcombine.high %v20_v50, %v52_v51  ;;  %v7197_v56 = vld [vmem:[%s9418_s1 + $0x340] sm:$0xff]  }
  0x32   :  { %6471 = vmatprep.subr.bf16.mxu1 %v7150_v57  ;;  %v7198_v57 = vld [vmem:[%s9418_s1 + $0x3c0] sm:$0xff]  }
  0x33   :  { %v7247_v50 = vld [vmem:[%s9418_s1 + $0x420] sm:$0xff]  }
  0x34   :  { %6450 = vmatpush3.bf16.msra.mxu0 %v7151_v58  ;;  %v7199_v58 = vld [vmem:[%s9418_s1 + $0x300] sm:$0xff]  }
  0x35   :  { %6472 = vmatpush3.bf16.msra.mxu1 %v7152_v59  ;;  %6451 = vmatprep.subr.bf16.mxu0 %v7153_v60  ;;  %v7200_v59 = vld [vmem:[%s9418_s1 + $0x380] sm:$0xff]   ;;  %v7201_v60 = vld [vmem:[%s9418_s1 + $0x348] sm:$0xff]  }
  0x36   :  { %6473 = vmatprep.subr.bf16.mxu1 %v7154_v61  ;;  %v7202_v61 = vld [vmem:[%s9418_s1 + $0x3c8] sm:$0xff]   ;;  %v7248_v51 = vld [vmem:[%s9418_s1 + $0x4a0] sm:$0xff]  }
  0x38   :  { %6452 = vmatpush3.bf16.msra.mxu0 %v7155_v62  ;;  %v7203_v62 = vld [vmem:[%s9418_s1 + $0x308] sm:$0xff]  }
  0x39   :  { %6474 = vmatpush3.bf16.msra.mxu1 %v7156_v63  ;;  %6453 = vmatprep.subr.bf16.mxu0 %v7157_v0  ;;  %v7204_v63 = vld [vmem:[%s9418_s1 + $0x388] sm:$0xff]   ;;  %v7205_v0 = vld [vmem:[%s9418_s1 + $0x350] sm:$0xff]  }
  0x3a   :  { %6475 = vmatprep.subr.bf16.mxu1 %v7158_v1  ;;  %v7206_v1 = vld [vmem:[%s9418_s1 + $0x3d0] sm:$0xff]  }
  0x3c   :  { %6454 = vmatpush3.bf16.msra.mxu0 %v7159_v2  ;;  %v7207_v2 = vld [vmem:[%s9418_s1 + $0x310] sm:$0xff]  }
  0x3d   :  { %6476 = vmatpush3.bf16.msra.mxu1 %v7160_v3  ;;  %6455 = vmatprep.subr.bf16.mxu0 %v7161_v4  ;;  %v7208_v3 = vld [vmem:[%s9418_s1 + $0x390] sm:$0xff]   ;;  %v7209_v4 = vld [vmem:[%s9418_s1 + $0x358] sm:$0xff]  }
  0x3e   :  { %6477 = vmatprep.subr.bf16.mxu1 %v7162_v5  ;;  %v7210_v5 = vld [vmem:[%s9418_s1 + $0x3d8] sm:$0xff]  }
  0x40   :  { %6456 = vmatpush3.bf16.msra.mxu0 %v7163_v6  ;;  %v7211_v6 = vld [vmem:[%s9418_s1 + $0x318] sm:$0xff]  }
  0x41   :  { %6478 = vmatpush3.bf16.msra.mxu1 %v7164_v7  ;;  %6485 = vmatprep.subr.bf16.mxu0 %v7165_v16  ;;  %v7212_v7 = vld [vmem:[%s9418_s1 + $0x398] sm:$0xff]   ;;  %v7221_v16 = vld [vmem:[%s9418_s1 + $0x370] sm:$0xff]  }
  0x42   :  { %6507 = vmatprep.subr.bf16.mxu1 %v7166_v17  ;;  %v7222_v17 = vld [vmem:[%s9418_s1 + $0x3f0] sm:$0xff]  }
  0x43   :  { %4617 = vmatmul.mubr.bf16.vlgmr.msra.gmra.mrb[4].mxu0 %v5825_v10  ;;  %v7215_v10 = vld [vmem:[%s9418_s1 + $0x320] sm:$0xff]  }
  0x44   :  { %4658 = vmatmul.mubr.bf16.vlgmr.msra.gmra.mrb[4].mxu1 %v5827_v14  ;;  %6486 = vmatpush3.bf16.msra.mxu0 %v7167_v18  ;;  %v7219_v14 = vld [vmem:[%s9418_s1 + $0x328] sm:$0xff]   ;;  %v7223_v18 = vld [vmem:[%s9418_s1 + $0x330] sm:$0xff]  }
  0x45   :  { %6508 = vmatpush3.bf16.msra.mxu1 %v7168_v19  ;;  %6487 = vmatprep.subr.bf16.mxu0 %v7169_v20  ;;  %v7224_v19 = vld [vmem:[%s9418_s1 + $0x3b0] sm:$0xff]   ;;  %v7225_v20 = vld [vmem:[%s9418_s1 + $0x378] sm:$0xff]  }
  0x46   :  { %6509 = vmatprep.subr.bf16.mxu1 %v7170_v21  ;;  %4698 = vmatprep.mubr.bf16.mxu0 %v5830_v53  ;;  %v7226_v21 = vld [vmem:[%s9418_s1 + $0x3f8] sm:$0xff]   ;;  %v7250_v53 = vld [vmem:[%s9418_s1 + $0x4e8] sm:$0xff]  }
  0x47   :  { %4739 = vmatprep.mubr.bf16.mxu1 %v5832_v55  ;;  %v7252_v55 = vld [vmem:[%s9418_s1 + $0x4a8] sm:$0xff]  }
  0x48   :  { %6488 = vmatpush3.bf16.msra.mxu0 %v7171_v22  ;;  %v7227_v22 = vld [vmem:[%s9418_s1 + $0x338] sm:$0xff]  }
  0x49   :  { %6510 = vmatpush3.bf16.msra.mxu1 %v7172_v23  ;;  %6489 = vmatprep.subr.bf16.mxu0 %v7173_v24  ;;  %v7228_v23 = vld [vmem:[%s9418_s1 + $0x3b8] sm:$0xff]   ;;  %v21_v24 = vld [vmem:[%s9419_s0 + $0x30] sm:$0xff] }
  0x4a   :  { %6511 = vmatprep.subr.bf16.mxu1 %v7174_v25  ;;  %v53_v25 = vld [vmem:[%s9419_s0 + $0x130] sm:$0xff] }
  0x4c   :  { %6490 = vmatpush3.bf16.msra.mxu0 %v7175_v26  ;;  %v22_v26 = vld [vmem:[%s9419_s0 + $0x38] sm:$0xff] }
  0x4d   :  { %6512 = vmatpush3.bf16.msra.mxu1 %v7176_v27  ;;  %6491 = vmatprep.subr.bf16.mxu0 %v7177_v28  ;;  %v5833_v27 = vcombine.low %v21_v24, %v53_v25  ;;  %v5834_v28 = vcombine.high %v21_v24, %v53_v25  ;;  %v7277_v24 = vld [vmem:[%s9418_s1 + $0x560] sm:$0xff]  }
  0x4e   :  { %6513 = vmatprep.subr.bf16.mxu1 %v7178_v29  ;;  %v54_v29 = vld [vmem:[%s9419_s0 + $0x138] sm:$0xff]  ;;  %v7278_v25 = vld [vmem:[%s9418_s1 + $0x5e0] sm:$0xff]  }
  0x50   :  { %6492 = vmatpush3.bf16.msra.mxu0 %v7179_v30  ;;  %v5835_v30 = vcombine.low %v22_v26, %v54_v29 }
  0x51   :  { %6514 = vmatpush3.bf16.msra.mxu1 %v7180_v31  ;;  %6493 = vmatprep.subr.bf16.mxu0 %v7181_v32  ;;  %v5836_v31 = vcombine.high %v22_v26, %v54_v29  ;;  %v7229_v32 = vld [vmem:[%s9418_s1 + $0x440] sm:$0xff]   ;;  %v7282_v29 = vld [vmem:[%s9418_s1 + $0x5e8] sm:$0xff]  }
  0x52   :  { %6515 = vmatprep.subr.bf16.mxu1 %v7182_v33  ;;  %v7230_v33 = vld [vmem:[%s9418_s1 + $0x4c0] sm:$0xff]  }
  0x53   :  { %v7279_v26 = vld [vmem:[%s9418_s1 + $0x520] sm:$0xff]  }
  0x54   :  { %6494 = vmatpush3.bf16.msra.mxu0 %v7183_v34  ;;  %v7231_v34 = vld [vmem:[%s9418_s1 + $0x400] sm:$0xff]  }
  0x55   :  { %6516 = vmatpush3.bf16.msra.mxu1 %v7184_v35  ;;  %6495 = vmatprep.subr.bf16.mxu0 %v7185_v36  ;;  %v7232_v35 = vld [vmem:[%s9418_s1 + $0x480] sm:$0xff]   ;;  %v7233_v36 = vld [vmem:[%s9418_s1 + $0x448] sm:$0xff]  }
  0x56   :  { %6517 = vmatprep.subr.bf16.mxu1 %v7186_v37  ;;  %v7234_v37 = vld [vmem:[%s9418_s1 + $0x4c8] sm:$0xff]  }
  0x58   :  { %6496 = vmatpush3.bf16.msra.mxu0 %v7187_v38  ;;  %v7235_v38 = vld [vmem:[%s9418_s1 + $0x408] sm:$0xff]  }
  0x59   :  { %6518 = vmatpush3.bf16.msra.mxu1 %v7188_v39  ;;  %6497 = vmatprep.subr.bf16.mxu0 %v7189_v40  ;;  %v7236_v39 = vld [vmem:[%s9418_s1 + $0x488] sm:$0xff]   ;;  %v7237_v40 = vld [vmem:[%s9418_s1 + $0x450] sm:$0xff]  }
  0x5a   :  { %6519 = vmatprep.subr.bf16.mxu1 %v7190_v41  ;;  %v7238_v41 = vld [vmem:[%s9418_s1 + $0x4d0] sm:$0xff]  }
  0x5c   :  { %6498 = vmatpush3.bf16.msra.mxu0 %v7191_v42  ;;  %v7239_v42 = vld [vmem:[%s9418_s1 + $0x410] sm:$0xff]  }
  0x5d   :  { %6520 = vmatpush3.bf16.msra.mxu1 %v7192_v43  ;;  %6499 = vmatprep.subr.bf16.mxu0 %v7193_v44  ;;  %v7240_v43 = vld [vmem:[%s9418_s1 + $0x490] sm:$0xff]   ;;  %v7241_v44 = vld [vmem:[%s9418_s1 + $0x458] sm:$0xff]  }
  0x5e   :  { %6521 = vmatprep.subr.bf16.mxu1 %v7194_v45  ;;  %v7242_v45 = vld [vmem:[%s9418_s1 + $0x4d8] sm:$0xff]  }
  0x60   :  { %6500 = vmatpush3.bf16.msra.mxu0 %v7195_v46  ;;  %v7243_v46 = vld [vmem:[%s9418_s1 + $0x418] sm:$0xff]  }
  0x61   :  { %6522 = vmatpush3.bf16.msra.mxu1 %v7196_v47  ;;  %6529 = vmatprep.subr.bf16.mxu0 %v7197_v56  ;;  %v7244_v47 = vld [vmem:[%s9418_s1 + $0x498] sm:$0xff]   ;;  %v7253_v56 = vld [vmem:[%s9418_s1 + $0x470] sm:$0xff]  }
  0x62   :  { %6551 = vmatprep.subr.bf16.mxu1 %v7198_v57  ;;  %v7254_v57 = vld [vmem:[%s9418_s1 + $0x4f0] sm:$0xff]  }
  0x63   :  { %4699 = vmatmul.mubr.bf16.vlgmr.msra.gmra.mrb[8].mxu0 %v5829_v52  ;;  %v7249_v52 = vld [vmem:[%s9418_s1 + $0x468] sm:$0xff]  }
  0x64   :  { %4740 = vmatmul.mubr.bf16.vlgmr.msra.gmra.mrb[8].mxu1 %v5831_v54  ;;  %6530 = vmatpush3.bf16.msra.mxu0 %v7199_v58  ;;  %v7251_v54 = vld [vmem:[%s9418_s1 + $0x428] sm:$0xff]   ;;  %v7255_v58 = vld [vmem:[%s9418_s1 + $0x430] sm:$0xff]  }
  0x65   :  { %6552 = vmatpush3.bf16.msra.mxu1 %v7200_v59  ;;  %6531 = vmatprep.subr.bf16.mxu0 %v7201_v60  ;;  %v7256_v59 = vld [vmem:[%s9418_s1 + $0x4b0] sm:$0xff]   ;;  %v7257_v60 = vld [vmem:[%s9418_s1 + $0x478] sm:$0xff]  }
  0x66   :  { %6553 = vmatprep.subr.bf16.mxu1 %v7202_v61  ;;  %4780 = vmatprep.mubr.bf16.mxu0 %v5834_v28  ;;  %v7258_v61 = vld [vmem:[%s9418_s1 + $0x4f8] sm:$0xff]   ;;  %v7281_v28 = vld [vmem:[%s9418_s1 + $0x568] sm:$0xff]  }
  0x67   :  { %4821 = vmatprep.mubr.bf16.mxu1 %v5836_v31  ;;  %v7284_v31 = vld [vmem:[%s9418_s1 + $0x5a8] sm:$0xff]  }
  0x68   :  { %6532 = vmatpush3.bf16.msra.mxu0 %v7203_v62  ;;  %v7259_v62 = vld [vmem:[%s9418_s1 + $0x438] sm:$0xff]  }
  0x69   :  { %6554 = vmatpush3.bf16.msra.mxu1 %v7204_v63  ;;  %6533 = vmatprep.subr.bf16.mxu0 %v7205_v0  ;;  %v7260_v63 = vld [vmem:[%s9418_s1 + $0x4b8] sm:$0xff]   ;;  %v23_v0 = vld [vmem:[%s9419_s0 + $0x40] sm:$0xff] }
  0x6a   :  { %6555 = vmatprep.subr.bf16.mxu1 %v7206_v1  ;;  %v55_v1 = vld [vmem:[%s9419_s0 + $0x140] sm:$0xff] }
  0x6c   :  { %6534 = vmatpush3.bf16.msra.mxu0 %v7207_v2  ;;  %v5837_v2 = vcombine.low %v23_v0, %v55_v1 }
  0x6d   :  { %6556 = vmatpush3.bf16.msra.mxu1 %v7208_v3  ;;  %6535 = vmatprep.subr.bf16.mxu0 %v7209_v4  ;;  %v5838_v3 = vcombine.high %v23_v0, %v55_v1  ;;  %v24_v4 = vld [vmem:[%s9419_s0 + $0x48] sm:$0xff]  ;;  %v7309_v0 = vld [vmem:[%s9418_s1 + $0x660] sm:$0xff]  }
  0x6e   :  { %6557 = vmatprep.subr.bf16.mxu1 %v7210_v5  ;;  %v56_v5 = vld [vmem:[%s9419_s0 + $0x148] sm:$0xff]  ;;  %v7310_v1 = vld [vmem:[%s9418_s1 + $0x6e0] sm:$0xff]  }
  0x70   :  { %6536 = vmatpush3.bf16.msra.mxu0 %v7211_v6  ;;  %v5839_v6 = vcombine.low %v24_v4, %v56_v5 }
  0x71   :  { %6558 = vmatpush3.bf16.msra.mxu1 %v7212_v7  ;;  %6537 = vmatprep.subr.bf16.mxu0 %v7213_v8  ;;  %v5840_v7 = vcombine.high %v24_v4, %v56_v5  ;;  %v7261_v8 = vld [vmem:[%s9418_s1 + $0x540] sm:$0xff]   ;;  %v7313_v4 = vld [vmem:[%s9418_s1 + $0x668] sm:$0xff]  }
  0x72   :  { %6559 = vmatprep.subr.bf16.mxu1 %v7214_v9  ;;  %v7262_v9 = vld [vmem:[%s9418_s1 + $0x5c0] sm:$0xff]   ;;  %v7314_v5 = vld [vmem:[%s9418_s1 + $0x6e8] sm:$0xff]  }
  0x74   :  { %6538 = vmatpush3.bf16.msra.mxu0 %v7215_v10  ;;  %v7263_v10 = vld [vmem:[%s9418_s1 + $0x500] sm:$0xff]  }
  0x75   :  { %6560 = vmatpush3.bf16.msra.mxu1 %v7216_v11  ;;  %6539 = vmatprep.subr.bf16.mxu0 %v7217_v12  ;;  %v7264_v11 = vld [vmem:[%s9418_s1 + $0x580] sm:$0xff]   ;;  %v7265_v12 = vld [vmem:[%s9418_s1 + $0x548] sm:$0xff]  }
  0x76   :  { %6561 = vmatprep.subr.bf16.mxu1 %v7218_v13  ;;  %v7266_v13 = vld [vmem:[%s9418_s1 + $0x5c8] sm:$0xff]  }
  0x78   :  { %6540 = vmatpush3.bf16.msra.mxu0 %v7219_v14  ;;  %v7267_v14 = vld [vmem:[%s9418_s1 + $0x508] sm:$0xff]  }
  0x79   :  { %6562 = vmatpush3.bf16.msra.mxu1 %v7220_v15  ;;  %6541 = vmatprep.subr.bf16.mxu0 %v7221_v16  ;;  %v7268_v15 = vld [vmem:[%s9418_s1 + $0x588] sm:$0xff]   ;;  %v7269_v16 = vld [vmem:[%s9418_s1 + $0x550] sm:$0xff]  }
  0x7a   :  { %6563 = vmatprep.subr.bf16.mxu1 %v7222_v17  ;;  %v7270_v17 = vld [vmem:[%s9418_s1 + $0x5d0] sm:$0xff]  }
  0x7c   :  { %6542 = vmatpush3.bf16.msra.mxu0 %v7223_v18  ;;  %v7271_v18 = vld [vmem:[%s9418_s1 + $0x510] sm:$0xff]  }
  0x7d   :  { %6564 = vmatpush3.bf16.msra.mxu1 %v7224_v19  ;;  %6543 = vmatprep.subr.bf16.mxu0 %v7225_v20  ;;  %v7272_v19 = vld [vmem:[%s9418_s1 + $0x590] sm:$0xff]   ;;  %v7273_v20 = vld [vmem:[%s9418_s1 + $0x558] sm:$0xff]  }
  0x7e   :  { %6565 = vmatprep.subr.bf16.mxu1 %v7226_v21  ;;  %v7274_v21 = vld [vmem:[%s9418_s1 + $0x5d8] sm:$0xff]  }
  0x80   :  { %6544 = vmatpush3.bf16.msra.mxu0 %v7227_v22  ;;  %v7275_v22 = vld [vmem:[%s9418_s1 + $0x518] sm:$0xff]  }
  0x81   :  { %6566 = vmatpush3.bf16.msra.mxu1 %v7228_v23  ;;  %6573 = vmatprep.subr.bf16.mxu0 %v7229_v32  ;;  %v7276_v23 = vld [vmem:[%s9418_s1 + $0x598] sm:$0xff]   ;;  %v7285_v32 = vld [vmem:[%s9418_s1 + $0x570] sm:$0xff]  }
  0x82   :  { %6595 = vmatprep.subr.bf16.mxu1 %v7230_v33  ;;  %v7286_v33 = vld [vmem:[%s9418_s1 + $0x5f0] sm:$0xff]  }
  0x83   :  { %4781 = vmatmul.mubr.bf16.vlgmr.msra.gmra.mrb[12].mxu0 %v5833_v27  ;;  %v7280_v27 = vld [vmem:[%s9418_s1 + $0x5a0] sm:$0xff]  }
  0x84   :  { %4822 = vmatmul.mubr.bf16.vlgmr.msra.gmra.mrb[12].mxu1 %v5835_v30  ;;  %6574 = vmatpush3.bf16.msra.mxu0 %v7231_v34  ;;  %v7283_v30 = vld [vmem:[%s9418_s1 + $0x528] sm:$0xff]   ;;  %v7287_v34 = vld [vmem:[%s9418_s1 + $0x530] sm:$0xff]  }
  0x85   :  { %6596 = vmatpush3.bf16.msra.mxu1 %v7232_v35  ;;  %6575 = vmatprep.subr.bf16.mxu0 %v7233_v36  ;;  %v7288_v35 = vld [vmem:[%s9418_s1 + $0x5b0] sm:$0xff]   ;;  %v7289_v36 = vld [vmem:[%s9418_s1 + $0x578] sm:$0xff]  }
  0x86   :  { %6597 = vmatprep.subr.bf16.mxu1 %v7234_v37  ;;  %4862 = vmatprep.mubr.bf16.mxu0 %v5838_v3  ;;  %v7290_v37 = vld [vmem:[%s9418_s1 + $0x5f8] sm:$0xff]   ;;  %v7312_v3 = vld [vmem:[%s9418_s1 + $0x6a0] sm:$0xff]  }
  0x87   :  { %4903 = vmatprep.mubr.bf16.mxu1 %v5840_v7  ;;  %v7316_v7 = vld [vmem:[%s9418_s1 + $0x6a8] sm:$0xff]  }
  0x88   :  { %6576 = vmatpush3.bf16.msra.mxu0 %v7235_v38  ;;  %v7291_v38 = vld [vmem:[%s9418_s1 + $0x538] sm:$0xff]  }
  0x89   :  { %6598 = vmatpush3.bf16.msra.mxu1 %v7236_v39  ;;  %6577 = vmatprep.subr.bf16.mxu0 %v7237_v40  ;;  %v7292_v39 = vld [vmem:[%s9418_s1 + $0x5b8] sm:$0xff]   ;;  %v25_v40 = vld [vmem:[%s9419_s0 + $0x50] sm:$0xff] }
  0x8a   :  { %6599 = vmatprep.subr.bf16.mxu1 %v7238_v41  ;;  %v57_v41 = vld [vmem:[%s9419_s0 + $0x150] sm:$0xff] }
  0x8c   :  { %6578 = vmatpush3.bf16.msra.mxu0 %v7239_v42  ;;  %v26_v42 = vld [vmem:[%s9419_s0 + $0x58] sm:$0xff] }
  0x8d   :  { %6600 = vmatpush3.bf16.msra.mxu1 %v7240_v43  ;;  %6579 = vmatprep.subr.bf16.mxu0 %v7241_v44  ;;  %v58_v43 = vld [vmem:[%s9419_s0 + $0x158] sm:$0xff]  ;;  %v5841_v44 = vcombine.low %v25_v40, %v57_v41 }
  0x8e   :  { %6601 = vmatprep.subr.bf16.mxu1 %v7242_v45  ;;  %v5842_v45 = vcombine.high %v25_v40, %v57_v41  ;;  %v7340_v41 = vld [vmem:[%s9418_s1 + $0x798] sm:$0xff]  }
  0x90   :  { %6580 = vmatpush3.bf16.msra.mxu0 %v7243_v46  ;;  %v5843_v46 = vcombine.low %v26_v42, %v58_v43 }
  0x91   :  { %6602 = vmatpush3.bf16.msra.mxu1 %v7244_v47  ;;  %6581 = vmatprep.subr.bf16.mxu0 %v7245_v48  ;;  %v5844_v47 = vcombine.high %v26_v42, %v58_v43  ;;  %v7293_v48 = vld [vmem:[%s9418_s1 + $0x640] sm:$0xff]  }
  0x92   :  { %6603 = vmatprep.subr.bf16.mxu1 %v7246_v49  ;;  %v7294_v49 = vld [vmem:[%s9418_s1 + $0x6c0] sm:$0xff]  }
  0x93   :  { %v7341_v43 = vld [vmem:[%s9418_s1 + $0x760] sm:$0xff]  }
  0x94   :  { %6582 = vmatpush3.bf16.msra.mxu0 %v7247_v50  ;;  %v7295_v50 = vld [vmem:[%s9418_s1 + $0x600] sm:$0xff]  }
  0x95   :  { %6604 = vmatpush3.bf16.msra.mxu1 %v7248_v51  ;;  %6583 = vmatprep.subr.bf16.mxu0 %v7249_v52  ;;  %v7296_v51 = vld [vmem:[%s9418_s1 + $0x680] sm:$0xff]   ;;  %v7297_v52 = vld [vmem:[%s9418_s1 + $0x648] sm:$0xff]  }
  0x96   :  { %6605 = vmatprep.subr.bf16.mxu1 %v7250_v53  ;;  %v7298_v53 = vld [vmem:[%s9418_s1 + $0x6c8] sm:$0xff]  }
  0x98   :  { %6584 = vmatpush3.bf16.msra.mxu0 %v7251_v54  ;;  %v7299_v54 = vld [vmem:[%s9418_s1 + $0x608] sm:$0xff]  }
  0x99   :  { %6606 = vmatpush3.bf16.msra.mxu1 %v7252_v55  ;;  %6585 = vmatprep.subr.bf16.mxu0 %v7253_v56  ;;  %v7300_v55 = vld [vmem:[%s9418_s1 + $0x688] sm:$0xff]   ;;  %v7301_v56 = vld [vmem:[%s9418_s1 + $0x650] sm:$0xff]  }
  0x9a   :  { %6607 = vmatprep.subr.bf16.mxu1 %v7254_v57  ;;  %v7302_v57 = vld [vmem:[%s9418_s1 + $0x6d0] sm:$0xff]  }
  0x9c   :  { %6586 = vmatpush3.bf16.msra.mxu0 %v7255_v58  ;;  %v7303_v58 = vld [vmem:[%s9418_s1 + $0x610] sm:$0xff]  }
  0x9d   :  { %6608 = vmatpush3.bf16.msra.mxu1 %v7256_v59  ;;  %6587 = vmatprep.subr.bf16.mxu0 %v7257_v60  ;;  %v7304_v59 = vld [vmem:[%s9418_s1 + $0x690] sm:$0xff]   ;;  %v7305_v60 = vld [vmem:[%s9418_s1 + $0x658] sm:$0xff]  }
  0x9e   :  { %6609 = vmatprep.subr.bf16.mxu1 %v7258_v61  ;;  %v7306_v61 = vld [vmem:[%s9418_s1 + $0x6d8] sm:$0xff]  }
  0xa0   :  { %6588 = vmatpush3.bf16.msra.mxu0 %v7259_v62  ;;  %v7307_v62 = vld [vmem:[%s9418_s1 + $0x618] sm:$0xff]  }
  0xa1   :  { %6610 = vmatpush3.bf16.msra.mxu1 %v7260_v63  ;;  %6617 = vmatprep.subr.bf16.mxu0 %v7261_v8  ;;  %v7308_v63 = vld [vmem:[%s9418_s1 + $0x698] sm:$0xff]   ;;  %v7317_v8 = vld [vmem:[%s9418_s1 + $0x670] sm:$0xff]  }
  0xa2   :  { %6639 = vmatprep.subr.bf16.mxu1 %v7262_v9  ;;  %v7318_v9 = vld [vmem:[%s9418_s1 + $0x6f0] sm:$0xff]  }
  0xa3   :  { %4863 = vmatmul.mubr.bf16.vlgmr.msra.gmra.mrb[16].mxu0 %v5837_v2  ;;  %v7311_v2 = vld [vmem:[%s9418_s1 + $0x620] sm:$0xff]  }
  0xa4   :  { %4904 = vmatmul.mubr.bf16.vlgmr.msra.gmra.mrb[16].mxu1 %v5839_v6  ;;  %6618 = vmatpush3.bf16.msra.mxu0 %v7263_v10  ;;  %v7315_v6 = vld [vmem:[%s9418_s1 + $0x628] sm:$0xff]   ;;  %v7319_v10 = vld [vmem:[%s9418_s1 + $0x630] sm:$0xff]  }
  0xa5   :  { %6640 = vmatpush3.bf16.msra.mxu1 %v7264_v11  ;;  %6619 = vmatprep.subr.bf16.mxu0 %v7265_v12  ;;  %v7320_v11 = vld [vmem:[%s9418_s1 + $0x6b0] sm:$0xff]   ;;  %v7321_v12 = vld [vmem:[%s9418_s1 + $0x678] sm:$0xff]  }
  0xa6   :  { %6641 = vmatprep.subr.bf16.mxu1 %v7266_v13  ;;  %4944 = vmatprep.mubr.bf16.mxu0 %v5842_v45  ;;  %v7322_v13 = vld [vmem:[%s9418_s1 + $0x6f8] sm:$0xff]  }
  0xa7   :  { %4985 = vmatprep.mubr.bf16.mxu1 %v5844_v47 }
  0xa8   :  { %6620 = vmatpush3.bf16.msra.mxu0 %v7267_v14  ;;  %v7323_v14 = vld [vmem:[%s9418_s1 + $0x638] sm:$0xff]  }
  0xa9   :  { %6642 = vmatpush3.bf16.msra.mxu1 %v7268_v15  ;;  %6621 = vmatprep.subr.bf16.mxu0 %v7269_v16  ;;  %v7324_v15 = vld [vmem:[%s9418_s1 + $0x6b8] sm:$0xff]   ;;  %v27_v16 = vld [vmem:[%s9419_s0 + $0x60] sm:$0xff] }
  0xaa   :  { %6643 = vmatprep.subr.bf16.mxu1 %v7270_v17  ;;  %v59_v17 = vld [vmem:[%s9419_s0 + $0x160] sm:$0xff] }
  0xac   :  { %6622 = vmatpush3.bf16.msra.mxu0 %v7271_v18  ;;  %v28_v18 = vld [vmem:[%s9419_s0 + $0x68] sm:$0xff] }
  0xad   :  { %6644 = vmatpush3.bf16.msra.mxu1 %v7272_v19  ;;  %6623 = vmatprep.subr.bf16.mxu0 %v7273_v20  ;;  %v5845_v19 = vcombine.low %v27_v16, %v59_v17  ;;  %v5846_v20 = vcombine.high %v27_v16, %v59_v17  ;;  %v7357_v17 = vld [vmem:[%s9418_s1 + $0x840] sm:$0xff]  }
  0xae   :  { %6645 = vmatprep.subr.bf16.mxu1 %v7274_v21  ;;  %v60_v21 = vld [vmem:[%s9419_s0 + $0x168] sm:$0xff] }
  0xb0   :  { %6624 = vmatpush3.bf16.msra.mxu0 %v7275_v22  ;;  %v5847_v22 = vcombine.low %v28_v18, %v60_v21 }
  0xb1   :  { %6646 = vmatpush3.bf16.msra.mxu1 %v7276_v23  ;;  %6625 = vmatprep.subr.bf16.mxu0 %v7277_v24  ;;  %v5848_v23 = vcombine.high %v28_v18, %v60_v21  ;;  %v7325_v24 = vld [vmem:[%s9418_s1 + $0x740] sm:$0xff]   ;;  %v7361_v21 = vld [vmem:[%s9418_s1 + $0x848] sm:$0xff]  }
  0xb2   :  { %6647 = vmatprep.subr.bf16.mxu1 %v7278_v25  ;;  %v7326_v25 = vld [vmem:[%s9418_s1 + $0x7c0] sm:$0xff]  }
  0xb3   :  { %v7358_v18 = vld [vmem:[%s9418_s1 + $0x8c0] sm:$0xff]  }
  0xb4   :  { %6626 = vmatpush3.bf16.msra.mxu0 %v7279_v26  ;;  %v7327_v26 = vld [vmem:[%s9418_s1 + $0x700] sm:$0xff]  }
  0xb5   :  { %6648 = vmatpush3.bf16.msra.mxu1 %v7280_v27  ;;  %6627 = vmatprep.subr.bf16.mxu0 %v7281_v28  ;;  %v7328_v27 = vld [vmem:[%s9418_s1 + $0x780] sm:$0xff]   ;;  %v7329_v28 = vld [vmem:[%s9418_s1 + $0x748] sm:$0xff]  }
  0xb6   :  { %6649 = vmatprep.subr.bf16.mxu1 %v7282_v29  ;;  %v7330_v29 = vld [vmem:[%s9418_s1 + $0x7c8] sm:$0xff]  }
  0xb8   :  { %6628 = vmatpush3.bf16.msra.mxu0 %v7283_v30  ;;  %v7331_v30 = vld [vmem:[%s9418_s1 + $0x708] sm:$0xff]  }
  0xb9   :  { %6650 = vmatpush3.bf16.msra.mxu1 %v7284_v31  ;;  %6629 = vmatprep.subr.bf16.mxu0 %v7285_v32  ;;  %v7332_v31 = vld [vmem:[%s9418_s1 + $0x788] sm:$0xff]   ;;  %v7333_v32 = vld [vmem:[%s9418_s1 + $0x750] sm:$0xff]  }
  0xba   :  { %6651 = vmatprep.subr.bf16.mxu1 %v7286_v33  ;;  %v7334_v33 = vld [vmem:[%s9418_s1 + $0x7d0] sm:$0xff]  }
  0xbc   :  { %6630 = vmatpush3.bf16.msra.mxu0 %v7287_v34  ;;  %v7335_v34 = vld [vmem:[%s9418_s1 + $0x710] sm:$0xff]  }
  0xbd   :  { %6652 = vmatpush3.bf16.msra.mxu1 %v7288_v35  ;;  %6631 = vmatprep.subr.bf16.mxu0 %v7289_v36  ;;  %v7336_v35 = vld [vmem:[%s9418_s1 + $0x790] sm:$0xff]   ;;  %v7337_v36 = vld [vmem:[%s9418_s1 + $0x758] sm:$0xff]  }
  0xbe   :  { %6653 = vmatprep.subr.bf16.mxu1 %v7290_v37  ;;  %v7338_v37 = vld [vmem:[%s9418_s1 + $0x7d8] sm:$0xff]  }
  0xc0   :  { %6632 = vmatpush3.bf16.msra.mxu0 %v7291_v38 }
  0xc1   :  { %6654 = vmatpush3.bf16.msra.mxu1 %v7292_v39  ;;  %6661 = vmatprep.subr.bf16.mxu0 %v7293_v48  ;;  %v7339_v39 = vld [vmem:[%s9418_s1 + $0x718] sm:$0xff]  }
  0xc2   :  { %6683 = vmatprep.subr.bf16.mxu1 %v7294_v49  ;;  %v7343_v49 = vld [vmem:[%s9418_s1 + $0x720] sm:$0xff]  }
  0xc3   :  { %4945 = vmatmul.mubr.bf16.vlgmr.msra.gmra.mrb[20].mxu0 %v5841_v44 }
  0xc4   :  { %4986 = vmatmul.mubr.bf16.vlgmr.msra.gmra.mrb[20].mxu1 %v5843_v46  ;;  %6662 = vmatpush3.bf16.msra.mxu0 %v7295_v50  ;;  %v7342_v46 = vld [vmem:[%s9418_s1 + $0x7e0] sm:$0xff]  }
  0xc5   :  { %6684 = vmatpush3.bf16.msra.mxu1 %v7296_v51  ;;  %6663 = vmatprep.subr.bf16.mxu0 %v7297_v52  ;;  %v7344_v51 = vld [vmem:[%s9418_s1 + $0x7a0] sm:$0xff]  }
  0xc6   :  { %6685 = vmatprep.subr.bf16.mxu1 %v7298_v53  ;;  %5026 = vmatprep.mubr.bf16.mxu0 %v5846_v20  ;;  %v5820_v52 = vld [vmem:[%s9420_s2] ss:$0 sm:$0xff] }
  0xc7   :  { %5067 = vmatprep.mubr.bf16.mxu1 %v5848_v23  ;;  %v7360_v20 = vld [vmem:[%s9418_s1 + $0x880] sm:$0xff]   ;;  %v7363_v23 = vld [vmem:[%s9418_s1 + $0x808] sm:$0xff]  }
  0xc8   :  { %6664 = vmatpush3.bf16.msra.mxu0 %v7299_v54 }
  0xc9   :  { %6686 = vmatpush3.bf16.msra.mxu1 %v7300_v55  ;;  %6665 = vmatprep.subr.bf16.mxu0 %v7301_v56  ;;  %v7345_v55 = vld [vmem:[%s9418_s1 + $0x768] sm:$0xff]  }
  0xca   :  { %6687 = vmatprep.subr.bf16.mxu1 %v7302_v57 }
  0xcc   :  { %6666 = vmatpush3.bf16.msra.mxu0 %v7303_v58  ;;  %v7346_v58 = vld [vmem:[%s9418_s1 + $0x7e8] sm:$0xff]  }
  0xcd   :  { %6688 = vmatpush3.bf16.msra.mxu1 %v7304_v59  ;;  %6667 = vmatprep.subr.bf16.mxu0 %v7305_v60 }
  0xce   :  { %6689 = vmatprep.subr.bf16.mxu1 %v7306_v61  ;;  %v7347_v61 = vld [vmem:[%s9418_s1 + $0x728] sm:$0xff]  }
  0xd0   :  { %6668 = vmatpush3.bf16.msra.mxu0 %v7307_v62 }
  0xd1   :  { %6690 = vmatpush3.bf16.msra.mxu1 %v7308_v63  ;;  %6669 = vmatprep.subr.bf16.mxu0 %v7309_v0  ;;  %v7348_v63 = vld [vmem:[%s9418_s1 + $0x7a8] sm:$0xff]  }
  0xd2   :  { %6691 = vmatprep.subr.bf16.mxu1 %v7310_v1  ;;  %v7349_v1 = vld [vmem:[%s9418_s1 + $0x770] sm:$0xff]  }
  0xd4   :  { %6670 = vmatpush3.bf16.msra.mxu0 %v7311_v2  ;;  %v7350_v2 = vld [vmem:[%s9418_s1 + $0x7f0] sm:$0xff]  }
  0xd5   :  { %6692 = vmatpush3.bf16.msra.mxu1 %v7312_v3  ;;  %6671 = vmatprep.subr.bf16.mxu0 %v7313_v4  ;;  %v7351_v3 = vld [vmem:[%s9418_s1 + $0x730] sm:$0xff]  }
  0xd6   :  { %6693 = vmatprep.subr.bf16.mxu1 %v7314_v5  ;;  %v7352_v4 = vld [vmem:[%s9418_s1 + $0x7b0] sm:$0xff]   ;;  %v7353_v5 = vld [vmem:[%s9418_s1 + $0x778] sm:$0xff]  }
  0xd8   :  { %6672 = vmatpush3.bf16.msra.mxu0 %v7315_v6  ;;  %v7354_v6 = vld [vmem:[%s9418_s1 + $0x7f8] sm:$0xff]  }
  0xd9   :  { %6694 = vmatpush3.bf16.msra.mxu1 %v7316_v7  ;;  %6673 = vmatprep.subr.bf16.mxu0 %v7317_v8  ;;  %v7355_v7 = vld [vmem:[%s9418_s1 + $0x738] sm:$0xff]  }
  0xda   :  { %6695 = vmatprep.subr.bf16.mxu1 %v7318_v9  ;;  %v7356_v8 = vld [vmem:[%s9418_s1 + $0x7b8] sm:$0xff]   ;;  %v29_v9 = vld [vmem:[%s9419_s0 + $0x70] sm:$0xff] }
  0xdc   :  { %6674 = vmatpush3.bf16.msra.mxu0 %v7319_v10  ;;  %v61_v10 = vld [vmem:[%s9419_s0 + $0x170] sm:$0xff] }
  0xdd   :  { %6696 = vmatpush3.bf16.msra.mxu1 %v7320_v11  ;;  %6675 = vmatprep.subr.bf16.mxu0 %v7321_v12  ;;  %v30_v11 = vld [vmem:[%s9419_s0 + $0x78] sm:$0xff] }
  0xde   :  { %6697 = vmatprep.subr.bf16.mxu1 %v7322_v13  ;;  %v62_v12 = vld [vmem:[%s9419_s0 + $0x178] sm:$0xff]  ;;  %v5849_v13 = vcombine.low %v29_v9, %v61_v10 }
  0xdf   :  { %v5852_v16 = vcombine.high %v30_v11, %v62_v12 }
  0xe0   :  { %6676 = vmatpush3.bf16.msra.mxu0 %v7323_v14  ;;  %v5850_v14 = vcombine.high %v29_v9, %v61_v10  ;;  %v7389_v9 = vld [vmem:[%s9418_s1 + $0x940] sm:$0xff]  }
  0xe1   :  { %6698 = vmatpush3.bf16.msra.mxu1 %v7324_v15  ;;  %6705 = vmatprep.subr.bf16.mxu0 %v7325_v24  ;;  %v5851_v15 = vcombine.low %v30_v11, %v62_v12  ;;  %v7364_v24 = vld [vmem:[%s9418_s1 + $0x888] sm:$0xff]   ;;  %v7390_v10 = vld [vmem:[%s9418_s1 + $0x9c0] sm:$0xff]  }
  0xe2   :  { %6727 = vmatprep.subr.bf16.mxu1 %v7326_v25  ;;  %v7365_v25 = vld [vmem:[%s9418_s1 + $0x850] sm:$0xff]   ;;  %v7391_v11 = vld [vmem:[%s9418_s1 + $0x900] sm:$0xff]  }
  0xe3   :  { %5027 = vmatmul.mubr.bf16.vlgmr.msra.gmra.mrb[24].mxu0 %v5845_v19  ;;  %v7359_v19 = vld [vmem:[%s9418_s1 + $0x800] sm:$0xff]  }
  0xe4   :  { %5068 = vmatmul.mubr.bf16.vlgmr.msra.gmra.mrb[24].mxu1 %v5847_v22  ;;  %6706 = vmatpush3.bf16.msra.mxu0 %v7327_v26  ;;  %v7362_v22 = vld [vmem:[%s9418_s1 + $0x8c8] sm:$0xff]   ;;  %v7366_v26 = vld [vmem:[%s9418_s1 + $0x8d0] sm:$0xff]   ;;  %v7392_v12 = vld [vmem:[%s9418_s1 + $0x980] sm:$0xff]  }
  0xe5   :  { %6728 = vmatpush3.bf16.msra.mxu1 %v7328_v27  ;;  %6707 = vmatprep.subr.bf16.mxu0 %v7329_v28  ;;  %v7367_v27 = vld [vmem:[%s9418_s1 + $0x810] sm:$0xff]  }
  0xe6   :  { %6729 = vmatprep.subr.bf16.mxu1 %v7330_v29  ;;  %5108 = vmatprep.mubr.bf16.mxu0 %v5850_v14  ;;  %v7368_v28 = vld [vmem:[%s9418_s1 + $0x890] sm:$0xff]   ;;  %v7369_v29 = vld [vmem:[%s9418_s1 + $0x858] sm:$0xff]   ;;  %v7394_v14 = vld [vmem:[%s9418_s1 + $0x9c8] sm:$0xff]  }
  0xe7   :  { %5149 = vmatprep.mubr.bf16.mxu1 %v5852_v16  ;;  %v7396_v16 = vld [vmem:[%s9418_s1 + $0x988] sm:$0xff]  }
  0xe8   :  { %6708 = vmatpush3.bf16.msra.mxu0 %v7331_v30  ;;  %v7370_v30 = vld [vmem:[%s9418_s1 + $0x8d8] sm:$0xff]  }
  0xe9   :  { %6730 = vmatpush3.bf16.msra.mxu1 %v7332_v31  ;;  %6709 = vmatprep.subr.bf16.mxu0 %v7333_v32  ;;  %v7371_v32 = vld [vmem:[%s9418_s1 + $0x818] sm:$0xff]  }
  0xea   :  { %6731 = vmatprep.subr.bf16.mxu1 %v7334_v33 }
  0xec   :  { %6710 = vmatpush3.bf16.msra.mxu0 %v7335_v34  ;;  %v7372_v34 = vld [vmem:[%s9418_s1 + $0x898] sm:$0xff]  }
  0xed   :  { %6732 = vmatpush3.bf16.msra.mxu1 %v7336_v35  ;;  %6711 = vmatprep.subr.bf16.mxu0 %v7337_v36  ;;  %v7373_v36 = vld [vmem:[%s9418_s1 + $0x860] sm:$0xff]  }
  0xee   :  { %6733 = vmatprep.subr.bf16.mxu1 %v7338_v37 }
  0xf0   :  { %6712 = vmatpush3.bf16.msra.mxu0 %v7339_v39  ;;  %v7374_v39 = vld [vmem:[%s9418_s1 + $0x8e0] sm:$0xff]  }
  0xf1   :  { %6734 = vmatpush3.bf16.msra.mxu1 %v7340_v41  ;;  %6713 = vmatprep.subr.bf16.mxu0 %v7341_v43 }
  0xf2   :  { %6735 = vmatprep.subr.bf16.mxu1 %v7342_v46 }
  0xf4   :  { %6714 = vmatpush3.bf16.msra.mxu0 %v7343_v49 }
  0xf5   :  { %6736 = vmatpush3.bf16.msra.mxu1 %v7344_v51  ;;  %6715 = vmatprep.subr.bf16.mxu0 %v7345_v55  ;;  %v7378_v51 = vld [vmem:[%s9418_s1 + $0x8e8] sm:$0xff]  }
  0xf6   :  { %v6413_v38 = vpop.f32.mrb[0].mxu0  ;;  %6737 = vmatprep.subr.bf16.mxu1 %v7346_v58  ;;  %v7380_v55 = vld [vmem:[%s9418_s1 + $0x8a8] sm:$0xff]   ;;  %v7382_v58 = vld [vmem:[%s9418_s1 + $0x8f0] sm:$0xff]  }
  0xf7   :  { %v6435_v40 = vpop.f32.mrb[0].mxu1  ;;  %v6414_v42 = vpop.f32.mrb[1].mxu0 }
  0xf8   :  { %v6415_v44 = vadd.f32 %v6414_v42, %v6413_v38  ;;  %v6436_v45 = vpop.f32.mrb[1].mxu1  ;;  %v6416_v48 = vpop.f32.mrb[2].mxu0  ;;  %6716 = vmatpush3.bf16.msra.mxu0 %v7347_v61  ;;  %v7375_v42 = vld [vmem:[%s9418_s1 + $0x820] sm:$0xff]   ;;  %v7385_v61 = vld [vmem:[%s9418_s1 + $0x878] sm:$0xff]  }
  0xf9   :  { %v6437_v47 = vadd.f32 %v6436_v45, %v6435_v40  ;;  %v6438_v50 = vpop.f32.mrb[2].mxu1  ;;  %v6417_v53 = vpop.f32.mrb[3].mxu0  ;;  %6738 = vmatpush3.bf16.msra.mxu1 %v7348_v63  ;;  %6717 = vmatprep.subr.bf16.mxu0 %v7349_v1  ;;  %v7376_v45 = vld [vmem:[%s9418_s1 + $0x8a0] sm:$0xff]   ;;  %v7387_v63 = vld [vmem:[%s9418_s1 + $0x838] sm:$0xff]  }
  0xfa   :  { %v4537_v54 = vadd.f32 %v6415_v44, %v5820_v52  ;;  %v6418_v56 = vadd.f32 %v6417_v53, %v6416_v48  ;;  %v6439_v57 = vpop.f32.mrb[3].mxu1  ;;  %6739 = vmatprep.subr.bf16.mxu1 %v7350_v2  ;;  %v7377_v48 = vld [vmem:[%s9418_s1 + $0x868] sm:$0xff]   ;;  %v31_v1 = vld [vmem:[%s9419_s0 + $0x80] sm:$0xff] }
  0xfb   :  { %v6440_v59 = vadd.f32 %v6439_v57, %v6438_v50  ;;  %v7379_v53 = vld [vmem:[%s9418_s1 + $0x828] sm:$0xff]   ;;  %v7381_v57 = vld [vmem:[%s9418_s1 + $0x870] sm:$0xff]   ;;  %v63_v2 = vld [vmem:[%s9419_s0 + $0x180] sm:$0xff] }
  0xfc   :  { %v8458_v60 = vadd.f32 %v6437_v47, %v4537_v54  ;;  %v4540_v62 = vadd.f32 %v6418_v56, %v5820_v52  ;;  %6718 = vmatpush3.bf16.msra.mxu0 %v7351_v3  ;;  %v32_v3 = vld [vmem:[%s9419_s0 + $0x88] sm:$0xff] }
  0xfd   :  { %6740 = vmatpush3.bf16.msra.mxu1 %v7352_v4  ;;  %6719 = vmatprep.subr.bf16.mxu0 %v7353_v5  ;;  %v5853_v4 = vcombine.low %v31_v1, %v63_v2  ;;  %v5854_v5 = vcombine.high %v31_v1, %v63_v2  ;;  %v7421_v1 = vld [vmem:[%s9418_s1 + $0xa40] sm:$0xff]  }
  0xfe   :  { %v8466_v0 = vadd.f32 %v6440_v59, %v4540_v62  ;;  %6741 = vmatprep.subr.bf16.mxu1 %v7354_v6  ;;  %v7383_v59 = vld [vmem:[%s9418_s1 + $0x830] sm:$0xff]   ;;  %v7386_v62 = vld [vmem:[%s9418_s1 + $0x8f8] sm:$0xff]   ;;  %v64_v6 = vld [vmem:[%s9419_s0 + $0x188] sm:$0xff] }
  0xff   :  { %v7422_v2 = vld [vmem:[%s9418_s1 + $0xac0] sm:$0xff]  }
 0x100   :  { %6720 = vmatpush3.bf16.msra.mxu0 %v7355_v7  ;;  %v5855_v7 = vcombine.low %v32_v3, %v64_v6 }
 0x101   :  { %6742 = vmatpush3.bf16.msra.mxu1 %v7356_v8  ;;  %6749 = vmatprep.subr.bf16.mxu0 %v7357_v17  ;;  %v5856_v8 = vcombine.high %v32_v3, %v64_v6  ;;  %v7397_v17 = vld [vmem:[%s9418_s1 + $0x950] sm:$0xff]   ;;  %v7423_v3 = vld [vmem:[%s9418_s1 + $0xa00] sm:$0xff]   ;;  %v7426_v6 = vld [vmem:[%s9418_s1 + $0xac8] sm:$0xff]  }
 0x102   :  { %6771 = vmatprep.subr.bf16.mxu1 %v7358_v18  ;;  %v7398_v18 = vld [vmem:[%s9418_s1 + $0x9d0] sm:$0xff]  }
 0x103   :  { %5109 = vmatmul.mubr.bf16.vlgmr.msra.gmra.mrb[28].mxu0 %v5849_v13  ;;  %v7393_v13 = vld [vmem:[%s9418_s1 + $0x948] sm:$0xff]  }
 0x104   :  { %5150 = vmatmul.mubr.bf16.vlgmr.msra.gmra.mrb[28].mxu1 %v5851_v15  ;;  %6750 = vmatpush3.bf16.msra.mxu0 %v7359_v19  ;;  %v7395_v15 = vld [vmem:[%s9418_s1 + $0x908] sm:$0xff]   ;;  %v7399_v19 = vld [vmem:[%s9418_s1 + $0x910] sm:$0xff]  }
 0x105   :  { %6772 = vmatpush3.bf16.msra.mxu1 %v7360_v20  ;;  %6751 = vmatprep.subr.bf16.mxu0 %v7361_v21  ;;  %v7400_v20 = vld [vmem:[%s9418_s1 + $0x990] sm:$0xff]   ;;  %v7401_v21 = vld [vmem:[%s9418_s1 + $0x958] sm:$0xff]  }
 0x106   :  { %6773 = vmatprep.subr.bf16.mxu1 %v7362_v22  ;;  %5190 = vmatprep.mubr.bf16.mxu0 %v5854_v5  ;;  %v7402_v22 = vld [vmem:[%s9418_s1 + $0x9d8] sm:$0xff]   ;;  %v7425_v5 = vld [vmem:[%s9418_s1 + $0xa48] sm:$0xff]  }
 0x107   :  { %5231 = vmatprep.mubr.bf16.mxu1 %v5856_v8  ;;  %v7428_v8 = vld [vmem:[%s9418_s1 + $0xa88] sm:$0xff]  }
 0x108   :  { %6752 = vmatpush3.bf16.msra.mxu0 %v7363_v23 }
 0x109   :  { %6774 = vmatpush3.bf16.msra.mxu1 %v7364_v24  ;;  %6753 = vmatprep.subr.bf16.mxu0 %v7365_v25  ;;  %v7403_v24 = vld [vmem:[%s9418_s1 + $0x918] sm:$0xff]  }
 0x10a   :  { %6775 = vmatprep.subr.bf16.mxu1 %v7366_v26  ;;  %v7404_v26 = vld [vmem:[%s9418_s1 + $0x998] sm:$0xff]  }
 0x10c   :  { %6754 = vmatpush3.bf16.msra.mxu0 %v7367_v27 }
 0x10d   :  { %6776 = vmatpush3.bf16.msra.mxu1 %v7368_v28  ;;  %6755 = vmatprep.subr.bf16.mxu0 %v7369_v29  ;;  %v7405_v28 = vld [vmem:[%s9418_s1 + $0x960] sm:$0xff]  }
 0x10e   :  { %6777 = vmatprep.subr.bf16.mxu1 %v7370_v30 }
 0x110   :  { %6756 = vmatpush3.bf16.msra.mxu0 %v7371_v32 }
 0x111   :  { %6778 = vmatpush3.bf16.msra.mxu1 %v7372_v34  ;;  %6757 = vmatprep.subr.bf16.mxu0 %v7373_v36  ;;  %v7407_v34 = vld [vmem:[%s9418_s1 + $0x920] sm:$0xff]  }
 0x112   :  { %6779 = vmatprep.subr.bf16.mxu1 %v7374_v39 }
 0x114   :  { %6758 = vmatpush3.bf16.msra.mxu0 %v7375_v42 }
 0x115   :  { %6780 = vmatpush3.bf16.msra.mxu1 %v7376_v45  ;;  %6759 = vmatprep.subr.bf16.mxu0 %v7377_v48  ;;  %v7411_v45 = vld [vmem:[%s9418_s1 + $0x928] sm:$0xff]  }
 0x116   :  { %v6457_v31 = vpop.f32.mrb[4].mxu0  ;;  %6781 = vmatprep.subr.bf16.mxu1 %v7378_v51  ;;  %v7415_v51 = vld [vmem:[%s9418_s1 + $0x930] sm:$0xff]  }
 0x117   :  { %v6479_v33 = vpop.f32.mrb[4].mxu1  ;;  %v6458_v35 = vpop.f32.mrb[5].mxu0 }
 0x118   :  { %v6459_v37 = vadd.f32 %v6458_v35, %v6457_v31  ;;  %v6480_v38 = vpop.f32.mrb[5].mxu1  ;;  %v6460_v41 = vpop.f32.mrb[6].mxu0  ;;  %6760 = vmatpush3.bf16.msra.mxu0 %v7379_v53  ;;  %v7406_v31 = vld [vmem:[%s9418_s1 + $0x9e0] sm:$0xff]   ;;  %v7417_v53 = vld [vmem:[%s9418_s1 + $0x978] sm:$0xff]  }
 0x119   :  { %v6481_v40 = vadd.f32 %v6480_v38, %v6479_v33  ;;  %v6482_v44 = vpop.f32.mrb[6].mxu1  ;;  %v6461_v46 = vpop.f32.mrb[7].mxu0  ;;  %6782 = vmatpush3.bf16.msra.mxu1 %v7380_v55  ;;  %6761 = vmatprep.subr.bf16.mxu0 %v7381_v57  ;;  %v7419_v55 = vld [vmem:[%s9418_s1 + $0x938] sm:$0xff]   ;;  %v33_v57 = vld [vmem:[%s9419_s0 + $0x90] sm:$0xff] }
 0x11a   :  { %v4619_v43 = vadd.f32 %v6459_v37, %v8458_v60  ;;  %v6462_v49 = vadd.f32 %v6461_v46, %v6460_v41  ;;  %v6483_v50 = vpop.f32.mrb[7].mxu1  ;;  %6783 = vmatprep.subr.bf16.mxu1 %v7382_v58  ;;  %v7384_v60 = vld [vmem:[%s9418_s1 + $0x8b0] sm:$0xff]   ;;  %v7408_v37 = vld [vmem:[%s9418_s1 + $0x9a0] sm:$0xff]  }
 0x11b   :  { %v6484_v52 = vadd.f32 %v6483_v50, %v6482_v44  ;;  %v7414_v50 = vld [vmem:[%s9418_s1 + $0x9f0] sm:$0xff]  }
 0x11c   :  { %v8565_v47 = vadd.f32 %v6481_v40, %v4619_v43  ;;  %v4622_v54 = vadd.f32 %v6462_v49, %v8466_v0  ;;  %6762 = vmatpush3.bf16.msra.mxu0 %v7383_v59  ;;  %v7388_v0 = vld [vmem:[%s9418_s1 + $0x8b8] sm:$0xff]   ;;  %v7409_v40 = vld [vmem:[%s9418_s1 + $0x968] sm:$0xff]   ;;  %v7413_v49 = vld [vmem:[%s9418_s1 + $0x970] sm:$0xff]  }
 0x11d   :  { %6784 = vmatpush3.bf16.msra.mxu1 %v7384_v60  ;;  %6763 = vmatprep.subr.bf16.mxu0 %v7385_v61  ;;  %v7410_v43 = vld [vmem:[%s9418_s1 + $0x9e8] sm:$0xff]   ;;  %v65_v58 = vld [vmem:[%s9419_s0 + $0x190] sm:$0xff]  ;;  %v34_v61 = vld [vmem:[%s9419_s0 + $0x98] sm:$0xff] }
 0x11e   :  { %v8580_v56 = vadd.f32 %v6484_v52, %v4622_v54  ;;  %6785 = vmatprep.subr.bf16.mxu1 %v7386_v62  ;;  %v7416_v52 = vld [vmem:[%s9418_s1 + $0x9b0] sm:$0xff]   ;;  %v7418_v54 = vld [vmem:[%s9418_s1 + $0x9f8] sm:$0xff]   ;;  %v5857_v59 = vcombine.low %v33_v57, %v65_v58  ;;  %v5858_v60 = vcombine.high %v33_v57, %v65_v58  ;;  %v7453_v57 = vld [vmem:[%s9418_s1 + $0xb40] sm:$0xff]  }
 0x11f   :  { %v66_v62 = vld [vmem:[%s9419_s0 + $0x198] sm:$0xff]  ;;  %v7454_v58 = vld [vmem:[%s9418_s1 + $0xbc0] sm:$0xff]  }
 0x120   :  { %6764 = vmatpush3.bf16.msra.mxu0 %v7387_v63  ;;  %v5859_v63 = vcombine.low %v34_v61, %v66_v62 }
 0x121   :  { %6786 = vmatpush3.bf16.msra.mxu1 %v7388_v0  ;;  %6793 = vmatprep.subr.bf16.mxu0 %v7389_v9  ;;  %v5860_v0 = vcombine.high %v34_v61, %v66_v62  ;;  %v7429_v9 = vld [vmem:[%s9418_s1 + $0xa50] sm:$0xff]   ;;  %v7457_v61 = vld [vmem:[%s9418_s1 + $0xb48] sm:$0xff]  }
 0x122   :  { %6815 = vmatprep.subr.bf16.mxu1 %v7390_v10  ;;  %v7430_v10 = vld [vmem:[%s9418_s1 + $0xad0] sm:$0xff]   ;;  %v7458_v62 = vld [vmem:[%s9418_s1 + $0xbc8] sm:$0xff]  }
 0x123   :  { %5191 = vmatmul.mubr.bf16.vlgmr.msra.gmra.mrb[32].mxu0 %v5853_v4  ;;  %v7424_v4 = vld [vmem:[%s9418_s1 + $0xa80] sm:$0xff]  }
 0x124   :  { %5232 = vmatmul.mubr.bf16.vlgmr.msra.gmra.mrb[32].mxu1 %v5855_v7  ;;  %6794 = vmatpush3.bf16.msra.mxu0 %v7391_v11  ;;  %v7427_v7 = vld [vmem:[%s9418_s1 + $0xa08] sm:$0xff]   ;;  %v7431_v11 = vld [vmem:[%s9418_s1 + $0xa10] sm:$0xff]  }
 0x125   :  { %6816 = vmatpush3.bf16.msra.mxu1 %v7392_v12  ;;  %6795 = vmatprep.subr.bf16.mxu0 %v7393_v13  ;;  %v7432_v12 = vld [vmem:[%s9418_s1 + $0xa90] sm:$0xff]   ;;  %v7433_v13 = vld [vmem:[%s9418_s1 + $0xa58] sm:$0xff]  }
 0x126   :  { %6817 = vmatprep.subr.bf16.mxu1 %v7394_v14  ;;  %5272 = vmatprep.mubr.bf16.mxu0 %v5858_v60  ;;  %v7434_v14 = vld [vmem:[%s9418_s1 + $0xad8] sm:$0xff]   ;;  %v7456_v60 = vld [vmem:[%s9418_s1 + $0xb80] sm:$0xff]  }
 0x127   :  { %5313 = vmatprep.mubr.bf16.mxu1 %v5860_v0  ;;  %v7460_v0 = vld [vmem:[%s9418_s1 + $0xb88] sm:$0xff]  }
 0x128   :  { %6796 = vmatpush3.bf16.msra.mxu0 %v7395_v15 }
 0x129   :  { %6818 = vmatpush3.bf16.msra.mxu1 %v7396_v16  ;;  %6797 = vmatprep.subr.bf16.mxu0 %v7397_v17  ;;  %v7435_v16 = vld [vmem:[%s9418_s1 + $0xa18] sm:$0xff]  }
 0x12a   :  { %6819 = vmatprep.subr.bf16.mxu1 %v7398_v18  ;;  %v7436_v18 = vld [vmem:[%s9418_s1 + $0xa98] sm:$0xff]  }
 0x12c   :  { %6798 = vmatpush3.bf16.msra.mxu0 %v7399_v19 }
 0x12d   :  { %6820 = vmatpush3.bf16.msra.mxu1 %v7400_v20  ;;  %6799 = vmatprep.subr.bf16.mxu0 %v7401_v21  ;;  %v7437_v20 = vld [vmem:[%s9418_s1 + $0xa60] sm:$0xff]  }
 0x12e   :  { %6821 = vmatprep.subr.bf16.mxu1 %v7402_v22 }
 0x130   :  { %6800 = vmatpush3.bf16.msra.mxu0 %v7403_v24 }
 0x131   :  { %6822 = vmatpush3.bf16.msra.mxu1 %v7404_v26  ;;  %6801 = vmatprep.subr.bf16.mxu0 %v7405_v28  ;;  %v7439_v26 = vld [vmem:[%s9418_s1 + $0xa20] sm:$0xff]  }
 0x132   :  { %6823 = vmatprep.subr.bf16.mxu1 %v7406_v31 }
 0x134   :  { %6802 = vmatpush3.bf16.msra.mxu0 %v7407_v34 }
 0x135   :  { %6824 = vmatpush3.bf16.msra.mxu1 %v7408_v37  ;;  %6803 = vmatprep.subr.bf16.mxu0 %v7409_v40  ;;  %v7443_v37 = vld [vmem:[%s9418_s1 + $0xa28] sm:$0xff]  }
 0x136   :  { %v6501_v23 = vpop.f32.mrb[8].mxu0  ;;  %6825 = vmatprep.subr.bf16.mxu1 %v7410_v43  ;;  %v7447_v43 = vld [vmem:[%s9418_s1 + $0xa30] sm:$0xff]  }
 0x137   :  { %v6523_v25 = vpop.f32.mrb[8].mxu1  ;;  %v6502_v27 = vpop.f32.mrb[9].mxu0 }
 0x138   :  { %v6503_v29 = vadd.f32 %v6502_v27, %v6501_v23  ;;  %v6524_v30 = vpop.f32.mrb[9].mxu1  ;;  %v6504_v33 = vpop.f32.mrb[10].mxu0  ;;  %6804 = vmatpush3.bf16.msra.mxu0 %v7411_v45  ;;  %v7438_v23 = vld [vmem:[%s9418_s1 + $0xae0] sm:$0xff]   ;;  %v7449_v45 = vld [vmem:[%s9418_s1 + $0xa78] sm:$0xff]  }
 0x139   :  { %v6525_v32 = vadd.f32 %v6524_v30, %v6523_v25  ;;  %v6526_v36 = vpop.f32.mrb[10].mxu1  ;;  %v6505_v38 = vpop.f32.mrb[11].mxu0  ;;  %6805 = vmatprep.subr.bf16.mxu0 %v7413_v49  ;;  %v35_v49 = vld [vmem:[%s9419_s0 + $0xa0] sm:$0xff] }
 0x13a   :  { %v4701_v35 = vadd.f32 %v6503_v29, %v8565_v47  ;;  %v6506_v41 = vadd.f32 %v6505_v38, %v6504_v33  ;;  %v6527_v42 = vpop.f32.mrb[11].mxu1  ;;  %v7412_v47 = vld [vmem:[%s9418_s1 + $0x9a8] sm:$0xff]   ;;  %v7440_v29 = vld [vmem:[%s9418_s1 + $0xaa0] sm:$0xff]  }
 0x13b   :  { %v6528_v44 = vadd.f32 %v6527_v42, %v6526_v36  ;;  %6826 = vmatpush3.bf16.msra.mxu1 %v7412_v47  ;;  %v7446_v42 = vld [vmem:[%s9418_s1 + $0xaf0] sm:$0xff]   ;;  %v7451_v47 = vld [vmem:[%s9418_s1 + $0xa38] sm:$0xff]  }
 0x13c   :  { %v8679_v39 = vadd.f32 %v6525_v32, %v4701_v35  ;;  %v4704_v46 = vadd.f32 %v6506_v41, %v8580_v56  ;;  %6827 = vmatprep.subr.bf16.mxu1 %v7414_v50  ;;  %6806 = vmatpush3.bf16.msra.mxu0 %v7415_v51  ;;  %v7420_v56 = vld [vmem:[%s9418_s1 + $0x9b8] sm:$0xff]   ;;  %v7441_v32 = vld [vmem:[%s9418_s1 + $0xa68] sm:$0xff]   ;;  %v7445_v41 = vld [vmem:[%s9418_s1 + $0xa70] sm:$0xff]  }
 0x13d   :  { %6807 = vmatprep.subr.bf16.mxu0 %v7417_v53  ;;  %v7442_v35 = vld [vmem:[%s9418_s1 + $0xae8] sm:$0xff]   ;;  %v67_v50 = vld [vmem:[%s9419_s0 + $0x1a0] sm:$0xff] }
 0x13e   :  { %v8694_v48 = vadd.f32 %v6528_v44, %v4704_v46  ;;  %v7448_v44 = vld [vmem:[%s9418_s1 + $0xab0] sm:$0xff]   ;;  %v7450_v46 = vld [vmem:[%s9418_s1 + $0xaf8] sm:$0xff]   ;;  %v36_v51 = vld [vmem:[%s9419_s0 + $0xa8] sm:$0xff]  ;;  %v5861_v53 = vcombine.low %v35_v49, %v67_v50 }
 0x13f   :  { %6828 = vmatpush3.bf16.msra.mxu1 %v7416_v52  ;;  %v68_v52 = vld [vmem:[%s9419_s0 + $0x1a8] sm:$0xff] }
 0x140   :  { %6829 = vmatprep.subr.bf16.mxu1 %v7418_v54  ;;  %6808 = vmatpush3.bf16.msra.mxu0 %v7419_v55  ;;  %v5862_v54 = vcombine.high %v35_v49, %v67_v50  ;;  %v5863_v55 = vcombine.low %v36_v51, %v68_v52  ;;  %v7485_v49 = vld [vmem:[%s9418_s1 + $0xc40] sm:$0xff]  }
 0x141   :  { %6837 = vmatprep.subr.bf16.mxu0 %v7421_v1  ;;  %v7461_v1 = vld [vmem:[%s9418_s1 + $0xb50] sm:$0xff]   ;;  %v7486_v50 = vld [vmem:[%s9418_s1 + $0xcc0] sm:$0xff]  }
 0x143   :  { %6830 = vmatpush3.bf16.msra.mxu1 %v7420_v56  ;;  %5273 = vmatmul.mubr.bf16.vlgmr.msra.gmra.mrb[36].mxu0 %v5857_v59  ;;  %v5864_v56 = vcombine.high %v36_v51, %v68_v52  ;;  %v7455_v59 = vld [vmem:[%s9418_s1 + $0xb00] sm:$0xff]  }
 0x144   :  { %6859 = vmatprep.subr.bf16.mxu1 %v7422_v2  ;;  %6838 = vmatpush3.bf16.msra.mxu0 %v7423_v3  ;;  %v7462_v2 = vld [vmem:[%s9418_s1 + $0xbd0] sm:$0xff]   ;;  %v7487_v51 = vld [vmem:[%s9418_s1 + $0xc00] sm:$0xff]  }
 0x145   :  { %6839 = vmatprep.subr.bf16.mxu0 %v7425_v5  ;;  %5354 = vmatprep.mubr.bf16.mxu0 %v5862_v54  ;;  %v7463_v3 = vld [vmem:[%s9418_s1 + $0xb10] sm:$0xff]   ;;  %v7465_v5 = vld [vmem:[%s9418_s1 + $0xb58] sm:$0xff]   ;;  %v7488_v52 = vld [vmem:[%s9418_s1 + $0xc80] sm:$0xff]  }
 0x146   :  { %5314 = vmatmul.mubr.bf16.vlgmr.msra.gmra.mrb[36].mxu1 %v5859_v63  ;;  %v7459_v63 = vld [vmem:[%s9418_s1 + $0xb08] sm:$0xff]  }
 0x147   :  { %6860 = vmatpush3.bf16.msra.mxu1 %v7424_v4  ;;  %5395 = vmatprep.mubr.bf16.mxu1 %v5864_v56  ;;  %v7464_v4 = vld [vmem:[%s9418_s1 + $0xb90] sm:$0xff]   ;;  %v7490_v54 = vld [vmem:[%s9418_s1 + $0xcc8] sm:$0xff]  }
 0x148   :  { %6861 = vmatprep.subr.bf16.mxu1 %v7426_v6  ;;  %6840 = vmatpush3.bf16.msra.mxu0 %v7427_v7  ;;  %v7466_v6 = vld [vmem:[%s9418_s1 + $0xbd8] sm:$0xff]   ;;  %v7492_v56 = vld [vmem:[%s9418_s1 + $0xc88] sm:$0xff]  }
 0x149   :  { %6841 = vmatprep.subr.bf16.mxu0 %v7429_v9 }
 0x14b   :  { %6862 = vmatpush3.bf16.msra.mxu1 %v7428_v8  ;;  %v7467_v8 = vld [vmem:[%s9418_s1 + $0xb18] sm:$0xff]  }
 0x14c   :  { %6863 = vmatprep.subr.bf16.mxu1 %v7430_v10  ;;  %6842 = vmatpush3.bf16.msra.mxu0 %v7431_v11  ;;  %v7468_v10 = vld [vmem:[%s9418_s1 + $0xb98] sm:$0xff]  }
 0x14d   :  { %6843 = vmatprep.subr.bf16.mxu0 %v7433_v13 }
 0x14f   :  { %6864 = vmatpush3.bf16.msra.mxu1 %v7432_v12  ;;  %v7469_v12 = vld [vmem:[%s9418_s1 + $0xb60] sm:$0xff]  }
 0x150   :  { %6865 = vmatprep.subr.bf16.mxu1 %v7434_v14  ;;  %6844 = vmatpush3.bf16.msra.mxu0 %v7435_v16 }
 0x151   :  { %6845 = vmatprep.subr.bf16.mxu0 %v7437_v20 }
 0x153   :  { %6866 = vmatpush3.bf16.msra.mxu1 %v7436_v18  ;;  %v7471_v18 = vld [vmem:[%s9418_s1 + $0xb20] sm:$0xff]  }
 0x154   :  { %6867 = vmatprep.subr.bf16.mxu1 %v7438_v23  ;;  %6846 = vmatpush3.bf16.msra.mxu0 %v7439_v26 }
 0x155   :  { %6847 = vmatprep.subr.bf16.mxu0 %v7441_v32 }
 0x156   :  { %v6545_v15 = vpop.f32.mrb[12].mxu0 }
 0x157   :  { %v6567_v17 = vpop.f32.mrb[12].mxu1  ;;  %v6546_v19 = vpop.f32.mrb[13].mxu0  ;;  %6868 = vmatpush3.bf16.msra.mxu1 %v7440_v29  ;;  %v7475_v29 = vld [vmem:[%s9418_s1 + $0xb28] sm:$0xff]  }
 0x158   :  { %v6547_v21 = vadd.f32 %v6546_v19, %v6545_v15  ;;  %v6568_v22 = vpop.f32.mrb[13].mxu1  ;;  %v6548_v25 = vpop.f32.mrb[14].mxu0  ;;  %6869 = vmatprep.subr.bf16.mxu1 %v7442_v35  ;;  %6848 = vmatpush3.bf16.msra.mxu0 %v7443_v37  ;;  %v7470_v15 = vld [vmem:[%s9418_s1 + $0xbe0] sm:$0xff]   ;;  %v7479_v35 = vld [vmem:[%s9418_s1 + $0xb30] sm:$0xff]   ;;  %v7481_v37 = vld [vmem:[%s9418_s1 + $0xb78] sm:$0xff]  }
 0x159   :  { %v6569_v24 = vadd.f32 %v6568_v22, %v6567_v17  ;;  %v6570_v28 = vpop.f32.mrb[14].mxu1  ;;  %v6549_v30 = vpop.f32.mrb[15].mxu0  ;;  %6849 = vmatprep.subr.bf16.mxu0 %v7445_v41  ;;  %v37_v41 = vld [vmem:[%s9419_s0 + $0xb0] sm:$0xff] }
 0x15a   :  { %v4783_v27 = vadd.f32 %v6547_v21, %v8679_v39  ;;  %v6550_v33 = vadd.f32 %v6549_v30, %v6548_v25  ;;  %v6571_v34 = vpop.f32.mrb[15].mxu1  ;;  %v7444_v39 = vld [vmem:[%s9418_s1 + $0xaa8] sm:$0xff]   ;;  %v7472_v21 = vld [vmem:[%s9418_s1 + $0xba0] sm:$0xff]  }
 0x15b   :  { %v6572_v36 = vadd.f32 %v6571_v34, %v6570_v28  ;;  %6870 = vmatpush3.bf16.msra.mxu1 %v7444_v39  ;;  %v7478_v34 = vld [vmem:[%s9418_s1 + $0xbf0] sm:$0xff]   ;;  %v7483_v39 = vld [vmem:[%s9418_s1 + $0xb38] sm:$0xff]  }
 0x15c   :  { %v8793_v31 = vadd.f32 %v6569_v24, %v4783_v27  ;;  %v4786_v38 = vadd.f32 %v6550_v33, %v8694_v48  ;;  %6871 = vmatprep.subr.bf16.mxu1 %v7446_v42  ;;  %6850 = vmatpush3.bf16.msra.mxu0 %v7447_v43  ;;  %v7452_v48 = vld [vmem:[%s9418_s1 + $0xab8] sm:$0xff]   ;;  %v7473_v24 = vld [vmem:[%s9418_s1 + $0xb68] sm:$0xff]   ;;  %v7477_v33 = vld [vmem:[%s9418_s1 + $0xb70] sm:$0xff]  }
 0x15d   :  { %6851 = vmatprep.subr.bf16.mxu0 %v7449_v45  ;;  %v7474_v27 = vld [vmem:[%s9418_s1 + $0xbe8] sm:$0xff]   ;;  %v69_v42 = vld [vmem:[%s9419_s0 + $0x1b0] sm:$0xff]  ;;  %v38_v43 = vld [vmem:[%s9419_s0 + $0xb8] sm:$0xff] }
 0x15e   :  { %v8808_v40 = vadd.f32 %v6572_v36, %v4786_v38  ;;  %v7480_v36 = vld [vmem:[%s9418_s1 + $0xbb0] sm:$0xff]   ;;  %v7482_v38 = vld [vmem:[%s9418_s1 + $0xbf8] sm:$0xff]   ;;  %v5866_v45 = vcombine.high %v37_v41, %v69_v42 }
 0x15f   :  { %6872 = vmatpush3.bf16.msra.mxu1 %v7448_v44  ;;  %v5865_v44 = vcombine.low %v37_v41, %v69_v42  ;;  %v7517_v41 = vld [vmem:[%s9418_s1 + $0xd40] sm:$0xff]  }
 0x160   :  { %6873 = vmatprep.subr.bf16.mxu1 %v7450_v46  ;;  %6852 = vmatpush3.bf16.msra.mxu0 %v7451_v47  ;;  %v70_v46 = vld [vmem:[%s9419_s0 + $0x1b8] sm:$0xff]  ;;  %v7518_v42 = vld [vmem:[%s9418_s1 + $0xdc0] sm:$0xff]  }
 0x161   :  { %6881 = vmatprep.subr.bf16.mxu0 %v7453_v57  ;;  %v5867_v47 = vcombine.low %v38_v43, %v70_v46  ;;  %v7493_v57 = vld [vmem:[%s9418_s1 + $0xc50] sm:$0xff]  }
 0x163   :  { %6874 = vmatpush3.bf16.msra.mxu1 %v7452_v48  ;;  %5355 = vmatmul.mubr.bf16.vlgmr.msra.gmra.mrb[40].mxu0 %v5861_v53  ;;  %v5868_v48 = vcombine.high %v38_v43, %v70_v46  ;;  %v7489_v53 = vld [vmem:[%s9418_s1 + $0xc48] sm:$0xff]   ;;  %v7519_v43 = vld [vmem:[%s9418_s1 + $0xd00] sm:$0xff]  }
 0x164   :  { %6903 = vmatprep.subr.bf16.mxu1 %v7454_v58  ;;  %6882 = vmatpush3.bf16.msra.mxu0 %v7455_v59  ;;  %v7494_v58 = vld [vmem:[%s9418_s1 + $0xcd0] sm:$0xff]   ;;  %v7522_v46 = vld [vmem:[%s9418_s1 + $0xdc8] sm:$0xff]  }
 0x165   :  { %6883 = vmatprep.subr.bf16.mxu0 %v7457_v61  ;;  %5436 = vmatprep.mubr.bf16.mxu0 %v5866_v45  ;;  %v7495_v59 = vld [vmem:[%s9418_s1 + $0xc10] sm:$0xff]   ;;  %v7497_v61 = vld [vmem:[%s9418_s1 + $0xc58] sm:$0xff]   ;;  %v7521_v45 = vld [vmem:[%s9418_s1 + $0xd48] sm:$0xff]  }
 0x166   :  { %5396 = vmatmul.mubr.bf16.vlgmr.msra.gmra.mrb[40].mxu1 %v5863_v55  ;;  %v7491_v55 = vld [vmem:[%s9418_s1 + $0xc08] sm:$0xff]  }
 0x167   :  { %6904 = vmatpush3.bf16.msra.mxu1 %v7456_v60  ;;  %5477 = vmatprep.mubr.bf16.mxu1 %v5868_v48  ;;  %v7496_v60 = vld [vmem:[%s9418_s1 + $0xc90] sm:$0xff]   ;;  %v7524_v48 = vld [vmem:[%s9418_s1 + $0xd88] sm:$0xff]  }
 0x168   :  { %6905 = vmatprep.subr.bf16.mxu1 %v7458_v62  ;;  %6884 = vmatpush3.bf16.msra.mxu0 %v7459_v63  ;;  %v7498_v62 = vld [vmem:[%s9418_s1 + $0xcd8] sm:$0xff]  }
 0x169   :  { %6885 = vmatprep.subr.bf16.mxu0 %v7461_v1 }
 0x16b   :  { %6906 = vmatpush3.bf16.msra.mxu1 %v7460_v0  ;;  %v7499_v0 = vld [vmem:[%s9418_s1 + $0xc18] sm:$0xff]  }
 0x16c   :  { %6907 = vmatprep.subr.bf16.mxu1 %v7462_v2  ;;  %6886 = vmatpush3.bf16.msra.mxu0 %v7463_v3  ;;  %v7500_v2 = vld [vmem:[%s9418_s1 + $0xc98] sm:$0xff]  }
 0x16d   :  { %6887 = vmatprep.subr.bf16.mxu0 %v7465_v5 }
 0x16f   :  { %6908 = vmatpush3.bf16.msra.mxu1 %v7464_v4  ;;  %v7501_v4 = vld [vmem:[%s9418_s1 + $0xc60] sm:$0xff]  }
 0x170   :  { %6909 = vmatprep.subr.bf16.mxu1 %v7466_v6  ;;  %6888 = vmatpush3.bf16.msra.mxu0 %v7467_v8 }
 0x171   :  { %6889 = vmatprep.subr.bf16.mxu0 %v7469_v12 }
 0x173   :  { %6910 = vmatpush3.bf16.msra.mxu1 %v7468_v10  ;;  %v7503_v10 = vld [vmem:[%s9418_s1 + $0xc20] sm:$0xff]  }
 0x174   :  { %6911 = vmatprep.subr.bf16.mxu1 %v7470_v15  ;;  %6890 = vmatpush3.bf16.msra.mxu0 %v7471_v18 }
 0x175   :  { %6891 = vmatprep.subr.bf16.mxu0 %v7473_v24 }
 0x176   :  { %v6589_v7 = vpop.f32.mrb[16].mxu0 }
 0x177   :  { %v6611_v9 = vpop.f32.mrb[16].mxu1  ;;  %v6590_v11 = vpop.f32.mrb[17].mxu0  ;;  %6912 = vmatpush3.bf16.msra.mxu1 %v7472_v21  ;;  %v7507_v21 = vld [vmem:[%s9418_s1 + $0xc28] sm:$0xff]  }
 0x178   :  { %v6591_v13 = vadd.f32 %v6590_v11, %v6589_v7  ;;  %v6612_v14 = vpop.f32.mrb[17].mxu1  ;;  %v6592_v17 = vpop.f32.mrb[18].mxu0  ;;  %6913 = vmatprep.subr.bf16.mxu1 %v7474_v27  ;;  %6892 = vmatpush3.bf16.msra.mxu0 %v7475_v29  ;;  %v7502_v7 = vld [vmem:[%s9418_s1 + $0xce0] sm:$0xff]   ;;  %v7511_v27 = vld [vmem:[%s9418_s1 + $0xc30] sm:$0xff]   ;;  %v7513_v29 = vld [vmem:[%s9418_s1 + $0xc78] sm:$0xff]  }
 0x179   :  { %v6613_v16 = vadd.f32 %v6612_v14, %v6611_v9  ;;  %v6614_v20 = vpop.f32.mrb[18].mxu1  ;;  %v6593_v22 = vpop.f32.mrb[19].mxu0  ;;  %6893 = vmatprep.subr.bf16.mxu0 %v7477_v33  ;;  %v39_v33 = vld [vmem:[%s9419_s0 + $0xc0] sm:$0xff] }
 0x17a   :  { %v4865_v19 = vadd.f32 %v6591_v13, %v8793_v31  ;;  %v6594_v25 = vadd.f32 %v6593_v22, %v6592_v17  ;;  %v6615_v26 = vpop.f32.mrb[19].mxu1  ;;  %v7476_v31 = vld [vmem:[%s9418_s1 + $0xba8] sm:$0xff]   ;;  %v7504_v13 = vld [vmem:[%s9418_s1 + $0xca0] sm:$0xff]  }
 0x17b   :  { %v6616_v28 = vadd.f32 %v6615_v26, %v6614_v20  ;;  %6914 = vmatpush3.bf16.msra.mxu1 %v7476_v31  ;;  %v7510_v26 = vld [vmem:[%s9418_s1 + $0xcf0] sm:$0xff]   ;;  %v7515_v31 = vld [vmem:[%s9418_s1 + $0xc38] sm:$0xff]  }
 0x17c   :  { %v8907_v23 = vadd.f32 %v6613_v16, %v4865_v19  ;;  %v4868_v30 = vadd.f32 %v6594_v25, %v8808_v40  ;;  %6915 = vmatprep.subr.bf16.mxu1 %v7478_v34  ;;  %6894 = vmatpush3.bf16.msra.mxu0 %v7479_v35  ;;  %v7484_v40 = vld [vmem:[%s9418_s1 + $0xbb8] sm:$0xff]   ;;  %v7505_v16 = vld [vmem:[%s9418_s1 + $0xc68] sm:$0xff]   ;;  %v7509_v25 = vld [vmem:[%s9418_s1 + $0xc70] sm:$0xff]  }
 0x17d   :  { %6895 = vmatprep.subr.bf16.mxu0 %v7481_v37  ;;  %v7506_v19 = vld [vmem:[%s9418_s1 + $0xce8] sm:$0xff]   ;;  %v71_v34 = vld [vmem:[%s9419_s0 + $0x1c0] sm:$0xff] }
 0x17e   :  { %v8922_v32 = vadd.f32 %v6616_v28, %v4868_v30  ;;  %v7512_v28 = vld [vmem:[%s9418_s1 + $0xcb0] sm:$0xff]   ;;  %v7514_v30 = vld [vmem:[%s9418_s1 + $0xcf8] sm:$0xff]   ;;  %v5869_v35 = vcombine.low %v39_v33, %v71_v34  ;;  %v40_v37 = vld [vmem:[%s9419_s0 + $0xc8] sm:$0xff] }
 0x17f   :  { %6916 = vmatpush3.bf16.msra.mxu1 %v7480_v36  ;;  %v5870_v36 = vcombine.high %v39_v33, %v71_v34  ;;  %v7549_v33 = vld [vmem:[%s9418_s1 + $0xe40] sm:$0xff]  }
 0x180   :  { %6917 = vmatprep.subr.bf16.mxu1 %v7482_v38  ;;  %6896 = vmatpush3.bf16.msra.mxu0 %v7483_v39  ;;  %v72_v38 = vld [vmem:[%s9419_s0 + $0x1c8] sm:$0xff]  ;;  %v7550_v34 = vld [vmem:[%s9418_s1 + $0xec0] sm:$0xff]  }
 0x181   :  { %6925 = vmatprep.subr.bf16.mxu0 %v7485_v49  ;;  %v5871_v39 = vcombine.low %v40_v37, %v72_v38  ;;  %v7525_v49 = vld [vmem:[%s9418_s1 + $0xd50] sm:$0xff]  }
 0x183   :  { %6918 = vmatpush3.bf16.msra.mxu1 %v7484_v40  ;;  %5437 = vmatmul.mubr.bf16.vlgmr.msra.gmra.mrb[44].mxu0 %v5865_v44  ;;  %v5872_v40 = vcombine.high %v40_v37, %v72_v38  ;;  %v7520_v44 = vld [vmem:[%s9418_s1 + $0xd80] sm:$0xff]   ;;  %v7553_v37 = vld [vmem:[%s9418_s1 + $0xe48] sm:$0xff]  }
 0x184   :  { %6947 = vmatprep.subr.bf16.mxu1 %v7486_v50  ;;  %6926 = vmatpush3.bf16.msra.mxu0 %v7487_v51  ;;  %v7526_v50 = vld [vmem:[%s9418_s1 + $0xdd0] sm:$0xff]   ;;  %v7554_v38 = vld [vmem:[%s9418_s1 + $0xec8] sm:$0xff]  }
 0x185   :  { %6927 = vmatprep.subr.bf16.mxu0 %v7489_v53  ;;  %5518 = vmatprep.mubr.bf16.mxu0 %v5870_v36  ;;  %v7527_v51 = vld [vmem:[%s9418_s1 + $0xd10] sm:$0xff]   ;;  %v7529_v53 = vld [vmem:[%s9418_s1 + $0xd58] sm:$0xff]   ;;  %v7552_v36 = vld [vmem:[%s9418_s1 + $0xe80] sm:$0xff]  }
 0x186   :  { %5478 = vmatmul.mubr.bf16.vlgmr.msra.gmra.mrb[44].mxu1 %v5867_v47  ;;  %v7523_v47 = vld [vmem:[%s9418_s1 + $0xd08] sm:$0xff]  }
 0x187   :  { %6948 = vmatpush3.bf16.msra.mxu1 %v7488_v52  ;;  %5559 = vmatprep.mubr.bf16.mxu1 %v5872_v40  ;;  %v7528_v52 = vld [vmem:[%s9418_s1 + $0xd90] sm:$0xff]   ;;  %v7556_v40 = vld [vmem:[%s9418_s1 + $0xe88] sm:$0xff]  }
 0x188   :  { %6949 = vmatprep.subr.bf16.mxu1 %v7490_v54  ;;  %6928 = vmatpush3.bf16.msra.mxu0 %v7491_v55  ;;  %v7530_v54 = vld [vmem:[%s9418_s1 + $0xdd8] sm:$0xff]  }
 0x189   :  { %6929 = vmatprep.subr.bf16.mxu0 %v7493_v57 }
 0x18b   :  { %6950 = vmatpush3.bf16.msra.mxu1 %v7492_v56  ;;  %v7531_v56 = vld [vmem:[%s9418_s1 + $0xd18] sm:$0xff]  }
 0x18c   :  { %6951 = vmatprep.subr.bf16.mxu1 %v7494_v58  ;;  %6930 = vmatpush3.bf16.msra.mxu0 %v7495_v59  ;;  %v7532_v58 = vld [vmem:[%s9418_s1 + $0xd98] sm:$0xff]  }
 0x18d   :  { %6931 = vmatprep.subr.bf16.mxu0 %v7497_v61 }
 0x18f   :  { %6952 = vmatpush3.bf16.msra.mxu1 %v7496_v60  ;;  %v7533_v60 = vld [vmem:[%s9418_s1 + $0xd60] sm:$0xff]  }
 0x190   :  { %6953 = vmatprep.subr.bf16.mxu1 %v7498_v62  ;;  %6932 = vmatpush3.bf16.msra.mxu0 %v7499_v0 }
 0x191   :  { %6933 = vmatprep.subr.bf16.mxu0 %v7501_v4 }
 0x193   :  { %6954 = vmatpush3.bf16.msra.mxu1 %v7500_v2  ;;  %v7535_v2 = vld [vmem:[%s9418_s1 + $0xd20] sm:$0xff]  }
 0x194   :  { %6955 = vmatprep.subr.bf16.mxu1 %v7502_v7  ;;  %6934 = vmatpush3.bf16.msra.mxu0 %v7503_v10 }
 0x195   :  { %6935 = vmatprep.subr.bf16.mxu0 %v7505_v16 }
 0x196   :  { %v6633_v63 = vpop.f32.mrb[20].mxu0 }
 0x197   :  { %v6655_v1 = vpop.f32.mrb[20].mxu1  ;;  %v6634_v3 = vpop.f32.mrb[21].mxu0  ;;  %6956 = vmatpush3.bf16.msra.mxu1 %v7504_v13  ;;  %v7539_v13 = vld [vmem:[%s9418_s1 + $0xd28] sm:$0xff]  }
 0x198   :  { %v6635_v5 = vadd.f32 %v6634_v3, %v6633_v63  ;;  %v6656_v6 = vpop.f32.mrb[21].mxu1  ;;  %v6636_v9 = vpop.f32.mrb[22].mxu0  ;;  %6957 = vmatprep.subr.bf16.mxu1 %v7506_v19  ;;  %6936 = vmatpush3.bf16.msra.mxu0 %v7507_v21  ;;  %v7534_v63 = vld [vmem:[%s9418_s1 + $0xde0] sm:$0xff]   ;;  %v7543_v19 = vld [vmem:[%s9418_s1 + $0xd30] sm:$0xff]   ;;  %v7545_v21 = vld [vmem:[%s9418_s1 + $0xd78] sm:$0xff]  }
 0x199   :  { %v6657_v8 = vadd.f32 %v6656_v6, %v6655_v1  ;;  %v6658_v12 = vpop.f32.mrb[22].mxu1  ;;  %v6637_v14 = vpop.f32.mrb[23].mxu0  ;;  %6937 = vmatprep.subr.bf16.mxu0 %v7509_v25  ;;  %v41_v25 = vld [vmem:[%s9419_s0 + $0xd0] sm:$0xff] }
 0x19a   :  { %v4947_v11 = vadd.f32 %v6635_v5, %v8907_v23  ;;  %v6638_v17 = vadd.f32 %v6637_v14, %v6636_v9  ;;  %v6659_v18 = vpop.f32.mrb[23].mxu1  ;;  %v7508_v23 = vld [vmem:[%s9418_s1 + $0xca8] sm:$0xff]   ;;  %v7536_v5 = vld [vmem:[%s9418_s1 + $0xda0] sm:$0xff]  }
 0x19b   :  { %v6660_v20 = vadd.f32 %v6659_v18, %v6658_v12  ;;  %6958 = vmatpush3.bf16.msra.mxu1 %v7508_v23  ;;  %v7542_v18 = vld [vmem:[%s9418_s1 + $0xdf0] sm:$0xff]   ;;  %v7547_v23 = vld [vmem:[%s9418_s1 + $0xd38] sm:$0xff]  }
 0x19c   :  { %v9021_v15 = vadd.f32 %v6657_v8, %v4947_v11  ;;  %v4950_v22 = vadd.f32 %v6638_v17, %v8922_v32  ;;  %6959 = vmatprep.subr.bf16.mxu1 %v7510_v26  ;;  %6938 = vmatpush3.bf16.msra.mxu0 %v7511_v27  ;;  %v7516_v32 = vld [vmem:[%s9418_s1 + $0xcb8] sm:$0xff]   ;;  %v7537_v8 = vld [vmem:[%s9418_s1 + $0xd68] sm:$0xff]   ;;  %v7541_v17 = vld [vmem:[%s9418_s1 + $0xd70] sm:$0xff]  }
 0x19d   :  { %6939 = vmatprep.subr.bf16.mxu0 %v7513_v29  ;;  %v7538_v11 = vld [vmem:[%s9418_s1 + $0xde8] sm:$0xff]   ;;  %v73_v26 = vld [vmem:[%s9419_s0 + $0x1d0] sm:$0xff]  ;;  %v42_v27 = vld [vmem:[%s9419_s0 + $0xd8] sm:$0xff] }
 0x19e   :  { %v9036_v24 = vadd.f32 %v6660_v20, %v4950_v22  ;;  %v7544_v20 = vld [vmem:[%s9418_s1 + $0xdb0] sm:$0xff]   ;;  %v7546_v22 = vld [vmem:[%s9418_s1 + $0xdf8] sm:$0xff]   ;;  %v5873_v29 = vcombine.low %v41_v25, %v73_v26 }
 0x19f   :  { %6960 = vmatpush3.bf16.msra.mxu1 %v7512_v28  ;;  %v74_v28 = vld [vmem:[%s9419_s0 + $0x1d8] sm:$0xff] }
 0x1a0   :  { %6961 = vmatprep.subr.bf16.mxu1 %v7514_v30  ;;  %6940 = vmatpush3.bf16.msra.mxu0 %v7515_v31  ;;  %v5874_v30 = vcombine.high %v41_v25, %v73_v26  ;;  %v5875_v31 = vcombine.low %v42_v27, %v74_v28  ;;  %v7581_v25 = vld [vmem:[%s9418_s1 + $0xf40] sm:$0xff]  }
 0x1a1   :  { %6969 = vmatprep.subr.bf16.mxu0 %v7517_v41  ;;  %v7557_v41 = vld [vmem:[%s9418_s1 + $0xe50] sm:$0xff]   ;;  %v7582_v26 = vld [vmem:[%s9418_s1 + $0xfc0] sm:$0xff]  }
 0x1a3   :  { %6962 = vmatpush3.bf16.msra.mxu1 %v7516_v32  ;;  %5519 = vmatmul.mubr.bf16.vlgmr.msra.gmra.mrb[48].mxu0 %v5869_v35  ;;  %v5876_v32 = vcombine.high %v42_v27, %v74_v28  ;;  %v7551_v35 = vld [vmem:[%s9418_s1 + $0xe00] sm:$0xff]  }
 0x1a4   :  { %6991 = vmatprep.subr.bf16.mxu1 %v7518_v42  ;;  %6970 = vmatpush3.bf16.msra.mxu0 %v7519_v43  ;;  %v7558_v42 = vld [vmem:[%s9418_s1 + $0xed0] sm:$0xff]   ;;  %v7583_v27 = vld [vmem:[%s9418_s1 + $0xf00] sm:$0xff]  }
 0x1a5   :  { %6971 = vmatprep.subr.bf16.mxu0 %v7521_v45  ;;  %5600 = vmatprep.mubr.bf16.mxu0 %v5874_v30  ;;  %v7559_v43 = vld [vmem:[%s9418_s1 + $0xe10] sm:$0xff]   ;;  %v7561_v45 = vld [vmem:[%s9418_s1 + $0xe58] sm:$0xff]   ;;  %v7584_v28 = vld [vmem:[%s9418_s1 + $0xf80] sm:$0xff]  }
 0x1a6   :  { %5560 = vmatmul.mubr.bf16.vlgmr.msra.gmra.mrb[48].mxu1 %v5871_v39  ;;  %v7555_v39 = vld [vmem:[%s9418_s1 + $0xe08] sm:$0xff]  }
 0x1a7   :  { %6992 = vmatpush3.bf16.msra.mxu1 %v7520_v44  ;;  %5641 = vmatprep.mubr.bf16.mxu1 %v5876_v32  ;;  %v7560_v44 = vld [vmem:[%s9418_s1 + $0xe90] sm:$0xff]   ;;  %v7586_v30 = vld [vmem:[%s9418_s1 + $0xfc8] sm:$0xff]  }
 0x1a8   :  { %6993 = vmatprep.subr.bf16.mxu1 %v7522_v46  ;;  %6972 = vmatpush3.bf16.msra.mxu0 %v7523_v47  ;;  %v7562_v46 = vld [vmem:[%s9418_s1 + $0xed8] sm:$0xff]   ;;  %v7588_v32 = vld [vmem:[%s9418_s1 + $0xf88] sm:$0xff]  }
 0x1a9   :  { %6973 = vmatprep.subr.bf16.mxu0 %v7525_v49  ;;  %v7563_v47 = vld [vmem:[%s9418_s1 + $0xe18] sm:$0xff]  }
 0x1aa   :  { %v7564_v49 = vld [vmem:[%s9418_s1 + $0xe98] sm:$0xff]  }
 0x1ab   :  { %6994 = vmatpush3.bf16.msra.mxu1 %v7524_v48 }
 0x1ac   :  { %6995 = vmatprep.subr.bf16.mxu1 %v7526_v50  ;;  %6974 = vmatpush3.bf16.msra.mxu0 %v7527_v51  ;;  %v7565_v51 = vld [vmem:[%s9418_s1 + $0xe60] sm:$0xff]  }
 0x1ad   :  { %6975 = vmatprep.subr.bf16.mxu0 %v7529_v53  ;;  %v7566_v53 = vld [vmem:[%s9418_s1 + $0xee0] sm:$0xff]  }
 0x1af   :  { %6996 = vmatpush3.bf16.msra.mxu1 %v7528_v52 }
 0x1b0   :  { %6997 = vmatprep.subr.bf16.mxu1 %v7530_v54  ;;  %6976 = vmatpush3.bf16.msra.mxu0 %v7531_v56  ;;  %v7567_v56 = vld [vmem:[%s9418_s1 + $0xe20] sm:$0xff]  }
 0x1b1   :  { %6977 = vmatprep.subr.bf16.mxu0 %v7533_v60 }
 0x1b3   :  { %6998 = vmatpush3.bf16.msra.mxu1 %v7532_v58 }
 0x1b4   :  { %6999 = vmatprep.subr.bf16.mxu1 %v7534_v63  ;;  %6978 = vmatpush3.bf16.msra.mxu0 %v7535_v2 }
 0x1b5   :  { %6979 = vmatprep.subr.bf16.mxu0 %v7537_v8  ;;  %v7573_v8 = vld [vmem:[%s9418_s1 + $0xe70] sm:$0xff]  }
 0x1b6   :  { %v6677_v55 = vpop.f32.mrb[24].mxu0 }
 0x1b7   :  { %v6699_v57 = vpop.f32.mrb[24].mxu1  ;;  %v6678_v59 = vpop.f32.mrb[25].mxu0  ;;  %7000 = vmatpush3.bf16.msra.mxu1 %v7536_v5 }
 0x1b8   :  { %v6679_v61 = vadd.f32 %v6678_v59, %v6677_v55  ;;  %v6700_v62 = vpop.f32.mrb[25].mxu1  ;;  %v6680_v1 = vpop.f32.mrb[26].mxu0  ;;  %7001 = vmatprep.subr.bf16.mxu1 %v7538_v11  ;;  %6980 = vmatpush3.bf16.msra.mxu0 %v7539_v13  ;;  %v7568_v59 = vld [vmem:[%s9418_s1 + $0xea0] sm:$0xff]   ;;  %v7575_v11 = vld [vmem:[%s9418_s1 + $0xe30] sm:$0xff]   ;;  %v7577_v13 = vld [vmem:[%s9418_s1 + $0xe78] sm:$0xff]  }
 0x1b9   :  { %v6701_v0 = vadd.f32 %v6700_v62, %v6699_v57  ;;  %v6702_v4 = vpop.f32.mrb[26].mxu1  ;;  %v6681_v6 = vpop.f32.mrb[27].mxu0  ;;  %6981 = vmatprep.subr.bf16.mxu0 %v7541_v17  ;;  %v7569_v62 = vld [vmem:[%s9418_s1 + $0xe68] sm:$0xff]   ;;  %v43_v17 = vld [vmem:[%s9419_s0 + $0xe0] sm:$0xff] }
 0x1ba   :  { %v5029_v3 = vadd.f32 %v6679_v61, %v9021_v15  ;;  %v6682_v9 = vadd.f32 %v6681_v6, %v6680_v1  ;;  %v6703_v10 = vpop.f32.mrb[27].mxu1  ;;  %v7540_v15 = vld [vmem:[%s9418_s1 + $0xda8] sm:$0xff]  }
 0x1bb   :  { %v6704_v12 = vadd.f32 %v6703_v10, %v6702_v4  ;;  %7002 = vmatpush3.bf16.msra.mxu1 %v7540_v15  ;;  %v7570_v1 = vld [vmem:[%s9418_s1 + $0xee8] sm:$0xff]   ;;  %v7574_v10 = vld [vmem:[%s9418_s1 + $0xef0] sm:$0xff]   ;;  %v7579_v15 = vld [vmem:[%s9418_s1 + $0xe38] sm:$0xff]  }
 0x1bc   :  { %v9135_v7 = vadd.f32 %v6701_v0, %v5029_v3  ;;  %v5032_v14 = vadd.f32 %v6682_v9, %v9036_v24  ;;  %7003 = vmatprep.subr.bf16.mxu1 %v7542_v18  ;;  %6982 = vmatpush3.bf16.msra.mxu0 %v7543_v19  ;;  %v7548_v24 = vld [vmem:[%s9418_s1 + $0xdb8] sm:$0xff]   ;;  %v7571_v4 = vld [vmem:[%s9418_s1 + $0xe28] sm:$0xff]   ;;  %v75_v18 = vld [vmem:[%s9419_s0 + $0x1e0] sm:$0xff] }
 0x1bd   :  { %6983 = vmatprep.subr.bf16.mxu0 %v7545_v21  ;;  %v7572_v6 = vld [vmem:[%s9418_s1 + $0xea8] sm:$0xff]   ;;  %v5878_v21 = vcombine.high %v43_v17, %v75_v18 }
 0x1be   :  { %v9150_v16 = vadd.f32 %v6704_v12, %v5032_v14  ;;  %v7576_v12 = vld [vmem:[%s9418_s1 + $0xeb0] sm:$0xff]   ;;  %v7578_v14 = vld [vmem:[%s9418_s1 + $0xef8] sm:$0xff]   ;;  %v44_v19 = vld [vmem:[%s9419_s0 + $0xe8] sm:$0xff] }
 0x1bf   :  { %7004 = vmatpush3.bf16.msra.mxu1 %v7544_v20  ;;  %v5877_v20 = vcombine.low %v43_v17, %v75_v18 }
 0x1c0   :  { %7005 = vmatprep.subr.bf16.mxu1 %v7546_v22  ;;  %6984 = vmatpush3.bf16.msra.mxu0 %v7547_v23  ;;  %v76_v22 = vld [vmem:[%s9419_s0 + $0x1e8] sm:$0xff] }
 0x1c1   :  { %7013 = vmatprep.subr.bf16.mxu0 %v7549_v33  ;;  %v5879_v23 = vcombine.low %v44_v19, %v76_v22  ;;  %v7589_v33 = vld [vmem:[%s9418_s1 + $0xf50] sm:$0xff]  }
 0x1c3   :  { %7006 = vmatpush3.bf16.msra.mxu1 %v7548_v24  ;;  %5601 = vmatmul.mubr.bf16.vlgmr.msra.gmra.mrb[52].mxu0 %v5873_v29  ;;  %v5880_v24 = vcombine.high %v44_v19, %v76_v22  ;;  %v7585_v29 = vld [vmem:[%s9418_s1 + $0xf48] sm:$0xff]  }
 0x1c4   :  { %7035 = vmatprep.subr.bf16.mxu1 %v7550_v34  ;;  %7014 = vmatpush3.bf16.msra.mxu0 %v7551_v35  ;;  %v7590_v34 = vld [vmem:[%s9418_s1 + $0xfd0] sm:$0xff]  }
 0x1c5   :  { %7015 = vmatprep.subr.bf16.mxu0 %v7553_v37  ;;  %5682 = vmatprep.mubr.bf16.mxu0 %v5878_v21  ;;  %v7591_v35 = vld [vmem:[%s9418_s1 + $0xf10] sm:$0xff]   ;;  %v7593_v37 = vld [vmem:[%s9418_s1 + $0xf58] sm:$0xff]  }
 0x1c6   :  { %5642 = vmatmul.mubr.bf16.vlgmr.msra.gmra.mrb[52].mxu1 %v5875_v31  ;;  %v7587_v31 = vld [vmem:[%s9418_s1 + $0xf08] sm:$0xff]  }
 0x1c7   :  { %7036 = vmatpush3.bf16.msra.mxu1 %v7552_v36  ;;  %5723 = vmatprep.mubr.bf16.mxu1 %v5880_v24  ;;  %v7592_v36 = vld [vmem:[%s9418_s1 + $0xf90] sm:$0xff]  }
 0x1c8   :  { %7037 = vmatprep.subr.bf16.mxu1 %v7554_v38  ;;  %7016 = vmatpush3.bf16.msra.mxu0 %v7555_v39  ;;  %v7594_v38 = vld [vmem:[%s9418_s1 + $0xfd8] sm:$0xff]  }
 0x1c9   :  { %7017 = vmatprep.subr.bf16.mxu0 %v7557_v41 }
 0x1cb   :  { %7038 = vmatpush3.bf16.msra.mxu1 %v7556_v40  ;;  %v7595_v40 = vld [vmem:[%s9418_s1 + $0xf18] sm:$0xff]  }
 0x1cc   :  { %7039 = vmatprep.subr.bf16.mxu1 %v7558_v42  ;;  %7018 = vmatpush3.bf16.msra.mxu0 %v7559_v43  ;;  %v7596_v42 = vld [vmem:[%s9418_s1 + $0xf98] sm:$0xff]  }
 0x1cd   :  { %7019 = vmatprep.subr.bf16.mxu0 %v7561_v45 }
 0x1cf   :  { %7040 = vmatpush3.bf16.msra.mxu1 %v7560_v44  ;;  %v7597_v44 = vld [vmem:[%s9418_s1 + $0xf60] sm:$0xff]  }
 0x1d0   :  { %7041 = vmatprep.subr.bf16.mxu1 %v7562_v46  ;;  %7020 = vmatpush3.bf16.msra.mxu0 %v7563_v47  ;;  %v7598_v47 = vld [vmem:[%s9418_s1 + $0xfe0] sm:$0xff]  }
 0x1d1   :  { %7021 = vmatprep.subr.bf16.mxu0 %v7565_v51 }
 0x1d3   :  { %7042 = vmatpush3.bf16.msra.mxu1 %v7564_v49 }
 0x1d4   :  { %7043 = vmatprep.subr.bf16.mxu1 %v7566_v53  ;;  %7022 = vmatpush3.bf16.msra.mxu0 %v7567_v56  ;;  %v7600_v53 = vld [vmem:[%s9418_s1 + $0xfa0] sm:$0xff]   ;;  %v7601_v56 = vld [vmem:[%s9418_s1 + $0xf68] sm:$0xff]  }
 0x1d5   :  { %7023 = vmatprep.subr.bf16.mxu0 %v7569_v62 }
 0x1d6   :  { %v6721_v48 = vpop.f32.mrb[28].mxu0 }
 0x1d7   :  { %v6743_v50 = vpop.f32.mrb[28].mxu1  ;;  %v6722_v52 = vpop.f32.mrb[29].mxu0  ;;  %7044 = vmatpush3.bf16.msra.mxu1 %v7568_v59  ;;  %v7602_v59 = vld [vmem:[%s9418_s1 + $0xfe8] sm:$0xff]  }
 0x1d8   :  { %v6723_v54 = vadd.f32 %v6722_v52, %v6721_v48  ;;  %v6744_v55 = vpop.f32.mrb[29].mxu1  ;;  %v6724_v58 = vpop.f32.mrb[30].mxu0  ;;  %7045 = vmatprep.subr.bf16.mxu1 %v7570_v1  ;;  %7024 = vmatpush3.bf16.msra.mxu0 %v7571_v4  ;;  %v7605_v1 = vld [vmem:[%s9418_s1 + $0xf70] sm:$0xff]  }
 0x1d9   :  { %v6745_v57 = vadd.f32 %v6744_v55, %v6743_v50  ;;  %v6746_v61 = vpop.f32.mrb[30].mxu1  ;;  %v6725_v63 = vpop.f32.mrb[31].mxu0  ;;  %7025 = vmatprep.subr.bf16.mxu0 %v7573_v8  ;;  %v7599_v50 = vld [vmem:[%s9418_s1 + $0xf20] sm:$0xff]   ;;  %v7608_v4 = vld [vmem:[%s9418_s1 + $0xfb0] sm:$0xff]   ;;  %v7612_v8 = vld [vmem:[%s9418_s1 + $0xfb8] sm:$0xff]  }
 0x1da   :  { %v5111_v60 = vadd.f32 %v6723_v54, %v9135_v7  ;;  %v6726_v2 = vadd.f32 %v6725_v63, %v6724_v58  ;;  %v6747_v3 = vpop.f32.mrb[31].mxu1  ;;  %v7604_v63 = vld [vmem:[%s9418_s1 + $0xfa8] sm:$0xff]  }
 0x1db   :  { %v6748_v5 = vadd.f32 %v6747_v3, %v6746_v61  ;;  %7046 = vmatpush3.bf16.msra.mxu1 %v7572_v6  ;;  %v7603_v61 = vld [vmem:[%s9418_s1 + $0xf28] sm:$0xff]   ;;  %v7607_v3 = vld [vmem:[%s9418_s1 + $0xf30] sm:$0xff]   ;;  %v7610_v6 = vld [vmem:[%s9418_s1 + $0xff8] sm:$0xff]  }
 0x1dc   :  { %v9252_v0 = vadd.f32 %v6745_v57, %v5111_v60  ;;  %v5114_v7 = vadd.f32 %v6726_v2, %v9150_v16  ;;  %7047 = vmatprep.subr.bf16.mxu1 %v7574_v10  ;;  %7026 = vmatpush3.bf16.msra.mxu0 %v7575_v11  ;;  %v7580_v16 = vld [vmem:[%s9418_s1 + $0xeb8] sm:$0xff]   ;;  %v7606_v2 = vld [vmem:[%s9418_s1 + $0xff0] sm:$0xff]  }
 0x1dd   :  { %7027 = vmatprep.subr.bf16.mxu0 %v7577_v13  ;;  %v77_v10 = vld [vmem:[%s9419_s0 + $0x1f0] sm:$0xff]  ;;  %v46_v13 = vld [vmem:[%s9419_s0 + $0xf8] sm:$0xff] }
 0x1de   :  { %v9267_v9 = vadd.f32 %v6748_v5, %v5114_v7  ;;  %v7609_v5 = vld [vmem:[%s9418_s1 + $0xf78] sm:$0xff]  }
 0x1df   :  { %7048 = vmatpush3.bf16.msra.mxu1 %v7576_v12  ;;  %v7611_v7 = vld [vmem:[%s9418_s1 + $0xf38] sm:$0xff]  }
 0x1e0   :  { %7049 = vmatprep.subr.bf16.mxu1 %v7578_v14  ;;  %7028 = vmatpush3.bf16.msra.mxu0 %v7579_v15  ;;  %v78_v14 = vld [vmem:[%s9419_s0 + $0x1f8] sm:$0xff] }
 0x1e1   :  { %7057 = vmatprep.subr.bf16.mxu0 %v7581_v25  ;;  %v5883_v15 = vcombine.low %v46_v13, %v78_v14 }
 0x1e3   :  { %7050 = vmatpush3.bf16.msra.mxu1 %v7580_v16  ;;  %5683 = vmatmul.mubr.bf16.vlgmr.msra.gmra.mrb[56].mxu0 %v5877_v20  ;;  %v5884_v16 = vcombine.high %v46_v13, %v78_v14 }
 0x1e4   :  { %7079 = vmatprep.subr.bf16.mxu1 %v7582_v26  ;;  %7058 = vmatpush3.bf16.msra.mxu0 %v7583_v27 }
 0x1e5   :  { %7059 = vmatprep.subr.bf16.mxu0 %v7585_v29 }
 0x1e6   :  { %5724 = vmatmul.mubr.bf16.vlgmr.msra.gmra.mrb[56].mxu1 %v5879_v23 }
 0x1e7   :  { %7080 = vmatpush3.bf16.msra.mxu1 %v7584_v28  ;;  %5805 = vmatprep.mubr.bf16.mxu1 %v5884_v16 }
 0x1e8   :  { %7081 = vmatprep.subr.bf16.mxu1 %v7586_v30  ;;  %7060 = vmatpush3.bf16.msra.mxu0 %v7587_v31 }
 0x1e9   :  { %7061 = vmatprep.subr.bf16.mxu0 %v7589_v33 }
 0x1eb   :  { %7082 = vmatpush3.bf16.msra.mxu1 %v7588_v32 }
 0x1ec   :  { %7083 = vmatprep.subr.bf16.mxu1 %v7590_v34  ;;  %7062 = vmatpush3.bf16.msra.mxu0 %v7591_v35 }
 0x1ed   :  { %7063 = vmatprep.subr.bf16.mxu0 %v7593_v37 }
 0x1ef   :  { %7084 = vmatpush3.bf16.msra.mxu1 %v7592_v36 }
 0x1f0   :  { %7085 = vmatprep.subr.bf16.mxu1 %v7594_v38  ;;  %7064 = vmatpush3.bf16.msra.mxu0 %v7595_v40 }
 0x1f1   :  { %7065 = vmatprep.subr.bf16.mxu0 %v7597_v44 }
 0x1f3   :  { %7086 = vmatpush3.bf16.msra.mxu1 %v7596_v42 }
 0x1f4   :  { %7087 = vmatprep.subr.bf16.mxu1 %v7598_v47  ;;  %7066 = vmatpush3.bf16.msra.mxu0 %v7599_v50 }
 0x1f5   :  { %7067 = vmatprep.subr.bf16.mxu0 %v7601_v56 }
 0x1f6   :  { %v6765_v39 = vpop.f32.mrb[32].mxu0 }
 0x1f7   :  { %v6787_v41 = vpop.f32.mrb[32].mxu1  ;;  %v6766_v43 = vpop.f32.mrb[33].mxu0  ;;  %7088 = vmatpush3.bf16.msra.mxu1 %v7600_v53 }
 0x1f8   :  { %v6767_v45 = vadd.f32 %v6766_v43, %v6765_v39  ;;  %v6788_v46 = vpop.f32.mrb[33].mxu1  ;;  %v6768_v49 = vpop.f32.mrb[34].mxu0  ;;  %7089 = vmatprep.subr.bf16.mxu1 %v7602_v59  ;;  %7068 = vmatpush3.bf16.msra.mxu0 %v7603_v61 }
 0x1f9   :  { %v6789_v48 = vadd.f32 %v6788_v46, %v6787_v41  ;;  %v6790_v52 = vpop.f32.mrb[34].mxu1  ;;  %v6769_v54 = vpop.f32.mrb[35].mxu0  ;;  %7069 = vmatprep.subr.bf16.mxu0 %v7605_v1 }
 0x1fa   :  { %v5193_v51 = vadd.f32 %v6767_v45, %v9252_v0  ;;  %v6770_v57 = vadd.f32 %v6769_v54, %v6768_v49  ;;  %v6791_v58 = vpop.f32.mrb[35].mxu1 }
 0x1fb   :  { %v6792_v60 = vadd.f32 %v6791_v58, %v6790_v52  ;;  %7090 = vmatpush3.bf16.msra.mxu1 %v7604_v63 }
 0x1fc   :  { %v5234_v55 = vadd.f32 %v6789_v48, %v5193_v51  ;;  %v5196_v62 = vadd.f32 %v6770_v57, %v9267_v9  ;;  %7091 = vmatprep.subr.bf16.mxu1 %v7606_v2  ;;  %7070 = vmatpush3.bf16.msra.mxu0 %v7607_v3  ;;  %v45_v9 = vld [vmem:[%s9419_s0 + $0xf0] sm:$0xff] }
 0x1fd   :  { %7071 = vmatprep.subr.bf16.mxu0 %v7609_v5  ;;  %v5881_v11 = vcombine.low %v45_v9, %v77_v10  ;;  %v5882_v12 = vcombine.high %v45_v9, %v77_v10 }
 0x1fe   :  { %v5237_v0 = vadd.f32 %v6792_v60, %v5196_v62 }
 0x1ff   :  { %7092 = vmatpush3.bf16.msra.mxu1 %v7608_v4  ;;  %5764 = vmatprep.mubr.bf16.mxu0 %v5882_v12 }
 0x200   :  { %7093 = vmatprep.subr.bf16.mxu1 %v7610_v6  ;;  %7072 = vmatpush3.bf16.msra.mxu0 %v7611_v7 }
 0x203   :  { %7094 = vmatpush3.bf16.msra.mxu1 %v7612_v8  ;;  %5765 = vmatmul.mubr.bf16.vlgmr.msra.gmra.mrb[60].mxu0 %v5881_v11 }
 0x206   :  { %5806 = vmatmul.mubr.bf16.vlgmr.msra.gmra.mrb[60].mxu1 %v5883_v15 }
 0x216   :  { %v6809_v17 = vpop.f32.mrb[36].mxu0 }
 0x217   :  { %v6810_v19 = vpop.f32.mrb[37].mxu0 }
 0x218   :  { %v6811_v20 = vadd.f32 %v6810_v19, %v6809_v17  ;;  %v6812_v22 = vpop.f32.mrb[38].mxu0 }
 0x219   :  { %v6831_v18 = vpop.f32.mrb[36].mxu1  ;;  %v6813_v25 = vpop.f32.mrb[39].mxu0 }
 0x21a   :  { %v6832_v21 = vpop.f32.mrb[37].mxu1  ;;  %v5275_v26 = vadd.f32 %v6811_v20, %v5234_v55  ;;  %v6814_v27 = vadd.f32 %v6813_v25, %v6812_v22 }
 0x21b   :  { %v6833_v23 = vadd.f32 %v6832_v21, %v6831_v18  ;;  %v6834_v24 = vpop.f32.mrb[38].mxu1 }
 0x21c   :  { %v6835_v28 = vpop.f32.mrb[39].mxu1  ;;  %v5278_v31 = vadd.f32 %v6814_v27, %v5237_v0 }
 0x21d   :  { %v6836_v29 = vadd.f32 %v6835_v28, %v6834_v24  ;;  %v5316_v30 = vadd.f32 %v6833_v23, %v5275_v26 }
 0x21f   :  { %v5319_v32 = vadd.f32 %v6836_v29, %v5278_v31 }
 0x236   :  { %v6853_v33 = vpop.f32.mrb[40].mxu0 }
 0x237   :  { %v6854_v35 = vpop.f32.mrb[41].mxu0 }
 0x238   :  { %v6855_v37 = vadd.f32 %v6854_v35, %v6853_v33  ;;  %v6856_v39 = vpop.f32.mrb[42].mxu0 }
 0x239   :  { %v6875_v34 = vpop.f32.mrb[40].mxu1  ;;  %v6857_v41 = vpop.f32.mrb[43].mxu0 }
 0x23a   :  { %v6876_v36 = vpop.f32.mrb[41].mxu1  ;;  %v5357_v43 = vadd.f32 %v6855_v37, %v5316_v30  ;;  %v6858_v44 = vadd.f32 %v6857_v41, %v6856_v39 }
 0x23b   :  { %v6877_v38 = vadd.f32 %v6876_v36, %v6875_v34  ;;  %v6878_v40 = vpop.f32.mrb[42].mxu1 }
 0x23c   :  { %v6879_v42 = vpop.f32.mrb[43].mxu1  ;;  %v5360_v47 = vadd.f32 %v6858_v44, %v5319_v32 }
 0x23d   :  { %v6880_v45 = vadd.f32 %v6879_v42, %v6878_v40  ;;  %v5398_v46 = vadd.f32 %v6877_v38, %v5357_v43 }
 0x23f   :  { %v5401_v48 = vadd.f32 %v6880_v45, %v5360_v47 }
 0x256   :  { %v6897_v49 = vpop.f32.mrb[44].mxu0 }
 0x257   :  { %v6898_v51 = vpop.f32.mrb[45].mxu0 }
 0x258   :  { %v6899_v52 = vadd.f32 %v6898_v51, %v6897_v49  ;;  %v6900_v54 = vpop.f32.mrb[46].mxu0 }
 0x259   :  { %v6919_v50 = vpop.f32.mrb[44].mxu1  ;;  %v6901_v57 = vpop.f32.mrb[47].mxu0 }
 0x25a   :  { %v6920_v53 = vpop.f32.mrb[45].mxu1  ;;  %v5439_v58 = vadd.f32 %v6899_v52, %v5398_v46  ;;  %v6902_v59 = vadd.f32 %v6901_v57, %v6900_v54 }
 0x25b   :  { %v6921_v55 = vadd.f32 %v6920_v53, %v6919_v50  ;;  %v6922_v56 = vpop.f32.mrb[46].mxu1 }
 0x25c   :  { %v6923_v60 = vpop.f32.mrb[47].mxu1  ;;  %v5442_v63 = vadd.f32 %v6902_v59, %v5401_v48 }
 0x25d   :  { %v6924_v61 = vadd.f32 %v6923_v60, %v6922_v56  ;;  %v5480_v62 = vadd.f32 %v6921_v55, %v5439_v58 }
 0x25f   :  { %v5483_v0 = vadd.f32 %v6924_v61, %v5442_v63 }
 0x276   :  { %v6941_v1 = vpop.f32.mrb[48].mxu0 }
 0x277   :  { %v6942_v3 = vpop.f32.mrb[49].mxu0 }
 0x278   :  { %v6943_v4 = vadd.f32 %v6942_v3, %v6941_v1  ;;  %v6944_v6 = vpop.f32.mrb[50].mxu0 }
 0x279   :  { %v6963_v2 = vpop.f32.mrb[48].mxu1  ;;  %v6945_v9 = vpop.f32.mrb[51].mxu0 }
 0x27a   :  { %v6964_v5 = vpop.f32.mrb[49].mxu1  ;;  %v5521_v10 = vadd.f32 %v6943_v4, %v5480_v62  ;;  %v6946_v11 = vadd.f32 %v6945_v9, %v6944_v6 }
 0x27b   :  { %v6965_v7 = vadd.f32 %v6964_v5, %v6963_v2  ;;  %v6966_v8 = vpop.f32.mrb[50].mxu1 }
 0x27c   :  { %v6967_v12 = vpop.f32.mrb[51].mxu1  ;;  %v5524_v15 = vadd.f32 %v6946_v11, %v5483_v0 }
 0x27d   :  { %v6968_v13 = vadd.f32 %v6967_v12, %v6966_v8  ;;  %v5562_v14 = vadd.f32 %v6965_v7, %v5521_v10 }
 0x27f   :  { %v5565_v16 = vadd.f32 %v6968_v13, %v5524_v15 }
 0x296   :  { %v6985_v17 = vpop.f32.mrb[52].mxu0 }
 0x297   :  { %v6986_v19 = vpop.f32.mrb[53].mxu0 }
 0x298   :  { %v6987_v21 = vadd.f32 %v6986_v19, %v6985_v17  ;;  %v6988_v23 = vpop.f32.mrb[54].mxu0 }
 0x299   :  { %v7007_v18 = vpop.f32.mrb[52].mxu1  ;;  %v6989_v25 = vpop.f32.mrb[55].mxu0 }
 0x29a   :  { %v7008_v20 = vpop.f32.mrb[53].mxu1  ;;  %v5603_v27 = vadd.f32 %v6987_v21, %v5562_v14  ;;  %v6990_v28 = vadd.f32 %v6989_v25, %v6988_v23 }
 0x29b   :  { %v7009_v22 = vadd.f32 %v7008_v20, %v7007_v18  ;;  %v7010_v24 = vpop.f32.mrb[54].mxu1 }
 0x29c   :  { %v7011_v26 = vpop.f32.mrb[55].mxu1  ;;  %v5606_v31 = vadd.f32 %v6990_v28, %v5565_v16 }
 0x29d   :  { %v7012_v29 = vadd.f32 %v7011_v26, %v7010_v24  ;;  %v5644_v30 = vadd.f32 %v7009_v22, %v5603_v27 }
 0x29f   :  { %v5647_v32 = vadd.f32 %v7012_v29, %v5606_v31 }
 0x2b6   :  { %v7029_v33 = vpop.f32.mrb[56].mxu0 }
 0x2b7   :  { %v7030_v35 = vpop.f32.mrb[57].mxu0 }
 0x2b8   :  { %v7031_v36 = vadd.f32 %v7030_v35, %v7029_v33  ;;  %v7032_v38 = vpop.f32.mrb[58].mxu0 }
 0x2b9   :  { %v7051_v34 = vpop.f32.mrb[56].mxu1  ;;  %v7033_v41 = vpop.f32.mrb[59].mxu0 }
 0x2ba   :  { %v7052_v37 = vpop.f32.mrb[57].mxu1  ;;  %v5685_v42 = vadd.f32 %v7031_v36, %v5644_v30  ;;  %v7034_v43 = vadd.f32 %v7033_v41, %v7032_v38 }
 0x2bb   :  { %v7053_v39 = vadd.f32 %v7052_v37, %v7051_v34  ;;  %v7054_v40 = vpop.f32.mrb[58].mxu1 }
 0x2bc   :  { %v7055_v44 = vpop.f32.mrb[59].mxu1  ;;  %v5688_v47 = vadd.f32 %v7034_v43, %v5647_v32 }
 0x2bd   :  { %v7056_v45 = vadd.f32 %v7055_v44, %v7054_v40  ;;  %v5726_v46 = vadd.f32 %v7053_v39, %v5685_v42 }
 0x2bf   :  { %v5729_v48 = vadd.f32 %v7056_v45, %v5688_v47 }
 0x2d6   :  { %v7073_v49 = vpop.f32.mrb[60].mxu0 }
 0x2d7   :  { %v7074_v51 = vpop.f32.mrb[61].mxu0 }
 0x2d8   :  { %v7075_v52 = vadd.f32 %v7074_v51, %v7073_v49  ;;  %v7076_v54 = vpop.f32.mrb[62].mxu0 }
 0x2d9   :  { %v7095_v50 = vpop.f32.mrb[60].mxu1  ;;  %v7077_v57 = vpop.f32.mrb[63].mxu0 }
 0x2da   :  { %v7096_v53 = vpop.f32.mrb[61].mxu1  ;;  %v5767_v58 = vadd.f32 %v7075_v52, %v5726_v46  ;;  %v7078_v59 = vadd.f32 %v7077_v57, %v7076_v54 }
 0x2db   :  { %v7097_v55 = vadd.f32 %v7096_v53, %v7095_v50  ;;  %v7098_v56 = vpop.f32.mrb[62].mxu1 }
 0x2dc   :  { %v7099_v60 = vpop.f32.mrb[63].mxu1  ;;  %v5770_v63 = vadd.f32 %v7078_v59, %v5729_v48 }
 0x2dd   :  { %v7100_v61 = vadd.f32 %v7099_v60, %v7098_v56  ;;  %v5808_v62 = vadd.f32 %v7097_v55, %v5767_v58 }
 0x2df   :  { %5814 = vst [vmem:[%s9421_s3] sm:$0xff] %v5808_v62  ;;  %v5811_v0 = vadd.f32 %v7100_v61, %v5770_v63 }
 0x2e1   :  { %5815 = vst [vmem:[%s9421_s3 + $0x8] sm:$0xff] %v5811_v0 }

</bundles_post_ra>
